<compile_context>
chip_gen: v5e
topology: v5e:2x2
jax: 0.10.0
libtpu: 0.0.40
codegen_flags: <defaults>
</compile_context>

<pallas_src>
import functools
import math

import numpy as np

import jax
import jax.numpy as jnp
from jax.experimental import pallas as pl
from jax.experimental.pallas import tpu as pltpu

# --------------------------- model configuration ---------------------------
# TODO(synk): the torch module loads pretrained torchvision VGG (25088-dim
# flatten, 4096-dim classifier); here deterministic synthetic weights at
# scaled-down dims stand in.  Dropout is identity (inference) and the
# iter_num-driven scale schedule is evaluated at iter_num=0.

_FEATURE_CFG = [8, 'M', 16, 'M', 32, 32, 'M']   # mini-VGG; 16x16x3 -> 2x2x32
_IMG = 16                                       # input spatial size
_IN_CH = 3
_POOL_HW = 2                                    # spatial size after features
_C_LAST = 32                                    # channels after features
_FLAT_DIM = _C_LAST * _POOL_HW * _POOL_HW       # 128 (stands in for 25088)
_FC_DIM = 64                                    # stands in for 4096
_HASH_BIT = 16

# per-conv (input H, input W, followed-by-2x2-maxpool?)
_CONV_GEOM = [(16, 16, True), (8, 8, True), (4, 4, False), (4, 4, True)]

# pooled-block widths (all multiples of 128 -> aligned lane slices in kernel)
_POOL1_D = 8 * 8 * 8     # 512
_POOL2_D = 4 * 4 * 16    # 256
_POOL4_D = 2 * 2 * 32    # 128 == _FLAT_DIM


# --------------------- init-time conv -> matmul lowering --------------------

def _conv3x3_same_matrix(w_hwio, H, W):
    """Dense (H*W*cin, H*W*cout) matrix M such that, for an image flattened in
    (h, w, c) row-major order, x_flat @ M equals the 'same'-padded 3x3 conv
    output flattened in (h, w, cout) row-major order."""
    kh, kw, cin, cout = w_hwio.shape
    M = np.zeros((H * W * cin, H * W * cout), np.float32)
    for oy in range(H):
        for ox in range(W):
            c0 = (oy * W + ox) * cout
            for dy in range(kh):
                iy = oy + dy - 1
                if iy < 0 or iy >= H:
                    continue
                for dx in range(kw):
                    ix = ox + dx - 1
                    if ix < 0 or ix >= W:
                        continue
                    r0 = (iy * W + ix) * cin
                    M[r0:r0 + cin, c0:c0 + cout] += w_hwio[dy, dx]
    return M


def _pool_block_perm(H, W, C):
    """Column permutation p (len H*W*C): new column j holds old column p[j].
    New order = four contiguous blocks, one per 2x2-window position
    q = 2*wy + wx, each of size (H/2)*(W/2)*C in (ph, pw, c) row-major order.
    max over the four blocks == 2x2/stride-2 max pool, already in the (h, w, c)
    flatten order the next conv matrix expects."""
    Hp, Wp = H // 2, W // 2
    D = Hp * Wp * C
    p = np.empty(H * W * C, np.int64)
    for q in range(4):
        wy, wx = q // 2, q % 2
        for ph in range(Hp):
            for pw in range(Wp):
                oy, ox = 2 * ph + wy, 2 * pw + wx
                src = (oy * W + ox) * C
                dst = q * D + (ph * Wp + pw) * C
                p[dst:dst + C] = np.arange(src, src + C)
    return p


# ------------------------------ fused kernel -------------------------------

def _vggfc_kernel(x_ref,
                  w1, b1, w2, b2, w3, b3, w4, b4,
                  wf1, bf1, wf2, bf2, wh, bh,
                  o_ref, *, scale):
    """Whole network for one batch block: 10 bf16 matmuls + f32 elementwise."""

    def dense(a, w_ref, b_ref):
        acc = jnp.dot(a.astype(jnp.bfloat16), w_ref[...],
                      preferred_element_type=jnp.float32)
        return acc + b_ref[...]                      # (B, D) + (1, D), f32

    def pool(a, d):
        # 2x2/stride-2 max pool: the conv matrix's columns were permuted so the
        # four window positions are four contiguous, 128-aligned lane blocks.
        return jnp.maximum(jnp.maximum(a[:, 0:d], a[:, d:2 * d]),
                           jnp.maximum(a[:, 2 * d:3 * d], a[:, 3 * d:4 * d]))

    x = x_ref[...]                                   # (B, 768) bf16
    a = jnp.maximum(dense(x, w1, b1), 0.0)           # conv1 + ReLU  (B, 2048)
    a = pool(a, _POOL1_D)                            # maxpool       (B, 512)
    a = jnp.maximum(dense(a, w2, b2), 0.0)           # conv2 + ReLU  (B, 1024)
    a = pool(a, _POOL2_D)                            # maxpool       (B, 256)
    a = jnp.maximum(dense(a, w3, b3), 0.0)           # conv3 + ReLU  (B, 512)
    a = jnp.maximum(dense(a, w4, b4), 0.0)           # conv4 + ReLU  (B, 512)
    a = pool(a, _POOL4_D)                            # maxpool       (B, 128)

    # classifier: Linear+ReLU (+Dropout=identity) x2, rows of wf1 pre-permuted
    # to the kernel's (h, w, c) flatten order.
    a = jnp.maximum(dense(a, wf1, bf1), 0.0)         # fc1 + ReLU    (B, 64)
    a = jnp.maximum(dense(a, wf2, bf2), 0.0)         # fc2 + ReLU    (B, 64)
    # TODO(synk): training-mode Dropout / iter_num increment not implemented.

    y = dense(a, wh, bh)                             # hash layer    (B, 16)
    o_ref[...] = jnp.tanh(scale * y)                 # tanh(scale * y)


# ------------------------------ host wrappers -------------------------------

def vggfc_forward(x_nchw, params, *, batch_block=16):
    # Inference: training=False -> iter_num stays 0 and Dropout is identity.
    iter_num, step_size, gamma, power, init_scale = 0, 200, 0.005, 0.5, 1.0
    if iter_num % step_size == 0:
        scale = init_scale * math.pow(1.0 + gamma * iter_num, power)
    else:
        scale = init_scale

    n = x_nchw.shape[0]
    # NCHW -> NHWC -> (N, H*W*C) flatten, cast once to bf16 on the host.
    x = jnp.transpose(x_nchw.astype(jnp.float32), (0, 2, 3, 1))
    x = x.reshape(n, _IMG * _IMG * _IN_CH).astype(jnp.bfloat16)

    nb = pl.cdiv(n, batch_block)
    n_pad = nb * batch_block
    if n_pad != n:
        x = jnp.pad(x, ((0, n_pad - n), (0, 0)))

    w1, b1, w2, b2, w3, b3, w4, b4 = params['features_mm']
    wf1, bf1 = params['fc1']
    wf2, bf2 = params['fc2']
    wh, bh = params['hash']
    args = (x, w1, b1, w2, b2, w3, b3, w4, b4, wf1, bf1, wf2, bf2, wh, bh)

    def full2d(a):
        return pl.BlockSpec(a.shape, lambda i: (0, 0))   # weight resident

    in_specs = [pl.BlockSpec((batch_block, x.shape[1]), lambda i: (i, 0))]
    in_specs += [full2d(a) for a in args[1:]]

    out = pl.pallas_call(
        functools.partial(_vggfc_kernel, scale=scale),
        grid=(nb,),
        in_specs=in_specs,
        out_specs=pl.BlockSpec((batch_block, _HASH_BIT), lambda i: (i, 0)),
        out_shape=jax.ShapeDtypeStruct((n_pad, _HASH_BIT), jnp.float32),
        compiler_params=pltpu.CompilerParams(
            dimension_semantics=("parallel",),
            vmem_limit_bytes=32 * 1024 * 1024),
    )(*args)
    return out[:n]


def init_params(key):
    """Deterministic synthetic weights (stand-in for pretrained torchvision
    VGG).  Weights are bf16-rounded once so the kernel (bf16 MXU) and the f32
    reference share identical values.  Returns (kernel_params, ref_params)."""

    def bf16_round(a):
        return a.astype(jnp.bfloat16).astype(jnp.float32)

    convs = []
    cin = _IN_CH
    for item in _FEATURE_CFG:
        if item == 'M':
            continue
        key, kw, kb = jax.random.split(key, 3)
        w = bf16_round(jax.random.normal(kw, (3, 3, cin, item), jnp.float32)
                       * math.sqrt(2.0 / (9 * cin)))   # HWIO (torch OIHW transposed)
        b = jax.random.normal(kb, (item,), jnp.float32) * 0.05
        convs.append((w, b))
        cin = item

    key, k1, kb1, k2, kb2, kh = jax.random.split(key, 6)
    w_fc1 = bf16_round(jax.random.normal(k1, (_FLAT_DIM, _FC_DIM), jnp.float32)
                       * math.sqrt(1.0 / _FLAT_DIM))    # (in, out)
    b_fc1 = jax.random.normal(kb1, (_FC_DIM,), jnp.float32) * 0.05
    w_fc2 = bf16_round(jax.random.normal(k2, (_FC_DIM, _FC_DIM), jnp.float32)
                       * math.sqrt(1.0 / _FC_DIM))
    b_fc2 = jax.random.normal(kb2, (_FC_DIM,), jnp.float32) * 0.05
    # hash_layer: weight ~ N(0, 0.01), bias = 0 (exactly as in __init__)
    w_h = bf16_round(jax.random.normal(kh, (_FC_DIM, _HASH_BIT), jnp.float32) * 0.01)
    b_h = jnp.zeros((_HASH_BIT,), jnp.float32)

    ref_params = {'features': convs, 'fc1': (w_fc1, b_fc1),
                  'fc2': (w_fc2, b_fc2), 'hash': (w_h, b_h)}

    # ---- kernel-side: each 3x3 conv lowered to ONE dense bf16 matmul ----
    feats_mm = []
    for (w, b), (H, W, pooled) in zip(convs, _CONV_GEOM):
        w_np = np.asarray(w)
        cout = w_np.shape[3]
        mat = _conv3x3_same_matrix(w_np, H, W)          # (H*W*cin, H*W*cout)
        if pooled:
            mat = mat[:, _pool_block_perm(H, W, cout)]  # pool-friendly columns
        b_full = np.tile(np.asarray(b), H * W)          # per-channel bias, broadcast
        feats_mm += [jnp.asarray(mat, jnp.bfloat16),
                     jnp.asarray(b_full, jnp.float32).reshape(1, -1)]

    # fc1 rows permuted once from torch's (C,H,W) flatten order to the kernel's
    # (h, w, c) pooled order -> single (128, 64) matmul, no transpose/flatten.
    w_fc1_perm = jnp.transpose(
        w_fc1.reshape(_C_LAST, _POOL_HW, _POOL_HW, _FC_DIM), (1, 2, 0, 3)
    ).reshape(_FLAT_DIM, _FC_DIM)

    kernel_params = {
        'features_mm': tuple(feats_mm),
        'fc1': (w_fc1_perm.astype(jnp.bfloat16), b_fc1.reshape(1, -1)),
        'fc2': (w_fc2.astype(jnp.bfloat16), b_fc2.reshape(1, -1)),
        'hash': (w_h.astype(jnp.bfloat16), b_h.reshape(1, -1)),
    }
    return kernel_params, ref_params


def vggfc_reference(x_nchw, ref_params, scale=1.0):
    """Pure-JAX f32 reference with the PyTorch module's exact op sequence."""
    hi = jax.lax.Precision.HIGHEST
    x = jnp.transpose(x_nchw.astype(jnp.float32), (0, 2, 3, 1))          # NHWC
    for idx, (w, b) in enumerate(ref_params['features']):
        x = jax.lax.conv_general_dilated(
            x, w, window_strides=(1, 1), padding='SAME',
            dimension_numbers=('NHWC', 'HWIO', 'NHWC'), precision=hi)
        x = jnp.maximum(x + b, 0.0)
        if _CONV_GEOM[idx][2]:                                           # 2x2/2 maxpool
            nb, h, wd, c = x.shape
            x = jnp.max(x.reshape(nb, h // 2, 2, wd // 2, 2, c), axis=(2, 4))
    n = x.shape[0]
    x = jnp.transpose(x, (0, 3, 1, 2)).reshape(n, _FLAT_DIM)             # torch .view()
    w, b = ref_params['fc1']
    x = jnp.maximum(jnp.dot(x, w, precision=hi) + b, 0.0)                # fc1+ReLU
    w, b = ref_params['fc2']
    x = jnp.maximum(jnp.dot(x, w, precision=hi) + b, 0.0)                # fc2+ReLU
    w, b = ref_params['hash']
    return jnp.tanh(scale * (jnp.dot(x, w, precision=hi) + b))           # hash+tanh


if __name__ == "__main__":
    key = jax.random.PRNGKey(0)
    key, kx = jax.random.split(key)
    n = 32                                            # 2 grid steps of 16 images
    x = jax.random.normal(kx, (n, _IN_CH, _IMG, _IMG), jnp.float32)   # NCHW like PyTorch

    kernel_params, ref_params = init_params(key)

    fwd = jax.jit(functools.partial(vggfc_forward, batch_block=16))
    y = jax.block_until_ready(fwd(x, kernel_params))

    assert y.shape == (n, _HASH_BIT), y.shape
    assert bool(jnp.all(jnp.isfinite(y)))
    assert bool(jnp.all(jnp.abs(y) <= 1.0))           # tanh range

    # correctness vs a pure-JAX f32 reference (real conv / maxpool / torch flatten)
    y_ref = vggfc_reference(x, ref_params)
    max_err = float(jnp.max(jnp.abs(y - y_ref)))
    assert max_err < 5e-2, f"kernel vs f32 reference max abs err {max_err}"
    print("KERNEL_OK")
</pallas_src>

<mosaic_0001>
module attributes {stable_mosaic.version = 11 : i64} {
  func.func @_vggfc_kernel(%arg0: i32, %arg1: memref<16x768xbf16, #tpu.memory_space<vmem>>, %arg2: memref<768x2048xbf16, #tpu.memory_space<vmem>>, %arg3: memref<1x2048xf32, #tpu.memory_space<vmem>>, %arg4: memref<512x1024xbf16, #tpu.memory_space<vmem>>, %arg5: memref<1x1024xf32, #tpu.memory_space<vmem>>, %arg6: memref<256x512xbf16, #tpu.memory_space<vmem>>, %arg7: memref<1x512xf32, #tpu.memory_space<vmem>>, %arg8: memref<512x512xbf16, #tpu.memory_space<vmem>>, %arg9: memref<1x512xf32, #tpu.memory_space<vmem>>, %arg10: memref<128x64xbf16, #tpu.memory_space<vmem>>, %arg11: memref<1x64xf32, #tpu.memory_space<vmem>>, %arg12: memref<64x64xbf16, #tpu.memory_space<vmem>>, %arg13: memref<1x64xf32, #tpu.memory_space<vmem>>, %arg14: memref<64x16xbf16, #tpu.memory_space<vmem>>, %arg15: memref<1x16xf32, #tpu.memory_space<vmem>>, %arg16: memref<16x16xf32, #tpu.memory_space<vmem>>) attributes {dimension_semantics = [#tpu.dimension_semantics<parallel>], iteration_bounds = array<i64: 2>, scalar_prefetch = 0 : i64, scratch_operands = 0 : i64, tpu.core_type = #tpu.core_type<tc>, window_params = [{transform_indices = @transform_0, window_bounds = array<i64: 16, 768>}, {pipeline_mode = #tpu.pipeline_mode<synchronous>, transform_indices = @transform_1, window_bounds = array<i64: 768, 2048>}, {pipeline_mode = #tpu.pipeline_mode<synchronous>, transform_indices = @transform_2, window_bounds = array<i64: 1, 2048>}, {pipeline_mode = #tpu.pipeline_mode<synchronous>, transform_indices = @transform_3, window_bounds = array<i64: 512, 1024>}, {pipeline_mode = #tpu.pipeline_mode<synchronous>, transform_indices = @transform_4, window_bounds = array<i64: 1, 1024>}, {pipeline_mode = #tpu.pipeline_mode<synchronous>, transform_indices = @transform_5, window_bounds = array<i64: 256, 512>}, {pipeline_mode = #tpu.pipeline_mode<synchronous>, transform_indices = @transform_6, window_bounds = array<i64: 1, 512>}, {pipeline_mode = #tpu.pipeline_mode<synchronous>, transform_indices = @transform_7, window_bounds = array<i64: 512, 512>}, {pipeline_mode = #tpu.pipeline_mode<synchronous>, transform_indices = @transform_8, window_bounds = array<i64: 1, 512>}, {pipeline_mode = #tpu.pipeline_mode<synchronous>, transform_indices = @transform_9, window_bounds = array<i64: 128, 64>}, {pipeline_mode = #tpu.pipeline_mode<synchronous>, transform_indices = @transform_10, window_bounds = array<i64: 1, 64>}, {pipeline_mode = #tpu.pipeline_mode<synchronous>, transform_indices = @transform_11, window_bounds = array<i64: 64, 64>}, {pipeline_mode = #tpu.pipeline_mode<synchronous>, transform_indices = @transform_12, window_bounds = array<i64: 1, 64>}, {pipeline_mode = #tpu.pipeline_mode<synchronous>, transform_indices = @transform_13, window_bounds = array<i64: 64, 16>}, {pipeline_mode = #tpu.pipeline_mode<synchronous>, transform_indices = @transform_14, window_bounds = array<i64: 1, 16>}, {transform_indices = @transform_15, window_bounds = array<i64: 16, 16>}]} {
    %c0 = arith.constant 0 : index
    %c0_0 = arith.constant 0 : index
    %0 = vector.load %arg1[%c0, %c0_0] : memref<16x768xbf16, #tpu.memory_space<vmem>>, vector<16x768xbf16>
    %c0_1 = arith.constant 0 : index
    %c0_2 = arith.constant 0 : index
    %1 = vector.load %arg2[%c0_1, %c0_2] : memref<768x2048xbf16, #tpu.memory_space<vmem>>, vector<768x2048xbf16>
    %cst = arith.constant dense<0.000000e+00> : vector<16x2048xf32>
    %2 = tpu.matmul %0, %1, %cst {dimension_numbers = #tpu.dot_dimension_numbers<[1], [0], [0], [1], [0, 0, 1, 1], [], []>} : vector<16x768xbf16>, vector<768x2048xbf16>, vector<16x2048xf32> -> vector<16x2048xf32>
    %c0_3 = arith.constant 0 : index
    %c0_4 = arith.constant 0 : index
    %3 = vector.load %arg3[%c0_3, %c0_4] : memref<1x2048xf32, #tpu.memory_space<vmem>>, vector<1x2048xf32>
    %4 = vector.broadcast %3 : vector<1x2048xf32> to vector<16x2048xf32>
    %5 = arith.addf %2, %4 : vector<16x2048xf32>
    %cst_5 = arith.constant 0.000000e+00 : f32
    %6 = vector.broadcast %cst_5 : f32 to vector<16x2048xf32>
    %7 = arith.maximumf %5, %6 : vector<16x2048xf32>
    %8 = vector.extract_strided_slice %7 {offsets = [0, 0], sizes = [16, 512], strides = [1, 1]} : vector<16x2048xf32> to vector<16x512xf32>
    %9 = vector.extract_strided_slice %7 {offsets = [0, 512], sizes = [16, 512], strides = [1, 1]} : vector<16x2048xf32> to vector<16x512xf32>
    %10 = arith.maximumf %8, %9 : vector<16x512xf32>
    %11 = vector.extract_strided_slice %7 {offsets = [0, 1024], sizes = [16, 512], strides = [1, 1]} : vector<16x2048xf32> to vector<16x512xf32>
    %12 = vector.extract_strided_slice %7 {offsets = [0, 1536], sizes = [16, 512], strides = [1, 1]} : vector<16x2048xf32> to vector<16x512xf32>
    %13 = arith.maximumf %11, %12 : vector<16x512xf32>
    %14 = arith.maximumf %10, %13 : vector<16x512xf32>
    %15 = arith.truncf %14 : vector<16x512xf32> to vector<16x512xbf16>
    %c0_6 = arith.constant 0 : index
    %c0_7 = arith.constant 0 : index
    %16 = vector.load %arg4[%c0_6, %c0_7] : memref<512x1024xbf16, #tpu.memory_space<vmem>>, vector<512x1024xbf16>
    %cst_8 = arith.constant dense<0.000000e+00> : vector<16x1024xf32>
    %17 = tpu.matmul %15, %16, %cst_8 {dimension_numbers = #tpu.dot_dimension_numbers<[1], [0], [0], [1], [0, 0, 1, 1], [], []>} : vector<16x512xbf16>, vector<512x1024xbf16>, vector<16x1024xf32> -> vector<16x1024xf32>
    %c0_9 = arith.constant 0 : index
    %c0_10 = arith.constant 0 : index
    %18 = vector.load %arg5[%c0_9, %c0_10] : memref<1x1024xf32, #tpu.memory_space<vmem>>, vector<1x1024xf32>
    %19 = vector.broadcast %18 : vector<1x1024xf32> to vector<16x1024xf32>
    %20 = arith.addf %17, %19 : vector<16x1024xf32>
    %cst_11 = arith.constant 0.000000e+00 : f32
    %21 = vector.broadcast %cst_11 : f32 to vector<16x1024xf32>
    %22 = arith.maximumf %20, %21 : vector<16x1024xf32>
    %23 = vector.extract_strided_slice %22 {offsets = [0, 0], sizes = [16, 256], strides = [1, 1]} : vector<16x1024xf32> to vector<16x256xf32>
    %24 = vector.extract_strided_slice %22 {offsets = [0, 256], sizes = [16, 256], strides = [1, 1]} : vector<16x1024xf32> to vector<16x256xf32>
    %25 = arith.maximumf %23, %24 : vector<16x256xf32>
    %26 = vector.extract_strided_slice %22 {offsets = [0, 512], sizes = [16, 256], strides = [1, 1]} : vector<16x1024xf32> to vector<16x256xf32>
    %27 = vector.extract_strided_slice %22 {offsets = [0, 768], sizes = [16, 256], strides = [1, 1]} : vector<16x1024xf32> to vector<16x256xf32>
    %28 = arith.maximumf %26, %27 : vector<16x256xf32>
    %29 = arith.maximumf %25, %28 : vector<16x256xf32>
    %30 = arith.truncf %29 : vector<16x256xf32> to vector<16x256xbf16>
    %c0_12 = arith.constant 0 : index
    %c0_13 = arith.constant 0 : index
    %31 = vector.load %arg6[%c0_12, %c0_13] : memref<256x512xbf16, #tpu.memory_space<vmem>>, vector<256x512xbf16>
    %cst_14 = arith.constant dense<0.000000e+00> : vector<16x512xf32>
    %32 = tpu.matmul %30, %31, %cst_14 {dimension_numbers = #tpu.dot_dimension_numbers<[1], [0], [0], [1], [0, 0, 1, 1], [], []>} : vector<16x256xbf16>, vector<256x512xbf16>, vector<16x512xf32> -> vector<16x512xf32>
    %c0_15 = arith.constant 0 : index
    %c0_16 = arith.constant 0 : index
    %33 = vector.load %arg7[%c0_15, %c0_16] : memref<1x512xf32, #tpu.memory_space<vmem>>, vector<1x512xf32>
    %34 = vector.broadcast %33 : vector<1x512xf32> to vector<16x512xf32>
    %35 = arith.addf %32, %34 : vector<16x512xf32>
    %cst_17 = arith.constant 0.000000e+00 : f32
    %36 = vector.broadcast %cst_17 : f32 to vector<16x512xf32>
    %37 = arith.maximumf %35, %36 : vector<16x512xf32>
    %38 = arith.truncf %37 : vector<16x512xf32> to vector<16x512xbf16>
    %c0_18 = arith.constant 0 : index
    %c0_19 = arith.constant 0 : index
    %39 = vector.load %arg8[%c0_18, %c0_19] : memref<512x512xbf16, #tpu.memory_space<vmem>>, vector<512x512xbf16>
    %cst_20 = arith.constant dense<0.000000e+00> : vector<16x512xf32>
    %40 = tpu.matmul %38, %39, %cst_20 {dimension_numbers = #tpu.dot_dimension_numbers<[1], [0], [0], [1], [0, 0, 1, 1], [], []>} : vector<16x512xbf16>, vector<512x512xbf16>, vector<16x512xf32> -> vector<16x512xf32>
    %c0_21 = arith.constant 0 : index
    %c0_22 = arith.constant 0 : index
    %41 = vector.load %arg9[%c0_21, %c0_22] : memref<1x512xf32, #tpu.memory_space<vmem>>, vector<1x512xf32>
    %42 = vector.broadcast %41 : vector<1x512xf32> to vector<16x512xf32>
    %43 = arith.addf %40, %42 : vector<16x512xf32>
    %cst_23 = arith.constant 0.000000e+00 : f32
    %44 = vector.broadcast %cst_23 : f32 to vector<16x512xf32>
    %45 = arith.maximumf %43, %44 : vector<16x512xf32>
    %46 = vector.extract_strided_slice %45 {offsets = [0, 0], sizes = [16, 128], strides = [1, 1]} : vector<16x512xf32> to vector<16x128xf32>
    %47 = vector.extract_strided_slice %45 {offsets = [0, 128], sizes = [16, 128], strides = [1, 1]} : vector<16x512xf32> to vector<16x128xf32>
    %48 = arith.maximumf %46, %47 : vector<16x128xf32>
    %49 = vector.extract_strided_slice %45 {offsets = [0, 256], sizes = [16, 128], strides = [1, 1]} : vector<16x512xf32> to vector<16x128xf32>
    %50 = vector.extract_strided_slice %45 {offsets = [0, 384], sizes = [16, 128], strides = [1, 1]} : vector<16x512xf32> to vector<16x128xf32>
    %51 = arith.maximumf %49, %50 : vector<16x128xf32>
    %52 = arith.maximumf %48, %51 : vector<16x128xf32>
    %53 = arith.truncf %52 : vector<16x128xf32> to vector<16x128xbf16>
    %c0_24 = arith.constant 0 : index
    %c0_25 = arith.constant 0 : index
    %54 = vector.load %arg10[%c0_24, %c0_25] : memref<128x64xbf16, #tpu.memory_space<vmem>>, vector<128x64xbf16>
    %cst_26 = arith.constant dense<0.000000e+00> : vector<16x64xf32>
    %55 = tpu.matmul %53, %54, %cst_26 {dimension_numbers = #tpu.dot_dimension_numbers<[1], [0], [0], [1], [0, 0, 1, 1], [], []>} : vector<16x128xbf16>, vector<128x64xbf16>, vector<16x64xf32> -> vector<16x64xf32>
    %c0_27 = arith.constant 0 : index
    %c0_28 = arith.constant 0 : index
    %56 = vector.load %arg11[%c0_27, %c0_28] : memref<1x64xf32, #tpu.memory_space<vmem>>, vector<1x64xf32>
    %57 = vector.broadcast %56 : vector<1x64xf32> to vector<16x64xf32>
    %58 = arith.addf %55, %57 : vector<16x64xf32>
    %cst_29 = arith.constant 0.000000e+00 : f32
    %59 = vector.broadcast %cst_29 : f32 to vector<16x64xf32>
    %60 = arith.maximumf %58, %59 : vector<16x64xf32>
    %61 = arith.truncf %60 : vector<16x64xf32> to vector<16x64xbf16>
    %c0_30 = arith.constant 0 : index
    %c0_31 = arith.constant 0 : index
    %62 = vector.load %arg12[%c0_30, %c0_31] : memref<64x64xbf16, #tpu.memory_space<vmem>>, vector<64x64xbf16>
    %cst_32 = arith.constant dense<0.000000e+00> : vector<16x64xf32>
    %63 = tpu.matmul %61, %62, %cst_32 {dimension_numbers = #tpu.dot_dimension_numbers<[1], [0], [0], [1], [0, 0, 1, 1], [], []>} : vector<16x64xbf16>, vector<64x64xbf16>, vector<16x64xf32> -> vector<16x64xf32>
    %c0_33 = arith.constant 0 : index
    %c0_34 = arith.constant 0 : index
    %64 = vector.load %arg13[%c0_33, %c0_34] : memref<1x64xf32, #tpu.memory_space<vmem>>, vector<1x64xf32>
    %65 = vector.broadcast %64 : vector<1x64xf32> to vector<16x64xf32>
    %66 = arith.addf %63, %65 : vector<16x64xf32>
    %cst_35 = arith.constant 0.000000e+00 : f32
    %67 = vector.broadcast %cst_35 : f32 to vector<16x64xf32>
    %68 = arith.maximumf %66, %67 : vector<16x64xf32>
    %69 = arith.truncf %68 : vector<16x64xf32> to vector<16x64xbf16>
    %c0_36 = arith.constant 0 : index
    %c0_37 = arith.constant 0 : index
    %70 = vector.load %arg14[%c0_36, %c0_37] : memref<64x16xbf16, #tpu.memory_space<vmem>>, vector<64x16xbf16>
    %cst_38 = arith.constant dense<0.000000e+00> : vector<16x16xf32>
    %71 = tpu.matmul %69, %70, %cst_38 {dimension_numbers = #tpu.dot_dimension_numbers<[1], [0], [0], [1], [0, 0, 1, 1], [], []>} : vector<16x64xbf16>, vector<64x16xbf16>, vector<16x16xf32> -> vector<16x16xf32>
    %c0_39 = arith.constant 0 : index
    %c0_40 = arith.constant 0 : index
    %72 = vector.load %arg15[%c0_39, %c0_40] : memref<1x16xf32, #tpu.memory_space<vmem>>, vector<1x16xf32>
    %73 = vector.broadcast %72 : vector<1x16xf32> to vector<16x16xf32>
    %74 = arith.addf %71, %73 : vector<16x16xf32>
    %cst_41 = arith.constant 1.000000e+00 : f32
    %75 = vector.broadcast %cst_41 : f32 to vector<16x16xf32>
    %76 = arith.mulf %75, %74 : vector<16x16xf32>
    %77 = math.tanh %76 : vector<16x16xf32>
    %c0_42 = arith.constant 0 : index
    %c0_43 = arith.constant 0 : index
    %78 = vector.load %arg16[%c0_42, %c0_43] : memref<16x16xf32, #tpu.memory_space<vmem>>, vector<16x16xf32>
    tpu.vector_store %arg16[%c0_42, %c0_43], %77 {strides = array<i32>} : memref<16x16xf32, #tpu.memory_space<vmem>>, vector<16x16xf32>,
    return
  }
  func.func @transform_0(%arg0: i32) -> (i32, i32) {
    %c0_i32 = arith.constant 0 : i32
    %c0_i32_0 = arith.constant 0 : i32
    return %arg0, %c0_i32 : i32, i32
  }
  func.func @transform_1(%arg0: i32) -> (i32, i32) {
    %c0_i32 = arith.constant 0 : i32
    %c0_i32_0 = arith.constant 0 : i32
    %c0_i32_1 = arith.constant 0 : i32
    return %c0_i32, %c0_i32_0 : i32, i32
  }
  func.func @transform_2(%arg0: i32) -> (i32, i32) {
    %c0_i32 = arith.constant 0 : i32
    %c0_i32_0 = arith.constant 0 : i32
    %c0_i32_1 = arith.constant 0 : i32
    return %c0_i32, %c0_i32_0 : i32, i32
  }
  func.func @transform_3(%arg0: i32) -> (i32, i32) {
    %c0_i32 = arith.constant 0 : i32
    %c0_i32_0 = arith.constant 0 : i32
    %c0_i32_1 = arith.constant 0 : i32
    return %c0_i32, %c0_i32_0 : i32, i32
  }
  func.func @transform_4(%arg0: i32) -> (i32, i32) {
    %c0_i32 = arith.constant 0 : i32
    %c0_i32_0 = arith.constant 0 : i32
    %c0_i32_1 = arith.constant 0 : i32
    return %c0_i32, %c0_i32_0 : i32, i32
  }
  func.func @transform_5(%arg0: i32) -> (i32, i32) {
    %c0_i32 = arith.constant 0 : i32
    %c0_i32_0 = arith.constant 0 : i32
    %c0_i32_1 = arith.constant 0 : i32
    return %c0_i32, %c0_i32_0 : i32, i32
  }
  func.func @transform_6(%arg0: i32) -> (i32, i32) {
    %c0_i32 = arith.constant 0 : i32
    %c0_i32_0 = arith.constant 0 : i32
    %c0_i32_1 = arith.constant 0 : i32
    return %c0_i32, %c0_i32_0 : i32, i32
  }
  func.func @transform_7(%arg0: i32) -> (i32, i32) {
    %c0_i32 = arith.constant 0 : i32
    %c0_i32_0 = arith.constant 0 : i32
    %c0_i32_1 = arith.constant 0 : i32
    return %c0_i32, %c0_i32_0 : i32, i32
  }
  func.func @transform_8(%arg0: i32) -> (i32, i32) {
    %c0_i32 = arith.constant 0 : i32
    %c0_i32_0 = arith.constant 0 : i32
    %c0_i32_1 = arith.constant 0 : i32
    return %c0_i32, %c0_i32_0 : i32, i32
  }
  func.func @transform_9(%arg0: i32) -> (i32, i32) {
    %c0_i32 = arith.constant 0 : i32
    %c0_i32_0 = arith.constant 0 : i32
    %c0_i32_1 = arith.constant 0 : i32
    return %c0_i32, %c0_i32_0 : i32, i32
  }
  func.func @transform_10(%arg0: i32) -> (i32, i32) {
    %c0_i32 = arith.constant 0 : i32
    %c0_i32_0 = arith.constant 0 : i32
    %c0_i32_1 = arith.constant 0 : i32
    return %c0_i32, %c0_i32_0 : i32, i32
  }
  func.func @transform_11(%arg0: i32) -> (i32, i32) {
    %c0_i32 = arith.constant 0 : i32
    %c0_i32_0 = arith.constant 0 : i32
    %c0_i32_1 = arith.constant 0 : i32
    return %c0_i32, %c0_i32_0 : i32, i32
  }
  func.func @transform_12(%arg0: i32) -> (i32, i32) {
    %c0_i32 = arith.constant 0 : i32
    %c0_i32_0 = arith.constant 0 : i32
    %c0_i32_1 = arith.constant 0 : i32
    return %c0_i32, %c0_i32_0 : i32, i32
  }
  func.func @transform_13(%arg0: i32) -> (i32, i32) {
    %c0_i32 = arith.constant 0 : i32
    %c0_i32_0 = arith.constant 0 : i32
    %c0_i32_1 = arith.constant 0 : i32
    return %c0_i32, %c0_i32_0 : i32, i32
  }
  func.func @transform_14(%arg0: i32) -> (i32, i32) {
    %c0_i32 = arith.constant 0 : i32
    %c0_i32_0 = arith.constant 0 : i32
    %c0_i32_1 = arith.constant 0 : i32
    return %c0_i32, %c0_i32_0 : i32, i32
  }
  func.func @transform_15(%arg0: i32) -> (i32, i32) {
    %c0_i32 = arith.constant 0 : i32
    %c0_i32_0 = arith.constant 0 : i32
    return %arg0, %c0_i32 : i32, i32
  }
}

</mosaic_0001>

<bundles_post_ra>
// kernel: vggfc_forward.1
= control target key start
LH: loop header
LB: loop body
LE: loop exit
PB: predicated region body
PF: predicated region fallthrough
CT: control target
= control target key end

     0   :  { %s18479_s0 = inlined_call_operand.vmem [shape: bf16[32,768], index: 0, kind: input, shape index: {}]   ;;  %s18480_s1 = inlined_call_operand.hbm [shape: bf16[768,2048], index: 1, kind: input, shape index: {}]   ;;  %s18481_s2 = inlined_call_operand.hbm [shape: f32[1,2048], index: 2, kind: input, shape index: {}]   ;;  %s18482_s3 = inlined_call_operand.hbm [shape: bf16[512,1024], index: 3, kind: input, shape index: {}]   ;;  %s18483_s4 = inlined_call_operand.hbm [shape: f32[1,1024], index: 4, kind: input, shape index: {}]   ;;  %s18484_s5 = inlined_call_operand.hbm [shape: bf16[256,512], index: 5, kind: input, shape index: {}]   ;;  %s18485_s6 = inlined_call_operand.hbm [shape: f32[1,512], index: 6, kind: input, shape index: {}]   ;;  %s18486_s7 = inlined_call_operand.hbm [shape: bf16[512,512], index: 7, kind: input, shape index: {}]   ;;  %s18487_s8 = inlined_call_operand.hbm [shape: f32[1,512], index: 8, kind: input, shape index: {}]   ;;  %s18488_s9 = inlined_call_operand.vmem [shape: bf16[128,64], index: 9, kind: input, shape index: {}]   ;;  %s18489_s10 = inlined_call_operand.hbm [shape: f32[1,64], index: 10, kind: input, shape index: {}]   ;;  %s18490_s11 = inlined_call_operand.hbm [shape: bf16[64,64], index: 11, kind: input, shape index: {}]   ;;  %s18491_s12 = inlined_call_operand.hbm [shape: f32[1,64], index: 12, kind: input, shape index: {}]   ;;  %s18492_s13 = inlined_call_operand.vmem [shape: bf16[64,16], index: 13, kind: input, shape index: {}]   ;;  %s18493_s14 = inlined_call_operand.hbm [shape: f32[1,16], index: 14, kind: input, shape index: {}]   ;;  %s18494_s15 = inlined_call_operand.vmem [shape: f32[32,16], index: 15, kind: output, shape index: {}]  }
   0x1   :  { %18509 = sst [smem:[#allocation85_spill]] %s18480_s1 }
   0x2   :  { %18510 = sst [smem:[#allocation86_spill]] %s18481_s2 }
   0x3   :  { %18511 = sst [smem:[#allocation87_spill]] %s18483_s4 }
   0x4   :  { %18512 = sst [smem:[#allocation88_spill]] %s18485_s6 }
   0x5   :  { %18513 = sst [smem:[#allocation89_spill]] %s18494_s15 }
   0x6   :  { %20 = vsyncpa [#allocation3], 0 }
   0x7   :  { %21 = vsyncpa [#allocation5], 0 }
   0x8   :  { %22 = vsyncpa [#allocation8], 0 }
   0x9   :  { %23 = vsyncpa [#allocation11], 0 }
   0xa   :  { %24 = vsyncpa [#allocation14], 0 }
   0xb   :  { %25 = vsyncpa [#allocation17], 0 }
   0xc   :  { %26 = vsyncpa [#allocation20], 0  ;;  %s17582_s18 = smov 0  }
   0xd LB: > { %s18514_s2 = sld [smem:[#allocation86_spill]]  ;;  %s18495_s22 = sadd.s32 4294967295, %s17481_s18   ;;  %s17481_s18 = sphi %s17582_s18, %s32_s18  }
   0xe   : > { %p10713_p0 = scmp.ge.s32.totalorder %s17481_s18, 1  ;;  %p383_p1 = scmp.lt.s32.totalorder %s17481_s18, 3 }
   0xf   : > { %p17595_p2 = scmp.eq.s32.totalorder %s18495_s22, 0  ;;  %s17483_s25 = smov [#allocation4]  }
  0x10   : > { %p17599_p3 = pnand %p10713_p0, %p383_p1  ;;  %s411_s26 = sshll.u32 %s17483_s25, 4  ;;  %s412_s26 = int_to_ptr.vmem [resolvable:$true] %s411_s26 }
  0x11   : > { %s18517_s4 = sld [smem:[#allocation87_spill]]  ;;  %s17484_s20 = smov [#allocation7]  }
  0x12   : > { %p16987_p4 = pneg %p17599_p3  ;;  %s18518_s6 = sld [smem:[#allocation88_spill]] }
  0x13   : > { %s409_s21 = sshll.u32 %s18514_s2, 4  ;;  %s437_s25 = sshll.u32 %s17484_s20, 4  ;;  %s410_s21 = int_to_ptr.hbm [resolvable:$true] %s409_s21  ;;  %s438_s25 = int_to_ptr.vmem [resolvable:$true] %s437_s25 }
  0x14   : > { %p17613_p5 = pnand %p17595_p2, %p16987_p4  ;;  %s17485_s27 = smov [#allocation10]  }
  0x15   : > { %s463_s28 = sshll.u32 %s17485_s27, 4  ;;  %s487_s22 = sshll.u32 %s18487_s8, 4  ;;  %s464_s28 = int_to_ptr.vmem [resolvable:$true] %s463_s28  ;;  %s488_s22 = int_to_ptr.hbm [resolvable:$true] %s487_s22 }
  0x16   : > { %16993 = dma.hbm_to_vmem [thread:$0]  (!%p17613_p5), %s410_s21, 256, %s412_s26, [#allocation5]  }
  0x17   : > { %s435_s29 = sshll.u32 %s18517_s4, 4  ;;  %s17486_s2 = smov [#allocation13]   ;;  %s436_s29 = int_to_ptr.hbm [resolvable:$true] %s435_s29 }
  0x18   : > { %s461_s17 = sshll.u32 %s18518_s6, 4  ;;  %s489_s20 = sshll.u32 %s17486_s2, 4  ;;  %s462_s17 = int_to_ptr.hbm [resolvable:$true] %s461_s17  ;;  %s490_s20 = int_to_ptr.vmem [resolvable:$true] %s489_s20 }
  0x19   : > { %16999 = dma.hbm_to_vmem [thread:$0]  (!%p17613_p5), %s436_s29, 128, %s438_s25, [#allocation8]  }
  0x1a   : > { %17005 = dma.hbm_to_vmem [thread:$0]  (!%p17613_p5), %s462_s17, 64, %s464_s28, [#allocation11]  }
  0x1b   : > { %s513_s15 = sshll.u32 %s18490_s11, 4  ;;  %s17487_s21 = smov [#allocation16]   ;;  %s514_s15 = int_to_ptr.hbm [resolvable:$true] %s513_s15 }
  0x1c   : > { %17011 = dma.hbm_to_vmem [thread:$0]  (!%p17613_p5), %s488_s22, 64, %s490_s20, [#allocation14]  }
  0x1d   : > { %s515_s26 = sshll.u32 %s17487_s21, 4  ;;  %s18520_s1 = sld [smem:[#allocation85_spill]]  ;;  %s516_s26 = int_to_ptr.vmem [resolvable:$true] %s515_s26 }
  0x1e   : > { %s17488_s17 = smov 64   ;;  %s17489_s2 = smov 4  }
  0x1f   : > { %17017 = dma.hbm_to_vmem [thread:$0]  (!%p17613_p5), %s514_s15, 512, %s516_s26, [#allocation17], %s17488_s17, %s17488_s17, %s17489_s2  }
  0x20   : > { %s17490_s4 = smov [#allocation2]   ;;  %s420_s16 = sshll.u32 %s18482_s3, 4  ;;  %s421_s16 = int_to_ptr.hbm [resolvable:$true] %s420_s16 }
  0x21   : > { %s396_s6 = sshll.u32 %s17490_s4, 4  ;;  %s17491_s22 = smov 1024   ;;  %s397_s6 = int_to_ptr.vmem [resolvable:$true] %s396_s6 }
  0x22   : > { %s17492_s20 = smov [#allocation6]   ;;  %s17493_s15 = smov 512  }
  0x23   : > { %s394_s27 = sshll.u32 %s18520_s1, 4  ;;  %s422_s21 = sshll.u32 %s17492_s20, 4  ;;  %s395_s27 = int_to_ptr.hbm [resolvable:$true] %s394_s27  ;;  %s423_s21 = int_to_ptr.vmem [resolvable:$true] %s422_s21 }
  0x24   : > { %16990 = dma.hbm_to_vmem [thread:$0]  (!%p17613_p5), %s395_s27, 98304, %s397_s6, [#allocation3], %s17491_s22, %s17491_s22, %s17488_s17  }
  0x25   : > { %s446_s1 = sshll.u32 %s18484_s5, 4  ;;  %s17494_s26 = smov 32   ;;  %s447_s1 = int_to_ptr.hbm [resolvable:$true] %s446_s1 }
  0x26   : > { %16996 = dma.hbm_to_vmem [thread:$0]  (!%p17613_p5), %s421_s16, 32768, %s423_s21, [#allocation5], %s17493_s15, %s17493_s15, %s17494_s26  }
  0x27   : > { %s17495_s2 = smov [#allocation9]   ;;  %s17496_s28 = smov 256  }
  0x28   : > { %s448_s4 = sshll.u32 %s17495_s2, 4  ;;  %s17497_s30 = smov 16   ;;  %s449_s4 = int_to_ptr.vmem [resolvable:$true] %s448_s4 }
  0x29   : > { %17002 = dma.hbm_to_vmem [thread:$0]  (!%p17613_p5), %s447_s1, 8192, %s449_s4, [#allocation8], %s17496_s28, %s17496_s28, %s17497_s30  }
  0x2a   : > { %s472_s6 = sshll.u32 %s18486_s7, 4  ;;  %s17498_s22 = smov [#allocation12]   ;;  %s473_s6 = int_to_ptr.hbm [resolvable:$true] %s472_s6 }
  0x2b   : > { %s474_s20 = sshll.u32 %s17498_s22, 4  ;;  %s502_s21 = sshll.u32 %s18489_s10, 4  ;;  %s475_s20 = int_to_ptr.vmem [resolvable:$true] %s474_s20  ;;  %s503_s21 = int_to_ptr.hbm [resolvable:$true] %s502_s21 }
  0x2c   : > { %17008 = dma.hbm_to_vmem [thread:$0]  (!%p17613_p5), %s473_s6, 16384, %s475_s20, [#allocation11], %s17496_s28, %s17496_s28, %s17497_s30  }
  0x2d   : > { %s17499_s25 = smov [#allocation15]   ;;  %s528_s2 = sshll.u32 %s18491_s12, 4  ;;  %s529_s2 = int_to_ptr.hbm [resolvable:$true] %s528_s2 }
  0x2e   : > { %s504_s15 = sshll.u32 %s17499_s25, 4  ;;  %s543_s17 = sshll.u32 %s18493_s14, 4  ;;  %s505_s15 = int_to_ptr.vmem [resolvable:$true] %s504_s15  ;;  %s544_s17 = int_to_ptr.hbm [resolvable:$true] %s543_s17 }
  0x2f   : > { %17014 = dma.hbm_to_vmem [thread:$0]  (!%p17613_p5), %s503_s21, 16, %s505_s15, [#allocation14]  }
  0x30   : > { %s17500_s22 = smov [#allocation18]   ;;  %s17501_s28 = smov [#allocation19]  }
  0x31   : > { %s530_s29 = sshll.u32 %s17500_s22, 4  ;;  %s545_s30 = sshll.u32 %s17501_s28, 4  ;;  %s531_s29 = int_to_ptr.vmem [resolvable:$true] %s530_s29  ;;  %s546_s30 = int_to_ptr.vmem [resolvable:$true] %s545_s30 }
  0x32   : > { %17020 = dma.hbm_to_vmem [thread:$0]  (!%p17613_p5), %s529_s2, 16, %s531_s29, [#allocation17]  }
  0x33   : > { %17023 = dma.hbm_to_vmem [thread:$0]  (!%p17613_p5), %s544_s17, 16, %s546_s30, [#allocation20]  }
  0x34   : > { %568 = sbr.rel (%p17599_p3) target bundleno = 2388 (0x954), region = 80 }
  0x39   : > { %17452 = dma.done.wait (%p17595_p2), [#allocation3], 98304  }
  0x3a   : > { %17454 = vsyncadd (%p17595_p2), [#allocation3], 4294868992 }
  0x3b   : > { %17456 = dma.done.wait (%p17595_p2), [#allocation5], 33024  }
  0x3c   : > { %17458 = vsyncadd (%p17595_p2), [#allocation5], 4294934272 }
  0x3d   : > { %17460 = dma.done.wait (%p17595_p2), [#allocation8], 8320  }
  0x3e   : > { %17462 = vsyncadd (%p17595_p2), [#allocation8], 4294958976 }
  0x3f   : > { %17464 = dma.done.wait (%p17595_p2), [#allocation11], 16448  }
  0x40   : > { %17466 = vsyncadd (%p17595_p2), [#allocation11], 4294950848 }
  0x41   : > { %17468 = dma.done.wait (%p17595_p2), [#allocation14], 80  }
  0x42   : > { %17470 = vsyncadd (%p17595_p2), [#allocation14], 4294967216 }
  0x43   : > { %17472 = dma.done.wait (%p17595_p2), [#allocation17], 528  }
  0x44   : > { %17474 = vsyncadd (%p17595_p2), [#allocation17], 4294966768 }
  0x45   : > { %17476 = dma.done.wait (%p17595_p2), [#allocation20], 16  }
  0x46   : > { %17478 = vsyncadd (%p17595_p2), [#allocation20], 4294967280  ;;  %v11218_v0 = vld [vmem:[#allocation2 + $0x380] sm:$0xf]  ;;  %s18521_s23 = sadd.s32 4294967295, %s17481_s18   ;;  %vm10459_vm0 = vcmask 523264  }
  0x47   : > { %v15826_v1 = vld [vmem:[#allocation2 + $0x3bc] sm:$0xf0]  ;;  %s17700_s24 = sshll.u32 %s18521_s23, 1  ;;  %s18651_s22 = sld [smem:[#allocation89_spill]]  ;;  %vm10535_vm1 = vcmask 130048  }
  0x48   : > { %v11730_v2 = vld [vmem:[#allocation2 + $0x780] sm:$0xf]  ;;  %v11219_v3 = vor.u32 %v15826_v1, %v11218_v0  ;;  %p674_p6 = scmp.lt.s32.totalorder %s17700_s24, 3 }
  0x49   : > { %v15954_v4 = vld [vmem:[#allocation2 + $0x7bc] sm:$0xf0] }
  0x4a   : > { %v12242_v5 = vld [vmem:[#allocation2 + $0xb80] sm:$0xf]  ;;  %v11731_v7 = vor.u32 %v15954_v4, %v11730_v2  ;;  %5367 = vmatpush.bf16.msra.mxu0 %v11219_v3  ;;  %s18653_s24 = smov (!%p674_p6, %s17700_s24), 3 }
  0x4b   : > { %v16082_v6 = vld [vmem:[#allocation2 + $0xbbc] sm:$0xf0]  ;;  %s16938_s19 = smul.u32 24, %s18653_s24  ;;  %s10743_s4 = sshll.u32 %s18653_s24, 3 }
  0x4c   : > { %v12243_v8 = vor.u32 %v16082_v6, %v12242_v5  ;;  %v12754_v9 = vld [vmem:[#allocation2 + $0xf80] sm:$0xf]  ;;  %5381 = vmatpush.bf16.msra.mxu1 %v11731_v7 }
  0x4d   : > { %v16210_v10 = vld [vmem:[#allocation2 + $0xfbc] sm:$0xf0]  ;;  %s17714_s16 = scalar_lea.vmem %s18479_s0, %s16938_s19  ;;  %s684_s29 = scalar_lea.vmem %s18651_s22, %s10743_s4 }
  0x4e   : > { %v11154_v11 = vld [vmem:[#allocation2 + $0x300] sm:$0xf]  ;;  %v12755_v12 = vor.u32 %v16210_v10, %v12754_v9  ;;  %5395 = vmatpush.bf16.msra.mxu2 %v12243_v8 }
  0x4f   : > { %v15810_v13 = vld [vmem:[#allocation2 + $0x33c] sm:$0xf0] }
  0x50   : > { %v11666_v14 = vld [vmem:[#allocation2 + $0x700] sm:$0xf]  ;;  %v11155_v16 = vor.u32 %v15810_v13, %v11154_v11  ;;  %5409 = vmatpush.bf16.msra.mxu3 %v12755_v12 }
  0x51   : > { %v15938_v15 = vld [vmem:[#allocation2 + $0x73c] sm:$0xf0] }
  0x52   : > { %v11667_v17 = vor.u32 %v15938_v15, %v11666_v14  ;;  %v12178_v18 = vld [vmem:[#allocation2 + $0xb00] sm:$0xf]  ;;  %5368 = vmatpush.bf16.msra.mxu0 %v11155_v16 }
  0x53   : > { %v16066_v19 = vld [vmem:[#allocation2 + $0xb3c] sm:$0xf0] }
  0x54   : > { %v12690_v20 = vld [vmem:[#allocation2 + $0xf00] sm:$0xf]  ;;  %v12179_v21 = vor.u32 %v16066_v19, %v12178_v18  ;;  %5382 = vmatpush.bf16.msra.mxu1 %v11667_v17 }
  0x55   : > { %v16194_v22 = vld [vmem:[#allocation2 + $0xf3c] sm:$0xf0] }
  0x56   : > { %v11090_v23 = vld [vmem:[#allocation2 + $0x280] sm:$0xf]  ;;  %v12691_v25 = vor.u32 %v16194_v22, %v12690_v20  ;;  %5396 = vmatpush.bf16.msra.mxu2 %v12179_v21 }
  0x57   : > { %v15794_v24 = vld [vmem:[#allocation2 + $0x2bc] sm:$0xf0] }
  0x58   : > { %v11602_v26 = vld [vmem:[#allocation2 + $0x680] sm:$0xf]  ;;  %v11091_v29 = vor.u32 %v15794_v24, %v11090_v23  ;;  %5410 = vmatpush.bf16.msra.mxu3 %v12691_v25 }
  0x59   : > { %v15922_v27 = vld [vmem:[#allocation2 + $0x6bc] sm:$0xf0] }
  0x5a   : > { %v12114_v28 = vld [vmem:[#allocation2 + $0xa80] sm:$0xf]  ;;  %v11603_v33 = vor.u32 %v15922_v27, %v11602_v26  ;;  %5369 = vmatpush.bf16.msra.mxu0 %v11091_v29 }
  0x5b   : > { %v16050_v30 = vld [vmem:[#allocation2 + $0xabc] sm:$0xf0] }
  0x5c   : > { %v12626_v31 = vld [vmem:[#allocation2 + $0xe80] sm:$0xf]  ;;  %v12115_v34 = vor.u32 %v16050_v30, %v12114_v28  ;;  %5383 = vmatpush.bf16.msra.mxu1 %v11603_v33  ;;  %v15818_v33 = vld [vmem:[#allocation2 + $0x384] sm:$0xf] }
  0x5d   : > { %v16178_v32 = vld [vmem:[#allocation2 + $0xebc] sm:$0xf0] }
  0x5e   : > { %v11026_v35 = vld [vmem:[#allocation2 + $0x200] sm:$0xf]  ;;  %v12627_v38 = vor.u32 %v16178_v32, %v12626_v31  ;;  %5397 = vmatpush.bf16.msra.mxu2 %v12115_v34  ;;  %v11220_v34 = vld [vmem:[#allocation2 + $0x3c0] sm:$0xf0] }
  0x5f   : > { %v15778_v36 = vld [vmem:[#allocation2 + $0x23c] sm:$0xf0] }
  0x60   : > { %v11538_v37 = vld [vmem:[#allocation2 + $0x600] sm:$0xf]  ;;  %v11027_v44 = vor.u32 %v15778_v36, %v11026_v35  ;;  %5411 = vmatpush.bf16.msra.mxu3 %v12627_v38  ;;  %v11732_v38 = vld [vmem:[#allocation2 + $0x7c0] sm:$0xf0] }
  0x61   : > { %v15906_v39 = vld [vmem:[#allocation2 + $0x63c] sm:$0xf0] }
  0x62   : > { %v12050_v40 = vld [vmem:[#allocation2 + $0xa00] sm:$0xf]  ;;  %v11539_v45 = vor.u32 %v15906_v39, %v11538_v37  ;;  %5370 = vmatpush.bf16.msra.mxu0 %v11027_v44  ;;  %v15946_v37 = vld [vmem:[#allocation2 + $0x784] sm:$0xf] }
  0x63   : > { %v16034_v41 = vld [vmem:[#allocation2 + $0xa3c] sm:$0xf0] }
  0x64   : > { %v12562_v42 = vld [vmem:[#allocation2 + $0xe00] sm:$0xf]  ;;  %v12051_v46 = vor.u32 %v16034_v41, %v12050_v40  ;;  %5384 = vmatpush.bf16.msra.mxu1 %v11539_v45 }
  0x65   : > { %v16162_v43 = vld [vmem:[#allocation2 + $0xe3c] sm:$0xf0] }
  0x66   : > { %v10962_v47 = vld [vmem:[#allocation2 + $0x180] sm:$0xf]  ;;  %v12563_v50 = vor.u32 %v16162_v43, %v12562_v42  ;;  %5398 = vmatpush.bf16.msra.mxu2 %v12051_v46  ;;  %v11223_v43 = vor.u32 %v15818_v33, %v11220_v34  ;;  %v10964_v33 = vld [vmem:[#allocation2 + $0x1c0] sm:$0xf0] }
  0x67   : > { %v15762_v48 = vld [vmem:[#allocation2 + $0x1bc] sm:$0xf0]  ;;  %v15882_v34 = vld [vmem:[#allocation2 + $0x584] sm:$0xf] }
  0x68   : > { %v11474_v49 = vld [vmem:[#allocation2 + $0x580] sm:$0xf]  ;;  %v10963_v56 = vor.u32 %v15762_v48, %v10962_v47  ;;  %5412 = vmatpush.bf16.msra.mxu3 %v12563_v50  ;;  %v11735_v47 = vor.u32 %v15946_v37, %v11732_v38  ;;  %v15802_v48 = vld [vmem:[#allocation2 + $0x304] sm:$0xf] }
  0x69   : > { %v15890_v51 = vld [vmem:[#allocation2 + $0x5bc] sm:$0xf0]  ;;  %v15930_v50 = vld [vmem:[#allocation2 + $0x704] sm:$0xf] }
  0x6a   : > { %v11986_v52 = vld [vmem:[#allocation2 + $0x980] sm:$0xf]  ;;  %v11475_v57 = vor.u32 %v15890_v51, %v11474_v49  ;;  %5371 = vmatpush.bf16.msra.mxu0 %v10963_v56  ;;  %v11156_v49 = vld [vmem:[#allocation2 + $0x340] sm:$0xf0] }
  0x6b   : > { %v16018_v53 = vld [vmem:[#allocation2 + $0x9bc] sm:$0xf0]  ;;  %v11668_v51 = vld [vmem:[#allocation2 + $0x740] sm:$0xf0] }
  0x6c   : > { %v12498_v54 = vld [vmem:[#allocation2 + $0xd80] sm:$0xf]  ;;  %v11987_v58 = vor.u32 %v16018_v53, %v11986_v52  ;;  %5385 = vmatpush.bf16.msra.mxu1 %v11475_v57  ;;  %v15703_v53 = vld [vmem:[%s17714_s16 + $0x14] sm:$0xf0] }
  0x6d   : > { %v16146_v55 = vld [vmem:[#allocation2 + $0xdbc] sm:$0xf0] }
  0x6e   : > { %v10898_v59 = vld [vmem:[#allocation2 + $0x100] sm:$0xf]  ;;  %v12499_v62 = vor.u32 %v16146_v55, %v12498_v54  ;;  %5399 = vmatpush.bf16.msra.mxu2 %v11987_v58 }
  0x6f   : > { %v15746_v60 = vld [vmem:[#allocation2 + $0x13c] sm:$0xf0] }
  0x70   : > { %v11410_v61 = vld [vmem:[#allocation2 + $0x500] sm:$0xf]  ;;  %v10899_v4 = vor.u32 %v15746_v60, %v10898_v59  ;;  %5413 = vmatpush.bf16.msra.mxu3 %v12499_v62  ;;  %v11159_v59 = vor.u32 %v15802_v48, %v11156_v49  ;;  %v15786_v62 = vld [vmem:[#allocation2 + $0x284] sm:$0xf] }
  0x71   : > { %v15874_v63 = vld [vmem:[#allocation2 + $0x53c] sm:$0xf0] }
  0x72   : > { %v11922_v0 = vld [vmem:[#allocation2 + $0x900] sm:$0xf]  ;;  %v11411_v5 = vor.u32 %v15874_v63, %v11410_v61  ;;  %5372 = vmatpush.bf16.msra.mxu0 %v10899_v4  ;;  %v11671_v63 = vor.u32 %v15930_v50, %v11668_v51  ;;  %v11604_v4 = vld [vmem:[#allocation2 + $0x6c0] sm:$0xf0] }
  0x73   : > { %v16002_v1 = vld [vmem:[#allocation2 + $0x93c] sm:$0xf0] }
  0x74   : > { %v12434_v2 = vld [vmem:[#allocation2 + $0xd00] sm:$0xf]  ;;  %v11923_v6 = vor.u32 %v16002_v1, %v11922_v0  ;;  %5386 = vmatpush.bf16.msra.mxu1 %v11411_v5  ;;  %v11092_v0 = vld [vmem:[#allocation2 + $0x2c0] sm:$0xf0] }
  0x75   : > { %v16130_v3 = vld [vmem:[#allocation2 + $0xd3c] sm:$0xf0]  ;;  %v15700_v1 = vld [vmem:[%s17714_s16 + $0x4] sm:$0xf] }
  0x76   : > { %v10834_v7 = vld [vmem:[#allocation2 + $0x80] sm:$0xf]  ;;  %v12435_v10 = vor.u32 %v16130_v3, %v12434_v2  ;;  %5400 = vmatpush.bf16.msra.mxu2 %v11923_v6  ;;  %v10748_v2 = vld [vmem:[%s17714_s16 + $0x18] sm:$0xf0]  ;;  %v15914_v3 = vld [vmem:[#allocation2 + $0x684] sm:$0xf] }
  0x77   : > { %v15730_v8 = vld [vmem:[#allocation2 + $0xbc] sm:$0xf0]  ;;  %v17723_v6 = vor.u32 %v15700_v1, %v10748_v2 }
  0x78   : > { %v11346_v9 = vld [vmem:[#allocation2 + $0x480] sm:$0xf]  ;;  %v10835_v16 = vor.u32 %v15730_v8, %v10834_v7  ;;  %5414 = vmatpush.bf16.msra.mxu3 %v12435_v10 }
  0x79   : > { %v15858_v11 = vld [vmem:[#allocation2 + $0x4bc] sm:$0xf0] }
  0x7a   : > { %v11858_v12 = vld [vmem:[#allocation2 + $0x880] sm:$0xf]  ;;  %v11347_v19 = vor.u32 %v15858_v11, %v11346_v9  ;;  %5373 = vmatpush.bf16.msra.mxu0 %v10835_v16  ;;  %v11607_v16 = vor.u32 %v15914_v3, %v11604_v4  ;;  %v15706_v4 = vld [vmem:[#allocation2 + $0x4] sm:$0xf] }
  0x7b   : > { %v15986_v13 = vld [vmem:[#allocation2 + $0x8bc] sm:$0xf0] }
  0x7c   : > { %v12370_v14 = vld [vmem:[#allocation2 + $0xc80] sm:$0xf]  ;;  %v11859_v20 = vor.u32 %v15986_v13, %v11858_v12  ;;  %5387 = vmatpush.bf16.msra.mxu1 %v11347_v19  ;;  %v11095_v12 = vor.u32 %v15786_v62, %v11092_v0  ;;  %v15770_v13 = vld [vmem:[#allocation2 + $0x204] sm:$0xf] }
  0x7d   : > { %v16114_v15 = vld [vmem:[#allocation2 + $0xcbc] sm:$0xf0]  ;;  %v10756_v19 = vld [vmem:[%s17714_s16 + $0x20] sm:$0xf0] }
  0x7e   : > { %v10770_v17 = vld [vmem:[#allocation2] sm:$0xf]  ;;  %v12371_v24 = vor.u32 %v16114_v15, %v12370_v14  ;;  %5401 = vmatpush.bf16.msra.mxu2 %v11859_v20  ;;  %v11028_v14 = vld [vmem:[#allocation2 + $0x240] sm:$0xf0]  ;;  %v10754_v15 = vld [vmem:[%s17714_s16 + $0x8] sm:$0xf] }
  0x7f   : > { %v15714_v18 = vld [vmem:[#allocation2 + $0x3c] sm:$0xf0]  ;;  %v15898_v20 = vld [vmem:[#allocation2 + $0x604] sm:$0xf] }
  0x80   : > { %v11282_v21 = vld [vmem:[#allocation2 + $0x400] sm:$0xf]  ;;  %v10771_v31 = vor.u32 %v15714_v18, %v10770_v17  ;;  %5415 = vmatpush.bf16.msra.mxu3 %v12371_v24  ;;  %v15701_v18 = vld [vmem:[%s17714_s16 + $0xc] sm:$0xf] }
  0x81   : > { %v15842_v22 = vld [vmem:[#allocation2 + $0x43c] sm:$0xf0] }
  0x82   : > { %v11794_v23 = vld [vmem:[#allocation2 + $0x800] sm:$0xf]  ;;  %v11283_v35 = vor.u32 %v15842_v22, %v11282_v21  ;;  %5374 = vmatpush.bf16.msra.mxu0 %v10771_v31  ;;  %v11540_v21 = vld [vmem:[#allocation2 + $0x640] sm:$0xf0] }
  0x83   : > { %v15970_v25 = vld [vmem:[#allocation2 + $0x83c] sm:$0xf0] }
  0x84   : > { %v12306_v26 = vld [vmem:[#allocation2 + $0xc00] sm:$0xf]  ;;  %v11795_v36 = vor.u32 %v15970_v25, %v11794_v23  ;;  %5388 = vmatpush.bf16.msra.mxu1 %v11283_v35  ;;  %v17732_v23 = vor.u32 %v15701_v18, %v10756_v19  ;;  %v11476_v35 = vld [vmem:[#allocation2 + $0x5c0] sm:$0xf0] }
  0x85   : > { %v16098_v27 = vld [vmem:[#allocation2 + $0xc3c] sm:$0xf0] }
  0x86   : > { %v13266_v28 = vld [vmem:[#allocation2 + $0x1380] sm:$0xf]  ;;  %v12307_v39 = vor.u32 %v16098_v27, %v12306_v26  ;;  %5402 = vmatpush.bf16.msra.mxu2 %v11795_v36  ;;  %v11031_v26 = vor.u32 %v15770_v13, %v11028_v14  ;;  %v12756_v13 = vld [vmem:[#allocation2 + $0xfc0] sm:$0xf0] }
  0x87   : > { %v16338_v29 = vld [vmem:[#allocation2 + $0x13bc] sm:$0xf0]  ;;  %5389 = vmatmul.bf16.vlgmr.msra.gmra.mxu1 %v17723_v6 }
  0x88   : > { %v13778_v30 = vld [vmem:[#allocation2 + $0x1780] sm:$0xf]  ;;  %v13267_v40 = vor.u32 %v16338_v29, %v13266_v28  ;;  %5416 = vmatpush.bf16.msra.mxu3 %v12307_v39 }
  0x89   : > { %v16466_v32 = vld [vmem:[#allocation2 + $0x17bc] sm:$0xf0] }
  0x8a   : > { %v13202_v41 = vld [vmem:[#allocation2 + $0x1300] sm:$0xf]  ;;  %v13779_v42 = vor.u32 %v16466_v32, %v13778_v30  ;;  %5423 = vmatpush.bf16.msrb.mxu0 %v13267_v40  ;;  %5451 = vmatpush.bf16.msrb.mxu2 %v11223_v43  ;;  %v11543_v30 = vor.u32 %v15898_v20, %v11540_v21  ;;  %v15754_v32 = vld [vmem:[#allocation2 + $0x184] sm:$0xf]  ;;  %v10762_v21 = vld [vmem:[%s17714_s16 + $0x10] sm:$0xf] }
  0x8b   : > { %v16322_v44 = vld [vmem:[#allocation2 + $0x133c] sm:$0xf0]  ;;  %5417 = vmatmul.bf16.vlgmr.msra.gmra.mxu3 %v17732_v23  ;;  %v10967_v38 = vor.u32 %v15754_v32, %v10964_v33  ;;  %v13780_v20 = vld [vmem:[#allocation2 + $0x17c0] sm:$0xf0] }
  0x8c   : > { %v13714_v45 = vld [vmem:[#allocation2 + $0x1700] sm:$0xf]  ;;  %v13203_v54 = vor.u32 %v16322_v44, %v13202_v41  ;;  %5437 = vmatpush.bf16.msrb.mxu1 %v13779_v42  ;;  %5465 = vmatpush.bf16.msrb.mxu3 %v11735_v47  ;;  %v11479_v42 = vor.u32 %v15882_v34, %v11476_v35  ;;  %v15738_v44 = vld [vmem:[#allocation2 + $0x104] sm:$0xf] }
  0x8d   : > { %v16450_v46 = vld [vmem:[#allocation2 + $0x173c] sm:$0xf0]  ;;  %v11412_v47 = vld [vmem:[#allocation2 + $0x540] sm:$0xf0] }
  0x8e   : > { %v10746_v52 = vld [vmem:[%s17714_s16] sm:$0xf]  ;;  %v13715_v58 = vor.u32 %v16450_v46, %v13714_v45  ;;  %5424 = vmatpush.bf16.msrb.mxu0 %v13203_v54  ;;  %5452 = vmatpush.bf16.msrb.mxu2 %v11159_v59  ;;  %v10900_v45 = vld [vmem:[#allocation2 + $0x140] sm:$0xf0] }
  0x8f   : > { %v13138_v55 = vld [vmem:[#allocation2 + $0x1280] sm:$0xf]  ;;  %v17718_v57 = vor.u32 %v15703_v53, %v10746_v52  ;;  %v15866_v46 = vld [vmem:[#allocation2 + $0x504] sm:$0xf]  ;;  %v10903_v50 = vor.u32 %v15738_v44, %v10900_v45 }
  0x90   : > { %v16306_v56 = vld [vmem:[#allocation2 + $0x12bc] sm:$0xf0]  ;;  %5438 = vmatpush.bf16.msrb.mxu1 %v13715_v58  ;;  %5466 = vmatpush.bf16.msrb.mxu3 %v11671_v63  ;;  %v11415_v54 = vor.u32 %v15866_v46, %v11412_v47  ;;  %v10836_v58 = vld [vmem:[#allocation2 + $0xc0] sm:$0xf0] }
  0x91   : > { %v13650_v60 = vld [vmem:[#allocation2 + $0x1680] sm:$0xf]  ;;  %5375 = vmatmul.bf16.vlgmr.msra.gmra.mxu0 %v17718_v57  ;;  %v13139_v7 = vor.u32 %v16306_v56, %v13138_v55  ;;  %v15722_v56 = vld [vmem:[#allocation2 + $0x84] sm:$0xf] }
  0x92   : > { %v16434_v61 = vld [vmem:[#allocation2 + $0x16bc] sm:$0xf0]  ;;  %5453 = vmatpush.bf16.msrb.mxu2 %v11095_v12  ;;  %v15850_v59 = vld [vmem:[#allocation2 + $0x484] sm:$0xf]  ;;  %v10839_v2 = vor.u32 %v15722_v56, %v10836_v58 }
  0x93   : > { %v13074_v5 = vld [vmem:[#allocation2 + $0x1200] sm:$0xf]  ;;  %v13651_v11 = vor.u32 %v16434_v61, %v13650_v60  ;;  %5425 = vmatpush.bf16.msrb.mxu0 %v13139_v7  ;;  %v11348_v60 = vld [vmem:[#allocation2 + $0x4c0] sm:$0xf0] }
  0x94   : > { %v16290_v8 = vld [vmem:[#allocation2 + $0x123c] sm:$0xf0]  ;;  %5467 = vmatpush.bf16.msrb.mxu3 %v11607_v16  ;;  %v11351_v7 = vor.u32 %v15850_v59, %v11348_v60  ;;  %v16202_v12 = vld [vmem:[#allocation2 + $0xf84] sm:$0xf] }
  0x95   : > { %v13586_v9 = vld [vmem:[#allocation2 + $0x1600] sm:$0xf]  ;;  %v13075_v24 = vor.u32 %v16290_v8, %v13074_v5  ;;  %5439 = vmatpush.bf16.msrb.mxu1 %v13651_v11  ;;  %v10772_v5 = vld [vmem:[#allocation2 + $0x40] sm:$0xf0] }
  0x96   : > { %v16418_v10 = vld [vmem:[#allocation2 + $0x163c] sm:$0xf0]  ;;  %5454 = vmatpush.bf16.msrb.mxu2 %v11031_v26  ;;  %v15834_v8 = vld [vmem:[#allocation2 + $0x404] sm:$0xf]  ;;  %v10775_v19 = vor.u32 %v15706_v4, %v10772_v5 }
  0x97   : > { %v15704_v17 = vld [vmem:[%s17714_s16 + $0x1c] sm:$0xf0]  ;;  %v13587_v25 = vor.u32 %v16418_v10, %v13586_v9  ;;  %5426 = vmatpush.bf16.msrb.mxu0 %v13075_v24  ;;  %v11284_v9 = vld [vmem:[#allocation2 + $0x440] sm:$0xf0]  ;;  %v15705_v24 = vld [vmem:[%s17714_s16 + $0x24] sm:$0xf0] }
  0x98   : > { %v17730_v22 = vor.u32 %v15704_v17, %v10754_v15  ;;  %v13010_v27 = vld [vmem:[#allocation2 + $0x1180] sm:$0xf]  ;;  %5468 = vmatpush.bf16.msrb.mxu3 %v11543_v30  ;;  %v16074_v10 = vld [vmem:[#allocation2 + $0xb84] sm:$0xf]  ;;  %v17740_v35 = vor.u32 %v15705_v24, %v10762_v21 }
  0x99   : > { %v16274_v28 = vld [vmem:[#allocation2 + $0x11bc] sm:$0xf0]  ;;  %5440 = vmatpush.bf16.msrb.mxu1 %v13587_v25  ;;  %v12244_v11 = vld [vmem:[#allocation2 + $0xbc0] sm:$0xf0]  ;;  %v11287_v25 = vor.u32 %v15834_v8, %v11284_v9 }
  0x9a   : > { %v13522_v29 = vld [vmem:[#allocation2 + $0x1580] sm:$0xf]  ;;  %5403 = vmatmul.bf16.vlgmr.msra.gmra.mxu2 %v17730_v22  ;;  %v13011_v36 = vor.u32 %v16274_v28, %v13010_v27  ;;  %v16330_v15 = vld [vmem:[#allocation2 + $0x1384] sm:$0xf]  ;;  %v12247_v26 = vor.u32 %v16074_v10, %v12244_v11  ;;  %v15702_v27 = vld [vmem:[%s17714_s16 + $0x14] sm:$0xf] }
  0x9b   : > { %v16402_v31 = vld [vmem:[#allocation2 + $0x15bc] sm:$0xf0]  ;;  %5455 = vmatpush.bf16.msrb.mxu2 %v10967_v38  ;;  %v13268_v16 = vld [vmem:[#allocation2 + $0x13c0] sm:$0xf0]  ;;  %v10764_v28 = vld [vmem:[%s17714_s16 + $0x28] sm:$0xf0] }
  0x9c   : > { %v13523_v37 = vor.u32 %v16402_v31, %v13522_v29  ;;  %v12946_v39 = vld [vmem:[#allocation2 + $0x1100] sm:$0xf]  ;;  %5427 = vmatpush.bf16.msrb.mxu0 %v13011_v36  ;;  %5469 = vmatpush.bf16.msrb.mxu3 %v11479_v42  ;;  %v16458_v17 = vld [vmem:[#allocation2 + $0x1784] sm:$0xf]  ;;  %v12759_v29 = vor.u32 %v16202_v12, %v12756_v13  ;;  %v13271_v30 = vor.u32 %v16330_v15, %v13268_v16 }
  0x9d   : > { %v16258_v40 = vld [vmem:[#allocation2 + $0x113c] sm:$0xf0]  ;;  %v16058_v31 = vld [vmem:[#allocation2 + $0xb04] sm:$0xf]  ;;  %v13783_v34 = vor.u32 %v16458_v17, %v13780_v20 }
  0x9e   : > { %v13458_v41 = vld [vmem:[#allocation2 + $0x1500] sm:$0xf]  ;;  %v12947_v48 = vor.u32 %v16258_v40, %v12946_v39  ;;  %5441 = vmatpush.bf16.msrb.mxu1 %v13523_v37  ;;  %v12180_v32 = vld [vmem:[#allocation2 + $0xb40] sm:$0xf0]  ;;  %v17742_v39 = vor.u32 %v15702_v27, %v10764_v28 }
  0x9f   : > { %v16386_v43 = vld [vmem:[#allocation2 + $0x153c] sm:$0xf0]  ;;  %5456 = vmatpush.bf16.msrb.mxu2 %v10903_v50  ;;  %v16186_v33 = vld [vmem:[#allocation2 + $0xf04] sm:$0xf]  ;;  %v12183_v42 = vor.u32 %v16058_v31, %v12180_v32 }
  0xa0   : > { %v13459_v49 = vor.u32 %v16386_v43, %v13458_v41  ;;  %v12882_v51 = vld [vmem:[#allocation2 + $0x1080] sm:$0xf]  ;;  %5428 = vmatpush.bf16.msrb.mxu0 %v12947_v48  ;;  %5470 = vmatpush.bf16.msrb.mxu3 %v11415_v54  ;;  %v12692_v36 = vld [vmem:[#allocation2 + $0xf40] sm:$0xf0] }
  0xa1   : > { %v16242_v52 = vld [vmem:[#allocation2 + $0x10bc] sm:$0xf0]  ;;  %v16314_v37 = vld [vmem:[#allocation2 + $0x1304] sm:$0xf]  ;;  %v12695_v43 = vor.u32 %v16186_v33, %v12692_v36 }
  0xa2   : > { %v13394_v53 = vld [vmem:[#allocation2 + $0x1480] sm:$0xf]  ;;  %v12883_v61 = vor.u32 %v16242_v52, %v12882_v51  ;;  %5442 = vmatpush.bf16.msrb.mxu1 %v13459_v49  ;;  %v13204_v38 = vld [vmem:[#allocation2 + $0x1340] sm:$0xf0] }
  0xa3   : > { %v16370_v55 = vld [vmem:[#allocation2 + $0x14bc] sm:$0xf0]  ;;  %5457 = vmatpush.bf16.msrb.mxu2 %v10839_v2  ;;  %v16442_v40 = vld [vmem:[#allocation2 + $0x1704] sm:$0xf]  ;;  %v13207_v44 = vor.u32 %v16314_v37, %v13204_v38 }
  0xa4   : > { %v12818_v62 = vld [vmem:[#allocation2 + $0x1000] sm:$0xf]  ;;  %v13395_v1 = vor.u32 %v16370_v55, %v13394_v53  ;;  %5429 = vmatpush.bf16.msrb.mxu0 %v12883_v61  ;;  %5471 = vmatpush.bf16.msrb.mxu3 %v11351_v7  ;;  %v13716_v41 = vld [vmem:[#allocation2 + $0x1740] sm:$0xf0] }
  0xa5   : > { %v16226_v63 = vld [vmem:[#allocation2 + $0x103c] sm:$0xf0]  ;;  %v16042_v45 = vld [vmem:[#allocation2 + $0xa84] sm:$0xf]  ;;  %v13719_v48 = vor.u32 %v16442_v40, %v13716_v41 }
  0xa6   : > { %v13330_v0 = vld [vmem:[#allocation2 + $0x1400] sm:$0xf]  ;;  %v12819_v14 = vor.u32 %v16226_v63, %v12818_v62  ;;  %5443 = vmatpush.bf16.msrb.mxu1 %v13395_v1  ;;  %v12116_v46 = vld [vmem:[#allocation2 + $0xac0] sm:$0xf0] }
  0xa7   : > { %v16354_v3 = vld [vmem:[#allocation2 + $0x143c] sm:$0xf0]  ;;  %5458 = vmatpush.bf16.msrb.mxu2 %v10775_v19  ;;  %v16170_v47 = vld [vmem:[#allocation2 + $0xe84] sm:$0xf]  ;;  %v12119_v54 = vor.u32 %v16042_v45, %v12116_v46 }
  0xa8   : > { %v13331_v18 = vor.u32 %v16354_v3, %v13330_v0  ;;  %5430 = vmatpush.bf16.msrb.mxu0 %v12819_v14  ;;  %5472 = vmatpush.bf16.msrb.mxu3 %v11287_v25  ;;  %v12628_v49 = vld [vmem:[#allocation2 + $0xec0] sm:$0xf0] }
  0xa9   : > { %v16298_v50 = vld [vmem:[#allocation2 + $0x1284] sm:$0xf]  ;;  %v12631_v55 = vor.u32 %v16170_v47, %v12628_v49 }
  0xaa   : > { %5444 = vmatpush.bf16.msrb.mxu1 %v13331_v18  ;;  %v13140_v51 = vld [vmem:[#allocation2 + $0x12c0] sm:$0xf0]  ;;  %5459 = vmatmul.bf16.vlgmr.msrb.gmra.mxu2 %v17718_v57 }
  0xab   : > { %5507 = vmatpush.bf16.msra.mxu2 %v13271_v30  ;;  %5431 = vmatmul.bf16.vlgmr.msrb.gmra.mxu0 %v17740_v35  ;;  %v16426_v52 = vld [vmem:[#allocation2 + $0x1684] sm:$0xf]  ;;  %v13143_v56 = vor.u32 %v16298_v50, %v13140_v51 }
  0xac   : > { %5479 = vmatpush.bf16.msra.mxu0 %v12247_v26  ;;  %5521 = vmatpush.bf16.msra.mxu3 %v13783_v34  ;;  %v13652_v53 = vld [vmem:[#allocation2 + $0x16c0] sm:$0xf0] }
  0xad   : > { %5445 = vmatmul.bf16.vlgmr.msrb.gmra.mxu1 %v17742_v39  ;;  %5473 = vmatmul.bf16.vlgmr.msrb.gmra.mxu3 %v17723_v6  ;;  %v16026_v58 = vld [vmem:[#allocation2 + $0xa04] sm:$0xf]  ;;  %v13655_v61 = vor.u32 %v16426_v52, %v13652_v53 }
  0xae   : > { %5493 = vmatpush.bf16.msra.mxu1 %v12759_v29  ;;  %v12052_v59 = vld [vmem:[#allocation2 + $0xa40] sm:$0xf0] }
  0xaf   : > { %5508 = vmatpush.bf16.msra.mxu2 %v13207_v44  ;;  %v16154_v60 = vld [vmem:[#allocation2 + $0xe04] sm:$0xf]  ;;  %v12055_v3 = vor.u32 %v16026_v58, %v12052_v59  ;;  %v15827_v58 = vld [vmem:[#allocation2 + $0x3c4] sm:$0xf0] }
  0xb0   : > { %5480 = vmatpush.bf16.msra.mxu0 %v12183_v42  ;;  %5522 = vmatpush.bf16.msra.mxu3 %v13719_v48  ;;  %v12564_v62 = vld [vmem:[#allocation2 + $0xe40] sm:$0xf0]  ;;  %v11738_v59 = vld [vmem:[#allocation2 + $0x788] sm:$0xf] }
  0xb1   : > { %v16282_v63 = vld [vmem:[#allocation2 + $0x1204] sm:$0xf]  ;;  %v12567_v4 = vor.u32 %v16154_v60, %v12564_v62  ;;  %v15955_v60 = vld [vmem:[#allocation2 + $0x7c4] sm:$0xf0] }
  0xb2   : > { %5494 = vmatpush.bf16.msra.mxu1 %v12695_v43  ;;  %v13076_v0 = vld [vmem:[#allocation2 + $0x1240] sm:$0xf0]  ;;  %v12250_v62 = vld [vmem:[#allocation2 + $0xb88] sm:$0xf] }
  0xb3   : > { %v16410_v1 = vld [vmem:[#allocation2 + $0x1604] sm:$0xf]  ;;  %5509 = vmatpush.bf16.msra.mxu2 %v13143_v56  ;;  %v13079_v5 = vor.u32 %v16282_v63, %v13076_v0  ;;  %v11226_v56 = vld [vmem:[#allocation2 + $0x388] sm:$0xf] }
  0xb4   : > { %v13588_v2 = vld [vmem:[#allocation2 + $0x1640] sm:$0xf0]  ;;  %5481 = vmatpush.bf16.msra.mxu0 %v12119_v54  ;;  %5523 = vmatpush.bf16.msra.mxu3 %v13655_v61  ;;  %v16083_v63 = vld [vmem:[#allocation2 + $0xbc4] sm:$0xf0] }
  0xb5   : > { %v16010_v7 = vld [vmem:[#allocation2 + $0x984] sm:$0xf]  ;;  %v13591_v10 = vor.u32 %v16410_v1, %v13588_v2  ;;  %v12762_v2 = vld [vmem:[#allocation2 + $0xf88] sm:$0xf] }
  0xb6   : > { %5495 = vmatpush.bf16.msra.mxu1 %v12631_v55  ;;  %v11988_v8 = vld [vmem:[#allocation2 + $0x9c0] sm:$0xf0] }
  0xb7   : > { %v16138_v9 = vld [vmem:[#allocation2 + $0xd84] sm:$0xf]  ;;  %v11991_v16 = vor.u32 %v16010_v7, %v11988_v8  ;;  %5510 = vmatpush.bf16.msra.mxu2 %v13079_v5  ;;  %v11227_v5 = vor.u32 %v15827_v58, %v11226_v56  ;;  %v11739_v7 = vor.u32 %v15955_v60, %v11738_v59  ;;  %v12251_v8 = vor.u32 %v16083_v63, %v12250_v62  ;;  %v12506_v56 = vld [vmem:[#allocation2 + $0xd88] sm:$0xf] }
  0xb8   : > { %v12500_v11 = vld [vmem:[#allocation2 + $0xdc0] sm:$0xf0]  ;;  %5482 = vmatpush.bf16.msra.mxu0 %v12055_v3  ;;  %5524 = vmatpush.bf16.msra.mxu3 %v13591_v10  ;;  %v16211_v3 = vld [vmem:[#allocation2 + $0xfc4] sm:$0xf0] }
  0xb9   : > { %v16266_v12 = vld [vmem:[#allocation2 + $0x1184] sm:$0xf]  ;;  %v12503_v17 = vor.u32 %v16138_v9, %v12500_v11  ;;  %v11162_v9 = vld [vmem:[#allocation2 + $0x308] sm:$0xf] }
  0xba   : > { %v13012_v13 = vld [vmem:[#allocation2 + $0x11c0] sm:$0xf0]  ;;  %5496 = vmatpush.bf16.msra.mxu1 %v12567_v4  ;;  %v15811_v10 = vld [vmem:[#allocation2 + $0x344] sm:$0xf0] }
  0xbb   : > { %v16394_v14 = vld [vmem:[#allocation2 + $0x1584] sm:$0xf]  ;;  %v13015_v18 = vor.u32 %v16266_v12, %v13012_v13  ;;  %v11674_v11 = vld [vmem:[#allocation2 + $0x708] sm:$0xf]  ;;  %v12763_v12 = vor.u32 %v16211_v3, %v12762_v2 }
  0xbc   : > { %v13524_v15 = vld [vmem:[#allocation2 + $0x15c0] sm:$0xf0]  ;;  %5483 = vmatpush.bf16.msra.mxu0 %v11991_v16  ;;  %v15939_v13 = vld [vmem:[#allocation2 + $0x744] sm:$0xf0] }
  0xbd   : > { %v15994_v19 = vld [vmem:[#allocation2 + $0x904] sm:$0xf]  ;;  %v13527_v24 = vor.u32 %v16394_v14, %v13524_v15  ;;  %5511 = vmatpush.bf16.msra.mxu2 %v13015_v18  ;;  %v12186_v14 = vld [vmem:[#allocation2 + $0xb08] sm:$0xf]  ;;  %v11163_v18 = vor.u32 %v15811_v10, %v11162_v9 }
  0xbe   : > { %v11924_v20 = vld [vmem:[#allocation2 + $0x940] sm:$0xf0]  ;;  %5497 = vmatpush.bf16.msra.mxu1 %v12503_v17  ;;  %v16067_v15 = vld [vmem:[#allocation2 + $0xb44] sm:$0xf0] }
  0xbf   : > { %v16122_v21 = vld [vmem:[#allocation2 + $0xd04] sm:$0xf]  ;;  %v11927_v30 = vor.u32 %v15994_v19, %v11924_v20  ;;  %5525 = vmatpush.bf16.msra.mxu3 %v13527_v24  ;;  %v12698_v16 = vld [vmem:[#allocation2 + $0xf08] sm:$0xf]  ;;  %v11675_v19 = vor.u32 %v15939_v13, %v11674_v11  ;;  %v12187_v20 = vor.u32 %v16067_v15, %v12186_v14 }
  0xc0   : > { %v12436_v25 = vld [vmem:[#allocation2 + $0xd40] sm:$0xf0]  ;;  %v16195_v17 = vld [vmem:[#allocation2 + $0xf44] sm:$0xf0] }
  0xc1   : > { %v16250_v26 = vld [vmem:[#allocation2 + $0x1104] sm:$0xf]  ;;  %v12439_v31 = vor.u32 %v16122_v21, %v12436_v25  ;;  %5484 = vmatpush.bf16.msra.mxu0 %v11927_v30  ;;  %v11098_v21 = vld [vmem:[#allocation2 + $0x288] sm:$0xf] }
  0xc2   : > { %v12948_v27 = vld [vmem:[#allocation2 + $0x1140] sm:$0xf0]  ;;  %v15795_v24 = vld [vmem:[#allocation2 + $0x2c4] sm:$0xf0] }
  0xc3   : > { %v16378_v28 = vld [vmem:[#allocation2 + $0x1504] sm:$0xf]  ;;  %v12951_v32 = vor.u32 %v16250_v26, %v12948_v27  ;;  %5498 = vmatpush.bf16.msra.mxu1 %v12439_v31  ;;  %v11610_v25 = vld [vmem:[#allocation2 + $0x688] sm:$0xf]  ;;  %v12699_v26 = vor.u32 %v16195_v17, %v12698_v16 }
  0xc4   : > { %v13460_v29 = vld [vmem:[#allocation2 + $0x1540] sm:$0xf0]  ;;  %v15923_v27 = vld [vmem:[#allocation2 + $0x6c4] sm:$0xf0] }
  0xc5   : > { %v15978_v33 = vld [vmem:[#allocation2 + $0x884] sm:$0xf]  ;;  %v13463_v37 = vor.u32 %v16378_v28, %v13460_v29  ;;  %5512 = vmatpush.bf16.msra.mxu2 %v12951_v32  ;;  %v12122_v28 = vld [vmem:[#allocation2 + $0xa88] sm:$0xf]  ;;  %v11099_v32 = vor.u32 %v15795_v24, %v11098_v21 }
  0xc6   : > { %v11860_v34 = vld [vmem:[#allocation2 + $0x8c0] sm:$0xf0]  ;;  %v16051_v29 = vld [vmem:[#allocation2 + $0xac4] sm:$0xf0] }
  0xc7   : > { %v16106_v36 = vld [vmem:[#allocation2 + $0xc84] sm:$0xf]  ;;  %v11863_v45 = vor.u32 %v15978_v33, %v11860_v34  ;;  %5526 = vmatpush.bf16.msra.mxu3 %v13463_v37  ;;  %v12634_v30 = vld [vmem:[#allocation2 + $0xe88] sm:$0xf]  ;;  %v11611_v33 = vor.u32 %v15923_v27, %v11610_v25  ;;  %v12123_v34 = vor.u32 %v16051_v29, %v12122_v28 }
  0xc8   : > { %v12372_v38 = vld [vmem:[#allocation2 + $0xcc0] sm:$0xf0]  ;;  %v16179_v31 = vld [vmem:[#allocation2 + $0xec4] sm:$0xf0] }
  0xc9   : > { %v16234_v40 = vld [vmem:[#allocation2 + $0x1084] sm:$0xf]  ;;  %v12375_v49 = vor.u32 %v16106_v36, %v12372_v38  ;;  %5485 = vmatpush.bf16.msra.mxu0 %v11863_v45  ;;  %v11034_v36 = vld [vmem:[#allocation2 + $0x208] sm:$0xf] }
  0xca   : > { %v12884_v41 = vld [vmem:[#allocation2 + $0x10c0] sm:$0xf0]  ;;  %v15779_v37 = vld [vmem:[#allocation2 + $0x244] sm:$0xf0] }
  0xcb   : > { %v16362_v42 = vld [vmem:[#allocation2 + $0x1484] sm:$0xf]  ;;  %v12887_v50 = vor.u32 %v16234_v40, %v12884_v41  ;;  %5499 = vmatpush.bf16.msra.mxu1 %v12375_v49  ;;  %v11546_v38 = vld [vmem:[#allocation2 + $0x608] sm:$0xf]  ;;  %v12635_v40 = vor.u32 %v16179_v31, %v12634_v30 }
  0xcc   : > { %v13396_v43 = vld [vmem:[#allocation2 + $0x14c0] sm:$0xf0]  ;;  %v15907_v41 = vld [vmem:[#allocation2 + $0x644] sm:$0xf0] }
  0xcd   : > { %v15962_v44 = vld [vmem:[#allocation2 + $0x804] sm:$0xf]  ;;  %v13399_v54 = vor.u32 %v16362_v42, %v13396_v43  ;;  %5513 = vmatpush.bf16.msra.mxu2 %v12887_v50  ;;  %v12058_v42 = vld [vmem:[#allocation2 + $0xa08] sm:$0xf] }
  0xce   : > { %v11796_v46 = vld [vmem:[#allocation2 + $0x840] sm:$0xf0]  ;;  %v16035_v43 = vld [vmem:[#allocation2 + $0xa44] sm:$0xf0] }
  0xcf   : > { %v16090_v47 = vld [vmem:[#allocation2 + $0xc04] sm:$0xf]  ;;  %v11799_v61 = vor.u32 %v15962_v44, %v11796_v46  ;;  %5527 = vmatpush.bf16.msra.mxu3 %v13399_v54  ;;  %v12570_v44 = vld [vmem:[#allocation2 + $0xe08] sm:$0xf]  ;;  %v11035_v46 = vor.u32 %v15779_v37, %v11034_v36 }
  0xd0   : > { %v12308_v48 = vld [vmem:[#allocation2 + $0xc40] sm:$0xf0]  ;;  %v16163_v45 = vld [vmem:[#allocation2 + $0xe44] sm:$0xf0] }
  0xd1   : > { %v16218_v51 = vld [vmem:[#allocation2 + $0x1004] sm:$0xf]  ;;  %v12311_v0 = vor.u32 %v16090_v47, %v12308_v48  ;;  %5486 = vmatpush.bf16.msra.mxu0 %v11799_v61  ;;  %v11547_v47 = vor.u32 %v15907_v41, %v11546_v38  ;;  %v12059_v48 = vor.u32 %v16035_v43, %v12058_v42  ;;  %v10970_v49 = vld [vmem:[#allocation2 + $0x188] sm:$0xf]  ;;  %v15819_v41 = vld [vmem:[#allocation2 + $0x38c] sm:$0xf] }
  0xd2   : > { %v12820_v52 = vld [vmem:[#allocation2 + $0x1040] sm:$0xf0]  ;;  %v15763_v50 = vld [vmem:[#allocation2 + $0x1c4] sm:$0xf0]  ;;  %v11228_v42 = vld [vmem:[#allocation2 + $0x3c8] sm:$0xf0] }
  0xd3   : > { %v16346_v53 = vld [vmem:[#allocation2 + $0x1404] sm:$0xf]  ;;  %v12823_v1 = vor.u32 %v16218_v51, %v12820_v52  ;;  %5500 = vmatpush.bf16.msra.mxu1 %v12311_v0  ;;  %v11482_v51 = vld [vmem:[#allocation2 + $0x588] sm:$0xf]  ;;  %v12571_v52 = vor.u32 %v16163_v45, %v12570_v44  ;;  %v10971_v59 = vor.u32 %v15763_v50, %v10970_v49  ;;  %v15947_v45 = vld [vmem:[#allocation2 + $0x78c] sm:$0xf]  ;;  %v11231_v50 = vor.u32 %v15819_v41, %v11228_v42 }
  0xd4   : > { %v13332_v55 = vld [vmem:[#allocation2 + $0x1440] sm:$0xf0]  ;;  %5487 = vmatmul.bf16.vlgmr.msra.gmra.mxu0 %v17730_v22  ;;  %v11994_v54 = vld [vmem:[#allocation2 + $0x988] sm:$0xf] }
  0xd5   : > { %v13335_v4 = vor.u32 %v16346_v53, %v13332_v55  ;;  %5514 = vmatpush.bf16.msra.mxu2 %v12823_v1  ;;  %5535 = vmatpush.bf16.msrb.mxu0 %v11227_v5  ;;  %v15891_v53 = vld [vmem:[#allocation2 + $0x5c4] sm:$0xf0] }
  0xd6   : > { %5501 = vmatmul.bf16.vlgmr.msra.gmra.mxu1 %v17732_v23  ;;  %v16019_v55 = vld [vmem:[#allocation2 + $0x9c4] sm:$0xf0]  ;;  %v11483_v60 = vor.u32 %v15891_v53, %v11482_v51 }
  0xd7   : > { %5528 = vmatpush.bf16.msra.mxu3 %v13335_v4  ;;  %5549 = vmatpush.bf16.msrb.mxu1 %v11739_v7  ;;  %v16147_v58 = vld [vmem:[#allocation2 + $0xdc4] sm:$0xf0]  ;;  %v11995_v61 = vor.u32 %v16019_v55, %v11994_v54 }
  0xd8   : > { %5515 = vmatmul.bf16.vlgmr.msra.gmra.mxu2 %v17740_v35  ;;  %v10906_v62 = vld [vmem:[#allocation2 + $0x108] sm:$0xf]  ;;  %v12507_v1 = vor.u32 %v16147_v58, %v12506_v56  ;;  %v15803_v56 = vld [vmem:[#allocation2 + $0x30c] sm:$0xf] }
  0xd9   : > { %5563 = vmatpush.bf16.msrb.mxu2 %v12251_v8  ;;  %5536 = vmatpush.bf16.msrb.mxu0 %v11163_v18  ;;  %v15747_v63 = vld [vmem:[#allocation2 + $0x144] sm:$0xf0]  ;;  %v11164_v58 = vld [vmem:[#allocation2 + $0x348] sm:$0xf0] }
  0xda   : > { %5529 = vmatmul.bf16.vlgmr.msra.gmra.mxu3 %v17742_v39  ;;  %v11418_v0 = vld [vmem:[#allocation2 + $0x508] sm:$0xf]  ;;  %v10907_v8 = vor.u32 %v15747_v63, %v10906_v62  ;;  %v11167_v63 = vor.u32 %v15803_v56, %v11164_v58 }
  0xdb   : > { %5577 = vmatpush.bf16.msrb.mxu3 %v12763_v12  ;;  %5550 = vmatpush.bf16.msrb.mxu1 %v11675_v19  ;;  %v15875_v2 = vld [vmem:[#allocation2 + $0x544] sm:$0xf0] }
  0xdc   : > { %v11930_v3 = vld [vmem:[#allocation2 + $0x908] sm:$0xf]  ;;  %v11419_v9 = vor.u32 %v15875_v2, %v11418_v0 }
  0xdd   : > { %5564 = vmatpush.bf16.msrb.mxu2 %v12187_v20  ;;  %5537 = vmatpush.bf16.msrb.mxu0 %v11099_v32  ;;  %v16003_v4 = vld [vmem:[#allocation2 + $0x944] sm:$0xf0] }
  0xde   : > { %v12442_v5 = vld [vmem:[#allocation2 + $0xd08] sm:$0xf]  ;;  %v11931_v10 = vor.u32 %v16003_v4, %v11930_v3 }
  0xdf   : > { %5578 = vmatpush.bf16.msrb.mxu3 %v12699_v26  ;;  %5551 = vmatpush.bf16.msrb.mxu1 %v11611_v33  ;;  %v16131_v7 = vld [vmem:[#allocation2 + $0xd44] sm:$0xf0] }
  0xe0   : > { %v10842_v11 = vld [vmem:[#allocation2 + $0x88] sm:$0xf]  ;;  %v12443_v14 = vor.u32 %v16131_v7, %v12442_v5  ;;  %v15787_v5 = vld [vmem:[#allocation2 + $0x28c] sm:$0xf] }
  0xe1   : > { %5565 = vmatpush.bf16.msrb.mxu2 %v12123_v34  ;;  %5538 = vmatpush.bf16.msrb.mxu0 %v11035_v46  ;;  %v15731_v12 = vld [vmem:[#allocation2 + $0xc4] sm:$0xf0]  ;;  %v11740_v46 = vld [vmem:[#allocation2 + $0x7c8] sm:$0xf0] }
  0xe2   : > { %v11354_v13 = vld [vmem:[#allocation2 + $0x488] sm:$0xf]  ;;  %v10843_v20 = vor.u32 %v15731_v12, %v10842_v11  ;;  %v11743_v54 = vor.u32 %v15947_v45, %v11740_v46  ;;  %v11100_v7 = vld [vmem:[#allocation2 + $0x2c8] sm:$0xf0] }
  0xe3   : > { %5579 = vmatpush.bf16.msrb.mxu3 %v12635_v40  ;;  %5552 = vmatpush.bf16.msrb.mxu1 %v11547_v47  ;;  %v15859_v15 = vld [vmem:[#allocation2 + $0x4c4] sm:$0xf0]  ;;  %v11103_v12 = vor.u32 %v15787_v5, %v11100_v7  ;;  %v15739_v46 = vld [vmem:[#allocation2 + $0x10c] sm:$0xf] }
  0xe4   : > { %v11866_v16 = vld [vmem:[#allocation2 + $0x888] sm:$0xf]  ;;  %v11355_v25 = vor.u32 %v15859_v15, %v11354_v13  ;;  %v15707_v7 = vld [vmem:[#allocation2 + $0xc] sm:$0xf] }
  0xe5   : > { %5566 = vmatpush.bf16.msrb.mxu2 %v12059_v48  ;;  %5539 = vmatpush.bf16.msrb.mxu0 %v10971_v59  ;;  %v15987_v17 = vld [vmem:[#allocation2 + $0x8c4] sm:$0xf0]  ;;  %v15931_v59 = vld [vmem:[#allocation2 + $0x70c] sm:$0xf] }
  0xe6   : > { %v12378_v18 = vld [vmem:[#allocation2 + $0xc88] sm:$0xf]  ;;  %v11867_v26 = vor.u32 %v15987_v17, %v11866_v16 }
  0xe7   : > { %5580 = vmatpush.bf16.msrb.mxu3 %v12571_v52  ;;  %5553 = vmatpush.bf16.msrb.mxu1 %v11483_v60  ;;  %v16115_v19 = vld [vmem:[#allocation2 + $0xcc4] sm:$0xf0]  ;;  %v11676_v60 = vld [vmem:[#allocation2 + $0x748] sm:$0xf0] }
  0xe8   : > { %v10778_v21 = vld [vmem:[#allocation2 + $0x8] sm:$0xf]  ;;  %v12379_v30 = vor.u32 %v16115_v19, %v12378_v18  ;;  %v11679_v3 = vor.u32 %v15931_v59, %v11676_v60  ;;  %v15771_v18 = vld [vmem:[#allocation2 + $0x20c] sm:$0xf] }
  0xe9   : > { %5567 = vmatpush.bf16.msrb.mxu2 %v11995_v61  ;;  %5540 = vmatpush.bf16.msrb.mxu0 %v10907_v8  ;;  %v15715_v24 = vld [vmem:[#allocation2 + $0x44] sm:$0xf0]  ;;  %v15915_v8 = vld [vmem:[#allocation2 + $0x68c] sm:$0xf] }
  0xea   : > { %v11290_v27 = vld [vmem:[#allocation2 + $0x408] sm:$0xf]  ;;  %v10779_v38 = vor.u32 %v15715_v24, %v10778_v21  ;;  %v11036_v19 = vld [vmem:[#allocation2 + $0x248] sm:$0xf0] }
  0xeb   : > { %5581 = vmatpush.bf16.msrb.mxu3 %v12507_v1  ;;  %5554 = vmatpush.bf16.msrb.mxu1 %v11419_v9  ;;  %v15843_v28 = vld [vmem:[#allocation2 + $0x444] sm:$0xf0]  ;;  %v11612_v9 = vld [vmem:[#allocation2 + $0x6c8] sm:$0xf0] }
  0xec   : > { %v11802_v29 = vld [vmem:[#allocation2 + $0x808] sm:$0xf]  ;;  %v11291_v43 = vor.u32 %v15843_v28, %v11290_v27  ;;  %v11615_v16 = vor.u32 %v15915_v8, %v11612_v9  ;;  %v11548_v21 = vld [vmem:[#allocation2 + $0x648] sm:$0xf0] }
  0xed   : > { %5568 = vmatpush.bf16.msrb.mxu2 %v11931_v10  ;;  %v15971_v31 = vld [vmem:[#allocation2 + $0x844] sm:$0xf0]  ;;  %5541 = vmatpush.bf16.msrb.mxu0 %v10843_v20  ;;  %v15899_v20 = vld [vmem:[#allocation2 + $0x60c] sm:$0xf] }
  0xee   : > { %v12314_v32 = vld [vmem:[#allocation2 + $0xc08] sm:$0xf]  ;;  %v11803_v44 = vor.u32 %v15971_v31, %v11802_v29  ;;  %v15723_v59 = vld [vmem:[#allocation2 + $0x8c] sm:$0xf] }
  0xef   : > { %5582 = vmatpush.bf16.msrb.mxu3 %v12443_v14  ;;  %v16099_v33 = vld [vmem:[#allocation2 + $0xc44] sm:$0xf0]  ;;  %5555 = vmatpush.bf16.msrb.mxu1 %v11355_v25  ;;  %v10844_v60 = vld [vmem:[#allocation2 + $0xc8] sm:$0xf0] }
  0xf0   : > { %v13274_v34 = vld [vmem:[#allocation2 + $0x1388] sm:$0xf]  ;;  %v12315_v47 = vor.u32 %v16099_v33, %v12314_v32  ;;  %v15755_v32 = vld [vmem:[#allocation2 + $0x18c] sm:$0xf] }
  0xf1   : > { %v16339_v36 = vld [vmem:[#allocation2 + $0x13c4] sm:$0xf0]  ;;  %5569 = vmatpush.bf16.msrb.mxu2 %v11867_v26  ;;  %5542 = vmatpush.bf16.msrb.mxu0 %v10779_v38  ;;  %v11039_v26 = vor.u32 %v15771_v18, %v11036_v19  ;;  %v10972_v33 = vld [vmem:[#allocation2 + $0x1c8] sm:$0xf0] }
  0xf2   : > { %v13786_v37 = vld [vmem:[#allocation2 + $0x1788] sm:$0xf]  ;;  %v13275_v48 = vor.u32 %v16339_v36, %v13274_v34  ;;  %v15883_v34 = vld [vmem:[#allocation2 + $0x58c] sm:$0xf] }
  0xf3   : > { %v16467_v40 = vld [vmem:[#allocation2 + $0x17c4] sm:$0xf0]  ;;  %5583 = vmatpush.bf16.msrb.mxu3 %v12379_v30  ;;  %5556 = vmatpush.bf16.msrb.mxu1 %v11291_v43  ;;  %v11551_v30 = vor.u32 %v15899_v20, %v11548_v21  ;;  %v11484_v36 = vld [vmem:[#allocation2 + $0x5c8] sm:$0xf0] }
  0xf4   : > { %v13787_v49 = vor.u32 %v16467_v40, %v13786_v37  ;;  %v13210_v51 = vld [vmem:[#allocation2 + $0x1308] sm:$0xf]  ;;  %5543 = vmatmul.bf16.vlgmr.msrb.gmra.mxu0 %v17718_v57  ;;  %v10975_v40 = vor.u32 %v15755_v32, %v10972_v33  ;;  %v10780_v9 = vld [vmem:[#allocation2 + $0x48] sm:$0xf0] }
  0xf5   : > { %v16323_v52 = vld [vmem:[#allocation2 + $0x1344] sm:$0xf0]  ;;  %5570 = vmatpush.bf16.msrb.mxu2 %v11803_v44  ;;  %5591 = vmatpush.bf16.msra.mxu0 %v13275_v48  ;;  %v11487_v44 = vor.u32 %v15883_v34, %v11484_v36  ;;  %v15867_v48 = vld [vmem:[#allocation2 + $0x50c] sm:$0xf]  ;;  %v10783_v20 = vor.u32 %v15707_v7, %v10780_v9 }
  0xf6   : > { %v13722_v53 = vld [vmem:[#allocation2 + $0x1708] sm:$0xf]  ;;  %v13211_v61 = vor.u32 %v16323_v52, %v13210_v51  ;;  %5557 = vmatmul.bf16.vlgmr.msrb.gmra.mxu1 %v17723_v6  ;;  %v13276_v18 = vld [vmem:[#allocation2 + $0x13c8] sm:$0xf0] }
  0xf7   : > { %v16451_v55 = vld [vmem:[#allocation2 + $0x1744] sm:$0xf0]  ;;  %5584 = vmatpush.bf16.msrb.mxu3 %v12315_v47  ;;  %5605 = vmatpush.bf16.msra.mxu1 %v13787_v49  ;;  %v10908_v47 = vld [vmem:[#allocation2 + $0x148] sm:$0xf0] }
  0xf8   : > { %v13723_v62 = vor.u32 %v16451_v55, %v13722_v53  ;;  %v13146_v0 = vld [vmem:[#allocation2 + $0x1288] sm:$0xf]  ;;  %5571 = vmatmul.bf16.vlgmr.msrb.gmra.mxu2 %v17730_v22  ;;  %v11420_v49 = vld [vmem:[#allocation2 + $0x548] sm:$0xf0]  ;;  %v10911_v52 = vor.u32 %v15739_v46, %v10908_v47  ;;  %v17756_v46 = vld [vmem:[#allocation4] sm:$0xff] }
  0xf9   : > { %5619 = vmatpush.bf16.msra.mxu2 %v11231_v50  ;;  %v16307_v1 = vld [vmem:[#allocation2 + $0x12c4] sm:$0xf0]  ;;  %5592 = vmatpush.bf16.msra.mxu0 %v13211_v61  ;;  %v11423_v56 = vor.u32 %v15867_v48, %v11420_v49  ;;  %v15851_v61 = vld [vmem:[#allocation2 + $0x48c] sm:$0xf] }
  0xfa   : > { %v13658_v2 = vld [vmem:[#allocation2 + $0x1688] sm:$0xf]  ;;  %v13147_v10 = vor.u32 %v16307_v1, %v13146_v0  ;;  %5585 = vmatmul.bf16.vlgmr.msrb.gmra.mxu3 %v17732_v23  ;;  %v16459_v21 = vld [vmem:[#allocation2 + $0x178c] sm:$0xf] }
  0xfb   : > { %5633 = vmatpush.bf16.msra.mxu3 %v11743_v54  ;;  %v16435_v4 = vld [vmem:[#allocation2 + $0x16c4] sm:$0xf0]  ;;  %5606 = vmatpush.bf16.msra.mxu1 %v13723_v62  ;;  %v11356_v62 = vld [vmem:[#allocation2 + $0x4c8] sm:$0xf0] }
  0xfc   : > { %v13659_v11 = vor.u32 %v16435_v4, %v13658_v2  ;;  %v13082_v13 = vld [vmem:[#allocation2 + $0x1208] sm:$0xf]  ;;  %v11359_v8 = vor.u32 %v15851_v61, %v11356_v62  ;;  %v12700_v33 = vld [vmem:[#allocation2 + $0xf48] sm:$0xf0] }
  0xfd   : > { %5620 = vmatpush.bf16.msra.mxu2 %v11167_v63  ;;  %v16291_v14 = vld [vmem:[#allocation2 + $0x1244] sm:$0xf0]  ;;  %5593 = vmatpush.bf16.msra.mxu0 %v13147_v10  ;;  %v15835_v10 = vld [vmem:[#allocation2 + $0x40c] sm:$0xf] }
  0xfe   : > { %v13594_v15 = vld [vmem:[#allocation2 + $0x1608] sm:$0xf]  ;;  %v13083_v24 = vor.u32 %v16291_v14, %v13082_v13  ;;  %v12252_v13 = vld [vmem:[#allocation2 + $0xbc8] sm:$0xf0] }
  0xff   : > { %5634 = vmatpush.bf16.msra.mxu3 %v11679_v3  ;;  %v16419_v17 = vld [vmem:[#allocation2 + $0x1644] sm:$0xf0]  ;;  %5607 = vmatpush.bf16.msra.mxu1 %v13659_v11  ;;  %v10847_v3 = vor.u32 %v15723_v59, %v10844_v60  ;;  %v11292_v11 = vld [vmem:[#allocation2 + $0x448] sm:$0xf0] }
 0x100   : > { %v13595_v25 = vor.u32 %v16419_v17, %v13594_v15  ;;  %v13018_v27 = vld [vmem:[#allocation2 + $0x1188] sm:$0xf]  ;;  %v16203_v14 = vld [vmem:[#allocation2 + $0xf8c] sm:$0xf] }
 0x101   : > { %5621 = vmatpush.bf16.msra.mxu2 %v11103_v12  ;;  %v16275_v28 = vld [vmem:[#allocation2 + $0x11c4] sm:$0xf0]  ;;  %5594 = vmatpush.bf16.msra.mxu0 %v13083_v24  ;;  %v16075_v12 = vld [vmem:[#allocation2 + $0xb8c] sm:$0xf] }
 0x102   : > { %v13530_v29 = vld [vmem:[#allocation2 + $0x1588] sm:$0xf]  ;;  %v13019_v37 = vor.u32 %v16275_v28, %v13018_v27  ;;  %v16331_v17 = vld [vmem:[#allocation2 + $0x138c] sm:$0xf] }
 0x103   : > { %5635 = vmatpush.bf16.msra.mxu3 %v11615_v16  ;;  %v16403_v31 = vld [vmem:[#allocation2 + $0x15c4] sm:$0xf0]  ;;  %5608 = vmatpush.bf16.msra.mxu1 %v13595_v25  ;;  %v12764_v16 = vld [vmem:[#allocation2 + $0xfc8] sm:$0xf0]  ;;  %v11295_v25 = vor.u32 %v15835_v10, %v11292_v11  ;;  %v13279_v28 = vor.u32 %v16331_v17, %v13276_v18 }
 0x104   : > { %v13531_v38 = vor.u32 %v16403_v31, %v13530_v29  ;;  %v12954_v41 = vld [vmem:[#allocation2 + $0x1108] sm:$0xf]  ;;  %v13788_v24 = vld [vmem:[#allocation2 + $0x17c8] sm:$0xf0]  ;;  %v12767_v27 = vor.u32 %v16203_v14, %v12764_v16  ;;  %v5390_v18 = vpop.f32.mrf.mxu1 }
 0x105   : > { %5622 = vmatpush.bf16.msra.mxu2 %v11039_v26  ;;  %v16259_v42 = vld [vmem:[#allocation2 + $0x1144] sm:$0xf0]  ;;  %5595 = vmatpush.bf16.msra.mxu0 %v13019_v37  ;;  %v12255_v26 = vor.u32 %v16075_v12, %v12252_v13  ;;  %v16059_v29 = vld [vmem:[#allocation2 + $0xb0c] sm:$0xf]  ;;  %v13791_v32 = vor.u32 %v16459_v21, %v13788_v24 }
 0x106   : > { %v13466_v43 = vld [vmem:[#allocation2 + $0x1508] sm:$0xf]  ;;  %v12955_v50 = vor.u32 %v16259_v42, %v12954_v41  ;;  %v16187_v31 = vld [vmem:[#allocation2 + $0xf0c] sm:$0xf] }
 0x107   : > { %5636 = vmatpush.bf16.msra.mxu3 %v11551_v30  ;;  %v16387_v45 = vld [vmem:[#allocation2 + $0x1544] sm:$0xf0]  ;;  %5609 = vmatpush.bf16.msra.mxu1 %v13531_v38  ;;  %v12188_v30 = vld [vmem:[#allocation2 + $0xb48] sm:$0xf0]  ;;  %v12703_v42 = vor.u32 %v16187_v31, %v12700_v33 }
 0x108   : > { %v13467_v51 = vor.u32 %v16387_v45, %v13466_v43  ;;  %v12890_v53 = vld [vmem:[#allocation2 + $0x1088] sm:$0xf]  ;;  %v16315_v34 = vld [vmem:[#allocation2 + $0x130c] sm:$0xf] }
 0x109   : > { %5623 = vmatpush.bf16.msra.mxu2 %v10975_v40  ;;  %v16243_v54 = vld [vmem:[#allocation2 + $0x10c4] sm:$0xf0]  ;;  %5596 = vmatpush.bf16.msra.mxu0 %v12955_v50  ;;  %v13212_v36 = vld [vmem:[#allocation2 + $0x1348] sm:$0xf0]  ;;  %v12191_v40 = vor.u32 %v16059_v29, %v12188_v30 }
 0x10a   : > { %v13402_v55 = vld [vmem:[#allocation2 + $0x1488] sm:$0xf]  ;;  %v12891_v63 = vor.u32 %v16243_v54, %v12890_v53  ;;  %v16443_v37 = vld [vmem:[#allocation2 + $0x170c] sm:$0xf]  ;;  %v13215_v43 = vor.u32 %v16315_v34, %v13212_v36  ;;  %v18499_v54 = vperm.slane %v17756_v46, 0 }
 0x10b   : > { %5637 = vmatpush.bf16.msra.mxu3 %v11487_v44  ;;  %v16371_v58 = vld [vmem:[#allocation2 + $0x14c4] sm:$0xf0]  ;;  %5610 = vmatpush.bf16.msra.mxu1 %v13467_v51  ;;  %v13724_v38 = vld [vmem:[#allocation2 + $0x1748] sm:$0xf0] }
 0x10c   : > { %v12826_v0 = vld [vmem:[#allocation2 + $0x1008] sm:$0xf]  ;;  %v13403_v2 = vor.u32 %v16371_v58, %v13402_v55  ;;  %v16043_v41 = vld [vmem:[#allocation2 + $0xa8c] sm:$0xf]  ;;  %v13727_v47 = vor.u32 %v16443_v37, %v13724_v38 }
 0x10d   : > { %v16227_v1 = vld [vmem:[#allocation2 + $0x1044] sm:$0xf0]  ;;  %5624 = vmatpush.bf16.msra.mxu2 %v10911_v52  ;;  %5597 = vmatpush.bf16.msra.mxu0 %v12891_v63  ;;  %v12124_v44 = vld [vmem:[#allocation2 + $0xac8] sm:$0xf0] }
 0x10e   : > { %v13338_v4 = vld [vmem:[#allocation2 + $0x1408] sm:$0xf]  ;;  %v12827_v15 = vor.u32 %v16227_v1, %v12826_v0  ;;  %v16171_v45 = vld [vmem:[#allocation2 + $0xe8c] sm:$0xf]  ;;  %v12127_v53 = vor.u32 %v16043_v41, %v12124_v44 }
 0x10f   : > { %v16355_v5 = vld [vmem:[#allocation2 + $0x1444] sm:$0xf0]  ;;  %5638 = vmatpush.bf16.msra.mxu3 %v11423_v56  ;;  %5611 = vmatpush.bf16.msra.mxu1 %v13403_v2  ;;  %v12636_v48 = vld [vmem:[#allocation2 + $0xec8] sm:$0xf0] }
 0x110   : > { %v13339_v19 = vor.u32 %v16355_v5, %v13338_v4  ;;  %v16299_v49 = vld [vmem:[#allocation2 + $0x128c] sm:$0xf]  ;;  %v12639_v55 = vor.u32 %v16171_v45, %v12636_v48 }
 0x111   : > { %5625 = vmatpush.bf16.msra.mxu2 %v10847_v3  ;;  %5598 = vmatpush.bf16.msra.mxu0 %v12827_v15  ;;  %v13148_v50 = vld [vmem:[#allocation2 + $0x12c8] sm:$0xf0]  ;;  %v5376_v3 = vpop.f32.mrf.mxu0 }
 0x112   : > { %v16427_v51 = vld [vmem:[#allocation2 + $0x168c] sm:$0xf]  ;;  %v13151_v56 = vor.u32 %v16299_v49, %v13148_v50  ;;  %v5377_v5 = vadd.f32 %v5376_v3, %v18499_v54  ;;  %v11746_v3 = vld [vmem:[#allocation2 + $0x790] sm:$0xf] }
 0x113   : > { %5639 = vmatpush.bf16.msra.mxu3 %v11359_v8  ;;  %5612 = vmatpush.bf16.msra.mxu1 %v13339_v19  ;;  %v13660_v52 = vld [vmem:[#allocation2 + $0x16c8] sm:$0xf0] }
 0x114   : > { %5599 = vmatmul.bf16.vlgmr.msra.gmra.mxu0 %v17740_v35  ;;  %v16027_v58 = vld [vmem:[#allocation2 + $0xa0c] sm:$0xf]  ;;  %v13663_v61 = vor.u32 %v16427_v51, %v13660_v52 }
 0x115   : > { %5626 = vmatpush.bf16.msra.mxu2 %v10783_v20  ;;  %5647 = vmatpush.bf16.msrb.mxu0 %v12255_v26  ;;  %v12060_v59 = vld [vmem:[#allocation2 + $0xa48] sm:$0xf0]  ;;  %v5391_v20 = vadd.f32 %v5390_v18, %v5377_v5 }
 0x116   : > { %5613 = vmatmul.bf16.vlgmr.msra.gmra.mxu1 %v17742_v39  ;;  %v16155_v60 = vld [vmem:[#allocation2 + $0xe0c] sm:$0xf]  ;;  %v12063_v4 = vor.u32 %v16027_v58, %v12060_v59 }
 0x117   : > { %5640 = vmatpush.bf16.msra.mxu3 %v11295_v25  ;;  %5661 = vmatpush.bf16.msrb.mxu1 %v12767_v27  ;;  %v12572_v62 = vld [vmem:[#allocation2 + $0xe48] sm:$0xf0] }
 0x118   : > { %5627 = vmatmul.bf16.vlgmr.msra.gmra.mxu2 %v17718_v57  ;;  %v16283_v63 = vld [vmem:[#allocation2 + $0x120c] sm:$0xf]  ;;  %v12575_v7 = vor.u32 %v16155_v60, %v12572_v62 }
 0x119   : > { %5675 = vmatpush.bf16.msrb.mxu2 %v13279_v28  ;;  %5648 = vmatpush.bf16.msrb.mxu0 %v12191_v40  ;;  %v13084_v0 = vld [vmem:[#allocation2 + $0x1248] sm:$0xf0] }
 0x11a   : > { %5641 = vmatmul.bf16.vlgmr.msra.gmra.mxu3 %v17723_v6  ;;  %v16411_v1 = vld [vmem:[#allocation2 + $0x160c] sm:$0xf]  ;;  %v13087_v8 = vor.u32 %v16283_v63, %v13084_v0 }
 0x11b   : > { %5689 = vmatpush.bf16.msrb.mxu3 %v13791_v32  ;;  %5662 = vmatpush.bf16.msrb.mxu1 %v12703_v42  ;;  %v13596_v2 = vld [vmem:[#allocation2 + $0x1648] sm:$0xf0] }
 0x11c   : > { %v16011_v9 = vld [vmem:[#allocation2 + $0x98c] sm:$0xf]  ;;  %v13599_v12 = vor.u32 %v16411_v1, %v13596_v2  ;;  %v11234_v1 = vld [vmem:[#allocation2 + $0x390] sm:$0xf] }
 0x11d   : > { %5676 = vmatpush.bf16.msrb.mxu2 %v13215_v43  ;;  %5649 = vmatpush.bf16.msrb.mxu0 %v12127_v53  ;;  %v11996_v10 = vld [vmem:[#allocation2 + $0x9c8] sm:$0xf0]  ;;  %v5404_v59 = vpop.f32.mrf.mxu2  ;;  %v15828_v2 = vld [vmem:[#allocation2 + $0x3cc] sm:$0xf0] }
 0x11e   : > { %v16139_v11 = vld [vmem:[#allocation2 + $0xd8c] sm:$0xf]  ;;  %v11999_v19 = vor.u32 %v16011_v9, %v11996_v10  ;;  %v5405_v0 = vadd.f32 %v5404_v59, %v5391_v20  ;;  %v16084_v9 = vld [vmem:[#allocation2 + $0xbcc] sm:$0xf0] }
 0x11f   : > { %5690 = vmatpush.bf16.msrb.mxu3 %v13727_v47  ;;  %5663 = vmatpush.bf16.msrb.mxu1 %v12639_v55  ;;  %v12508_v13 = vld [vmem:[#allocation2 + $0xdc8] sm:$0xf0]  ;;  %v11170_v20 = vld [vmem:[#allocation2 + $0x310] sm:$0xf] }
 0x120   : > { %v16267_v14 = vld [vmem:[#allocation2 + $0x118c] sm:$0xf]  ;;  %v12511_v21 = vor.u32 %v16139_v11, %v12508_v13  ;;  %v12770_v13 = vld [vmem:[#allocation2 + $0xf90] sm:$0xf] }
 0x121   : > { %5677 = vmatpush.bf16.msrb.mxu2 %v13151_v56  ;;  %v13020_v15 = vld [vmem:[#allocation2 + $0x11c8] sm:$0xf0]  ;;  %5650 = vmatpush.bf16.msrb.mxu0 %v12063_v4  ;;  %v5418_v4 = vpop.f32.mrf.mxu3 }
 0x122   : > { %v16395_v16 = vld [vmem:[#allocation2 + $0x158c] sm:$0xf]  ;;  %v13023_v24 = vor.u32 %v16267_v14, %v13020_v15  ;;  %v17765_v10 = vadd.f32 %v5418_v4, %v5405_v0  ;;  %v16212_v14 = vld [vmem:[#allocation2 + $0xfcc] sm:$0xf0] }
 0x123   : > { %5691 = vmatpush.bf16.msrb.mxu3 %v13663_v61  ;;  %v13532_v17 = vld [vmem:[#allocation2 + $0x15c8] sm:$0xf0]  ;;  %5664 = vmatpush.bf16.msrb.mxu1 %v12575_v7  ;;  %v15956_v7 = vld [vmem:[#allocation2 + $0x7cc] sm:$0xf0] }
 0x124   : > { %v15995_v25 = vld [vmem:[#allocation2 + $0x90c] sm:$0xf]  ;;  %v13535_v28 = vor.u32 %v16395_v16, %v13532_v17  ;;  %v11235_v16 = vor.u32 %v15828_v2, %v11234_v1  ;;  %v11747_v17 = vor.u32 %v15956_v7, %v11746_v3  ;;  %v15764_v7 = vld [vmem:[#allocation2 + $0x1cc] sm:$0xf0] }
 0x125   : > { %5678 = vmatpush.bf16.msrb.mxu2 %v13087_v8  ;;  %v11932_v26 = vld [vmem:[#allocation2 + $0x948] sm:$0xf0]  ;;  %5651 = vmatpush.bf16.msrb.mxu0 %v11999_v19  ;;  %v12258_v8 = vld [vmem:[#allocation2 + $0xb90] sm:$0xf]  ;;  %v17767_v19 = vpop.f32.mrf.mxu0  ;;  %v17775_v59 = vpop.f32.mrf.mxu2 }
 0x126   : > { %v16123_v27 = vld [vmem:[#allocation2 + $0xd0c] sm:$0xf]  ;;  %v11935_v34 = vor.u32 %v15995_v25, %v11932_v26  ;;  %v12259_v18 = vor.u32 %v16084_v9, %v12258_v8  ;;  %v12771_v25 = vor.u32 %v16212_v14, %v12770_v13  ;;  %v15940_v26 = vld [vmem:[#allocation2 + $0x74c] sm:$0xf0] }
 0x127   : > { %5692 = vmatpush.bf16.msrb.mxu3 %v13599_v12  ;;  %v12444_v29 = vld [vmem:[#allocation2 + $0xd48] sm:$0xf0]  ;;  %5665 = vmatpush.bf16.msrb.mxu1 %v12511_v21  ;;  %v15812_v21 = vld [vmem:[#allocation2 + $0x34c] sm:$0xf0] }
 0x128   : > { %v16251_v30 = vld [vmem:[#allocation2 + $0x110c] sm:$0xf]  ;;  %v12447_v36 = vor.u32 %v16123_v27, %v12444_v29  ;;  %v12194_v27 = vld [vmem:[#allocation2 + $0xb10] sm:$0xf] }
 0x129   : > { %v12956_v31 = vld [vmem:[#allocation2 + $0x1148] sm:$0xf0]  ;;  %5679 = vmatpush.bf16.msrb.mxu2 %v13023_v24  ;;  %5652 = vmatpush.bf16.msrb.mxu0 %v11935_v34  ;;  %v11682_v24 = vld [vmem:[#allocation2 + $0x710] sm:$0xf]  ;;  %v17778_v1 = vpop.f32.mrf.mxu3 }
 0x12a   : > { %v16379_v32 = vld [vmem:[#allocation2 + $0x150c] sm:$0xf]  ;;  %v12959_v37 = vor.u32 %v16251_v30, %v12956_v31  ;;  %v12706_v29 = vld [vmem:[#allocation2 + $0xf10] sm:$0xf]  ;;  %v17769_v31 = vpop.f32.mrf.mxu1 }
 0x12b   : > { %v13468_v33 = vld [vmem:[#allocation2 + $0x1548] sm:$0xf0]  ;;  %5693 = vmatpush.bf16.msrb.mxu3 %v13535_v28  ;;  %5666 = vmatpush.bf16.msrb.mxu1 %v12447_v36  ;;  %v16068_v28 = vld [vmem:[#allocation2 + $0xb4c] sm:$0xf0] }
 0x12c   : > { %v15979_v38 = vld [vmem:[#allocation2 + $0x88c] sm:$0xf]  ;;  %v13471_v42 = vor.u32 %v16379_v32, %v13468_v33  ;;  %v16196_v30 = vld [vmem:[#allocation2 + $0xf4c] sm:$0xf0]  ;;  %v11171_v32 = vor.u32 %v15812_v21, %v11170_v20  ;;  %v11683_v33 = vor.u32 %v15940_v26, %v11682_v24  ;;  %v12195_v34 = vor.u32 %v16068_v28, %v12194_v27 }
 0x12d   : > { %v11868_v40 = vld [vmem:[#allocation2 + $0x8c8] sm:$0xf0]  ;;  %5680 = vmatpush.bf16.msrb.mxu2 %v12959_v37  ;;  %v11106_v36 = vld [vmem:[#allocation2 + $0x290] sm:$0xf] }
 0x12e   : > { %v16107_v41 = vld [vmem:[#allocation2 + $0xc8c] sm:$0xf]  ;;  %v11871_v49 = vor.u32 %v15979_v38, %v11868_v40  ;;  %v15796_v37 = vld [vmem:[#allocation2 + $0x2cc] sm:$0xf0]  ;;  %v12707_v40 = vor.u32 %v16196_v30, %v12706_v29  ;;  %v5460_v30 = vpop.f32.mrf.mxu2 }
 0x12f   : > { %v12380_v43 = vld [vmem:[#allocation2 + $0xcc8] sm:$0xf0]  ;;  %5694 = vmatpush.bf16.msrb.mxu3 %v13471_v42  ;;  %v11618_v38 = vld [vmem:[#allocation2 + $0x690] sm:$0xf] }
 0x130   : > { %v16235_v44 = vld [vmem:[#allocation2 + $0x108c] sm:$0xf]  ;;  %v12383_v52 = vor.u32 %v16107_v41, %v12380_v43  ;;  %5653 = vmatpush.bf16.msrb.mxu0 %v11871_v49  ;;  %v15924_v41 = vld [vmem:[#allocation2 + $0x6cc] sm:$0xf0] }
 0x131   : > { %v12892_v45 = vld [vmem:[#allocation2 + $0x10c8] sm:$0xf0]  ;;  %v12130_v42 = vld [vmem:[#allocation2 + $0xa90] sm:$0xf] }
 0x132   : > { %v16363_v47 = vld [vmem:[#allocation2 + $0x148c] sm:$0xf]  ;;  %v12895_v53 = vor.u32 %v16235_v44, %v12892_v45  ;;  %5667 = vmatpush.bf16.msrb.mxu1 %v12383_v52  ;;  %v16052_v43 = vld [vmem:[#allocation2 + $0xacc] sm:$0xf0]  ;;  %v5446_v4 = vpop.f32.mrf.mxu1 }
 0x133   : > { %v13404_v48 = vld [vmem:[#allocation2 + $0x14c8] sm:$0xf0]  ;;  %v12642_v44 = vld [vmem:[#allocation2 + $0xe90] sm:$0xf]  ;;  %v12131_v49 = vor.u32 %v16052_v43, %v12130_v42 }
 0x134   : > { %v15963_v50 = vld [vmem:[#allocation2 + $0x80c] sm:$0xf]  ;;  %v13407_v60 = vor.u32 %v16363_v47, %v13404_v48  ;;  %5681 = vmatpush.bf16.msrb.mxu2 %v12895_v53  ;;  %v16180_v45 = vld [vmem:[#allocation2 + $0xecc] sm:$0xf0]  ;;  %v11107_v47 = vor.u32 %v15796_v37, %v11106_v36  ;;  %v11619_v48 = vor.u32 %v15924_v41, %v11618_v38  ;;  %v5474_v37 = vpop.f32.mrf.mxu3 }
 0x135   : > { %v11804_v51 = vld [vmem:[#allocation2 + $0x848] sm:$0xf0]  ;;  %v11554_v52 = vld [vmem:[#allocation2 + $0x610] sm:$0xf]  ;;  %v12643_v53 = vor.u32 %v16180_v45, %v12642_v44 }
 0x136   : > { %v16091_v55 = vld [vmem:[#allocation2 + $0xc0c] sm:$0xf]  ;;  %v11807_v5 = vor.u32 %v15963_v50, %v11804_v51  ;;  %5695 = vmatpush.bf16.msrb.mxu3 %v13407_v60  ;;  %v11042_v50 = vld [vmem:[#allocation2 + $0x210] sm:$0xf]  ;;  %v5432_v60 = vpop.f32.mrf.mxu0 }
 0x137   : > { %v12316_v56 = vld [vmem:[#allocation2 + $0xc48] sm:$0xf0]  ;;  %v15780_v51 = vld [vmem:[#allocation2 + $0x24c] sm:$0xf0] }
 0x138   : > { %v16219_v58 = vld [vmem:[#allocation2 + $0x100c] sm:$0xf]  ;;  %v12319_v11 = vor.u32 %v16091_v55, %v12316_v56  ;;  %5654 = vmatpush.bf16.msrb.mxu0 %v11807_v5  ;;  %v15908_v55 = vld [vmem:[#allocation2 + $0x64c] sm:$0xf0]  ;;  %v11043_v0 = vor.u32 %v15780_v51, %v11042_v50 }
 0x139   : > { %v12828_v61 = vld [vmem:[#allocation2 + $0x1048] sm:$0xf0]  ;;  %v12066_v56 = vld [vmem:[#allocation2 + $0xa10] sm:$0xf]  ;;  %v11555_v2 = vor.u32 %v15908_v55, %v11554_v52 }
 0x13a   : > { %v16347_v62 = vld [vmem:[#allocation2 + $0x140c] sm:$0xf]  ;;  %v12831_v12 = vor.u32 %v16219_v58, %v12828_v61  ;;  %5668 = vmatpush.bf16.msrb.mxu1 %v12319_v11  ;;  %v16036_v58 = vld [vmem:[#allocation2 + $0xa4c] sm:$0xf0] }
 0x13b   : > { %v13340_v63 = vld [vmem:[#allocation2 + $0x1448] sm:$0xf0]  ;;  %5655 = vmatmul.bf16.vlgmr.msrb.gmra.mxu0 %v17730_v22  ;;  %v12578_v61 = vld [vmem:[#allocation2 + $0xe10] sm:$0xf]  ;;  %v12067_v3 = vor.u32 %v16036_v58, %v12066_v56 }
 0x13c   : > { %v13343_v15 = vor.u32 %v16347_v62, %v13340_v63  ;;  %5682 = vmatpush.bf16.msrb.mxu2 %v12831_v12  ;;  %5703 = vmatpush.bf16.msra.mxu0 %v11235_v16  ;;  %v16164_v62 = vld [vmem:[#allocation2 + $0xe4c] sm:$0xf0]  ;;  %v5433_v63 = vadd.f32 %v5432_v60, %v17765_v10  ;;  %v18498_v16 = vperm.slane %v17756_v46, 1 }
 0x13d   : > { %5669 = vmatmul.bf16.vlgmr.msrb.gmra.mxu1 %v17732_v23  ;;  %v10978_v5 = vld [vmem:[#allocation2 + $0x190] sm:$0xf]  ;;  %v12579_v9 = vor.u32 %v16164_v62, %v12578_v61 }
 0x13e   : > { %5696 = vmatpush.bf16.msrb.mxu3 %v13343_v15  ;;  %5717 = vmatpush.bf16.msra.mxu1 %v11747_v17  ;;  %v11490_v8 = vld [vmem:[#allocation2 + $0x590] sm:$0xf]  ;;  %v17780_v11 = vadd.f32 %v5446_v4, %v5433_v63  ;;  %v10979_v17 = vor.u32 %v15764_v7, %v10978_v5 }
 0x13f   : > { %5683 = vmatmul.bf16.vlgmr.msrb.gmra.mxu2 %v17740_v35  ;;  %v15892_v12 = vld [vmem:[#allocation2 + $0x5cc] sm:$0xf0] }
 0x140   : > { %5731 = vmatpush.bf16.msra.mxu2 %v12259_v18  ;;  %5704 = vmatpush.bf16.msra.mxu0 %v11171_v32  ;;  %v12002_v13 = vld [vmem:[#allocation2 + $0x990] sm:$0xf]  ;;  %v11491_v18 = vor.u32 %v15892_v12, %v11490_v8  ;;  %v15820_v12 = vld [vmem:[#allocation2 + $0x394] sm:$0xf] }
 0x141   : > { %5697 = vmatmul.bf16.vlgmr.msrb.gmra.mxu3 %v17742_v39  ;;  %v16020_v14 = vld [vmem:[#allocation2 + $0x9cc] sm:$0xf0] }
 0x142   : > { %5745 = vmatpush.bf16.msra.mxu3 %v12771_v25  ;;  %5718 = vmatpush.bf16.msra.mxu1 %v11683_v33  ;;  %v12514_v15 = vld [vmem:[#allocation2 + $0xd90] sm:$0xf]  ;;  %v12003_v20 = vor.u32 %v16020_v14, %v12002_v13  ;;  %v11236_v13 = vld [vmem:[#allocation2 + $0x3d0] sm:$0xf0] }
 0x143   : > { %v16148_v10 = vld [vmem:[#allocation2 + $0xdcc] sm:$0xf0] }
 0x144   : > { %5732 = vmatpush.bf16.msra.mxu2 %v12195_v34  ;;  %5705 = vmatpush.bf16.msra.mxu0 %v11107_v47  ;;  %v10914_v21 = vld [vmem:[#allocation2 + $0x110] sm:$0xf]  ;;  %v12515_v26 = vor.u32 %v16148_v10, %v12514_v15  ;;  %v5461_v34 = vadd.f32 %v5460_v30, %v18498_v16  ;;  %v15948_v10 = vld [vmem:[#allocation2 + $0x794] sm:$0xf]  ;;  %v13228_v16 = vld [vmem:[#allocation2 + $0x1358] sm:$0xf0] }
 0x145   : > { %v15748_v24 = vld [vmem:[#allocation2 + $0x14c] sm:$0xf0]  ;;  %v15804_v30 = vld [vmem:[#allocation2 + $0x314] sm:$0xf] }
 0x146   : > { %5746 = vmatpush.bf16.msra.mxu3 %v12707_v40  ;;  %5719 = vmatpush.bf16.msra.mxu1 %v11619_v48  ;;  %v11426_v25 = vld [vmem:[#allocation2 + $0x510] sm:$0xf]  ;;  %v10915_v36 = vor.u32 %v15748_v24, %v10914_v21  ;;  %v17785_v44 = vadd.f32 %v5474_v37, %v5461_v34  ;;  %v11239_v24 = vor.u32 %v15820_v12, %v11236_v13  ;;  %v15932_v34 = vld [vmem:[#allocation2 + $0x714] sm:$0xf] }
 0x147   : > { %v15876_v27 = vld [vmem:[#allocation2 + $0x54c] sm:$0xf0] }
 0x148   : > { %5733 = vmatpush.bf16.msra.mxu2 %v12131_v49  ;;  %5706 = vmatpush.bf16.msra.mxu0 %v11043_v0  ;;  %v11938_v28 = vld [vmem:[#allocation2 + $0x910] sm:$0xf]  ;;  %v11427_v38 = vor.u32 %v15876_v27, %v11426_v25 }
 0x149   : > { %v16004_v29 = vld [vmem:[#allocation2 + $0x94c] sm:$0xf0] }
 0x14a   : > { %5747 = vmatpush.bf16.msra.mxu3 %v12643_v53  ;;  %5720 = vmatpush.bf16.msra.mxu1 %v11555_v2  ;;  %v12450_v32 = vld [vmem:[#allocation2 + $0xd10] sm:$0xf]  ;;  %v11939_v40 = vor.u32 %v16004_v29, %v11938_v28 }
 0x14b   : > { %v16132_v33 = vld [vmem:[#allocation2 + $0xd4c] sm:$0xf0] }
 0x14c   : > { %5734 = vmatpush.bf16.msra.mxu2 %v12067_v3  ;;  %5707 = vmatpush.bf16.msra.mxu0 %v10979_v17  ;;  %v10850_v41 = vld [vmem:[#allocation2 + $0x90] sm:$0xf]  ;;  %v12451_v45 = vor.u32 %v16132_v33, %v12450_v32  ;;  %v11748_v17 = vld [vmem:[#allocation2 + $0x7d0] sm:$0xf0]  ;;  %v17787_v33 = vpop.f32.mrf.mxu0 }
 0x14d   : > { %v15732_v42 = vld [vmem:[#allocation2 + $0xcc] sm:$0xf0]  ;;  %v11751_v28 = vor.u32 %v15948_v10, %v11748_v17  ;;  %v11172_v32 = vld [vmem:[#allocation2 + $0x350] sm:$0xf0] }
 0x14e   : > { %5748 = vmatpush.bf16.msra.mxu3 %v12579_v9  ;;  %5721 = vmatpush.bf16.msra.mxu1 %v11491_v18  ;;  %v11362_v43 = vld [vmem:[#allocation2 + $0x490] sm:$0xf]  ;;  %v10851_v52 = vor.u32 %v15732_v42, %v10850_v41  ;;  %v11175_v41 = vor.u32 %v15804_v30, %v11172_v32 }
 0x14f   : > { %v15860_v47 = vld [vmem:[#allocation2 + $0x4cc] sm:$0xf0] }
 0x150   : > { %5735 = vmatpush.bf16.msra.mxu2 %v12003_v20  ;;  %v11874_v48 = vld [vmem:[#allocation2 + $0x890] sm:$0xf]  ;;  %5708 = vmatpush.bf16.msra.mxu0 %v10915_v36  ;;  %v11363_v56 = vor.u32 %v15860_v47, %v11362_v43  ;;  %v11684_v36 = vld [vmem:[#allocation2 + $0x750] sm:$0xf0] }
 0x151   : > { %v15988_v49 = vld [vmem:[#allocation2 + $0x8cc] sm:$0xf0]  ;;  %v11687_v47 = vor.u32 %v15932_v34, %v11684_v36 }
 0x152   : > { %5749 = vmatpush.bf16.msra.mxu3 %v12515_v26  ;;  %v12386_v50 = vld [vmem:[#allocation2 + $0xc90] sm:$0xf]  ;;  %5722 = vmatpush.bf16.msra.mxu1 %v11427_v38  ;;  %v11875_v58 = vor.u32 %v15988_v49, %v11874_v48  ;;  %v17789_v38 = vpop.f32.mrf.mxu1  ;;  %v15788_v49 = vld [vmem:[#allocation2 + $0x294] sm:$0xf] }
 0x153   : > { %v16116_v51 = vld [vmem:[#allocation2 + $0xccc] sm:$0xf0] }
 0x154   : > { %v10786_v53 = vld [vmem:[#allocation2 + $0x10] sm:$0xf]  ;;  %5736 = vmatpush.bf16.msra.mxu2 %v11939_v40  ;;  %v12387_v63 = vor.u32 %v16116_v51, %v12386_v50  ;;  %5709 = vmatpush.bf16.msra.mxu0 %v10851_v52  ;;  %v11108_v50 = vld [vmem:[#allocation2 + $0x2d0] sm:$0xf0] }
 0x155   : > { %v15716_v55 = vld [vmem:[#allocation2 + $0x4c] sm:$0xf0]  ;;  %v15916_v51 = vld [vmem:[#allocation2 + $0x694] sm:$0xf] }
 0x156   : > { %v11298_v60 = vld [vmem:[#allocation2 + $0x410] sm:$0xf]  ;;  %5750 = vmatpush.bf16.msra.mxu3 %v12451_v45  ;;  %v10787_v8 = vor.u32 %v15716_v55, %v10786_v53  ;;  %5723 = vmatpush.bf16.msra.mxu1 %v11363_v56  ;;  %v11620_v52 = vld [vmem:[#allocation2 + $0x6d0] sm:$0xf0]  ;;  %v17794_v55 = vpop.f32.mrf.mxu2 }
 0x157   : > { %v15844_v61 = vld [vmem:[#allocation2 + $0x44c] sm:$0xf0]  ;;  %18522 = vst [vmem:[#allocation28_spill] sm:$0xff] %v17794_v55 }
 0x158   : > { %v11810_v62 = vld [vmem:[#allocation2 + $0x810] sm:$0xf]  ;;  %5737 = vmatpush.bf16.msra.mxu2 %v11875_v58  ;;  %v11299_v14 = vor.u32 %v15844_v61, %v11298_v60  ;;  %5710 = vmatpush.bf16.msra.mxu0 %v10787_v8  ;;  %v11111_v58 = vor.u32 %v15788_v49, %v11108_v50  ;;  %v11556_v8 = vld [vmem:[#allocation2 + $0x650] sm:$0xf0] }
 0x159   : > { %v15972_v0 = vld [vmem:[#allocation2 + $0x84c] sm:$0xf0] }
 0x15a   : > { %v12322_v2 = vld [vmem:[#allocation2 + $0xc10] sm:$0xf]  ;;  %v11811_v15 = vor.u32 %v15972_v0, %v11810_v62  ;;  %5751 = vmatpush.bf16.msra.mxu3 %v12387_v63  ;;  %5724 = vmatpush.bf16.msra.mxu1 %v11299_v14  ;;  %v11623_v63 = vor.u32 %v15916_v51, %v11620_v52  ;;  %v17797_v0 = vpop.f32.mrf.mxu3 }
 0x15b   : > { %v16100_v3 = vld [vmem:[#allocation2 + $0xc4c] sm:$0xf0]  ;;  %5711 = vmatmul.bf16.vlgmr.msra.gmra.mxu0 %v17718_v57  ;;  %18523 = vst [vmem:[#allocation29_spill] sm:$0xff] %v17797_v0  ;;  %v13252_v0 = vld [vmem:[#allocation2 + $0x1370] sm:$0xf0] }
 0x15c   : > { %v13282_v4 = vld [vmem:[#allocation2 + $0x1390] sm:$0xf]  ;;  %v12323_v18 = vor.u32 %v16100_v3, %v12322_v2  ;;  %5738 = vmatpush.bf16.msra.mxu2 %v11811_v15  ;;  %v15772_v3 = vld [vmem:[#allocation2 + $0x214] sm:$0xf]  ;;  %v5502_v15 = vpop.f32.mrf.mxu1 }
 0x15d   : > { %v16340_v5 = vld [vmem:[#allocation2 + $0x13cc] sm:$0xf0]  ;;  %5725 = vmatmul.bf16.vlgmr.msra.gmra.mxu1 %v17723_v6 }
 0x15e   : > { %v13794_v7 = vld [vmem:[#allocation2 + $0x1790] sm:$0xf]  ;;  %v13283_v20 = vor.u32 %v16340_v5, %v13282_v4  ;;  %5752 = vmatpush.bf16.msra.mxu3 %v12323_v18  ;;  %v11044_v4 = vld [vmem:[#allocation2 + $0x250] sm:$0xf0]  ;;  %v5488_v5 = vpop.f32.mrf.mxu0 }
 0x15f   : > { %v16468_v9 = vld [vmem:[#allocation2 + $0x17cc] sm:$0xf0]  ;;  %5739 = vmatmul.bf16.vlgmr.msra.gmra.mxu2 %v17730_v22  ;;  %v11047_v14 = vor.u32 %v15772_v3, %v11044_v4  ;;  %v15852_v3 = vld [vmem:[#allocation2 + $0x494] sm:$0xf] }
 0x160   : > { %v13795_v21 = vor.u32 %v16468_v9, %v13794_v7  ;;  %v13218_v25 = vld [vmem:[#allocation2 + $0x1310] sm:$0xf]  ;;  %5759 = vmatpush.bf16.msrb.mxu0 %v13283_v20  ;;  %5787 = vmatpush.bf16.msrb.mxu2 %v11239_v24  ;;  %v15900_v7 = vld [vmem:[#allocation2 + $0x614] sm:$0xf]  ;;  %v5489_v9 = vadd.f32 %v5488_v5, %v17785_v44 }
 0x161   : > { %v16324_v26 = vld [vmem:[#allocation2 + $0x134c] sm:$0xf0]  ;;  %5753 = vmatmul.bf16.vlgmr.msra.gmra.mxu3 %v17732_v23  ;;  %v11559_v20 = vor.u32 %v15900_v7, %v11556_v8  ;;  %v11364_v4 = vld [vmem:[#allocation2 + $0x4d0] sm:$0xf0] }
 0x162   : > { %v13730_v27 = vld [vmem:[#allocation2 + $0x1710] sm:$0xf]  ;;  %v13219_v37 = vor.u32 %v16324_v26, %v13218_v25  ;;  %5773 = vmatpush.bf16.msrb.mxu1 %v13795_v21  ;;  %5801 = vmatpush.bf16.msrb.mxu3 %v11751_v28  ;;  %v5503_v21 = vadd.f32 %v5502_v15, %v5489_v9  ;;  %v15756_v25 = vld [vmem:[#allocation2 + $0x194] sm:$0xf]  ;;  %v5530_v49 = vpop.f32.mrf.mxu3 }
 0x163   : > { %v16452_v29 = vld [vmem:[#allocation2 + $0x174c] sm:$0xf0]  ;;  %v10980_v26 = vld [vmem:[#allocation2 + $0x1d0] sm:$0xf0] }
 0x164   : > { %v13731_v40 = vor.u32 %v16452_v29, %v13730_v27  ;;  %v13154_v42 = vld [vmem:[#allocation2 + $0x1290] sm:$0xf]  ;;  %5760 = vmatpush.bf16.msrb.mxu0 %v13219_v37  ;;  %5788 = vmatpush.bf16.msrb.mxu2 %v11175_v41  ;;  %v15884_v27 = vld [vmem:[#allocation2 + $0x594] sm:$0xf]  ;;  %v10983_v30 = vor.u32 %v15756_v25, %v10980_v26 }
 0x165   : > { %v16308_v43 = vld [vmem:[#allocation2 + $0x12cc] sm:$0xf0]  ;;  %v11492_v28 = vld [vmem:[#allocation2 + $0x5d0] sm:$0xf0] }
 0x166   : > { %v13666_v45 = vld [vmem:[#allocation2 + $0x1690] sm:$0xf]  ;;  %v13155_v53 = vor.u32 %v16308_v43, %v13154_v42  ;;  %5774 = vmatpush.bf16.msrb.mxu1 %v13731_v40  ;;  %5802 = vmatpush.bf16.msrb.mxu3 %v11687_v47  ;;  %v11495_v37 = vor.u32 %v15884_v27, %v11492_v28  ;;  %v5516_v40 = vpop.f32.mrf.mxu2  ;;  %v15740_v42 = vld [vmem:[#allocation2 + $0x114] sm:$0xf] }
 0x167   : > { %v16436_v48 = vld [vmem:[#allocation2 + $0x16cc] sm:$0xf0]  ;;  %v10916_v43 = vld [vmem:[#allocation2 + $0x150] sm:$0xf0] }
 0x168   : > { %v13667_v56 = vor.u32 %v16436_v48, %v13666_v45  ;;  %v13090_v60 = vld [vmem:[#allocation2 + $0x1210] sm:$0xf]  ;;  %5761 = vmatpush.bf16.msrb.mxu0 %v13155_v53  ;;  %5789 = vmatpush.bf16.msrb.mxu2 %v11111_v58  ;;  %v5517_v45 = vadd.f32 %v5516_v40, %v5503_v21  ;;  %v15868_v47 = vld [vmem:[#allocation2 + $0x514] sm:$0xf]  ;;  %v10919_v53 = vor.u32 %v15740_v42, %v10916_v43 }
 0x169   : > { %v16292_v61 = vld [vmem:[#allocation2 + $0x124c] sm:$0xf0]  ;;  %v11428_v48 = vld [vmem:[#allocation2 + $0x550] sm:$0xf0] }
 0x16a   : > { %v13602_v62 = vld [vmem:[#allocation2 + $0x1610] sm:$0xf]  ;;  %v13091_v12 = vor.u32 %v16292_v61, %v13090_v60  ;;  %5775 = vmatpush.bf16.msrb.mxu1 %v13667_v56  ;;  %5803 = vmatpush.bf16.msrb.mxu3 %v11623_v63  ;;  %v17800_v51 = vadd.f32 %v5530_v49, %v5517_v45  ;;  %v11431_v61 = vor.u32 %v15868_v47, %v11428_v48  ;;  %v15724_v63 = vld [vmem:[#allocation2 + $0x94] sm:$0xf] }
 0x16b   : > { %v16420_v2 = vld [vmem:[#allocation2 + $0x164c] sm:$0xf0]  ;;  %v15708_v15 = vld [vmem:[#allocation2 + $0x14] sm:$0xf] }
 0x16c   : > { %v13603_v13 = vor.u32 %v16420_v2, %v13602_v62  ;;  %v13026_v10 = vld [vmem:[#allocation2 + $0x1190] sm:$0xf]  ;;  %5762 = vmatpush.bf16.msrb.mxu0 %v13091_v12  ;;  %5790 = vmatpush.bf16.msrb.mxu2 %v11047_v14  ;;  %v10852_v2 = vld [vmem:[#allocation2 + $0xd0] sm:$0xf0] }
 0x16d   : > { %v16276_v17 = vld [vmem:[#allocation2 + $0x11cc] sm:$0xf0]  ;;  %v10855_v12 = vor.u32 %v15724_v63, %v10852_v2  ;;  %v16076_v21 = vld [vmem:[#allocation2 + $0xb94] sm:$0xf] }
 0x16e   : > { %v13538_v18 = vld [vmem:[#allocation2 + $0x1590] sm:$0xf]  ;;  %v13027_v29 = vor.u32 %v16276_v17, %v13026_v10  ;;  %5776 = vmatpush.bf16.msrb.mxu1 %v13603_v13  ;;  %5804 = vmatpush.bf16.msrb.mxu3 %v11559_v20  ;;  %v11367_v10 = vor.u32 %v15852_v3, %v11364_v4  ;;  %v10788_v17 = vld [vmem:[#allocation2 + $0x50] sm:$0xf0] }
 0x16f   : > { %v16404_v24 = vld [vmem:[#allocation2 + $0x15cc] sm:$0xf0]  ;;  %v11300_v20 = vld [vmem:[#allocation2 + $0x450] sm:$0xf0] }
 0x170   : > { %v13539_v44 = vor.u32 %v16404_v24, %v13538_v18  ;;  %v12962_v32 = vld [vmem:[#allocation2 + $0x1110] sm:$0xf]  ;;  %5763 = vmatpush.bf16.msrb.mxu0 %v13027_v29  ;;  %5791 = vmatpush.bf16.msrb.mxu2 %v10983_v30  ;;  %v15836_v18 = vld [vmem:[#allocation2 + $0x414] sm:$0xf]  ;;  %v10791_v30 = vor.u32 %v15708_v15, %v10788_v17 }
 0x171   : > { %v16260_v34 = vld [vmem:[#allocation2 + $0x114c] sm:$0xf0]  ;;  %v12260_v24 = vld [vmem:[#allocation2 + $0xbd0] sm:$0xf0] }
 0x172   : > { %v13474_v36 = vld [vmem:[#allocation2 + $0x1510] sm:$0xf]  ;;  %v12963_v50 = vor.u32 %v16260_v34, %v12962_v32  ;;  %5777 = vmatpush.bf16.msrb.mxu1 %v13539_v44  ;;  %5805 = vmatpush.bf16.msrb.mxu3 %v11495_v37  ;;  %v16204_v25 = vld [vmem:[#allocation2 + $0xf94] sm:$0xf]  ;;  %v12263_v37 = vor.u32 %v16076_v21, %v12260_v24  ;;  %v17811_v21 = vpop.f32.mrf.mxu2 }
 0x173   : > { %v16388_v41 = vld [vmem:[#allocation2 + $0x154c] sm:$0xf0]  ;;  %v12772_v27 = vld [vmem:[#allocation2 + $0xfd0] sm:$0xf0]  ;;  %18526 = vst [vmem:[#allocation32_spill] sm:$0xff] %v17811_v21 }
 0x174   : > { %v13475_v52 = vor.u32 %v16388_v41, %v13474_v36  ;;  %v12898_v56 = vld [vmem:[#allocation2 + $0x1090] sm:$0xf]  ;;  %5764 = vmatpush.bf16.msrb.mxu0 %v12963_v50  ;;  %5792 = vmatpush.bf16.msrb.mxu2 %v10919_v53  ;;  %v16332_v28 = vld [vmem:[#allocation2 + $0x1394] sm:$0xf]  ;;  %v11303_v36 = vor.u32 %v15836_v18, %v11300_v20  ;;  %v12775_v40 = vor.u32 %v16204_v25, %v12772_v27  ;;  %v15815_v21 = vld [vmem:[#allocation2 + $0x364] sm:$0xf0] }
 0x175   : > { %v16244_v58 = vld [vmem:[#allocation2 + $0x10cc] sm:$0xf0]  ;;  %v13284_v29 = vld [vmem:[#allocation2 + $0x13d0] sm:$0xf0] }
 0x176   : > { %v13410_v60 = vld [vmem:[#allocation2 + $0x1490] sm:$0xf]  ;;  %v12899_v5 = vor.u32 %v16244_v58, %v12898_v56  ;;  %5778 = vmatpush.bf16.msrb.mxu1 %v13475_v52  ;;  %5806 = vmatpush.bf16.msrb.mxu3 %v11431_v61  ;;  %v16460_v32 = vld [vmem:[#allocation2 + $0x1794] sm:$0xf]  ;;  %v13287_v41 = vor.u32 %v16332_v28, %v13284_v29  ;;  %v17802_v52 = vpop.f32.mrf.mxu0 }
 0x177   : > { %v16372_v62 = vld [vmem:[#allocation2 + $0x14cc] sm:$0xf0]  ;;  %v13796_v34 = vld [vmem:[#allocation2 + $0x17d0] sm:$0xf0]  ;;  %18524 = vst [vmem:[#allocation30_spill] sm:$0xff] %v17802_v52 }
 0x178   : > { %v12834_v7 = vld [vmem:[#allocation2 + $0x1010] sm:$0xf]  ;;  %v13411_v9 = vor.u32 %v16372_v62, %v13410_v60  ;;  %5765 = vmatpush.bf16.msrb.mxu0 %v12899_v5  ;;  %5793 = vmatpush.bf16.msrb.mxu2 %v10855_v12  ;;  %v16060_v42 = vld [vmem:[#allocation2 + $0xb14] sm:$0xf]  ;;  %v13799_v47 = vor.u32 %v16460_v32, %v13796_v34  ;;  %v17804_v60 = vpop.f32.mrf.mxu1 }
 0x179   : > { %v16228_v8 = vld [vmem:[#allocation2 + $0x104c] sm:$0xf0]  ;;  %v12196_v43 = vld [vmem:[#allocation2 + $0xb50] sm:$0xf0]  ;;  %18525 = vst [vmem:[#allocation31_spill] sm:$0xff] %v17804_v60 }
 0x17a   : > { %v13346_v13 = vld [vmem:[#allocation2 + $0x1410] sm:$0xf]  ;;  %v12835_v26 = vor.u32 %v16228_v8, %v12834_v7  ;;  %5779 = vmatpush.bf16.msrb.mxu1 %v13411_v9  ;;  %5807 = vmatpush.bf16.msrb.mxu3 %v11367_v10  ;;  %v16188_v45 = vld [vmem:[#allocation2 + $0xf14] sm:$0xf]  ;;  %v12199_v58 = vor.u32 %v16060_v42, %v12196_v43 }
 0x17b   : > { %v16356_v14 = vld [vmem:[#allocation2 + $0x144c] sm:$0xf0]  ;;  %v12708_v48 = vld [vmem:[#allocation2 + $0xf50] sm:$0xf0] }
 0x17c   : > { %v13347_v44 = vor.u32 %v16356_v14, %v13346_v13  ;;  %5766 = vmatpush.bf16.msrb.mxu0 %v12835_v26  ;;  %v16316_v49 = vld [vmem:[#allocation2 + $0x1314] sm:$0xf]  ;;  %5794 = vmatpush.bf16.msrb.mxu2 %v10791_v30  ;;  %v12711_v61 = vor.u32 %v16188_v45, %v12708_v48  ;;  %v18497_v14 = vperm.slane %v17756_v46, 2  ;;  %v17813_v30 = vpop.f32.mrf.mxu3  ;;  %v16328_v60 = vld [vmem:[#allocation2 + $0x136c] sm:$0xf0] }
 0x17d   : > { %v13220_v50 = vld [vmem:[#allocation2 + $0x1350] sm:$0xf0]  ;;  %18527 = vst [vmem:[#allocation33_spill] sm:$0xff] %v17813_v30  ;;  %v13428_v30 = vld [vmem:[#allocation2 + $0x14e0] sm:$0xf0] }
 0x17e   : > { %5780 = vmatpush.bf16.msrb.mxu1 %v13347_v44  ;;  %v16444_v53 = vld [vmem:[#allocation2 + $0x1714] sm:$0xf]  ;;  %5808 = vmatpush.bf16.msrb.mxu3 %v11303_v36  ;;  %v13223_v62 = vor.u32 %v16316_v49, %v13220_v50  ;;  %v5544_v44 = vpop.f32.mrf.mxu0 }
 0x17f   : > { %v13732_v56 = vld [vmem:[#allocation2 + $0x1750] sm:$0xf0]  ;;  %5767 = vmatmul.bf16.vlgmr.msrb.gmra.mxu0 %v17740_v35  ;;  %5795 = vmatmul.bf16.vlgmr.msrb.gmra.mxu2 %v17718_v57  ;;  %v5545_v34 = vadd.f32 %v5544_v44, %v18497_v14  ;;  %v16189_v14 = vld [vmem:[#allocation2 + $0xf1c] sm:$0xf] }
 0x180   : > { %5815 = vmatpush.bf16.msra.mxu0 %v12263_v37  ;;  %5843 = vmatpush.bf16.msra.mxu2 %v13287_v41  ;;  %v16044_v63 = vld [vmem:[#allocation2 + $0xa94] sm:$0xf]  ;;  %v13735_v4 = vor.u32 %v16444_v53, %v13732_v56  ;;  %v5558_v43 = vpop.f32.mrf.mxu1 }
 0x181   : > { %v12132_v2 = vld [vmem:[#allocation2 + $0xad0] sm:$0xf0]  ;;  %5781 = vmatmul.bf16.vlgmr.msrb.gmra.mxu1 %v17742_v39  ;;  %5809 = vmatmul.bf16.vlgmr.msrb.gmra.mxu3 %v17723_v6  ;;  %v5559_v50 = vadd.f32 %v5558_v43, %v5545_v34 }
 0x182   : > { %5829 = vmatpush.bf16.msra.mxu1 %v12775_v40  ;;  %v16172_v3 = vld [vmem:[#allocation2 + $0xe94] sm:$0xf]  ;;  %5857 = vmatpush.bf16.msra.mxu3 %v13799_v47  ;;  %v12135_v13 = vor.u32 %v16044_v63, %v12132_v2 }
 0x183   : > { %v12644_v5 = vld [vmem:[#allocation2 + $0xed0] sm:$0xf0] }
 0x184   : > { %v16300_v7 = vld [vmem:[#allocation2 + $0x1294] sm:$0xf]  ;;  %5816 = vmatpush.bf16.msra.mxu0 %v12199_v58  ;;  %5844 = vmatpush.bf16.msra.mxu2 %v13223_v62  ;;  %v12647_v15 = vor.u32 %v16172_v3, %v12644_v5 }
 0x185   : > { %v13156_v8 = vld [vmem:[#allocation2 + $0x12d0] sm:$0xf0] }
 0x186   : > { %v16428_v9 = vld [vmem:[#allocation2 + $0x1694] sm:$0xf]  ;;  %5830 = vmatpush.bf16.msra.mxu1 %v12711_v61  ;;  %v13159_v10 = vor.u32 %v16300_v7, %v13156_v8  ;;  %5858 = vmatpush.bf16.msra.mxu3 %v13735_v4 }
 0x187   : > { %v13668_v12 = vld [vmem:[#allocation2 + $0x16d0] sm:$0xf0] }
 0x188   : > { %v16028_v17 = vld [vmem:[#allocation2 + $0xa14] sm:$0xf]  ;;  %v13671_v24 = vor.u32 %v16428_v9, %v13668_v12  ;;  %5817 = vmatpush.bf16.msra.mxu0 %v12135_v13  ;;  %5845 = vmatpush.bf16.msra.mxu2 %v13159_v10  ;;  %v5572_v9 = vpop.f32.mrf.mxu2 }
 0x189   : > { %v12068_v18 = vld [vmem:[#allocation2 + $0xa50] sm:$0xf0] }
 0x18a   : > { %v16156_v20 = vld [vmem:[#allocation2 + $0xe14] sm:$0xf]  ;;  %v12071_v32 = vor.u32 %v16028_v17, %v12068_v18  ;;  %5831 = vmatpush.bf16.msra.mxu1 %v12647_v15  ;;  %5859 = vmatpush.bf16.msra.mxu3 %v13671_v24  ;;  %v5573_v15 = vadd.f32 %v5572_v9, %v5559_v50  ;;  %v5586_v17 = vpop.f32.mrf.mxu3  ;;  %v16213_v9 = vld [vmem:[#allocation2 + $0xfd4] sm:$0xf0] }
 0x18b   : > { %v12580_v25 = vld [vmem:[#allocation2 + $0xe50] sm:$0xf0] }
 0x18c   : > { %v16284_v26 = vld [vmem:[#allocation2 + $0x1214] sm:$0xf]  ;;  %v12583_v36 = vor.u32 %v16156_v20, %v12580_v25  ;;  %5818 = vmatpush.bf16.msra.mxu0 %v12071_v32 }
 0x18d   : > { %v13092_v27 = vld [vmem:[#allocation2 + $0x1250] sm:$0xf0] }
 0x18e   : > { %v16412_v28 = vld [vmem:[#allocation2 + $0x1614] sm:$0xf]  ;;  %v13095_v37 = vor.u32 %v16284_v26, %v13092_v27  ;;  %5832 = vmatpush.bf16.msra.mxu1 %v12583_v36  ;;  %v17817_v27 = vadd.f32 %v5586_v17, %v5573_v15  ;;  %v17819_v17 = vpop.f32.mrf.mxu0 }
 0x18f   : > { %v13604_v29 = vld [vmem:[#allocation2 + $0x1650] sm:$0xf0]  ;;  %18528 = vst [vmem:[#allocation34_spill] sm:$0xff] %v17819_v17 }
 0x190   : > { %v16012_v40 = vld [vmem:[#allocation2 + $0x994] sm:$0xf]  ;;  %v13607_v45 = vor.u32 %v16412_v28, %v13604_v29  ;;  %5846 = vmatpush.bf16.msra.mxu2 %v13095_v37 }
 0x191   : > { %v12004_v41 = vld [vmem:[#allocation2 + $0x9d0] sm:$0xf0] }
 0x192   : > { %v16140_v42 = vld [vmem:[#allocation2 + $0xd94] sm:$0xf]  ;;  %v12007_v58 = vor.u32 %v16012_v40, %v12004_v41  ;;  %5860 = vmatpush.bf16.msra.mxu3 %v13607_v45 }
 0x193   : > { %v12516_v47 = vld [vmem:[#allocation2 + $0xdd0] sm:$0xf0] }
 0x194   : > { %v16268_v48 = vld [vmem:[#allocation2 + $0x1194] sm:$0xf]  ;;  %v12519_v61 = vor.u32 %v16140_v42, %v12516_v47  ;;  %5819 = vmatpush.bf16.msra.mxu0 %v12007_v58  ;;  %v11242_v58 = vld [vmem:[#allocation2 + $0x398] sm:$0xf] }
 0x195   : > { %v13028_v49 = vld [vmem:[#allocation2 + $0x11d0] sm:$0xf0] }
 0x196   : > { %v16396_v53 = vld [vmem:[#allocation2 + $0x1594] sm:$0xf]  ;;  %v13031_v62 = vor.u32 %v16268_v48, %v13028_v49  ;;  %5833 = vmatpush.bf16.msra.mxu1 %v12519_v61  ;;  %v15829_v61 = vld [vmem:[#allocation2 + $0x3d4] sm:$0xf0] }
 0x197   : > { %v13540_v56 = vld [vmem:[#allocation2 + $0x15d0] sm:$0xf0] }
 0x198   : > { %v15996_v63 = vld [vmem:[#allocation2 + $0x914] sm:$0xf]  ;;  %v13543_v4 = vor.u32 %v16396_v53, %v13540_v56  ;;  %5847 = vmatpush.bf16.msra.mxu2 %v13031_v62  ;;  %v11754_v62 = vld [vmem:[#allocation2 + $0x798] sm:$0xf] }
 0x199   : > { %v11940_v2 = vld [vmem:[#allocation2 + $0x950] sm:$0xf0] }
 0x19a   : > { %v16124_v3 = vld [vmem:[#allocation2 + $0xd14] sm:$0xf]  ;;  %v11943_v10 = vor.u32 %v15996_v63, %v11940_v2  ;;  %5861 = vmatpush.bf16.msra.mxu3 %v13543_v4  ;;  %v15957_v2 = vld [vmem:[#allocation2 + $0x7d4] sm:$0xf0] }
 0x19b   : > { %v12452_v5 = vld [vmem:[#allocation2 + $0xd50] sm:$0xf0]  ;;  %v16085_v4 = vld [vmem:[#allocation2 + $0xbd4] sm:$0xf0]  ;;  %v11755_v15 = vor.u32 %v15957_v2, %v11754_v62 }
 0x19c   : > { %v16252_v7 = vld [vmem:[#allocation2 + $0x1114] sm:$0xf]  ;;  %v12455_v18 = vor.u32 %v16124_v3, %v12452_v5  ;;  %5820 = vmatpush.bf16.msra.mxu0 %v11943_v10  ;;  %v12266_v3 = vld [vmem:[#allocation2 + $0xb98] sm:$0xf] }
 0x19d   : > { %v12964_v8 = vld [vmem:[#allocation2 + $0x1150] sm:$0xf0]  ;;  %v12267_v10 = vor.u32 %v16085_v4, %v12266_v3  ;;  %v11050_v62 = vld [vmem:[#allocation2 + $0x218] sm:$0xf] }
 0x19e   : > { %v16380_v12 = vld [vmem:[#allocation2 + $0x1514] sm:$0xf]  ;;  %v12967_v20 = vor.u32 %v16252_v7, %v12964_v8  ;;  %5834 = vmatpush.bf16.msra.mxu1 %v12455_v18  ;;  %v12778_v8 = vld [vmem:[#allocation2 + $0xf98] sm:$0xf] }
 0x19f   : > { %v13476_v13 = vld [vmem:[#allocation2 + $0x1550] sm:$0xf0]  ;;  %v11178_v18 = vld [vmem:[#allocation2 + $0x318] sm:$0xf] }
 0x1a0   : > { %v15980_v24 = vld [vmem:[#allocation2 + $0x894] sm:$0xf]  ;;  %v13479_v28 = vor.u32 %v16380_v12, %v13476_v13  ;;  %5848 = vmatpush.bf16.msra.mxu2 %v12967_v20  ;;  %v11243_v13 = vor.u32 %v15829_v61, %v11242_v58  ;;  %v15813_v20 = vld [vmem:[#allocation2 + $0x354] sm:$0xf0] }
 0x1a1   : > { %v11876_v25 = vld [vmem:[#allocation2 + $0x8d0] sm:$0xf0]  ;;  %v11562_v2 = vld [vmem:[#allocation2 + $0x618] sm:$0xf] }
 0x1a2   : > { %v16108_v26 = vld [vmem:[#allocation2 + $0xc94] sm:$0xf]  ;;  %v11879_v37 = vor.u32 %v15980_v24, %v11876_v25  ;;  %5862 = vmatpush.bf16.msra.mxu3 %v13479_v28  ;;  %v11690_v24 = vld [vmem:[#allocation2 + $0x718] sm:$0xf]  ;;  %v12779_v25 = vor.u32 %v16213_v9, %v12778_v8  ;;  %v17827_v8 = vpop.f32.mrf.mxu2  ;;  %v5600_v9 = vpop.f32.mrf.mxu0 }
 0x1a3   : > { %v12388_v29 = vld [vmem:[#allocation2 + $0xcd0] sm:$0xf0]  ;;  %v12202_v28 = vld [vmem:[#allocation2 + $0xb18] sm:$0xf]  ;;  %18530 = vst [vmem:[#allocation36_spill] sm:$0xff] %v17827_v8 }
 0x1a4   : > { %v16236_v44 = vld [vmem:[#allocation2 + $0x1094] sm:$0xf]  ;;  %v12391_v42 = vor.u32 %v16108_v26, %v12388_v29  ;;  %5821 = vmatpush.bf16.msra.mxu0 %v11879_v37  ;;  %v15941_v26 = vld [vmem:[#allocation2 + $0x754] sm:$0xf0]  ;;  %v16190_v8 = vld [vmem:[#allocation2 + $0xf24] sm:$0xf] }
 0x1a5   : > { %v12900_v32 = vld [vmem:[#allocation2 + $0x10d0] sm:$0xf0]  ;;  %v16069_v29 = vld [vmem:[#allocation2 + $0xb54] sm:$0xf0]  ;;  %v11691_v37 = vor.u32 %v15941_v26, %v11690_v24 }
 0x1a6   : > { %v16364_v34 = vld [vmem:[#allocation2 + $0x1494] sm:$0xf]  ;;  %v12903_v43 = vor.u32 %v16236_v44, %v12900_v32  ;;  %5835 = vmatpush.bf16.msra.mxu1 %v12391_v42  ;;  %v12714_v44 = vld [vmem:[#allocation2 + $0xf18] sm:$0xf] }
 0x1a7   : > { %v13412_v36 = vld [vmem:[#allocation2 + $0x14d0] sm:$0xf0]  ;;  %v16197_v32 = vld [vmem:[#allocation2 + $0xf54] sm:$0xf0] }
 0x1a8   : > { %v15964_v40 = vld [vmem:[#allocation2 + $0x814] sm:$0xf]  ;;  %v13415_v49 = vor.u32 %v16364_v34, %v13412_v36  ;;  %5849 = vmatpush.bf16.msra.mxu2 %v12903_v43  ;;  %v17821_v34 = vpop.f32.mrf.mxu1  ;;  %v11179_v36 = vor.u32 %v15813_v20, %v11178_v18  ;;  %v15797_v42 = vld [vmem:[#allocation2 + $0x2d4] sm:$0xf0]  ;;  %v17830_v18 = vpop.f32.mrf.mxu3 }
 0x1a9   : > { %v11812_v41 = vld [vmem:[#allocation2 + $0x850] sm:$0xf0]  ;;  %18529 = vst [vmem:[#allocation35_spill] sm:$0xff] %v17821_v34  ;;  %v11626_v43 = vld [vmem:[#allocation2 + $0x698] sm:$0xf] }
 0x1aa   : > { %v16092_v45 = vld [vmem:[#allocation2 + $0xc14] sm:$0xf]  ;;  %v11815_v63 = vor.u32 %v15964_v40, %v11812_v41  ;;  %5863 = vmatpush.bf16.msra.mxu3 %v13415_v49  ;;  %v12203_v40 = vor.u32 %v16069_v29, %v12202_v28  ;;  %v11114_v41 = vld [vmem:[#allocation2 + $0x298] sm:$0xf]  ;;  %18531 = vst [vmem:[#allocation37_spill] sm:$0xff] %v17830_v18 }
 0x1ab   : > { %v12324_v47 = vld [vmem:[#allocation2 + $0xc50] sm:$0xf0]  ;;  %v16053_v49 = vld [vmem:[#allocation2 + $0xad4] sm:$0xf0]  ;;  %v13236_v34 = vld [vmem:[#allocation2 + $0x1360] sm:$0xf0] }
 0x1ac   : > { %v16220_v48 = vld [vmem:[#allocation2 + $0x1014] sm:$0xf]  ;;  %v12327_v5 = vor.u32 %v16092_v45, %v12324_v47  ;;  %5822 = vmatpush.bf16.msra.mxu0 %v11815_v63  ;;  %v12715_v45 = vor.u32 %v16197_v32, %v12714_v44  ;;  %v15925_v47 = vld [vmem:[#allocation2 + $0x6d4] sm:$0xf0] }
 0x1ad   : > { %v12836_v50 = vld [vmem:[#allocation2 + $0x1050] sm:$0xf0]  ;;  %v11627_v58 = vor.u32 %v15925_v47, %v11626_v43  ;;  %v15781_v63 = vld [vmem:[#allocation2 + $0x254] sm:$0xf0] }
 0x1ae   : > { %v16348_v53 = vld [vmem:[#allocation2 + $0x1414] sm:$0xf]  ;;  %v12839_v7 = vor.u32 %v16220_v48, %v12836_v50  ;;  %5836 = vmatpush.bf16.msra.mxu1 %v12327_v5  ;;  %v12138_v48 = vld [vmem:[#allocation2 + $0xa98] sm:$0xf] }
 0x1af   : > { %v13348_v56 = vld [vmem:[#allocation2 + $0x1450] sm:$0xf0]  ;;  %5823 = vmatmul.bf16.vlgmr.msra.gmra.mxu0 %v17730_v22  ;;  %v12650_v50 = vld [vmem:[#allocation2 + $0xe98] sm:$0xf]  ;;  %v12139_v61 = vor.u32 %v16053_v49, %v12138_v48 }
 0x1b0   : > { %v13351_v12 = vor.u32 %v16348_v53, %v13348_v56  ;;  %5850 = vmatpush.bf16.msra.mxu2 %v12839_v7  ;;  %5871 = vmatpush.bf16.msrb.mxu0 %v11243_v13  ;;  %v16181_v53 = vld [vmem:[#allocation2 + $0xed4] sm:$0xf0]  ;;  %v11115_v56 = vor.u32 %v15797_v42, %v11114_v41  ;;  %v17834_v42 = vld [vmem:[#allocation4] sm:$0xff]  ;;  %v11204_v52 = vld [vmem:[#allocation2 + $0x370] sm:$0xf0] }
 0x1b1   : > { %5837 = vmatmul.bf16.vlgmr.msra.gmra.mxu1 %v17732_v23  ;;  %v12651_v3 = vor.u32 %v16181_v53, %v12650_v50  ;;  %v15909_v4 = vld [vmem:[#allocation2 + $0x654] sm:$0xf0]  ;;  %v18496_v43 = vperm.slane %v17834_v42, 3 }
 0x1b2   : > { %5864 = vmatpush.bf16.msra.mxu3 %v13351_v12  ;;  %5885 = vmatpush.bf16.msrb.mxu1 %v11755_v15  ;;  %v12074_v5 = vld [vmem:[#allocation2 + $0xa18] sm:$0xf]  ;;  %v5601_v15 = vadd.f32 %v5600_v9, %v17817_v27  ;;  %v11563_v20 = vor.u32 %v15909_v4, %v11562_v2 }
 0x1b3   : > { %5851 = vmatmul.bf16.vlgmr.msra.gmra.mxu2 %v17740_v35  ;;  %v16037_v7 = vld [vmem:[#allocation2 + $0xa54] sm:$0xf0] }
 0x1b4   : > { %5899 = vmatpush.bf16.msrb.mxu2 %v12267_v10  ;;  %5872 = vmatpush.bf16.msrb.mxu0 %v11179_v36  ;;  %v12586_v12 = vld [vmem:[#allocation2 + $0xe18] sm:$0xf]  ;;  %v11051_v10 = vor.u32 %v15781_v63, %v11050_v62  ;;  %v12075_v24 = vor.u32 %v16037_v7, %v12074_v5  ;;  %v5628_v63 = vpop.f32.mrf.mxu2  ;;  %v5642_v7 = vpop.f32.mrf.mxu3 }
 0x1b5   : > { %5865 = vmatmul.bf16.vlgmr.msra.gmra.mxu3 %v17742_v39  ;;  %v16165_v13 = vld [vmem:[#allocation2 + $0xe54] sm:$0xf0]  ;;  %v5629_v4 = vadd.f32 %v5628_v63, %v18496_v43  ;;  %v12204_v43 = vld [vmem:[#allocation2 + $0xb58] sm:$0xf0] }
 0x1b6   : > { %5913 = vmatpush.bf16.msrb.mxu3 %v12779_v25  ;;  %5886 = vmatpush.bf16.msrb.mxu1 %v11691_v37  ;;  %v5614_v25 = vpop.f32.mrf.mxu1  ;;  %v10986_v26 = vld [vmem:[#allocation2 + $0x198] sm:$0xf]  ;;  %v12587_v44 = vor.u32 %v16165_v13, %v12586_v12 }
 0x1b7   : > { %v15765_v28 = vld [vmem:[#allocation2 + $0x1d4] sm:$0xf0]  ;;  %v17832_v32 = vadd.f32 %v5614_v25, %v5601_v15 }
 0x1b8   : > { %5900 = vmatpush.bf16.msrb.mxu2 %v12203_v40  ;;  %5873 = vmatpush.bf16.msrb.mxu0 %v11115_v56  ;;  %v11498_v29 = vld [vmem:[#allocation2 + $0x598] sm:$0xf] }
 0x1b9   : > { %v15893_v36 = vld [vmem:[#allocation2 + $0x5d4] sm:$0xf0] }
 0x1ba   : > { %5914 = vmatpush.bf16.msrb.mxu3 %v12715_v45  ;;  %5887 = vmatpush.bf16.msrb.mxu1 %v11627_v58  ;;  %v12010_v37 = vld [vmem:[#allocation2 + $0x998] sm:$0xf]  ;;  %v10987_v45 = vor.u32 %v15765_v28, %v10986_v26  ;;  %v11499_v47 = vor.u32 %v15893_v36, %v11498_v29 }
 0x1bb   : > { %v16021_v40 = vld [vmem:[#allocation2 + $0x9d4] sm:$0xf0] }
 0x1bc   : > { %5901 = vmatpush.bf16.msrb.mxu2 %v12139_v61  ;;  %v12522_v41 = vld [vmem:[#allocation2 + $0xd98] sm:$0xf]  ;;  %5874 = vmatpush.bf16.msrb.mxu0 %v11051_v10  ;;  %v12011_v48 = vor.u32 %v16021_v40, %v12010_v37 }
 0x1bd   : > { %v16149_v27 = vld [vmem:[#allocation2 + $0xdd4] sm:$0xf0] }
 0x1be   : > { %5915 = vmatpush.bf16.msrb.mxu3 %v12651_v3  ;;  %5888 = vmatpush.bf16.msrb.mxu1 %v11563_v20  ;;  %v10922_v49 = vld [vmem:[#allocation2 + $0x118] sm:$0xf]  ;;  %v12523_v56 = vor.u32 %v16149_v27, %v12522_v41  ;;  %v17839_v20 = vadd.f32 %v5642_v7, %v5629_v4  ;;  %v11244_v4 = vld [vmem:[#allocation2 + $0x3d8] sm:$0xf0] }
 0x1bf   : > { %v15749_v50 = vld [vmem:[#allocation2 + $0x154] sm:$0xf0] }
 0x1c0   : > { %5902 = vmatpush.bf16.msrb.mxu2 %v12075_v24  ;;  %v11434_v53 = vld [vmem:[#allocation2 + $0x518] sm:$0xf]  ;;  %5875 = vmatpush.bf16.msrb.mxu0 %v10987_v45  ;;  %v10923_v5 = vor.u32 %v15749_v50, %v10922_v49 }
 0x1c1   : > { %v15877_v58 = vld [vmem:[#allocation2 + $0x554] sm:$0xf0] }
 0x1c2   : > { %5916 = vmatpush.bf16.msrb.mxu3 %v12587_v44  ;;  %v11946_v61 = vld [vmem:[#allocation2 + $0x918] sm:$0xf]  ;;  %5889 = vmatpush.bf16.msrb.mxu1 %v11499_v47  ;;  %v11435_v9 = vor.u32 %v15877_v58, %v11434_v53 }
 0x1c3   : > { %v16005_v62 = vld [vmem:[#allocation2 + $0x954] sm:$0xf0] }
 0x1c4   : > { %v12458_v2 = vld [vmem:[#allocation2 + $0xd18] sm:$0xf]  ;;  %5903 = vmatpush.bf16.msrb.mxu2 %v12011_v48  ;;  %v11947_v12 = vor.u32 %v16005_v62, %v11946_v61  ;;  %5876 = vmatpush.bf16.msrb.mxu0 %v10923_v5 }
 0x1c5   : > { %v16133_v3 = vld [vmem:[#allocation2 + $0xd54] sm:$0xf0] }
 0x1c6   : > { %v10858_v13 = vld [vmem:[#allocation2 + $0x98] sm:$0xf]  ;;  %5917 = vmatpush.bf16.msrb.mxu3 %v12523_v56  ;;  %v12459_v24 = vor.u32 %v16133_v3, %v12458_v2  ;;  %5890 = vmatpush.bf16.msrb.mxu1 %v11435_v9  ;;  %v15821_v3 = vld [vmem:[#allocation2 + $0x39c] sm:$0xf] }
 0x1c7   : > { %v15733_v15 = vld [vmem:[#allocation2 + $0xd4] sm:$0xf0]  ;;  %v15949_v9 = vld [vmem:[#allocation2 + $0x79c] sm:$0xf] }
 0x1c8   : > { %v11370_v10 = vld [vmem:[#allocation2 + $0x498] sm:$0xf]  ;;  %v10859_v36 = vor.u32 %v15733_v15, %v10858_v13  ;;  %5904 = vmatpush.bf16.msrb.mxu2 %v11947_v12  ;;  %v11756_v12 = vld [vmem:[#allocation2 + $0x7d8] sm:$0xf0] }
 0x1c9   : > { %v15861_v25 = vld [vmem:[#allocation2 + $0x4d4] sm:$0xf0] }
 0x1ca   : > { %v11882_v26 = vld [vmem:[#allocation2 + $0x898] sm:$0xf]  ;;  %v11371_v41 = vor.u32 %v15861_v25, %v11370_v10  ;;  %5918 = vmatpush.bf16.msrb.mxu3 %v12459_v24  ;;  %5877 = vmatpush.bf16.msrb.mxu0 %v10859_v36  ;;  %v11247_v24 = vor.u32 %v15821_v3, %v11244_v4  ;;  %v15805_v36 = vld [vmem:[#allocation2 + $0x31c] sm:$0xf] }
 0x1cb   : > { %v15989_v28 = vld [vmem:[#allocation2 + $0x8d4] sm:$0xf0]  ;;  %v11628_v3 = vld [vmem:[#allocation2 + $0x6d8] sm:$0xf0] }
 0x1cc   : > { %v12394_v29 = vld [vmem:[#allocation2 + $0xc98] sm:$0xf]  ;;  %v11883_v27 = vor.u32 %v15989_v28, %v11882_v26  ;;  %5891 = vmatpush.bf16.msrb.mxu1 %v11371_v41  ;;  %v15933_v41 = vld [vmem:[#allocation2 + $0x71c] sm:$0xf] }
 0x1cd   : > { %v16117_v44 = vld [vmem:[#allocation2 + $0xcd4] sm:$0xf0] }
 0x1ce   : > { %v10794_v37 = vld [vmem:[#allocation2 + $0x18] sm:$0xf]  ;;  %v12395_v49 = vor.u32 %v16117_v44, %v12394_v29  ;;  %5905 = vmatpush.bf16.msrb.mxu2 %v11883_v27  ;;  %v11759_v29 = vor.u32 %v15949_v9, %v11756_v12  ;;  %v11692_v27 = vld [vmem:[#allocation2 + $0x758] sm:$0xf0] }
 0x1cf   : > { %v15717_v40 = vld [vmem:[#allocation2 + $0x54] sm:$0xf0] }
 0x1d0   : > { %v11306_v45 = vld [vmem:[#allocation2 + $0x418] sm:$0xf]  ;;  %v10795_v63 = vor.u32 %v15717_v40, %v10794_v37  ;;  %5919 = vmatpush.bf16.msrb.mxu3 %v12395_v49  ;;  %v11180_v37 = vld [vmem:[#allocation2 + $0x358] sm:$0xf0]  ;;  %v17841_v40 = vpop.f32.mrf.mxu0 }
 0x1d1   : > { %v15845_v47 = vld [vmem:[#allocation2 + $0x454] sm:$0xf0]  ;;  %18532 = vst [vmem:[#allocation38_spill] sm:$0xff] %v17841_v40  ;;  %v11183_v49 = vor.u32 %v15805_v36, %v11180_v37  ;;  %v11564_v36 = vld [vmem:[#allocation2 + $0x658] sm:$0xf0] }
 0x1d2   : > { %v11818_v48 = vld [vmem:[#allocation2 + $0x818] sm:$0xf]  ;;  %v11307_v5 = vor.u32 %v15845_v47, %v11306_v45  ;;  %5878 = vmatpush.bf16.msrb.mxu0 %v10795_v63  ;;  %v17843_v47 = vpop.f32.mrf.mxu1  ;;  %v11116_v63 = vld [vmem:[#allocation2 + $0x2d8] sm:$0xf0]  ;;  %v11188_v40 = vld [vmem:[#allocation2 + $0x360] sm:$0xf0] }
 0x1d3   : > { %v15973_v50 = vld [vmem:[#allocation2 + $0x854] sm:$0xf0]  ;;  %18533 = vst [vmem:[#allocation39_spill] sm:$0xff] %v17843_v47  ;;  %v13746_v47 = vld [vmem:[#allocation2 + $0x1720] sm:$0xf] }
 0x1d4   : > { %v12330_v53 = vld [vmem:[#allocation2 + $0xc18] sm:$0xf]  ;;  %v11819_v7 = vor.u32 %v15973_v50, %v11818_v48  ;;  %5892 = vmatpush.bf16.msrb.mxu1 %v11307_v5  ;;  %v17848_v5 = vpop.f32.mrf.mxu2 }
 0x1d5   : > { %v16101_v56 = vld [vmem:[#allocation2 + $0xc54] sm:$0xf0]  ;;  %5879 = vmatmul.bf16.vlgmr.msrb.gmra.mxu0 %v17718_v57  ;;  %18534 = vst [vmem:[#allocation40_spill] sm:$0xff] %v17848_v5  ;;  %v16326_v5 = vld [vmem:[#allocation2 + $0x135c] sm:$0xf0] }
 0x1d6   : > { %v13290_v58 = vld [vmem:[#allocation2 + $0x1398] sm:$0xf]  ;;  %v12331_v13 = vor.u32 %v16101_v56, %v12330_v53  ;;  %5906 = vmatpush.bf16.msrb.mxu2 %v11819_v7 }
 0x1d7   : > { %v16341_v61 = vld [vmem:[#allocation2 + $0x13d4] sm:$0xf0]  ;;  %5893 = vmatmul.bf16.vlgmr.msrb.gmra.mxu1 %v17723_v6 }
 0x1d8   : > { %v13802_v62 = vld [vmem:[#allocation2 + $0x1798] sm:$0xf]  ;;  %v13291_v15 = vor.u32 %v16341_v61, %v13290_v58  ;;  %5920 = vmatpush.bf16.msrb.mxu3 %v12331_v13  ;;  %v11695_v58 = vor.u32 %v15933_v41, %v11692_v27 }
 0x1d9   : > { %v16469_v2 = vld [vmem:[#allocation2 + $0x17d4] sm:$0xf0]  ;;  %5907 = vmatmul.bf16.vlgmr.msrb.gmra.mxu2 %v17730_v22 }
 0x1da   : > { %v13803_v10 = vor.u32 %v16469_v2, %v13802_v62  ;;  %v13226_v25 = vld [vmem:[#allocation2 + $0x1318] sm:$0xf]  ;;  %5927 = vmatpush.bf16.msra.mxu0 %v13291_v15  ;;  %5955 = vmatpush.bf16.msra.mxu2 %v11247_v24  ;;  %v15789_v62 = vld [vmem:[#allocation2 + $0x29c] sm:$0xf]  ;;  %v17851_v24 = vpop.f32.mrf.mxu3 }
 0x1db   : > { %v16325_v26 = vld [vmem:[#allocation2 + $0x1354] sm:$0xf0]  ;;  %v15917_v2 = vld [vmem:[#allocation2 + $0x69c] sm:$0xf]  ;;  %5921 = vmatmul.bf16.vlgmr.msrb.gmra.mxu3 %v17732_v23  ;;  %v11119_v9 = vor.u32 %v15789_v62, %v11116_v63  ;;  %18535 = vst [vmem:[#allocation41_spill] sm:$0xff] %v17851_v24 }
 0x1dc   : > { %v13738_v28 = vld [vmem:[#allocation2 + $0x1718] sm:$0xf]  ;;  %v13227_v45 = vor.u32 %v16325_v26, %v13226_v25  ;;  %5941 = vmatpush.bf16.msra.mxu1 %v13803_v10  ;;  %5969 = vmatpush.bf16.msra.mxu3 %v11759_v29  ;;  %v11631_v10 = vor.u32 %v15917_v2, %v11628_v3  ;;  %v15773_v26 = vld [vmem:[#allocation2 + $0x21c] sm:$0xf]  ;;  %v5656_v29 = vpop.f32.mrf.mxu0  ;;  %v16118_v24 = vld [vmem:[#allocation2 + $0xcdc] sm:$0xf0] }
 0x1dd   : > { %v16453_v44 = vld [vmem:[#allocation2 + $0x1754] sm:$0xf0]  ;;  %v5657_v37 = vadd.f32 %v5656_v29, %v17839_v20  ;;  %v15757_v62 = vld [vmem:[#allocation2 + $0x19c] sm:$0xf] }
 0x1de   : > { %v13739_v48 = vor.u32 %v16453_v44, %v13738_v28  ;;  %v13162_v50 = vld [vmem:[#allocation2 + $0x1298] sm:$0xf]  ;;  %5928 = vmatpush.bf16.msra.mxu0 %v13227_v45  ;;  %5956 = vmatpush.bf16.msra.mxu2 %v11183_v49  ;;  %v11052_v28 = vld [vmem:[#allocation2 + $0x258] sm:$0xf0] }
 0x1df   : > { %v16309_v53 = vld [vmem:[#allocation2 + $0x12d4] sm:$0xf0]  ;;  %v15901_v44 = vld [vmem:[#allocation2 + $0x61c] sm:$0xf]  ;;  %v11055_v45 = vor.u32 %v15773_v26, %v11052_v28 }
 0x1e0   : > { %v13674_v56 = vld [vmem:[#allocation2 + $0x1698] sm:$0xf]  ;;  %v13163_v4 = vor.u32 %v16309_v53, %v13162_v50  ;;  %5942 = vmatpush.bf16.msra.mxu1 %v13739_v48  ;;  %5970 = vmatpush.bf16.msra.mxu3 %v11695_v58  ;;  %v5670_v48 = vpop.f32.mrf.mxu1  ;;  %v10988_v63 = vld [vmem:[#allocation2 + $0x1d8] sm:$0xf0] }
 0x1e1   : > { %v16437_v61 = vld [vmem:[#allocation2 + $0x16d4] sm:$0xf0]  ;;  %v5671_v58 = vadd.f32 %v5670_v48, %v5657_v37  ;;  %v15885_v2 = vld [vmem:[#allocation2 + $0x59c] sm:$0xf] }
 0x1e2   : > { %v13675_v7 = vor.u32 %v16437_v61, %v13674_v56  ;;  %v13098_v12 = vld [vmem:[#allocation2 + $0x1218] sm:$0xf]  ;;  %5929 = vmatpush.bf16.msra.mxu0 %v13163_v4  ;;  %5957 = vmatpush.bf16.msra.mxu2 %v11119_v9  ;;  %v11567_v56 = vor.u32 %v15901_v44, %v11564_v36  ;;  %v11500_v3 = vld [vmem:[#allocation2 + $0x5d8] sm:$0xf0]  ;;  %v5698_v37 = vpop.f32.mrf.mxu3 }
 0x1e3   : > { %v16293_v13 = vld [vmem:[#allocation2 + $0x1254] sm:$0xf0]  ;;  %v15741_v26 = vld [vmem:[#allocation2 + $0x11c] sm:$0xf] }
 0x1e4   : > { %v13610_v15 = vld [vmem:[#allocation2 + $0x1618] sm:$0xf]  ;;  %v13099_v41 = vor.u32 %v16293_v13, %v13098_v12  ;;  %5943 = vmatpush.bf16.msra.mxu1 %v13675_v7  ;;  %5971 = vmatpush.bf16.msra.mxu3 %v11631_v10  ;;  %v10991_v7 = vor.u32 %v15757_v62, %v10988_v63  ;;  %v10924_v28 = vld [vmem:[#allocation2 + $0x158] sm:$0xf0]  ;;  %v17856_v54 = vpop.f32.mrf.mxu0 }
 0x1e5   : > { %v16421_v25 = vld [vmem:[#allocation2 + $0x1654] sm:$0xf0]  ;;  %v15869_v44 = vld [vmem:[#allocation2 + $0x51c] sm:$0xf]  ;;  %v10927_v48 = vor.u32 %v15741_v26, %v10924_v28  ;;  %18536 = vst [vmem:[#allocation42_spill] sm:$0xff] %v17856_v54 }
 0x1e6   : > { %v13611_v27 = vor.u32 %v16421_v25, %v13610_v15  ;;  %v13034_v49 = vld [vmem:[#allocation2 + $0x1198] sm:$0xf]  ;;  %5930 = vmatpush.bf16.msra.mxu0 %v13099_v41  ;;  %5958 = vmatpush.bf16.msra.mxu2 %v11055_v45  ;;  %v11503_v15 = vor.u32 %v15885_v2, %v11500_v3  ;;  %v5684_v25 = vpop.f32.mrf.mxu2  ;;  %v11436_v36 = vld [vmem:[#allocation2 + $0x558] sm:$0xf0]  ;;  %v12210_v54 = vld [vmem:[#allocation2 + $0xb20] sm:$0xf] }
 0x1e7   : > { %v16277_v50 = vld [vmem:[#allocation2 + $0x11d4] sm:$0xf0]  ;;  %v5685_v29 = vadd.f32 %v5684_v25, %v5671_v58  ;;  %v15725_v62 = vld [vmem:[#allocation2 + $0x9c] sm:$0xf] }
 0x1e8   : > { %v13546_v53 = vld [vmem:[#allocation2 + $0x1598] sm:$0xf]  ;;  %v13035_v4 = vor.u32 %v16277_v50, %v13034_v49  ;;  %5944 = vmatpush.bf16.msra.mxu1 %v13611_v27  ;;  %5972 = vmatpush.bf16.msra.mxu3 %v11567_v56  ;;  %v11439_v56 = vor.u32 %v15869_v44, %v11436_v36  ;;  %v10860_v63 = vld [vmem:[#allocation2 + $0xd8] sm:$0xf0] }
 0x1e9   : > { %v16405_v61 = vld [vmem:[#allocation2 + $0x15d4] sm:$0xf0]  ;;  %v17854_v27 = vadd.f32 %v5698_v37, %v5685_v29  ;;  %v15853_v58 = vld [vmem:[#allocation2 + $0x49c] sm:$0xf] }
 0x1ea   : > { %v13547_v20 = vor.u32 %v16405_v61, %v13546_v53  ;;  %v12970_v9 = vld [vmem:[#allocation2 + $0x1118] sm:$0xf]  ;;  %5931 = vmatpush.bf16.msra.mxu0 %v13035_v4  ;;  %5959 = vmatpush.bf16.msra.mxu2 %v10991_v7  ;;  %v11372_v2 = vld [vmem:[#allocation2 + $0x4d8] sm:$0xf0]  ;;  %v10863_v7 = vor.u32 %v15725_v62, %v10860_v63 }
 0x1eb   : > { %v16261_v12 = vld [vmem:[#allocation2 + $0x1154] sm:$0xf0]  ;;  %v15709_v25 = vld [vmem:[#allocation2 + $0x1c] sm:$0xf] }
 0x1ec   : > { %v13482_v13 = vld [vmem:[#allocation2 + $0x1518] sm:$0xf]  ;;  %v12971_v41 = vor.u32 %v16261_v12, %v12970_v9  ;;  %5945 = vmatpush.bf16.msra.mxu1 %v13547_v20  ;;  %5973 = vmatpush.bf16.msra.mxu3 %v11503_v15  ;;  %v10796_v15 = vld [vmem:[#allocation2 + $0x58] sm:$0xf0] }
 0x1ed   : > { %v16389_v10 = vld [vmem:[#allocation2 + $0x1554] sm:$0xf0]  ;;  %v15837_v26 = vld [vmem:[#allocation2 + $0x41c] sm:$0xf] }
 0x1ee   : > { %v13483_v45 = vor.u32 %v16389_v10, %v13482_v13  ;;  %v12906_v49 = vld [vmem:[#allocation2 + $0x1098] sm:$0xf]  ;;  %5932 = vmatpush.bf16.msra.mxu0 %v12971_v41  ;;  %5960 = vmatpush.bf16.msra.mxu2 %v10927_v48  ;;  %v11375_v10 = vor.u32 %v15853_v58, %v11372_v2  ;;  %v11308_v28 = vld [vmem:[#allocation2 + $0x458] sm:$0xf0]  ;;  %v10799_v48 = vor.u32 %v15709_v25, %v10796_v15 }
 0x1ef   : > { %v16245_v50 = vld [vmem:[#allocation2 + $0x10d4] sm:$0xf0]  ;;  %v16077_v29 = vld [vmem:[#allocation2 + $0xb9c] sm:$0xf] }
 0x1f0   : > { %v13418_v53 = vld [vmem:[#allocation2 + $0x1498] sm:$0xf]  ;;  %v12907_v3 = vor.u32 %v16245_v50, %v12906_v49  ;;  %5946 = vmatpush.bf16.msra.mxu1 %v13483_v45  ;;  %5974 = vmatpush.bf16.msra.mxu3 %v11439_v56  ;;  %v12268_v44 = vld [vmem:[#allocation2 + $0xbd8] sm:$0xf0]  ;;  %v11311_v56 = vor.u32 %v15837_v26, %v11308_v28 }
 0x1f1   : > { %v16373_v61 = vld [vmem:[#allocation2 + $0x14d4] sm:$0xf0]  ;;  %v16205_v36 = vld [vmem:[#allocation2 + $0xf9c] sm:$0xf]  ;;  %v12271_v62 = vor.u32 %v16077_v29, %v12268_v44 }
 0x1f2   : > { %v12842_v4 = vld [vmem:[#allocation2 + $0x1018] sm:$0xf]  ;;  %v13419_v20 = vor.u32 %v16373_v61, %v13418_v53  ;;  %5933 = vmatpush.bf16.msra.mxu0 %v12907_v3  ;;  %v12780_v41 = vld [vmem:[#allocation2 + $0xfd8] sm:$0xf0]  ;;  %5961 = vmatpush.bf16.msra.mxu2 %v10863_v7 }
 0x1f3   : > { %v16229_v9 = vld [vmem:[#allocation2 + $0x1054] sm:$0xf0]  ;;  %v16333_v49 = vld [vmem:[#allocation2 + $0x139c] sm:$0xf]  ;;  %v12783_v63 = vor.u32 %v16205_v36, %v12780_v41 }
 0x1f4   : > { %v13354_v12 = vld [vmem:[#allocation2 + $0x1418] sm:$0xf]  ;;  %v12843_v37 = vor.u32 %v16229_v9, %v12842_v4  ;;  %v13292_v50 = vld [vmem:[#allocation2 + $0x13d8] sm:$0xf0]  ;;  %5947 = vmatpush.bf16.msra.mxu1 %v13419_v20  ;;  %5975 = vmatpush.bf16.msra.mxu3 %v11375_v10 }
 0x1f5   : > { %v16357_v13 = vld [vmem:[#allocation2 + $0x1454] sm:$0xf0]  ;;  %v16461_v53 = vld [vmem:[#allocation2 + $0x179c] sm:$0xf]  ;;  %v13295_v58 = vor.u32 %v16333_v49, %v13292_v50 }
 0x1f6   : > { %v13355_v45 = vor.u32 %v16357_v13, %v13354_v12  ;;  %v13804_v61 = vld [vmem:[#allocation2 + $0x17d8] sm:$0xf0]  ;;  %5934 = vmatpush.bf16.msra.mxu0 %v12843_v37  ;;  %5962 = vmatpush.bf16.msra.mxu2 %v10799_v48  ;;  %v17858_v13 = vpop.f32.mrf.mxu1 }
 0x1f7   : > { %v16061_v2 = vld [vmem:[#allocation2 + $0xb1c] sm:$0xf]  ;;  %v13807_v3 = vor.u32 %v16461_v53, %v13804_v61  ;;  %18537 = vst [vmem:[#allocation43_spill] sm:$0xff] %v17858_v13  ;;  %v17865_v61 = vpop.f32.mrf.mxu2  ;;  %v15814_v13 = vld [vmem:[#allocation2 + $0x35c] sm:$0xf0] }
 0x1f8   : > { %v12716_v4 = vld [vmem:[#allocation2 + $0xf58] sm:$0xf0]  ;;  %5948 = vmatpush.bf16.msra.mxu1 %v13355_v45  ;;  %5976 = vmatpush.bf16.msra.mxu3 %v11311_v56  ;;  %v12207_v12 = vor.u32 %v16061_v2, %v12204_v43  ;;  %18538 = vst [vmem:[#allocation44_spill] sm:$0xff] %v17865_v61  ;;  %v17867_v2 = vpop.f32.mrf.mxu3  ;;  %v11186_v61 = vld [vmem:[#allocation2 + $0x320] sm:$0xf] }
 0x1f9   : > { %v16317_v9 = vld [vmem:[#allocation2 + $0x131c] sm:$0xf]  ;;  %v12719_v25 = vor.u32 %v16189_v14, %v12716_v4  ;;  %5935 = vmatmul.bf16.vlgmr.msra.gmra.mxu0 %v17740_v35  ;;  %5963 = vmatmul.bf16.vlgmr.msra.gmra.mxu2 %v17718_v57  ;;  %18539 = vst [vmem:[#allocation45_spill] sm:$0xff] %v17867_v2 }
 0x1fa   : > { %v16445_v20 = vld [vmem:[#allocation2 + $0x171c] sm:$0xf]  ;;  %5983 = vmatpush.bf16.msrb.mxu0 %v12271_v62  ;;  %6011 = vmatpush.bf16.msrb.mxu2 %v13295_v58  ;;  %v13231_v10 = vor.u32 %v16317_v9, %v13228_v16  ;;  %v18500_v16 = vperm.slane %v17834_v42, 4  ;;  %v5712_v9 = vpop.f32.mrf.mxu0 }
 0x1fb   : > { %v13740_v7 = vld [vmem:[#allocation2 + $0x1758] sm:$0xf0]  ;;  %5949 = vmatmul.bf16.vlgmr.msra.gmra.mxu1 %v17742_v39  ;;  %5977 = vmatmul.bf16.vlgmr.msra.gmra.mxu3 %v17723_v6 }
 0x1fc   : > { %5997 = vmatpush.bf16.msrb.mxu1 %v12783_v63  ;;  %v16045_v15 = vld [vmem:[#allocation2 + $0xa9c] sm:$0xf]  ;;  %6025 = vmatpush.bf16.msrb.mxu3 %v13807_v3  ;;  %v13743_v29 = vor.u32 %v16445_v20, %v13740_v7  ;;  %v5713_v7 = vadd.f32 %v5712_v9, %v18500_v16 }
 0x1fd   : > { %v12140_v26 = vld [vmem:[#allocation2 + $0xad8] sm:$0xf0] }
 0x1fe   : > { %v16173_v28 = vld [vmem:[#allocation2 + $0xe9c] sm:$0xf]  ;;  %5984 = vmatpush.bf16.msrb.mxu0 %v12207_v12  ;;  %v12143_v49 = vor.u32 %v16045_v15, %v12140_v26  ;;  %6012 = vmatpush.bf16.msrb.mxu2 %v13231_v10 }
 0x1ff   : > { %v12652_v44 = vld [vmem:[#allocation2 + $0xed8] sm:$0xf0] }
 0x200   : > { %v16301_v36 = vld [vmem:[#allocation2 + $0x129c] sm:$0xf]  ;;  %5998 = vmatpush.bf16.msrb.mxu1 %v12719_v25  ;;  %v12655_v14 = vor.u32 %v16173_v28, %v12652_v44  ;;  %6026 = vmatpush.bf16.msrb.mxu3 %v13743_v29  ;;  %v5726_v28 = vpop.f32.mrf.mxu1 }
 0x201   : > { %v13164_v37 = vld [vmem:[#allocation2 + $0x12d8] sm:$0xf0] }
 0x202   : > { %v16429_v41 = vld [vmem:[#allocation2 + $0x169c] sm:$0xf]  ;;  %v13167_v50 = vor.u32 %v16301_v36, %v13164_v37  ;;  %5985 = vmatpush.bf16.msrb.mxu0 %v12143_v49 }
 0x203   : > { %v13676_v43 = vld [vmem:[#allocation2 + $0x16d8] sm:$0xf0] }
 0x204   : > { %v16029_v45 = vld [vmem:[#allocation2 + $0xa1c] sm:$0xf]  ;;  %v13679_v56 = vor.u32 %v16429_v41, %v13676_v43  ;;  %5999 = vmatpush.bf16.msrb.mxu1 %v12655_v14  ;;  %6013 = vmatpush.bf16.msrb.mxu2 %v13167_v50  ;;  %v5727_v41 = vadd.f32 %v5726_v28, %v5713_v7  ;;  %v5754_v28 = vpop.f32.mrf.mxu3 }
 0x205   : > { %v12076_v48 = vld [vmem:[#allocation2 + $0xa58] sm:$0xf0] }
 0x206   : > { %v16157_v53 = vld [vmem:[#allocation2 + $0xe1c] sm:$0xf]  ;;  %v12079_v20 = vor.u32 %v16029_v45, %v12076_v48  ;;  %6027 = vmatpush.bf16.msrb.mxu3 %v13679_v56 }
 0x207   : > { %v12588_v62 = vld [vmem:[#allocation2 + $0xe58] sm:$0xf0] }
 0x208   : > { %v16285_v63 = vld [vmem:[#allocation2 + $0x121c] sm:$0xf]  ;;  %v12591_v12 = vor.u32 %v16157_v53, %v12588_v62  ;;  %5986 = vmatpush.bf16.msrb.mxu0 %v12079_v20 }
 0x209   : > { %v13100_v58 = vld [vmem:[#allocation2 + $0x1258] sm:$0xf0] }
 0x20a   : > { %v16413_v3 = vld [vmem:[#allocation2 + $0x161c] sm:$0xf]  ;;  %v13103_v25 = vor.u32 %v16285_v63, %v13100_v58  ;;  %6000 = vmatpush.bf16.msrb.mxu1 %v12591_v12 }
 0x20b   : > { %v13612_v4 = vld [vmem:[#allocation2 + $0x1658] sm:$0xf0] }
 0x20c   : > { %v16013_v10 = vld [vmem:[#allocation2 + $0x99c] sm:$0xf]  ;;  %v13615_v29 = vor.u32 %v16413_v3, %v13612_v4  ;;  %6014 = vmatpush.bf16.msrb.mxu2 %v13103_v25  ;;  %v5740_v4 = vpop.f32.mrf.mxu2 }
 0x20d   : > { %v12012_v15 = vld [vmem:[#allocation2 + $0x9d8] sm:$0xf0]  ;;  %v5741_v7 = vadd.f32 %v5740_v4, %v5727_v41  ;;  %v11250_v4 = vld [vmem:[#allocation2 + $0x3a0] sm:$0xf] }
 0x20e   : > { %v16141_v26 = vld [vmem:[#allocation2 + $0xd9c] sm:$0xf]  ;;  %v12015_v45 = vor.u32 %v16013_v10, %v12012_v15  ;;  %6028 = vmatpush.bf16.msrb.mxu3 %v13615_v29 }
 0x20f   : > { %v12524_v44 = vld [vmem:[#allocation2 + $0xdd8] sm:$0xf0] }
 0x210   : > { %v16269_v36 = vld [vmem:[#allocation2 + $0x119c] sm:$0xf]  ;;  %v12527_v14 = vor.u32 %v16141_v26, %v12524_v44  ;;  %5987 = vmatpush.bf16.msrb.mxu0 %v12015_v45  ;;  %v17871_v44 = vadd.f32 %v5754_v28, %v5741_v7  ;;  %v11762_v7 = vld [vmem:[#allocation2 + $0x7a0] sm:$0xf] }
 0x211   : > { %v13036_v37 = vld [vmem:[#allocation2 + $0x11d8] sm:$0xf0] }
 0x212   : > { %v16397_v43 = vld [vmem:[#allocation2 + $0x159c] sm:$0xf]  ;;  %v13039_v50 = vor.u32 %v16269_v36, %v13036_v37  ;;  %6001 = vmatpush.bf16.msrb.mxu1 %v12527_v14 }
 0x213   : > { %v13548_v49 = vld [vmem:[#allocation2 + $0x15d8] sm:$0xf0] }
 0x214   : > { %v15997_v48 = vld [vmem:[#allocation2 + $0x91c] sm:$0xf]  ;;  %v13551_v63 = vor.u32 %v16397_v43, %v13548_v49  ;;  %6015 = vmatpush.bf16.msrb.mxu2 %v13039_v50 }
 0x215   : > { %v11948_v53 = vld [vmem:[#allocation2 + $0x958] sm:$0xf0] }
 0x216   : > { %v16125_v62 = vld [vmem:[#allocation2 + $0xd1c] sm:$0xf]  ;;  %v11951_v20 = vor.u32 %v15997_v48, %v11948_v53  ;;  %6029 = vmatpush.bf16.msrb.mxu3 %v13551_v63 }
 0x217   : > { %v12460_v58 = vld [vmem:[#allocation2 + $0xd58] sm:$0xf0] }
 0x218   : > { %v16253_v56 = vld [vmem:[#allocation2 + $0x111c] sm:$0xf]  ;;  %v12463_v12 = vor.u32 %v16125_v62, %v12460_v58  ;;  %5988 = vmatpush.bf16.msrb.mxu0 %v11951_v20  ;;  %v15958_v20 = vld [vmem:[#allocation2 + $0x7dc] sm:$0xf0] }
 0x219   : > { %v12972_v3 = vld [vmem:[#allocation2 + $0x1158] sm:$0xf0] }
 0x21a   : > { %v16381_v9 = vld [vmem:[#allocation2 + $0x151c] sm:$0xf]  ;;  %v12975_v25 = vor.u32 %v16253_v56, %v12972_v3  ;;  %6002 = vmatpush.bf16.msrb.mxu1 %v12463_v12 }
 0x21b   : > { %v13484_v16 = vld [vmem:[#allocation2 + $0x1558] sm:$0xf0] }
 0x21c   : > { %v15981_v10 = vld [vmem:[#allocation2 + $0x89c] sm:$0xf]  ;;  %v13487_v29 = vor.u32 %v16381_v9, %v13484_v16  ;;  %6016 = vmatpush.bf16.msrb.mxu2 %v12975_v25  ;;  %v15830_v9 = vld [vmem:[#allocation2 + $0x3dc] sm:$0xf0] }
 0x21d   : > { %v11884_v15 = vld [vmem:[#allocation2 + $0x8d8] sm:$0xf0] }
 0x21e   : > { %v16109_v26 = vld [vmem:[#allocation2 + $0xc9c] sm:$0xf]  ;;  %v11887_v41 = vor.u32 %v15981_v10, %v11884_v15  ;;  %6030 = vmatpush.bf16.msrb.mxu3 %v13487_v29  ;;  %v12274_v10 = vld [vmem:[#allocation2 + $0xba0] sm:$0xf] }
 0x21f   : > { %v12396_v36 = vld [vmem:[#allocation2 + $0xcd8] sm:$0xf0]  ;;  %v16086_v15 = vld [vmem:[#allocation2 + $0xbdc] sm:$0xf0] }
 0x220   : > { %v16237_v37 = vld [vmem:[#allocation2 + $0x109c] sm:$0xf]  ;;  %v12399_v14 = vor.u32 %v16109_v26, %v12396_v36  ;;  %5989 = vmatpush.bf16.msrb.mxu0 %v11887_v41  ;;  %v12786_v26 = vld [vmem:[#allocation2 + $0xfa0] sm:$0xf] }
 0x221   : > { %v12908_v43 = vld [vmem:[#allocation2 + $0x10d8] sm:$0xf0]  ;;  %v16214_v36 = vld [vmem:[#allocation2 + $0xfdc] sm:$0xf0] }
 0x222   : > { %v16365_v49 = vld [vmem:[#allocation2 + $0x149c] sm:$0xf]  ;;  %v12911_v50 = vor.u32 %v16237_v37, %v12908_v43  ;;  %6003 = vmatpush.bf16.msrb.mxu1 %v12399_v14  ;;  %v11763_v37 = vor.u32 %v15958_v20, %v11762_v7  ;;  %v12275_v43 = vor.u32 %v16086_v15, %v12274_v10  ;;  %v11698_v41 = vld [vmem:[#allocation2 + $0x720] sm:$0xf] }
 0x223   : > { %v13420_v2 = vld [vmem:[#allocation2 + $0x14d8] sm:$0xf0]  ;;  %v16070_v14 = vld [vmem:[#allocation2 + $0xb5c] sm:$0xf0] }
 0x224   : > { %v15965_v45 = vld [vmem:[#allocation2 + $0x81c] sm:$0xf]  ;;  %v13423_v56 = vor.u32 %v16365_v49, %v13420_v2  ;;  %6017 = vmatpush.bf16.msrb.mxu2 %v12911_v50  ;;  %v11251_v2 = vor.u32 %v15830_v9, %v11250_v4  ;;  %v17873_v49 = vpop.f32.mrf.mxu0  ;;  %v17875_v50 = vpop.f32.mrf.mxu1  ;;  %v11634_v4 = vld [vmem:[#allocation2 + $0x6a0] sm:$0xf] }
 0x225   : > { %v11820_v48 = vld [vmem:[#allocation2 + $0x858] sm:$0xf0]  ;;  %v15926_v7 = vld [vmem:[#allocation2 + $0x6dc] sm:$0xf0] }
 0x226   : > { %v16093_v53 = vld [vmem:[#allocation2 + $0xc1c] sm:$0xf]  ;;  %v11823_v28 = vor.u32 %v15965_v45, %v11820_v48  ;;  %6031 = vmatpush.bf16.msrb.mxu3 %v13423_v56  ;;  %v12787_v45 = vor.u32 %v16214_v36, %v12786_v26  ;;  %v15942_v48 = vld [vmem:[#allocation2 + $0x75c] sm:$0xf0] }
 0x227   : > { %v12332_v62 = vld [vmem:[#allocation2 + $0xc58] sm:$0xf0]  ;;  %v11699_v56 = vor.u32 %v15942_v48, %v11698_v41  ;;  %v16054_v20 = vld [vmem:[#allocation2 + $0xadc] sm:$0xf0] }
 0x228   : > { %v16221_v58 = vld [vmem:[#allocation2 + $0x101c] sm:$0xf]  ;;  %v12335_v12 = vor.u32 %v16093_v53, %v12332_v62  ;;  %5990 = vmatpush.bf16.msrb.mxu0 %v11823_v28  ;;  %v12722_v53 = vld [vmem:[#allocation2 + $0xf20] sm:$0xf] }
 0x229   : > { %v12844_v63 = vld [vmem:[#allocation2 + $0x1058] sm:$0xf0]  ;;  %v16198_v62 = vld [vmem:[#allocation2 + $0xf5c] sm:$0xf0] }
 0x22a   : > { %v16349_v16 = vld [vmem:[#allocation2 + $0x141c] sm:$0xf]  ;;  %v12847_v25 = vor.u32 %v16221_v58, %v12844_v63  ;;  %6004 = vmatpush.bf16.msrb.mxu1 %v12335_v12  ;;  %v11187_v58 = vor.u32 %v15814_v13, %v11186_v61  ;;  %v12211_v63 = vor.u32 %v16070_v14, %v12210_v54  ;;  %v12723_v9 = vor.u32 %v16198_v62, %v12722_v53  ;;  %v12146_v28 = vld [vmem:[#allocation2 + $0xaa0] sm:$0xf] }
 0x22b   : > { %v13356_v3 = vld [vmem:[#allocation2 + $0x1458] sm:$0xf0]  ;;  %5991 = vmatmul.bf16.vlgmr.msrb.gmra.mxu0 %v17730_v22  ;;  %v12658_v10 = vld [vmem:[#allocation2 + $0xea0] sm:$0xf]  ;;  %v11635_v61 = vor.u32 %v15926_v7, %v11634_v4  ;;  %v12147_v15 = vor.u32 %v16054_v20, %v12146_v28 }
 0x22c   : > { %v13359_v29 = vor.u32 %v16349_v16, %v13356_v3  ;;  %6018 = vmatpush.bf16.msrb.mxu2 %v12847_v25  ;;  %6039 = vmatpush.bf16.msra.mxu0 %v11251_v2  ;;  %v11122_v16 = vld [vmem:[#allocation2 + $0x2a0] sm:$0xf]  ;;  %v5768_v41 = vpop.f32.mrf.mxu0  ;;  %v5782_v62 = vpop.f32.mrf.mxu1 }
 0x22d   : > { %v15798_v3 = vld [vmem:[#allocation2 + $0x2dc] sm:$0xf0]  ;;  %6005 = vmatmul.bf16.vlgmr.msrb.gmra.mxu1 %v17732_v23  ;;  %v5769_v14 = vadd.f32 %v5768_v41, %v17871_v44 }
 0x22e   : > { %6032 = vmatpush.bf16.msrb.mxu3 %v13359_v29  ;;  %6053 = vmatpush.bf16.msra.mxu1 %v11763_v37  ;;  %v16182_v13 = vld [vmem:[#allocation2 + $0xedc] sm:$0xf0]  ;;  %v11123_v54 = vor.u32 %v15798_v3, %v11122_v16 }
 0x22f   : > { %6019 = vmatmul.bf16.vlgmr.msrb.gmra.mxu2 %v17740_v35  ;;  %v11058_v12 = vld [vmem:[#allocation2 + $0x220] sm:$0xf]  ;;  %v12659_v36 = vor.u32 %v16182_v13, %v12658_v10  ;;  %v5783_v7 = vadd.f32 %v5782_v62, %v5769_v14 }
 0x230   : > { %6067 = vmatpush.bf16.msra.mxu2 %v12275_v43  ;;  %6040 = vmatpush.bf16.msra.mxu0 %v11187_v58  ;;  %v15782_v25 = vld [vmem:[#allocation2 + $0x25c] sm:$0xf0]  ;;  %v17881_v43 = vpop.f32.mrf.mxu2  ;;  %v17884_v58 = vpop.f32.mrf.mxu3 }
 0x231   : > { %6033 = vmatmul.bf16.vlgmr.msrb.gmra.mxu3 %v17742_v39  ;;  %v11570_v26 = vld [vmem:[#allocation2 + $0x620] sm:$0xf]  ;;  %v11059_v53 = vor.u32 %v15782_v25, %v11058_v12  ;;  %v6711_v12 = vmax.f32 %v17780_v11, 0.0 }
 0x232   : > { %6081 = vmatpush.bf16.msra.mxu3 %v12787_v45  ;;  %6054 = vmatpush.bf16.msra.mxu1 %v11699_v56  ;;  %v15910_v29 = vld [vmem:[#allocation2 + $0x65c] sm:$0xf0] }
 0x233   : > { %v12082_v2 = vld [vmem:[#allocation2 + $0xa20] sm:$0xf]  ;;  %v11571_v56 = vor.u32 %v15910_v29, %v11570_v26 }
 0x234   : > { %6068 = vmatpush.bf16.msra.mxu2 %v12211_v63  ;;  %v16038_v37 = vld [vmem:[#allocation2 + $0xa5c] sm:$0xf0]  ;;  %6041 = vmatpush.bf16.msra.mxu0 %v11123_v54  ;;  %v17894_v18 = vpop.f32.mrf.mxu0 }
 0x235   : > { %v12594_v45 = vld [vmem:[#allocation2 + $0xe20] sm:$0xf]  ;;  %v12083_v63 = vor.u32 %v16038_v37, %v12082_v2 }
 0x236   : > { %6082 = vmatpush.bf16.msra.mxu3 %v12723_v9  ;;  %v16166_v48 = vld [vmem:[#allocation2 + $0xe5c] sm:$0xf0]  ;;  %6055 = vmatpush.bf16.msra.mxu1 %v11635_v61  ;;  %v6715_v61 = vmax.f32 %v5783_v7, 0.0 }
 0x237   : > { %v10994_v16 = vld [vmem:[#allocation2 + $0x1a0] sm:$0xf]  ;;  %v12595_v9 = vor.u32 %v16166_v48, %v12594_v45 }
 0x238   : > { %6069 = vmatpush.bf16.msra.mxu2 %v12147_v15  ;;  %v15766_v3 = vld [vmem:[#allocation2 + $0x1dc] sm:$0xf0]  ;;  %6042 = vmatpush.bf16.msra.mxu0 %v11059_v53  ;;  %v17888_v37 = vmax.f32 %v6711_v12, %v6715_v61  ;;  %v5796_v62 = vpop.f32.mrf.mxu2  ;;  %v18540_v53 = vperm.slane %v17834_v42, 5 }
 0x239   : > { %v11506_v4 = vld [vmem:[#allocation2 + $0x5a0] sm:$0xf]  ;;  %v10995_v15 = vor.u32 %v15766_v3, %v10994_v16 }
 0x23a   : > { %6083 = vmatpush.bf16.msra.mxu3 %v12659_v36  ;;  %v15894_v28 = vld [vmem:[#allocation2 + $0x5dc] sm:$0xf0]  ;;  %6056 = vmatpush.bf16.msra.mxu1 %v11571_v56  ;;  %v5797_v16 = vadd.f32 %v5796_v62, %v18540_v53 }
 0x23b   : > { %v12018_v20 = vld [vmem:[#allocation2 + $0x9a0] sm:$0xf]  ;;  %v11507_v25 = vor.u32 %v15894_v28, %v11506_v4 }
 0x23c   : > { %v16022_v10 = vld [vmem:[#allocation2 + $0x9dc] sm:$0xf0]  ;;  %6070 = vmatpush.bf16.msra.mxu2 %v12083_v63  ;;  %6043 = vmatpush.bf16.msra.mxu0 %v10995_v15  ;;  %v5810_v63 = vpop.f32.mrf.mxu3 }
 0x23d   : > { %v12530_v13 = vld [vmem:[#allocation2 + $0xda0] sm:$0xf]  ;;  %v12019_v26 = vor.u32 %v16022_v10, %v12018_v20  ;;  %v17892_v20 = vadd.f32 %v5810_v63, %v5797_v16 }
 0x23e   : > { %v16150_v54 = vld [vmem:[#allocation2 + $0xddc] sm:$0xf0]  ;;  %6084 = vmatpush.bf16.msra.mxu3 %v12595_v9  ;;  %6057 = vmatpush.bf16.msra.mxu1 %v11507_v25 }
 0x23f   : > { %v10930_v29 = vld [vmem:[#allocation2 + $0x120] sm:$0xf]  ;;  %v12531_v41 = vor.u32 %v16150_v54, %v12530_v13 }
 0x240   : > { %v15750_v36 = vld [vmem:[#allocation2 + $0x15c] sm:$0xf0]  ;;  %6071 = vmatpush.bf16.msra.mxu2 %v12019_v26 }
 0x241   : > { %v11442_v2 = vld [vmem:[#allocation2 + $0x520] sm:$0xf]  ;;  %v10931_v56 = vor.u32 %v15750_v36, %v10930_v29 }
 0x242   : > { %v15878_v45 = vld [vmem:[#allocation2 + $0x55c] sm:$0xf0]  ;;  %6085 = vmatpush.bf16.msra.mxu3 %v12531_v41 }
 0x243   : > { %v11954_v48 = vld [vmem:[#allocation2 + $0x920] sm:$0xf]  ;;  %v11443_v3 = vor.u32 %v15878_v45, %v11442_v2  ;;  %6044 = vmatpush.bf16.msra.mxu0 %v10931_v56 }
 0x244   : > { %v16006_v14 = vld [vmem:[#allocation2 + $0x95c] sm:$0xf0] }
 0x245   : > { %v12466_v44 = vld [vmem:[#allocation2 + $0xd20] sm:$0xf]  ;;  %v11955_v4 = vor.u32 %v16006_v14, %v11954_v48  ;;  %6058 = vmatpush.bf16.msra.mxu1 %v11443_v3 }
 0x246   : > { %v16134_v11 = vld [vmem:[#allocation2 + $0xd5c] sm:$0xf0] }
 0x247   : > { %v10866_v9 = vld [vmem:[#allocation2 + $0xa0] sm:$0xf]  ;;  %v12467_v10 = vor.u32 %v16134_v11, %v12466_v44  ;;  %6072 = vmatpush.bf16.msra.mxu2 %v11955_v4 }
 0x248   : > { %v15734_v7 = vld [vmem:[#allocation2 + $0xdc] sm:$0xf0] }
 0x249   : > { %v11378_v28 = vld [vmem:[#allocation2 + $0x4a0] sm:$0xf]  ;;  %v10867_v15 = vor.u32 %v15734_v7, %v10866_v9  ;;  %6086 = vmatpush.bf16.msra.mxu3 %v12467_v10  ;;  %v15822_v9 = vld [vmem:[#allocation2 + $0x3a4] sm:$0xf] }
 0x24a   : > { %v15862_v13 = vld [vmem:[#allocation2 + $0x4dc] sm:$0xf0]  ;;  %v11252_v7 = vld [vmem:[#allocation2 + $0x3e0] sm:$0xf0] }
 0x24b   : > { %v11890_v54 = vld [vmem:[#allocation2 + $0x8a0] sm:$0xf]  ;;  %v11379_v25 = vor.u32 %v15862_v13, %v11378_v28  ;;  %6045 = vmatpush.bf16.msra.mxu0 %v10867_v15  ;;  %v15950_v28 = vld [vmem:[#allocation2 + $0x7a4] sm:$0xf] }
 0x24c   : > { %v15990_v12 = vld [vmem:[#allocation2 + $0x8dc] sm:$0xf0]  ;;  %v11764_v13 = vld [vmem:[#allocation2 + $0x7e0] sm:$0xf0] }
 0x24d   : > { %v12402_v61 = vld [vmem:[#allocation2 + $0xca0] sm:$0xf]  ;;  %v11891_v26 = vor.u32 %v15990_v12, %v11890_v54  ;;  %6059 = vmatpush.bf16.msra.mxu1 %v11379_v25  ;;  %v11255_v12 = vor.u32 %v15822_v9, %v11252_v7  ;;  %v11767_v15 = vor.u32 %v15950_v28, %v11764_v13  ;;  %v15934_v25 = vld [vmem:[#allocation2 + $0x724] sm:$0xf] }
 0x24e   : > { %v10802_v29 = vld [vmem:[#allocation2 + $0x20] sm:$0xf]  ;;  %v12403_v14 = vor.u32 %v16118_v24, %v12402_v61  ;;  %v11636_v9 = vld [vmem:[#allocation2 + $0x6e0] sm:$0xf0] }
 0x24f   : > { %v15718_v36 = vld [vmem:[#allocation2 + $0x5c] sm:$0xf0]  ;;  %6073 = vmatpush.bf16.msra.mxu2 %v11891_v26  ;;  %v11700_v26 = vld [vmem:[#allocation2 + $0x760] sm:$0xf0] }
 0x250   : > { %v11314_v2 = vld [vmem:[#allocation2 + $0x420] sm:$0xf]  ;;  %v10803_v56 = vor.u32 %v15718_v36, %v10802_v29  ;;  %6087 = vmatpush.bf16.msra.mxu3 %v12403_v14  ;;  %v15806_v36 = vld [vmem:[#allocation2 + $0x324] sm:$0xf] }
 0x251   : > { %v15846_v45 = vld [vmem:[#allocation2 + $0x45c] sm:$0xf0]  ;;  %v11191_v14 = vor.u32 %v15806_v36, %v11188_v40 }
 0x252   : > { %v11826_v48 = vld [vmem:[#allocation2 + $0x820] sm:$0xf]  ;;  %v11315_v3 = vor.u32 %v15846_v45, %v11314_v2  ;;  %6046 = vmatpush.bf16.msra.mxu0 %v10803_v56  ;;  %v17896_v45 = vpop.f32.mrf.mxu1  ;;  %v11124_v56 = vld [vmem:[#allocation2 + $0x2e0] sm:$0xf0] }
 0x253   : > { %v15974_v41 = vld [vmem:[#allocation2 + $0x85c] sm:$0xf0] }
 0x254   : > { %v12338_v44 = vld [vmem:[#allocation2 + $0xc20] sm:$0xf]  ;;  %v11827_v4 = vor.u32 %v15974_v41, %v11826_v48  ;;  %6060 = vmatpush.bf16.msra.mxu1 %v11315_v3  ;;  %v17904_v3 = vpop.f32.mrf.mxu3 }
 0x255   : > { %v16102_v62 = vld [vmem:[#allocation2 + $0xc5c] sm:$0xf0]  ;;  %6047 = vmatmul.bf16.vlgmr.msra.gmra.mxu0 %v17718_v57  ;;  %18541 = vst [vmem:[#allocation46_spill] sm:$0xff] %v17904_v3 }
 0x256   : > { %v13298_v11 = vld [vmem:[#allocation2 + $0x13a0] sm:$0xf]  ;;  %v12339_v10 = vor.u32 %v16102_v62, %v12338_v44  ;;  %6074 = vmatpush.bf16.msra.mxu2 %v11827_v4 }
 0x257   : > { %v16342_v53 = vld [vmem:[#allocation2 + $0x13dc] sm:$0xf0]  ;;  %6061 = vmatmul.bf16.vlgmr.msra.gmra.mxu1 %v17723_v6 }
 0x258   : > { %v13810_v16 = vld [vmem:[#allocation2 + $0x17a0] sm:$0xf]  ;;  %v13299_v24 = vor.u32 %v16342_v53, %v13298_v11  ;;  %6088 = vmatpush.bf16.msra.mxu3 %v12339_v10  ;;  %v11703_v11 = vor.u32 %v15934_v25, %v11700_v26 }
 0x259   : > { %v16470_v63 = vld [vmem:[#allocation2 + $0x17dc] sm:$0xf0]  ;;  %6075 = vmatmul.bf16.vlgmr.msra.gmra.mxu2 %v17730_v22 }
 0x25a   : > { %v13811_v54 = vor.u32 %v16470_v63, %v13810_v16  ;;  %v13234_v61 = vld [vmem:[#allocation2 + $0x1320] sm:$0xf]  ;;  %6095 = vmatpush.bf16.msrb.mxu0 %v13299_v24  ;;  %6123 = vmatpush.bf16.msrb.mxu2 %v11255_v12  ;;  %v15790_v16 = vld [vmem:[#allocation2 + $0x2a4] sm:$0xf] }
 0x25b   : > { %v16454_v29 = vld [vmem:[#allocation2 + $0x175c] sm:$0xf0]  ;;  %v13235_v2 = vor.u32 %v16326_v5, %v13234_v61  ;;  %v15918_v63 = vld [vmem:[#allocation2 + $0x6a4] sm:$0xf]  ;;  %6089 = vmatmul.bf16.vlgmr.msra.gmra.mxu3 %v17732_v23  ;;  %v11127_v7 = vor.u32 %v15790_v16, %v11124_v56  ;;  %v5824_v61 = vpop.f32.mrf.mxu0 }
 0x25c   : > { %6109 = vmatpush.bf16.msrb.mxu1 %v13811_v54  ;;  %v13747_v48 = vor.u32 %v16454_v29, %v13746_v47  ;;  %v13170_v41 = vld [vmem:[#allocation2 + $0x12a0] sm:$0xf]  ;;  %6137 = vmatpush.bf16.msrb.mxu3 %v11767_v15  ;;  %v17901_v47 = vpop.f32.mrf.mxu2  ;;  %v11639_v10 = vor.u32 %v15918_v63, %v11636_v9  ;;  %v15774_v54 = vld [vmem:[#allocation2 + $0x224] sm:$0xf]  ;;  %v5825_v36 = vadd.f32 %v5824_v61, %v17892_v20 }
 0x25d   : > { %v16310_v44 = vld [vmem:[#allocation2 + $0x12dc] sm:$0xf0]  ;;  %v11060_v12 = vld [vmem:[#allocation2 + $0x260] sm:$0xf0] }
 0x25e   : > { %v13682_v62 = vld [vmem:[#allocation2 + $0x16a0] sm:$0xf]  ;;  %6096 = vmatpush.bf16.msrb.mxu0 %v13235_v2  ;;  %v13171_v5 = vor.u32 %v16310_v44, %v13170_v41  ;;  %6124 = vmatpush.bf16.msrb.mxu2 %v11191_v14  ;;  %v15902_v15 = vld [vmem:[#allocation2 + $0x624] sm:$0xf]  ;;  %v11063_v2 = vor.u32 %v15774_v54, %v11060_v12 }
 0x25f   : > { %v16438_v53 = vld [vmem:[#allocation2 + $0x16dc] sm:$0xf0]  ;;  %v11572_v29 = vld [vmem:[#allocation2 + $0x660] sm:$0xf0] }
 0x260   : > { %6110 = vmatpush.bf16.msrb.mxu1 %v13747_v48  ;;  %v13683_v40 = vor.u32 %v16438_v53, %v13682_v62  ;;  %v13106_v4 = vld [vmem:[#allocation2 + $0x1220] sm:$0xf]  ;;  %6138 = vmatpush.bf16.msrb.mxu3 %v11703_v11  ;;  %v5838_v48 = vpop.f32.mrf.mxu1  ;;  %v11575_v62 = vor.u32 %v15902_v15, %v11572_v29  ;;  %v15758_v16 = vld [vmem:[#allocation2 + $0x1a4] sm:$0xf]  ;;  %v5866_v15 = vpop.f32.mrf.mxu3 }
 0x261   : > { %v16294_v28 = vld [vmem:[#allocation2 + $0x125c] sm:$0xf0]  ;;  %v5839_v11 = vadd.f32 %v5838_v48, %v5825_v36  ;;  %v10996_v56 = vld [vmem:[#allocation2 + $0x1e0] sm:$0xf0] }
 0x262   : > { %v13618_v13 = vld [vmem:[#allocation2 + $0x1620] sm:$0xf]  ;;  %6097 = vmatpush.bf16.msrb.mxu0 %v13171_v5  ;;  %v13107_v25 = vor.u32 %v16294_v28, %v13106_v4  ;;  %6125 = vmatpush.bf16.msrb.mxu2 %v11127_v7  ;;  %v15886_v63 = vld [vmem:[#allocation2 + $0x5a4] sm:$0xf] }
 0x263   : > { %v16422_v24 = vld [vmem:[#allocation2 + $0x165c] sm:$0xf0]  ;;  %v11508_v9 = vld [vmem:[#allocation2 + $0x5e0] sm:$0xf0]  ;;  %v17910_v17 = vpop.f32.mrf.mxu0 }
 0x264   : > { %6111 = vmatpush.bf16.msrb.mxu1 %v13683_v40  ;;  %v13619_v26 = vor.u32 %v16422_v24, %v13618_v13  ;;  %v13042_v14 = vld [vmem:[#allocation2 + $0x11a0] sm:$0xf]  ;;  %6139 = vmatpush.bf16.msrb.mxu3 %v11639_v10  ;;  %v10999_v40 = vor.u32 %v15758_v16, %v10996_v56  ;;  %v11511_v13 = vor.u32 %v15886_v63, %v11508_v9  ;;  %v5852_v24 = vpop.f32.mrf.mxu2  ;;  %v15742_v54 = vld [vmem:[#allocation2 + $0x124] sm:$0xf] }
 0x265   : > { %v16278_v41 = vld [vmem:[#allocation2 + $0x11dc] sm:$0xf0]  ;;  %v10932_v12 = vld [vmem:[#allocation2 + $0x160] sm:$0xf0]  ;;  %v5853_v61 = vadd.f32 %v5852_v24, %v5839_v11  ;;  %v6712_v11 = vmax.f32 %v17800_v51, 0.0  ;;  %18543 = vst [vmem:[#allocation48_spill] sm:$0xff] %v17910_v17 }
 0x266   : > { %v13554_v44 = vld [vmem:[#allocation2 + $0x15a0] sm:$0xf]  ;;  %6098 = vmatpush.bf16.msrb.mxu0 %v13107_v25  ;;  %v13043_v5 = vor.u32 %v16278_v41, %v13042_v14  ;;  %6126 = vmatpush.bf16.msrb.mxu2 %v11063_v2  ;;  %v15870_v29 = vld [vmem:[#allocation2 + $0x524] sm:$0xf]  ;;  %v10935_v48 = vor.u32 %v15742_v54, %v10932_v12 }
 0x267   : > { %v16406_v53 = vld [vmem:[#allocation2 + $0x15dc] sm:$0xf0]  ;;  %v11444_v36 = vld [vmem:[#allocation2 + $0x560] sm:$0xf0] }
 0x268   : > { %6112 = vmatpush.bf16.msrb.mxu1 %v13619_v26  ;;  %v13555_v20 = vor.u32 %v16406_v53, %v13554_v44  ;;  %v12978_v7 = vld [vmem:[#allocation2 + $0x1120] sm:$0xf]  ;;  %6140 = vmatpush.bf16.msrb.mxu3 %v11575_v62  ;;  %v5867_v26 = vadd.f32 %v5866_v15, %v5853_v61  ;;  %v11447_v62 = vor.u32 %v15870_v29, %v11444_v36  ;;  %v15726_v16 = vld [vmem:[#allocation2 + $0xa4] sm:$0xf] }
 0x269   : > { %v16262_v4 = vld [vmem:[#allocation2 + $0x115c] sm:$0xf0]  ;;  %v10868_v56 = vld [vmem:[#allocation2 + $0xe0] sm:$0xf0] }
 0x26a   : > { %v13490_v28 = vld [vmem:[#allocation2 + $0x1520] sm:$0xf]  ;;  %6099 = vmatpush.bf16.msrb.mxu0 %v13043_v5  ;;  %v12979_v25 = vor.u32 %v16262_v4, %v12978_v7  ;;  %6127 = vmatpush.bf16.msrb.mxu2 %v10999_v40  ;;  %v6716_v63 = vmax.f32 %v5867_v26, 0.0  ;;  %v15854_v9 = vld [vmem:[#allocation2 + $0x4a4] sm:$0xf] }
 0x26b   : > { %v16390_v10 = vld [vmem:[#allocation2 + $0x155c] sm:$0xf0]  ;;  %v11380_v24 = vld [vmem:[#allocation2 + $0x4e0] sm:$0xf0] }
 0x26c   : > { %6113 = vmatpush.bf16.msrb.mxu1 %v13555_v20  ;;  %v13491_v2 = vor.u32 %v16390_v10, %v13490_v28  ;;  %v12914_v14 = vld [vmem:[#allocation2 + $0x10a0] sm:$0xf]  ;;  %6141 = vmatpush.bf16.msrb.mxu3 %v11511_v13  ;;  %v17908_v7 = vmax.f32 %v6712_v11, %v6716_v63  ;;  %v10871_v28 = vor.u32 %v15726_v16, %v10868_v56  ;;  %v15710_v54 = vld [vmem:[#allocation2 + $0x24] sm:$0xf] }
 0x26d   : > { %v16246_v41 = vld [vmem:[#allocation2 + $0x10dc] sm:$0xf0]  ;;  %v11383_v12 = vor.u32 %v15854_v9, %v11380_v24  ;;  %v10804_v61 = vld [vmem:[#allocation2 + $0x60] sm:$0xf0] }
 0x26e   : > { %v13426_v44 = vld [vmem:[#allocation2 + $0x14a0] sm:$0xf]  ;;  %6100 = vmatpush.bf16.msrb.mxu0 %v12979_v25  ;;  %v12915_v5 = vor.u32 %v16246_v41, %v12914_v14  ;;  %18542 = vst [vmem:[#allocation47_spill] sm:$0xff] %v17908_v7  ;;  %6128 = vmatpush.bf16.msrb.mxu2 %v10935_v48  ;;  %v15838_v51 = vld [vmem:[#allocation2 + $0x424] sm:$0xf]  ;;  %v10807_v48 = vor.u32 %v15710_v54, %v10804_v61 }
 0x26f   : > { %v16374_v53 = vld [vmem:[#allocation2 + $0x14dc] sm:$0xf0]  ;;  %v11316_v15 = vld [vmem:[#allocation2 + $0x460] sm:$0xf0] }
 0x270   : > { %v12850_v20 = vld [vmem:[#allocation2 + $0x1020] sm:$0xf]  ;;  %6114 = vmatpush.bf16.msrb.mxu1 %v13491_v2  ;;  %v13427_v4 = vor.u32 %v16374_v53, %v13426_v44  ;;  %6142 = vmatpush.bf16.msrb.mxu3 %v11447_v62  ;;  %v16078_v29 = vld [vmem:[#allocation2 + $0xba4] sm:$0xf]  ;;  %v11319_v62 = vor.u32 %v15838_v51, %v11316_v15 }
 0x271   : > { %v16230_v40 = vld [vmem:[#allocation2 + $0x105c] sm:$0xf0]  ;;  %v12276_v36 = vld [vmem:[#allocation2 + $0xbe0] sm:$0xf0] }
 0x272   : > { %v13362_v13 = vld [vmem:[#allocation2 + $0x1420] sm:$0xf]  ;;  %v16206_v25 = vld [vmem:[#allocation2 + $0xfa4] sm:$0xf]  ;;  %6101 = vmatpush.bf16.msrb.mxu0 %v12915_v5  ;;  %v12851_v26 = vor.u32 %v16230_v40, %v12850_v20  ;;  %6129 = vmatpush.bf16.msrb.mxu2 %v10871_v28  ;;  %v12279_v16 = vor.u32 %v16078_v29, %v12276_v36 }
 0x273   : > { %v16358_v10 = vld [vmem:[#allocation2 + $0x145c] sm:$0xf0]  ;;  %v12788_v14 = vld [vmem:[#allocation2 + $0xfe0] sm:$0xf0] }
 0x274   : > { %v16334_v41 = vld [vmem:[#allocation2 + $0x13a4] sm:$0xf]  ;;  %6115 = vmatpush.bf16.msrb.mxu1 %v13427_v4  ;;  %v13363_v2 = vor.u32 %v16358_v10, %v13362_v13  ;;  %6143 = vmatpush.bf16.msrb.mxu3 %v11383_v12  ;;  %v12791_v56 = vor.u32 %v16206_v25, %v12788_v14  ;;  %v17912_v10 = vpop.f32.mrf.mxu1 }
 0x275   : > { %v13300_v11 = vld [vmem:[#allocation2 + $0x13e0] sm:$0xf0]  ;;  %18544 = vst [vmem:[#allocation49_spill] sm:$0xff] %v17912_v10  ;;  %v13762_v10 = vld [vmem:[#allocation2 + $0x1730] sm:$0xf] }
 0x276   : > { %v16462_v44 = vld [vmem:[#allocation2 + $0x17a4] sm:$0xf]  ;;  %v13303_v63 = vor.u32 %v16334_v41, %v13300_v11  ;;  %6102 = vmatpush.bf16.msrb.mxu0 %v12851_v26  ;;  %6130 = vmatpush.bf16.msrb.mxu2 %v10807_v48 }
 0x277   : > { %v13812_v53 = vld [vmem:[#allocation2 + $0x17e0] sm:$0xf0] }
 0x278   : > { %v16062_v9 = vld [vmem:[#allocation2 + $0xb24] sm:$0xf]  ;;  %v13815_v5 = vor.u32 %v16462_v44, %v13812_v53  ;;  %6116 = vmatpush.bf16.msrb.mxu1 %v13363_v2  ;;  %6144 = vmatpush.bf16.msrb.mxu3 %v11319_v62 }
 0x279   : > { %v12212_v24 = vld [vmem:[#allocation2 + $0xb60] sm:$0xf0]  ;;  %6103 = vmatmul.bf16.vlgmr.msrb.gmra.mxu0 %v17740_v35  ;;  %6131 = vmatmul.bf16.vlgmr.msrb.gmra.mxu2 %v17718_v57 }
 0x27a   : > { %v12724_v20 = vld [vmem:[#allocation2 + $0xf60] sm:$0xf0]  ;;  %6151 = vmatpush.bf16.msra.mxu0 %v12279_v16  ;;  %v12215_v13 = vor.u32 %v16062_v9, %v12212_v24  ;;  %6179 = vmatpush.bf16.msra.mxu2 %v13303_v63  ;;  %v17921_v16 = vpop.f32.mrf.mxu2 }
 0x27b   : > { %v16318_v40 = vld [vmem:[#allocation2 + $0x1324] sm:$0xf]  ;;  %v12727_v54 = vor.u32 %v16190_v8, %v12724_v20  ;;  %6117 = vmatmul.bf16.vlgmr.msrb.gmra.mxu1 %v17742_v39  ;;  %6145 = vmatmul.bf16.vlgmr.msrb.gmra.mxu3 %v17723_v6  ;;  %18546 = vst [vmem:[#allocation51_spill] sm:$0xff] %v17921_v16  ;;  %v12218_v16 = vld [vmem:[#allocation2 + $0xb28] sm:$0xf] }
 0x27c   : > { %v16446_v4 = vld [vmem:[#allocation2 + $0x1724] sm:$0xf]  ;;  %6165 = vmatpush.bf16.msra.mxu1 %v12791_v56  ;;  %v13239_v12 = vor.u32 %v16318_v40, %v13236_v34  ;;  %6193 = vmatpush.bf16.msra.mxu3 %v13815_v5  ;;  %v17923_v5 = vpop.f32.mrf.mxu3 }
 0x27d   : > { %v13748_v28 = vld [vmem:[#allocation2 + $0x1760] sm:$0xf0]  ;;  %18547 = vst [vmem:[#allocation52_spill] sm:$0xff] %v17923_v5  ;;  %v11194_v5 = vld [vmem:[#allocation2 + $0x328] sm:$0xf] }
 0x27e   : > { %v16046_v61 = vld [vmem:[#allocation2 + $0xaa4] sm:$0xf]  ;;  %v13751_v29 = vor.u32 %v16446_v4, %v13748_v28  ;;  %6152 = vmatpush.bf16.msra.mxu0 %v12215_v13  ;;  %6180 = vmatpush.bf16.msra.mxu2 %v13239_v12  ;;  %v5880_v4 = vpop.f32.mrf.mxu0 }
 0x27f   : > { %v12148_v51 = vld [vmem:[#allocation2 + $0xae0] sm:$0xf0] }
 0x280   : > { %v16174_v15 = vld [vmem:[#allocation2 + $0xea4] sm:$0xf]  ;;  %v12151_v11 = vor.u32 %v16046_v61, %v12148_v51  ;;  %6166 = vmatpush.bf16.msra.mxu1 %v12727_v54  ;;  %6194 = vmatpush.bf16.msra.mxu3 %v13751_v29  ;;  %v5894_v29 = vpop.f32.mrf.mxu1 }
 0x281   : > { %v12660_v36 = vld [vmem:[#allocation2 + $0xee0] sm:$0xf0] }
 0x282   : > { %v16302_v25 = vld [vmem:[#allocation2 + $0x12a4] sm:$0xf]  ;;  %v12663_v2 = vor.u32 %v16174_v15, %v12660_v36  ;;  %6153 = vmatpush.bf16.msra.mxu0 %v12151_v11 }
 0x283   : > { %v13172_v26 = vld [vmem:[#allocation2 + $0x12e0] sm:$0xf0] }
 0x284   : > { %v16430_v14 = vld [vmem:[#allocation2 + $0x16a4] sm:$0xf]  ;;  %v13175_v48 = vor.u32 %v16302_v25, %v13172_v26  ;;  %6167 = vmatpush.bf16.msra.mxu1 %v12663_v2 }
 0x285   : > { %v13684_v41 = vld [vmem:[#allocation2 + $0x16e0] sm:$0xf0] }
 0x286   : > { %v17918_v34 = vld [vmem:[#allocation4] sm:$0xff]  ;;  %v13687_v56 = vor.u32 %v16430_v14, %v13684_v41  ;;  %6181 = vmatpush.bf16.msra.mxu2 %v13175_v48 }
 0x287   : > { %18545 = vst [vmem:[#allocation50_spill] sm:$0xff] %v17918_v34  ;;  %v18501_v8 = vperm.slane %v17918_v34, 6  ;;  %v16030_v44 = vld [vmem:[#allocation2 + $0xa24] sm:$0xf] }
 0x288   : > { %v12084_v53 = vld [vmem:[#allocation2 + $0xa60] sm:$0xf0]  ;;  %6195 = vmatpush.bf16.msra.mxu3 %v13687_v56 }
 0x289   : > { %v16158_v62 = vld [vmem:[#allocation2 + $0xe24] sm:$0xf]  ;;  %v12087_v28 = vor.u32 %v16030_v44, %v12084_v53  ;;  %v5881_v13 = vadd.f32 %v5880_v4, %v18501_v8 }
 0x28a   : > { %v12596_v63 = vld [vmem:[#allocation2 + $0xe60] sm:$0xf0] }
 0x28b   : > { %v16286_v9 = vld [vmem:[#allocation2 + $0x1224] sm:$0xf]  ;;  %v12599_v54 = vor.u32 %v16158_v62, %v12596_v63  ;;  %v5895_v41 = vadd.f32 %v5894_v29, %v5881_v13  ;;  %6154 = vmatpush.bf16.msra.mxu0 %v12087_v28  ;;  %v5922_v29 = vpop.f32.mrf.mxu3 }
 0x28c   : > { %v13108_v24 = vld [vmem:[#allocation2 + $0x1260] sm:$0xf0] }
 0x28d   : > { %v16414_v20 = vld [vmem:[#allocation2 + $0x1624] sm:$0xf]  ;;  %v13111_v12 = vor.u32 %v16286_v9, %v13108_v24  ;;  %6168 = vmatpush.bf16.msra.mxu1 %v12599_v54 }
 0x28e   : > { %v13620_v40 = vld [vmem:[#allocation2 + $0x1660] sm:$0xf0] }
 0x28f   : > { %v16014_v61 = vld [vmem:[#allocation2 + $0x9a4] sm:$0xf]  ;;  %v13623_v36 = vor.u32 %v16414_v20, %v13620_v40  ;;  %6182 = vmatpush.bf16.msra.mxu2 %v13111_v12  ;;  %v5908_v40 = vpop.f32.mrf.mxu2 }
 0x290   : > { %v12020_v51 = vld [vmem:[#allocation2 + $0x9e0] sm:$0xf0]  ;;  %v5909_v13 = vadd.f32 %v5908_v40, %v5895_v41  ;;  %v11258_v40 = vld [vmem:[#allocation2 + $0x3a8] sm:$0xf] }
 0x291   : > { %v16142_v15 = vld [vmem:[#allocation2 + $0xda4] sm:$0xf]  ;;  %v12023_v44 = vor.u32 %v16014_v61, %v12020_v51  ;;  %6196 = vmatpush.bf16.msra.mxu3 %v13623_v36 }
 0x292   : > { %v12532_v25 = vld [vmem:[#allocation2 + $0xde0] sm:$0xf0] }
 0x293   : > { %v16270_v26 = vld [vmem:[#allocation2 + $0x11a4] sm:$0xf]  ;;  %v12535_v2 = vor.u32 %v16142_v15, %v12532_v25  ;;  %6155 = vmatpush.bf16.msra.mxu0 %v12023_v44  ;;  %v17927_v25 = vadd.f32 %v5922_v29, %v5909_v13  ;;  %v11770_v13 = vld [vmem:[#allocation2 + $0x7a8] sm:$0xf] }
 0x294   : > { %v13044_v14 = vld [vmem:[#allocation2 + $0x11e0] sm:$0xf0] }
 0x295   : > { %v16398_v7 = vld [vmem:[#allocation2 + $0x15a4] sm:$0xf]  ;;  %v13047_v48 = vor.u32 %v16270_v26, %v13044_v14  ;;  %6169 = vmatpush.bf16.msra.mxu1 %v12535_v2 }
 0x296   : > { %v13556_v11 = vld [vmem:[#allocation2 + $0x15e0] sm:$0xf0] }
 0x297   : > { %v15998_v53 = vld [vmem:[#allocation2 + $0x924] sm:$0xf]  ;;  %v13559_v9 = vor.u32 %v16398_v7, %v13556_v11  ;;  %6183 = vmatpush.bf16.msra.mxu2 %v13047_v48 }
 0x298   : > { %v11956_v62 = vld [vmem:[#allocation2 + $0x960] sm:$0xf0] }
 0x299   : > { %v16126_v63 = vld [vmem:[#allocation2 + $0xd24] sm:$0xf]  ;;  %v11959_v28 = vor.u32 %v15998_v53, %v11956_v62  ;;  %6197 = vmatpush.bf16.msra.mxu3 %v13559_v9 }
 0x29a   : > { %v12468_v24 = vld [vmem:[#allocation2 + $0xd60] sm:$0xf0] }
 0x29b   : > { %v16254_v56 = vld [vmem:[#allocation2 + $0x1124] sm:$0xf]  ;;  %v12471_v54 = vor.u32 %v16126_v63, %v12468_v24  ;;  %6156 = vmatpush.bf16.msra.mxu0 %v11959_v28  ;;  %v15959_v28 = vld [vmem:[#allocation2 + $0x7e4] sm:$0xf0] }
 0x29c   : > { %v12980_v20 = vld [vmem:[#allocation2 + $0x1160] sm:$0xf0] }
 0x29d   : > { %v16382_v4 = vld [vmem:[#allocation2 + $0x1524] sm:$0xf]  ;;  %v12983_v12 = vor.u32 %v16254_v56, %v12980_v20  ;;  %6170 = vmatpush.bf16.msra.mxu1 %v12471_v54 }
 0x29e   : > { %v13492_v8 = vld [vmem:[#allocation2 + $0x1560] sm:$0xf0] }
 0x29f   : > { %v15982_v61 = vld [vmem:[#allocation2 + $0x8a4] sm:$0xf]  ;;  %v13495_v7 = vor.u32 %v16382_v4, %v13492_v8  ;;  %6184 = vmatpush.bf16.msra.mxu2 %v12983_v12  ;;  %v15831_v4 = vld [vmem:[#allocation2 + $0x3e4] sm:$0xf0] }
 0x2a0   : > { %v11892_v51 = vld [vmem:[#allocation2 + $0x8e0] sm:$0xf0] }
 0x2a1   : > { %v16110_v15 = vld [vmem:[#allocation2 + $0xca4] sm:$0xf]  ;;  %v11895_v41 = vor.u32 %v15982_v61, %v11892_v51  ;;  %6198 = vmatpush.bf16.msra.mxu3 %v13495_v7  ;;  %v12282_v61 = vld [vmem:[#allocation2 + $0xba8] sm:$0xf] }
 0x2a2   : > { %v12404_v36 = vld [vmem:[#allocation2 + $0xce0] sm:$0xf0]  ;;  %v16087_v51 = vld [vmem:[#allocation2 + $0xbe4] sm:$0xf0] }
 0x2a3   : > { %v16238_v26 = vld [vmem:[#allocation2 + $0x10a4] sm:$0xf]  ;;  %v12407_v2 = vor.u32 %v16110_v15, %v12404_v36  ;;  %6157 = vmatpush.bf16.msra.mxu0 %v11895_v41  ;;  %v12794_v15 = vld [vmem:[#allocation2 + $0xfa8] sm:$0xf] }
 0x2a4   : > { %v12916_v14 = vld [vmem:[#allocation2 + $0x10e0] sm:$0xf0]  ;;  %v16215_v36 = vld [vmem:[#allocation2 + $0xfe4] sm:$0xf0] }
 0x2a5   : > { %v16366_v11 = vld [vmem:[#allocation2 + $0x14a4] sm:$0xf]  ;;  %v12919_v48 = vor.u32 %v16238_v26, %v12916_v14  ;;  %6171 = vmatpush.bf16.msra.mxu1 %v12407_v2  ;;  %v11771_v26 = vor.u32 %v15959_v28, %v11770_v13  ;;  %v12283_v14 = vor.u32 %v16087_v51, %v12282_v61  ;;  %v11706_v41 = vld [vmem:[#allocation2 + $0x728] sm:$0xf] }
 0x2a6   : > { %v15966_v44 = vld [vmem:[#allocation2 + $0x824] sm:$0xf]  ;;  %v13431_v56 = vor.u32 %v16366_v11, %v13428_v30  ;;  %v11259_v30 = vor.u32 %v15831_v4, %v11258_v40  ;;  %v17929_v11 = vpop.f32.mrf.mxu0  ;;  %v16071_v2 = vld [vmem:[#allocation2 + $0xb64] sm:$0xf0] }
 0x2a7   : > { %v11828_v53 = vld [vmem:[#allocation2 + $0x860] sm:$0xf0]  ;;  %6185 = vmatpush.bf16.msra.mxu2 %v12919_v48  ;;  %18548 = vst [vmem:[#allocation53_spill] sm:$0xff] %v17929_v11  ;;  %v17931_v48 = vpop.f32.mrf.mxu1  ;;  %v11642_v40 = vld [vmem:[#allocation2 + $0x6a8] sm:$0xf] }
 0x2a8   : > { %v16094_v62 = vld [vmem:[#allocation2 + $0xc24] sm:$0xf]  ;;  %v11831_v29 = vor.u32 %v15966_v44, %v11828_v53  ;;  %6199 = vmatpush.bf16.msra.mxu3 %v13431_v56  ;;  %v12795_v44 = vor.u32 %v16215_v36, %v12794_v15  ;;  %v15943_v53 = vld [vmem:[#allocation2 + $0x764] sm:$0xf0]  ;;  %18549 = vst [vmem:[#allocation54_spill] sm:$0xff] %v17931_v48 }
 0x2a9   : > { %v12340_v63 = vld [vmem:[#allocation2 + $0xc60] sm:$0xf0]  ;;  %v11707_v56 = vor.u32 %v15943_v53, %v11706_v41  ;;  %v15927_v13 = vld [vmem:[#allocation2 + $0x6e4] sm:$0xf0]  ;;  %v11196_v48 = vld [vmem:[#allocation2 + $0x368] sm:$0xf0] }
 0x2aa   : > { %v16222_v24 = vld [vmem:[#allocation2 + $0x1024] sm:$0xf]  ;;  %v12343_v54 = vor.u32 %v16094_v62, %v12340_v63  ;;  %6158 = vmatpush.bf16.msra.mxu0 %v11831_v29  ;;  %v12730_v62 = vld [vmem:[#allocation2 + $0xf28] sm:$0xf] }
 0x2ab   : > { %v12852_v9 = vld [vmem:[#allocation2 + $0x1060] sm:$0xf0]  ;;  %v16199_v63 = vld [vmem:[#allocation2 + $0xf64] sm:$0xf0] }
 0x2ac   : > { %v16350_v8 = vld [vmem:[#allocation2 + $0x1424] sm:$0xf]  ;;  %v12855_v12 = vor.u32 %v16222_v24, %v12852_v9  ;;  %6172 = vmatpush.bf16.msra.mxu1 %v12343_v54  ;;  %v11195_v24 = vor.u32 %v15815_v21, %v11194_v5  ;;  %v12219_v9 = vor.u32 %v16071_v2, %v12218_v16  ;;  %v12731_v4 = vor.u32 %v16199_v63, %v12730_v62  ;;  %v12154_v29 = vld [vmem:[#allocation2 + $0xaa8] sm:$0xf] }
 0x2ad   : > { %v13364_v20 = vld [vmem:[#allocation2 + $0x1460] sm:$0xf0]  ;;  %6159 = vmatmul.bf16.vlgmr.msra.gmra.mxu0 %v17730_v22  ;;  %v16055_v28 = vld [vmem:[#allocation2 + $0xae4] sm:$0xf0]  ;;  %v11643_v5 = vor.u32 %v15927_v13, %v11642_v40 }
 0x2ae   : > { %v13367_v7 = vor.u32 %v16350_v8, %v13364_v20  ;;  %6186 = vmatpush.bf16.msra.mxu2 %v12855_v12  ;;  %6207 = vmatpush.bf16.msrb.mxu0 %v11259_v30  ;;  %v11130_v8 = vld [vmem:[#allocation2 + $0x2a8] sm:$0xf]  ;;  %v12155_v51 = vor.u32 %v16055_v28, %v12154_v29  ;;  %v5936_v41 = vpop.f32.mrf.mxu0 }
 0x2af   : > { %v15799_v20 = vld [vmem:[#allocation2 + $0x2e4] sm:$0xf0]  ;;  %6173 = vmatmul.bf16.vlgmr.msra.gmra.mxu1 %v17732_v23  ;;  %v5937_v2 = vadd.f32 %v5936_v41, %v17927_v25  ;;  %v5950_v63 = vpop.f32.mrf.mxu1 }
 0x2b0   : > { %6200 = vmatpush.bf16.msra.mxu3 %v13367_v7  ;;  %6221 = vmatpush.bf16.msrb.mxu1 %v11771_v26  ;;  %v12666_v61 = vld [vmem:[#allocation2 + $0xea8] sm:$0xf]  ;;  %v11131_v16 = vor.u32 %v15799_v20, %v11130_v8 }
 0x2b1   : > { %6187 = vmatmul.bf16.vlgmr.msra.gmra.mxu2 %v17740_v35  ;;  %v16183_v21 = vld [vmem:[#allocation2 + $0xee4] sm:$0xf0]  ;;  %v5951_v13 = vadd.f32 %v5950_v63, %v5937_v2 }
 0x2b2   : > { %6235 = vmatpush.bf16.msrb.mxu2 %v12283_v14  ;;  %6208 = vmatpush.bf16.msrb.mxu0 %v11195_v24  ;;  %v11066_v54 = vld [vmem:[#allocation2 + $0x228] sm:$0xf]  ;;  %v12667_v36 = vor.u32 %v16183_v21, %v12666_v61  ;;  %v17937_v14 = vpop.f32.mrf.mxu2  ;;  %v17940_v24 = vpop.f32.mrf.mxu3 }
 0x2b3   : > { %6201 = vmatmul.bf16.vlgmr.msra.gmra.mxu3 %v17742_v39  ;;  %v15783_v12 = vld [vmem:[#allocation2 + $0x264] sm:$0xf0]  ;;  %18550 = vst [vmem:[#allocation55_spill] sm:$0xff] %v17937_v14 }
 0x2b4   : > { %6249 = vmatpush.bf16.msrb.mxu3 %v12795_v44  ;;  %6222 = vmatpush.bf16.msrb.mxu1 %v11707_v56  ;;  %v11578_v15 = vld [vmem:[#allocation2 + $0x628] sm:$0xf]  ;;  %v11067_v62 = vor.u32 %v15783_v12, %v11066_v54  ;;  %18551 = vst [vmem:[#allocation56_spill] sm:$0xff] %v17940_v24  ;;  %v6713_v54 = vmax.f32 %v17832_v32, 0.0 }
 0x2b5   : > { %v15911_v7 = vld [vmem:[#allocation2 + $0x664] sm:$0xf0] }
 0x2b6   : > { %6236 = vmatpush.bf16.msrb.mxu2 %v12219_v9  ;;  %v12090_v30 = vld [vmem:[#allocation2 + $0xa28] sm:$0xf]  ;;  %6209 = vmatpush.bf16.msrb.mxu0 %v11131_v16  ;;  %v11579_v56 = vor.u32 %v15911_v7, %v11578_v15  ;;  %v17950_v11 = vpop.f32.mrf.mxu0 }
 0x2b7   : > { %v16039_v26 = vld [vmem:[#allocation2 + $0xa64] sm:$0xf0]  ;;  %18554 = vst [vmem:[#allocation58_spill] sm:$0xff] %v17950_v11  ;;  %v12418_v11 = vld [vmem:[#allocation2 + $0xcb0] sm:$0xf] }
 0x2b8   : > { %6250 = vmatpush.bf16.msrb.mxu3 %v12731_v4  ;;  %v12602_v44 = vld [vmem:[#allocation2 + $0xe28] sm:$0xf]  ;;  %6223 = vmatpush.bf16.msrb.mxu1 %v11643_v5  ;;  %v12091_v9 = vor.u32 %v16039_v26, %v12090_v30  ;;  %v6717_v5 = vmax.f32 %v5951_v13, 0.0 }
 0x2b9   : > { %v16167_v53 = vld [vmem:[#allocation2 + $0xe64] sm:$0xf0] }
 0x2ba   : > { %6237 = vmatpush.bf16.msrb.mxu2 %v12155_v51  ;;  %v11002_v8 = vld [vmem:[#allocation2 + $0x1a8] sm:$0xf]  ;;  %v12603_v4 = vor.u32 %v16167_v53, %v12602_v44  ;;  %6210 = vmatpush.bf16.msrb.mxu0 %v11067_v62  ;;  %v17944_v26 = vmax.f32 %v6713_v54, %v6717_v5  ;;  %v5964_v63 = vpop.f32.mrf.mxu2  ;;  %v18553_v62 = vperm.slane %v17918_v34, 7  ;;  %v16120_v34 = vld [vmem:[#allocation2 + $0xcec] sm:$0xf0] }
 0x2bb   : > { %v15767_v20 = vld [vmem:[#allocation2 + $0x1e4] sm:$0xf0] }
 0x2bc   : > { %v11514_v40 = vld [vmem:[#allocation2 + $0x5a8] sm:$0xf]  ;;  %6251 = vmatpush.bf16.msrb.mxu3 %v12667_v36  ;;  %v11003_v51 = vor.u32 %v15767_v20, %v11002_v8  ;;  %6224 = vmatpush.bf16.msrb.mxu1 %v11579_v56  ;;  %18552 = vst [vmem:[#allocation57_spill] sm:$0xff] %v17944_v26  ;;  %v5965_v8 = vadd.f32 %v5964_v63, %v18553_v62 }
 0x2bd   : > { %v15895_v29 = vld [vmem:[#allocation2 + $0x5e4] sm:$0xf0] }
 0x2be   : > { %v12026_v28 = vld [vmem:[#allocation2 + $0x9a8] sm:$0xf]  ;;  %6238 = vmatpush.bf16.msrb.mxu2 %v12091_v9  ;;  %v11515_v12 = vor.u32 %v15895_v29, %v11514_v40  ;;  %6211 = vmatpush.bf16.msrb.mxu0 %v11003_v51  ;;  %v5978_v9 = vpop.f32.mrf.mxu3 }
 0x2bf   : > { %v16023_v61 = vld [vmem:[#allocation2 + $0x9e4] sm:$0xf0] }
 0x2c0   : > { %v12538_v21 = vld [vmem:[#allocation2 + $0xda8] sm:$0xf]  ;;  %v12027_v15 = vor.u32 %v16023_v61, %v12026_v28  ;;  %6252 = vmatpush.bf16.msrb.mxu3 %v12603_v4  ;;  %6225 = vmatpush.bf16.msrb.mxu1 %v11515_v12  ;;  %v17948_v28 = vadd.f32 %v5978_v9, %v5965_v8 }
 0x2c1   : > { %v16151_v16 = vld [vmem:[#allocation2 + $0xde4] sm:$0xf0] }
 0x2c2   : > { %v10938_v7 = vld [vmem:[#allocation2 + $0x128] sm:$0xf]  ;;  %v12539_v41 = vor.u32 %v16151_v16, %v12538_v21  ;;  %6239 = vmatpush.bf16.msrb.mxu2 %v12027_v15 }
 0x2c3   : > { %v15751_v36 = vld [vmem:[#allocation2 + $0x164] sm:$0xf0] }
 0x2c4   : > { %v11450_v30 = vld [vmem:[#allocation2 + $0x528] sm:$0xf]  ;;  %v10939_v56 = vor.u32 %v15751_v36, %v10938_v7  ;;  %6253 = vmatpush.bf16.msrb.mxu3 %v12539_v41 }
 0x2c5   : > { %v15879_v44 = vld [vmem:[#allocation2 + $0x564] sm:$0xf0] }
 0x2c6   : > { %v11962_v53 = vld [vmem:[#allocation2 + $0x928] sm:$0xf]  ;;  %v11451_v20 = vor.u32 %v15879_v44, %v11450_v30  ;;  %6212 = vmatpush.bf16.msrb.mxu0 %v10939_v56 }
 0x2c7   : > { %v16007_v2 = vld [vmem:[#allocation2 + $0x964] sm:$0xf0] }
 0x2c8   : > { %v12474_v25 = vld [vmem:[#allocation2 + $0xd28] sm:$0xf]  ;;  %v11963_v40 = vor.u32 %v16007_v2, %v11962_v53  ;;  %6226 = vmatpush.bf16.msrb.mxu1 %v11451_v20 }
 0x2c9   : > { %v16135_v32 = vld [vmem:[#allocation2 + $0xd64] sm:$0xf0] }
 0x2ca   : > { %v10874_v4 = vld [vmem:[#allocation2 + $0xa8] sm:$0xf]  ;;  %v12475_v61 = vor.u32 %v16135_v32, %v12474_v25  ;;  %6240 = vmatpush.bf16.msrb.mxu2 %v11963_v40 }
 0x2cb   : > { %v15735_v13 = vld [vmem:[#allocation2 + $0xe4] sm:$0xf0] }
 0x2cc   : > { %v11386_v29 = vld [vmem:[#allocation2 + $0x4a8] sm:$0xf]  ;;  %v10875_v51 = vor.u32 %v15735_v13, %v10874_v4  ;;  %6254 = vmatpush.bf16.msrb.mxu3 %v12475_v61  ;;  %v15823_v4 = vld [vmem:[#allocation2 + $0x3ac] sm:$0xf] }
 0x2cd   : > { %v15863_v21 = vld [vmem:[#allocation2 + $0x4e4] sm:$0xf0]  ;;  %v11260_v13 = vld [vmem:[#allocation2 + $0x3e8] sm:$0xf0] }
 0x2ce   : > { %v11898_v16 = vld [vmem:[#allocation2 + $0x8a8] sm:$0xf]  ;;  %v11387_v12 = vor.u32 %v15863_v21, %v11386_v29  ;;  %6213 = vmatpush.bf16.msrb.mxu0 %v10875_v51  ;;  %v15951_v29 = vld [vmem:[#allocation2 + $0x7ac] sm:$0xf] }
 0x2cf   : > { %v15991_v54 = vld [vmem:[#allocation2 + $0x8e4] sm:$0xf0]  ;;  %v11772_v21 = vld [vmem:[#allocation2 + $0x7e8] sm:$0xf0] }
 0x2d0   : > { %v12410_v5 = vld [vmem:[#allocation2 + $0xca8] sm:$0xf]  ;;  %v11899_v15 = vor.u32 %v15991_v54, %v11898_v16  ;;  %6227 = vmatpush.bf16.msrb.mxu1 %v11387_v12  ;;  %v11263_v54 = vor.u32 %v15823_v4, %v11260_v13  ;;  %v11775_v51 = vor.u32 %v15951_v29, %v11772_v21  ;;  %v15935_v12 = vld [vmem:[#allocation2 + $0x72c] sm:$0xf] }
 0x2d1   : > { %v16119_v26 = vld [vmem:[#allocation2 + $0xce4] sm:$0xf0]  ;;  %v11644_v4 = vld [vmem:[#allocation2 + $0x6e8] sm:$0xf0] }
 0x2d2   : > { %v10810_v7 = vld [vmem:[#allocation2 + $0x28] sm:$0xf]  ;;  %v12411_v2 = vor.u32 %v16119_v26, %v12410_v5  ;;  %6241 = vmatpush.bf16.msrb.mxu2 %v11899_v15  ;;  %v11708_v15 = vld [vmem:[#allocation2 + $0x768] sm:$0xf0] }
 0x2d3   : > { %v15719_v36 = vld [vmem:[#allocation2 + $0x64] sm:$0xf0] }
 0x2d4   : > { %v11322_v30 = vld [vmem:[#allocation2 + $0x428] sm:$0xf]  ;;  %v10811_v56 = vor.u32 %v15719_v36, %v10810_v7  ;;  %6255 = vmatpush.bf16.msrb.mxu3 %v12411_v2  ;;  %v15807_v36 = vld [vmem:[#allocation2 + $0x32c] sm:$0xf] }
 0x2d5   : > { %v15847_v44 = vld [vmem:[#allocation2 + $0x464] sm:$0xf0]  ;;  %v11199_v2 = vor.u32 %v15807_v36, %v11196_v48 }
 0x2d6   : > { %v11834_v53 = vld [vmem:[#allocation2 + $0x828] sm:$0xf]  ;;  %v11323_v20 = vor.u32 %v15847_v44, %v11322_v30  ;;  %6214 = vmatpush.bf16.msrb.mxu0 %v10811_v56  ;;  %v17952_v44 = vpop.f32.mrf.mxu1  ;;  %v11132_v56 = vld [vmem:[#allocation2 + $0x2e8] sm:$0xf0] }
 0x2d7   : > { %v15975_v41 = vld [vmem:[#allocation2 + $0x864] sm:$0xf0]  ;;  %18555 = vst [vmem:[#allocation59_spill] sm:$0xff] %v17952_v44  ;;  %v12226_v44 = vld [vmem:[#allocation2 + $0xb30] sm:$0xf] }
 0x2d8   : > { %v12346_v25 = vld [vmem:[#allocation2 + $0xc28] sm:$0xf]  ;;  %v11835_v40 = vor.u32 %v15975_v41, %v11834_v53  ;;  %6228 = vmatpush.bf16.msrb.mxu1 %v11323_v20  ;;  %v17960_v20 = vpop.f32.mrf.mxu3 }
 0x2d9   : > { %v16103_v63 = vld [vmem:[#allocation2 + $0xc64] sm:$0xf0]  ;;  %6215 = vmatmul.bf16.vlgmr.msrb.gmra.mxu0 %v17718_v57  ;;  %18557 = vst [vmem:[#allocation61_spill] sm:$0xff] %v17960_v20  ;;  %v13244_v20 = vld [vmem:[#allocation2 + $0x1368] sm:$0xf0] }
 0x2da   : > { %v13306_v32 = vld [vmem:[#allocation2 + $0x13a8] sm:$0xf]  ;;  %v12347_v61 = vor.u32 %v16103_v63, %v12346_v25  ;;  %6242 = vmatpush.bf16.msrb.mxu2 %v11835_v40 }
 0x2db   : > { %v16343_v62 = vld [vmem:[#allocation2 + $0x13e4] sm:$0xf0]  ;;  %6229 = vmatmul.bf16.vlgmr.msrb.gmra.mxu1 %v17723_v6 }
 0x2dc   : > { %v13818_v8 = vld [vmem:[#allocation2 + $0x17a8] sm:$0xf]  ;;  %v13307_v26 = vor.u32 %v16343_v62, %v13306_v32  ;;  %6256 = vmatpush.bf16.msrb.mxu3 %v12347_v61  ;;  %v11711_v32 = vor.u32 %v15935_v12, %v11708_v15 }
 0x2dd   : > { %v16471_v9 = vld [vmem:[#allocation2 + $0x17e4] sm:$0xf0]  ;;  %6243 = vmatmul.bf16.vlgmr.msrb.gmra.mxu2 %v17730_v22 }
 0x2de   : > { %v13819_v16 = vor.u32 %v16471_v9, %v13818_v8  ;;  %v13242_v5 = vld [vmem:[#allocation2 + $0x1328] sm:$0xf]  ;;  %6263 = vmatpush.bf16.msra.mxu0 %v13307_v26  ;;  %6291 = vmatpush.bf16.msra.mxu2 %v11263_v54  ;;  %v15791_v8 = vld [vmem:[#allocation2 + $0x2ac] sm:$0xf] }
 0x2df   : > { %v16327_v24 = vld [vmem:[#allocation2 + $0x1364] sm:$0xf0]  ;;  %v15919_v9 = vld [vmem:[#allocation2 + $0x6ac] sm:$0xf]  ;;  %6257 = vmatmul.bf16.vlgmr.msrb.gmra.mxu3 %v17732_v23  ;;  %v11135_v13 = vor.u32 %v15791_v8, %v11132_v56 }
 0x2e0   : > { %v13754_v14 = vld [vmem:[#allocation2 + $0x1728] sm:$0xf]  ;;  %v13243_v30 = vor.u32 %v16327_v24, %v13242_v5  ;;  %6277 = vmatpush.bf16.msra.mxu1 %v13819_v16  ;;  %6305 = vmatpush.bf16.msra.mxu3 %v11775_v51  ;;  %v11647_v61 = vor.u32 %v15919_v9, %v11644_v4  ;;  %v15775_v16 = vld [vmem:[#allocation2 + $0x22c] sm:$0xf]  ;;  %v5992_v5 = vpop.f32.mrf.mxu0 }
 0x2e1   : > { %v16455_v7 = vld [vmem:[#allocation2 + $0x1764] sm:$0xf0]  ;;  %v11068_v54 = vld [vmem:[#allocation2 + $0x268] sm:$0xf0]  ;;  %v5993_v36 = vadd.f32 %v5992_v5, %v17948_v28 }
 0x2e2   : > { %v13755_v53 = vor.u32 %v16455_v7, %v13754_v14  ;;  %v13178_v41 = vld [vmem:[#allocation2 + $0x12a8] sm:$0xf]  ;;  %6264 = vmatpush.bf16.msra.mxu0 %v13243_v30  ;;  %v17957_v14 = vpop.f32.mrf.mxu2  ;;  %6292 = vmatpush.bf16.msra.mxu2 %v11199_v2  ;;  %v15903_v51 = vld [vmem:[#allocation2 + $0x62c] sm:$0xf]  ;;  %v11071_v30 = vor.u32 %v15775_v16, %v11068_v54 }
 0x2e3   : > { %v16311_v25 = vld [vmem:[#allocation2 + $0x12e4] sm:$0xf0]  ;;  %18556 = vst [vmem:[#allocation60_spill] sm:$0xff] %v17957_v14  ;;  %v11580_v7 = vld [vmem:[#allocation2 + $0x668] sm:$0xf0] }
 0x2e4   : > { %v13690_v63 = vld [vmem:[#allocation2 + $0x16a8] sm:$0xf]  ;;  %v13179_v24 = vor.u32 %v16311_v25, %v13178_v41  ;;  %6278 = vmatpush.bf16.msra.mxu1 %v13755_v53  ;;  %6306 = vmatpush.bf16.msra.mxu3 %v11711_v32  ;;  %v6006_v53 = vpop.f32.mrf.mxu1  ;;  %v15759_v8 = vld [vmem:[#allocation2 + $0x1ac] sm:$0xf] }
 0x2e5   : > { %v16439_v62 = vld [vmem:[#allocation2 + $0x16e4] sm:$0xf0]  ;;  %v6007_v32 = vadd.f32 %v6006_v53, %v5993_v36  ;;  %v11004_v56 = vld [vmem:[#allocation2 + $0x1e8] sm:$0xf0] }
 0x2e6   : > { %v13691_v48 = vor.u32 %v16439_v62, %v13690_v63  ;;  %v13114_v40 = vld [vmem:[#allocation2 + $0x1228] sm:$0xf]  ;;  %6265 = vmatpush.bf16.msra.mxu0 %v13179_v24  ;;  %6293 = vmatpush.bf16.msra.mxu2 %v11135_v13  ;;  %v11583_v63 = vor.u32 %v15903_v51, %v11580_v7  ;;  %v15887_v9 = vld [vmem:[#allocation2 + $0x5ac] sm:$0xf]  ;;  %v6034_v51 = vpop.f32.mrf.mxu3 }
 0x2e7   : > { %v16295_v29 = vld [vmem:[#allocation2 + $0x1264] sm:$0xf0]  ;;  %v11516_v4 = vld [vmem:[#allocation2 + $0x5e8] sm:$0xf0] }
 0x2e8   : > { %v13626_v21 = vld [vmem:[#allocation2 + $0x1628] sm:$0xf]  ;;  %v13115_v12 = vor.u32 %v16295_v29, %v13114_v40  ;;  %6279 = vmatpush.bf16.msra.mxu1 %v13691_v48  ;;  %6307 = vmatpush.bf16.msra.mxu3 %v11647_v61  ;;  %v11007_v48 = vor.u32 %v15759_v8, %v11004_v56  ;;  %v15743_v16 = vld [vmem:[#allocation2 + $0x12c] sm:$0xf]  ;;  %v17966_v14 = vpop.f32.mrf.mxu0 }
 0x2e9   : > { %v16423_v26 = vld [vmem:[#allocation2 + $0x1664] sm:$0xf0]  ;;  %v10940_v54 = vld [vmem:[#allocation2 + $0x168] sm:$0xf0]  ;;  %18559 = vst [vmem:[#allocation63_spill] sm:$0xff] %v17966_v14 }
 0x2ea   : > { %v13627_v15 = vor.u32 %v16423_v26, %v13626_v21  ;;  %v13050_v2 = vld [vmem:[#allocation2 + $0x11a8] sm:$0xf]  ;;  %6266 = vmatpush.bf16.msra.mxu0 %v13115_v12  ;;  %6294 = vmatpush.bf16.msra.mxu2 %v11071_v30  ;;  %v11519_v21 = vor.u32 %v15887_v9, %v11516_v4  ;;  %v6020_v26 = vpop.f32.mrf.mxu2  ;;  %v15871_v7 = vld [vmem:[#allocation2 + $0x52c] sm:$0xf]  ;;  %v10943_v53 = vor.u32 %v15743_v16, %v10940_v54  ;;  %v15816_v14 = vld [vmem:[#allocation2 + $0x36c] sm:$0xf0] }
 0x2eb   : > { %v16279_v41 = vld [vmem:[#allocation2 + $0x11e4] sm:$0xf0]  ;;  %v6021_v5 = vadd.f32 %v6020_v26, %v6007_v32  ;;  %v11452_v36 = vld [vmem:[#allocation2 + $0x568] sm:$0xf0]  ;;  %v6714_v32 = vmax.f32 %v17854_v27, 0.0 }
 0x2ec   : > { %v13562_v25 = vld [vmem:[#allocation2 + $0x15a8] sm:$0xf]  ;;  %v13051_v24 = vor.u32 %v16279_v41, %v13050_v2  ;;  %6280 = vmatpush.bf16.msra.mxu1 %v13627_v15  ;;  %6308 = vmatpush.bf16.msra.mxu3 %v11583_v63  ;;  %v11455_v63 = vor.u32 %v15871_v7, %v11452_v36  ;;  %v15727_v8 = vld [vmem:[#allocation2 + $0xac] sm:$0xf] }
 0x2ed   : > { %v16407_v62 = vld [vmem:[#allocation2 + $0x15e4] sm:$0xf0]  ;;  %v6035_v15 = vadd.f32 %v6034_v51, %v6021_v5  ;;  %v10876_v56 = vld [vmem:[#allocation2 + $0xe8] sm:$0xf0] }
 0x2ee   : > { %v13563_v28 = vor.u32 %v16407_v62, %v13562_v25  ;;  %v12986_v13 = vld [vmem:[#allocation2 + $0x1128] sm:$0xf]  ;;  %6267 = vmatpush.bf16.msra.mxu0 %v13051_v24  ;;  %6295 = vmatpush.bf16.msra.mxu2 %v11007_v48  ;;  %v15855_v4 = vld [vmem:[#allocation2 + $0x4ac] sm:$0xf] }
 0x2ef   : > { %v16263_v40 = vld [vmem:[#allocation2 + $0x1164] sm:$0xf0]  ;;  %v6718_v9 = vmax.f32 %v6035_v15, 0.0  ;;  %v11388_v26 = vld [vmem:[#allocation2 + $0x4e8] sm:$0xf0] }
 0x2f0   : > { %v13498_v29 = vld [vmem:[#allocation2 + $0x1528] sm:$0xf]  ;;  %v12987_v12 = vor.u32 %v16263_v40, %v12986_v13  ;;  %6281 = vmatpush.bf16.msra.mxu1 %v13563_v28  ;;  %6309 = vmatpush.bf16.msra.mxu3 %v11519_v21  ;;  %v15711_v16 = vld [vmem:[#allocation2 + $0x2c] sm:$0xf]  ;;  %v11391_v54 = vor.u32 %v15855_v4, %v11388_v26 }
 0x2f1   : > { %v16391_v61 = vld [vmem:[#allocation2 + $0x1564] sm:$0xf0]  ;;  %v17964_v13 = vmax.f32 %v6714_v32, %v6718_v9  ;;  %v10812_v5 = vld [vmem:[#allocation2 + $0x68] sm:$0xf0] }
 0x2f2   : > { %v13499_v30 = vor.u32 %v16391_v61, %v13498_v29  ;;  %v12922_v2 = vld [vmem:[#allocation2 + $0x10a8] sm:$0xf]  ;;  %6268 = vmatpush.bf16.msra.mxu0 %v12987_v12  ;;  %6296 = vmatpush.bf16.msra.mxu2 %v10943_v53  ;;  %v10879_v29 = vor.u32 %v15727_v8, %v10876_v56  ;;  %v15839_v27 = vld [vmem:[#allocation2 + $0x42c] sm:$0xf]  ;;  %v10815_v53 = vor.u32 %v15711_v16, %v10812_v5  ;;  %v17968_v16 = vpop.f32.mrf.mxu1 }
 0x2f3   : > { %v16247_v41 = vld [vmem:[#allocation2 + $0x10e4] sm:$0xf0]  ;;  %18558 = vst [vmem:[#allocation62_spill] sm:$0xff] %v17964_v13  ;;  %v11324_v51 = vld [vmem:[#allocation2 + $0x468] sm:$0xf0] }
 0x2f4   : > { %v13434_v25 = vld [vmem:[#allocation2 + $0x14a8] sm:$0xf]  ;;  %v12923_v24 = vor.u32 %v16247_v41, %v12922_v2  ;;  %6282 = vmatpush.bf16.msra.mxu1 %v13499_v30  ;;  %6310 = vmatpush.bf16.msra.mxu3 %v11455_v63  ;;  %v16079_v7 = vld [vmem:[#allocation2 + $0xbac] sm:$0xf]  ;;  %v11327_v63 = vor.u32 %v15839_v27, %v11324_v51  ;;  %18560 = vst [vmem:[#allocation64_spill] sm:$0xff] %v17968_v16 }
 0x2f5   : > { %v16375_v62 = vld [vmem:[#allocation2 + $0x14e4] sm:$0xf0]  ;;  %v12284_v36 = vld [vmem:[#allocation2 + $0xbe8] sm:$0xf0]  ;;  %v11202_v16 = vld [vmem:[#allocation2 + $0x330] sm:$0xf] }
 0x2f6   : > { %v12858_v28 = vld [vmem:[#allocation2 + $0x1028] sm:$0xf]  ;;  %v13435_v40 = vor.u32 %v16375_v62, %v13434_v25  ;;  %v16207_v12 = vld [vmem:[#allocation2 + $0xfac] sm:$0xf]  ;;  %6269 = vmatpush.bf16.msra.mxu0 %v12923_v24  ;;  %6297 = vmatpush.bf16.msra.mxu2 %v10879_v29  ;;  %v12287_v8 = vor.u32 %v16079_v7, %v12284_v36 }
 0x2f7   : > { %v16231_v48 = vld [vmem:[#allocation2 + $0x1064] sm:$0xf0]  ;;  %v12796_v2 = vld [vmem:[#allocation2 + $0xfe8] sm:$0xf0] }
 0x2f8   : > { %v13370_v21 = vld [vmem:[#allocation2 + $0x1428] sm:$0xf]  ;;  %v12859_v15 = vor.u32 %v16231_v48, %v12858_v28  ;;  %v16335_v41 = vld [vmem:[#allocation2 + $0x13ac] sm:$0xf]  ;;  %6283 = vmatpush.bf16.msra.mxu1 %v13435_v40  ;;  %6311 = vmatpush.bf16.msra.mxu3 %v11391_v54  ;;  %v12799_v56 = vor.u32 %v16207_v12, %v12796_v2 }
 0x2f9   : > { %v16359_v61 = vld [vmem:[#allocation2 + $0x1464] sm:$0xf0]  ;;  %v13308_v32 = vld [vmem:[#allocation2 + $0x13e8] sm:$0xf0] }
 0x2fa   : > { %v13371_v30 = vor.u32 %v16359_v61, %v13370_v21  ;;  %v16463_v25 = vld [vmem:[#allocation2 + $0x17ac] sm:$0xf]  ;;  %v13311_v9 = vor.u32 %v16335_v41, %v13308_v32  ;;  %6270 = vmatpush.bf16.msra.mxu0 %v12859_v15  ;;  %6298 = vmatpush.bf16.msra.mxu2 %v10815_v53 }
 0x2fb   : > { %v13820_v62 = vld [vmem:[#allocation2 + $0x17e8] sm:$0xf0] }
 0x2fc   : > { %v16063_v4 = vld [vmem:[#allocation2 + $0xb2c] sm:$0xf]  ;;  %v13823_v24 = vor.u32 %v16463_v25, %v13820_v62  ;;  %6284 = vmatpush.bf16.msra.mxu1 %v13371_v30  ;;  %6312 = vmatpush.bf16.msra.mxu3 %v11327_v63 }
 0x2fd   : > { %v12220_v26 = vld [vmem:[#allocation2 + $0xb68] sm:$0xf0]  ;;  %6271 = vmatmul.bf16.vlgmr.msra.gmra.mxu0 %v17740_v35  ;;  %6299 = vmatmul.bf16.vlgmr.msra.gmra.mxu2 %v17718_v57 }
 0x2fe   : > { %v16191_v13 = vld [vmem:[#allocation2 + $0xf2c] sm:$0xf]  ;;  %6319 = vmatpush.bf16.msrb.mxu0 %v12287_v8  ;;  %v12223_v21 = vor.u32 %v16063_v4, %v12220_v26  ;;  %6347 = vmatpush.bf16.msrb.mxu2 %v13311_v9  ;;  %v17977_v8 = vpop.f32.mrf.mxu2 }
 0x2ff   : > { %v12732_v28 = vld [vmem:[#allocation2 + $0xf68] sm:$0xf0]  ;;  %6285 = vmatmul.bf16.vlgmr.msra.gmra.mxu1 %v17742_v39  ;;  %6313 = vmatmul.bf16.vlgmr.msra.gmra.mxu3 %v17723_v6  ;;  %18561 = vst [vmem:[#allocation65_spill] sm:$0xff] %v17977_v8 }
 0x300   : > { %v16319_v48 = vld [vmem:[#allocation2 + $0x132c] sm:$0xf]  ;;  %6333 = vmatpush.bf16.msrb.mxu1 %v12799_v56  ;;  %v12735_v54 = vor.u32 %v16191_v13, %v12732_v28  ;;  %6361 = vmatpush.bf16.msrb.mxu3 %v13823_v24 }
 0x301   : > { %v16447_v40 = vld [vmem:[#allocation2 + $0x172c] sm:$0xf]  ;;  %v13247_v5 = vor.u32 %v16319_v48, %v13244_v20  ;;  %v6048_v48 = vpop.f32.mrf.mxu0 }
 0x302   : > { %v13756_v29 = vld [vmem:[#allocation2 + $0x1768] sm:$0xf0]  ;;  %6320 = vmatpush.bf16.msrb.mxu0 %v12223_v21 }
 0x303   : > { %v16047_v61 = vld [vmem:[#allocation2 + $0xaac] sm:$0xf]  ;;  %v13759_v36 = vor.u32 %v16447_v40, %v13756_v29  ;;  %6348 = vmatpush.bf16.msrb.mxu2 %v13247_v5  ;;  %v17979_v40 = vpop.f32.mrf.mxu3 }
 0x304   : > { %v12156_v27 = vld [vmem:[#allocation2 + $0xae8] sm:$0xf0]  ;;  %6334 = vmatpush.bf16.msrb.mxu1 %v12735_v54  ;;  %18562 = vst [vmem:[#allocation66_spill] sm:$0xff] %v17979_v40 }
 0x305   : > { %v16175_v51 = vld [vmem:[#allocation2 + $0xeac] sm:$0xf]  ;;  %v12159_v13 = vor.u32 %v16047_v61, %v12156_v27  ;;  %6362 = vmatpush.bf16.msrb.mxu3 %v13759_v36  ;;  %v6062_v36 = vpop.f32.mrf.mxu1 }
 0x306   : > { %v17970_v7 = vld [vmem:[#allocation4 + $0x8] sm:$0xff] }
 0x307   : > { %v12668_v12 = vld [vmem:[#allocation2 + $0xee8] sm:$0xf0]  ;;  %v18502_v20 = vperm.slane %v17970_v7, 0  ;;  %6321 = vmatpush.bf16.msrb.mxu0 %v12159_v13 }
 0x308   : > { %v16303_v15 = vld [vmem:[#allocation2 + $0x12ac] sm:$0xf]  ;;  %v12671_v30 = vor.u32 %v16175_v51, %v12668_v12 }
 0x309   : > { %v13180_v2 = vld [vmem:[#allocation2 + $0x12e8] sm:$0xf0]  ;;  %v6049_v21 = vadd.f32 %v6048_v48, %v18502_v20 }
 0x30a   : > { %v16431_v41 = vld [vmem:[#allocation2 + $0x16ac] sm:$0xf]  ;;  %v13183_v53 = vor.u32 %v16303_v15, %v13180_v2  ;;  %6335 = vmatpush.bf16.msrb.mxu1 %v12671_v30 }
 0x30b   : > { %v13692_v32 = vld [vmem:[#allocation2 + $0x16e8] sm:$0xf0] }
 0x30c   : > { %v16031_v25 = vld [vmem:[#allocation2 + $0xa2c] sm:$0xf]  ;;  %v13695_v56 = vor.u32 %v16431_v41, %v13692_v32  ;;  %6349 = vmatpush.bf16.msrb.mxu2 %v13183_v53  ;;  %v6063_v32 = vadd.f32 %v6062_v36, %v6049_v21 }
 0x30d   : > { %v12092_v62 = vld [vmem:[#allocation2 + $0xa68] sm:$0xf0] }
 0x30e   : > { %v16159_v63 = vld [vmem:[#allocation2 + $0xe2c] sm:$0xf]  ;;  %v12095_v29 = vor.u32 %v16031_v25, %v12092_v62  ;;  %6363 = vmatpush.bf16.msrb.mxu3 %v13695_v56 }
 0x30f   : > { %v12604_v9 = vld [vmem:[#allocation2 + $0xe68] sm:$0xf0] }
 0x310   : > { %v16287_v4 = vld [vmem:[#allocation2 + $0x122c] sm:$0xf]  ;;  %v12607_v61 = vor.u32 %v16159_v63, %v12604_v9  ;;  %6322 = vmatpush.bf16.msrb.mxu0 %v12095_v29  ;;  %v6090_v29 = vpop.f32.mrf.mxu3 }
 0x311   : > { %v13116_v26 = vld [vmem:[#allocation2 + $0x1268] sm:$0xf0] }
 0x312   : > { %v16415_v24 = vld [vmem:[#allocation2 + $0x162c] sm:$0xf]  ;;  %v13119_v54 = vor.u32 %v16287_v4, %v13116_v26  ;;  %6336 = vmatpush.bf16.msrb.mxu1 %v12607_v61 }
 0x313   : > { %v13628_v28 = vld [vmem:[#allocation2 + $0x1668] sm:$0xf0] }
 0x314   : > { %v16015_v5 = vld [vmem:[#allocation2 + $0x9ac] sm:$0xf]  ;;  %v13631_v12 = vor.u32 %v16415_v24, %v13628_v28  ;;  %6350 = vmatpush.bf16.msrb.mxu2 %v13119_v54  ;;  %v6076_v28 = vpop.f32.mrf.mxu2 }
 0x315   : > { %v12028_v27 = vld [vmem:[#allocation2 + $0x9e8] sm:$0xf0]  ;;  %v6077_v21 = vadd.f32 %v6076_v28, %v6063_v32  ;;  %v11266_v28 = vld [vmem:[#allocation2 + $0x3b0] sm:$0xf] }
 0x316   : > { %v16143_v51 = vld [vmem:[#allocation2 + $0xdac] sm:$0xf]  ;;  %v12031_v25 = vor.u32 %v16015_v5, %v12028_v27  ;;  %6364 = vmatpush.bf16.msrb.mxu3 %v13631_v12 }
 0x317   : > { %v12540_v15 = vld [vmem:[#allocation2 + $0xde8] sm:$0xf0] }
 0x318   : > { %v16271_v2 = vld [vmem:[#allocation2 + $0x11ac] sm:$0xf]  ;;  %v12543_v30 = vor.u32 %v16143_v51, %v12540_v15  ;;  %6323 = vmatpush.bf16.msrb.mxu0 %v12031_v25  ;;  %v17983_v15 = vadd.f32 %v6090_v29, %v6077_v21  ;;  %v11778_v21 = vld [vmem:[#allocation2 + $0x7b0] sm:$0xf] }
 0x319   : > { %v13052_v41 = vld [vmem:[#allocation2 + $0x11e8] sm:$0xf0]  ;;  %v15960_v29 = vld [vmem:[#allocation2 + $0x7ec] sm:$0xf0] }
 0x31a   : > { %v16399_v40 = vld [vmem:[#allocation2 + $0x15ac] sm:$0xf]  ;;  %v13055_v53 = vor.u32 %v16271_v2, %v13052_v41  ;;  %6337 = vmatpush.bf16.msrb.mxu1 %v12543_v30 }
 0x31b   : > { %v13564_v13 = vld [vmem:[#allocation2 + $0x15e8] sm:$0xf0] }
 0x31c   : > { %v15999_v62 = vld [vmem:[#allocation2 + $0x92c] sm:$0xf]  ;;  %v13567_v4 = vor.u32 %v16399_v40, %v13564_v13  ;;  %6351 = vmatpush.bf16.msrb.mxu2 %v13055_v53 }
 0x31d   : > { %v11964_v63 = vld [vmem:[#allocation2 + $0x968] sm:$0xf0] }
 0x31e   : > { %v16127_v9 = vld [vmem:[#allocation2 + $0xd2c] sm:$0xf]  ;;  %v11967_v36 = vor.u32 %v15999_v62, %v11964_v63  ;;  %6365 = vmatpush.bf16.msrb.mxu3 %v13567_v4 }
 0x31f   : > { %v12476_v26 = vld [vmem:[#allocation2 + $0xd68] sm:$0xf0] }
 0x320   : > { %v16255_v56 = vld [vmem:[#allocation2 + $0x112c] sm:$0xf]  ;;  %v12479_v61 = vor.u32 %v16127_v9, %v12476_v26  ;;  %6324 = vmatpush.bf16.msrb.mxu0 %v11967_v36 }
 0x321   : > { %v12988_v24 = vld [vmem:[#allocation2 + $0x1168] sm:$0xf0] }
 0x322   : > { %v16383_v48 = vld [vmem:[#allocation2 + $0x152c] sm:$0xf]  ;;  %v12991_v54 = vor.u32 %v16255_v56, %v12988_v24  ;;  %6338 = vmatpush.bf16.msrb.mxu1 %v12479_v61 }
 0x323   : > { %v13500_v20 = vld [vmem:[#allocation2 + $0x1568] sm:$0xf0] }
 0x324   : > { %v15983_v5 = vld [vmem:[#allocation2 + $0x8ac] sm:$0xf]  ;;  %v13503_v40 = vor.u32 %v16383_v48, %v13500_v20  ;;  %6352 = vmatpush.bf16.msrb.mxu2 %v12991_v54  ;;  %v15832_v48 = vld [vmem:[#allocation2 + $0x3ec] sm:$0xf0] }
 0x325   : > { %v11900_v27 = vld [vmem:[#allocation2 + $0x8e8] sm:$0xf0] }
 0x326   : > { %v16111_v51 = vld [vmem:[#allocation2 + $0xcac] sm:$0xf]  ;;  %v11903_v32 = vor.u32 %v15983_v5, %v11900_v27  ;;  %6366 = vmatpush.bf16.msrb.mxu3 %v13503_v40  ;;  %v12290_v5 = vld [vmem:[#allocation2 + $0xbb0] sm:$0xf] }
 0x327   : > { %v12412_v12 = vld [vmem:[#allocation2 + $0xce8] sm:$0xf0]  ;;  %v16088_v27 = vld [vmem:[#allocation2 + $0xbec] sm:$0xf0] }
 0x328   : > { %v16239_v2 = vld [vmem:[#allocation2 + $0x10ac] sm:$0xf]  ;;  %v12415_v30 = vor.u32 %v16111_v51, %v12412_v12  ;;  %6325 = vmatpush.bf16.msrb.mxu0 %v11903_v32  ;;  %v12802_v51 = vld [vmem:[#allocation2 + $0xfb0] sm:$0xf] }
 0x329   : > { %v12924_v41 = vld [vmem:[#allocation2 + $0x10e8] sm:$0xf0]  ;;  %v16216_v12 = vld [vmem:[#allocation2 + $0xfec] sm:$0xf0] }
 0x32a   : > { %v16367_v13 = vld [vmem:[#allocation2 + $0x14ac] sm:$0xf]  ;;  %v12927_v53 = vor.u32 %v16239_v2, %v12924_v41  ;;  %6339 = vmatpush.bf16.msrb.mxu1 %v12415_v30  ;;  %v11779_v2 = vor.u32 %v15960_v29, %v11778_v21  ;;  %v12291_v41 = vor.u32 %v16088_v27, %v12290_v5  ;;  %v11714_v32 = vld [vmem:[#allocation2 + $0x730] sm:$0xf] }
 0x32b   : > { %v13436_v8 = vld [vmem:[#allocation2 + $0x14e8] sm:$0xf0]  ;;  %v16072_v30 = vld [vmem:[#allocation2 + $0xb6c] sm:$0xf0] }
 0x32c   : > { %v15967_v25 = vld [vmem:[#allocation2 + $0x82c] sm:$0xf]  ;;  %v13439_v56 = vor.u32 %v16367_v13, %v13436_v8  ;;  %6353 = vmatpush.bf16.msrb.mxu2 %v12927_v53  ;;  %v11267_v8 = vor.u32 %v15832_v48, %v11266_v28  ;;  %v17985_v13 = vpop.f32.mrf.mxu0  ;;  %v12738_v53 = vld [vmem:[#allocation2 + $0xf30] sm:$0xf] }
 0x32d   : > { %v11836_v62 = vld [vmem:[#allocation2 + $0x868] sm:$0xf0]  ;;  %v11650_v28 = vld [vmem:[#allocation2 + $0x6b0] sm:$0xf] }
 0x32e   : > { %v16095_v63 = vld [vmem:[#allocation2 + $0xc2c] sm:$0xf]  ;;  %v11839_v36 = vor.u32 %v15967_v25, %v11836_v62  ;;  %6367 = vmatpush.bf16.msrb.mxu3 %v13439_v56  ;;  %v12803_v25 = vor.u32 %v16216_v12, %v12802_v51  ;;  %v15944_v62 = vld [vmem:[#allocation2 + $0x76c] sm:$0xf0] }
 0x32f   : > { %v12348_v9 = vld [vmem:[#allocation2 + $0xc68] sm:$0xf0]  ;;  %v11715_v56 = vor.u32 %v15944_v62, %v11714_v32  ;;  %v15928_v21 = vld [vmem:[#allocation2 + $0x6ec] sm:$0xf0] }
 0x330   : > { %v16223_v26 = vld [vmem:[#allocation2 + $0x102c] sm:$0xf]  ;;  %v12351_v61 = vor.u32 %v16095_v63, %v12348_v9  ;;  %6326 = vmatpush.bf16.msrb.mxu0 %v11839_v36  ;;  %v16200_v63 = vld [vmem:[#allocation2 + $0xf6c] sm:$0xf0]  ;;  %v17987_v9 = vpop.f32.mrf.mxu1 }
 0x331   : > { %v12860_v4 = vld [vmem:[#allocation2 + $0x1068] sm:$0xf0]  ;;  %v12739_v48 = vor.u32 %v16200_v63, %v12738_v53  ;;  %v12162_v36 = vld [vmem:[#allocation2 + $0xab0] sm:$0xf]  ;;  %v17996_v63 = vpop.f32.mrf.mxu3 }
 0x332   : > { %v16351_v20 = vld [vmem:[#allocation2 + $0x142c] sm:$0xf]  ;;  %v12863_v54 = vor.u32 %v16223_v26, %v12860_v4  ;;  %6340 = vmatpush.bf16.msrb.mxu1 %v12351_v61  ;;  %v11203_v26 = vor.u32 %v15816_v14, %v11202_v16  ;;  %v12227_v4 = vor.u32 %v16072_v30, %v12226_v44  ;;  %v16056_v29 = vld [vmem:[#allocation2 + $0xaec] sm:$0xf0]  ;;  %v11651_v16 = vor.u32 %v15928_v21, %v11650_v28 }
 0x333   : > { %v13372_v24 = vld [vmem:[#allocation2 + $0x1468] sm:$0xf0]  ;;  %6327 = vmatmul.bf16.vlgmr.msrb.gmra.mxu0 %v17730_v22  ;;  %v12674_v5 = vld [vmem:[#allocation2 + $0xeb0] sm:$0xf]  ;;  %v12163_v27 = vor.u32 %v16056_v29, %v12162_v36 }
 0x334   : > { %v13375_v40 = vor.u32 %v16351_v20, %v13372_v24  ;;  %6354 = vmatpush.bf16.msrb.mxu2 %v12863_v54  ;;  %6375 = vmatpush.bf16.msra.mxu0 %v11267_v8  ;;  %v11138_v20 = vld [vmem:[#allocation2 + $0x2b0] sm:$0xf]  ;;  %v6104_v32 = vpop.f32.mrf.mxu0 }
 0x335   : > { %v15800_v24 = vld [vmem:[#allocation2 + $0x2ec] sm:$0xf0]  ;;  %6341 = vmatmul.bf16.vlgmr.msrb.gmra.mxu1 %v17732_v23  ;;  %v6105_v30 = vadd.f32 %v6104_v32, %v17983_v15 }
 0x336   : > { %6368 = vmatpush.bf16.msrb.mxu3 %v13375_v40  ;;  %6389 = vmatpush.bf16.msra.mxu1 %v11779_v2  ;;  %v16184_v14 = vld [vmem:[#allocation2 + $0xeec] sm:$0xf0]  ;;  %v11139_v44 = vor.u32 %v15800_v24, %v11138_v20 }
 0x337   : > { %6355 = vmatmul.bf16.vlgmr.msrb.gmra.mxu2 %v17740_v35  ;;  %v11074_v61 = vld [vmem:[#allocation2 + $0x230] sm:$0xf]  ;;  %v12675_v12 = vor.u32 %v16184_v14, %v12674_v5 }
 0x338   : > { %6403 = vmatpush.bf16.msra.mxu2 %v12291_v41  ;;  %6376 = vmatpush.bf16.msra.mxu0 %v11203_v26  ;;  %v15784_v54 = vld [vmem:[#allocation2 + $0x26c] sm:$0xf0]  ;;  %v17993_v41 = vpop.f32.mrf.mxu2 }
 0x339   : > { %6369 = vmatmul.bf16.vlgmr.msrb.gmra.mxu3 %v17742_v39  ;;  %v11586_v51 = vld [vmem:[#allocation2 + $0x630] sm:$0xf]  ;;  %v11075_v53 = vor.u32 %v15784_v54, %v11074_v61 }
 0x33a   : > { %6417 = vmatpush.bf16.msra.mxu3 %v12803_v25  ;;  %6390 = vmatpush.bf16.msra.mxu1 %v11715_v56  ;;  %v15912_v40 = vld [vmem:[#allocation2 + $0x66c] sm:$0xf0] }
 0x33b   : > { %v12098_v8 = vld [vmem:[#allocation2 + $0xa30] sm:$0xf]  ;;  %v11587_v26 = vor.u32 %v15912_v40, %v11586_v51 }
 0x33c   : > { %6404 = vmatpush.bf16.msra.mxu2 %v12227_v4  ;;  %v16040_v2 = vld [vmem:[#allocation2 + $0xa6c] sm:$0xf0]  ;;  %6377 = vmatpush.bf16.msra.mxu0 %v11139_v44  ;;  %v6118_v4 = vpop.f32.mrf.mxu1  ;;  %v18505_v44 = vperm.slane %v17970_v7, 1  ;;  %v18005_v17 = vpop.f32.mrf.mxu0 }
 0x33d   : > { %v12610_v25 = vld [vmem:[#allocation2 + $0xe30] sm:$0xf]  ;;  %v12099_v56 = vor.u32 %v16040_v2, %v12098_v8  ;;  %v17998_v21 = vadd.f32 %v6118_v4, %v6105_v30 }
 0x33e   : > { %6418 = vmatpush.bf16.msra.mxu3 %v12739_v48  ;;  %v16168_v62 = vld [vmem:[#allocation2 + $0xe6c] sm:$0xf0]  ;;  %6391 = vmatpush.bf16.msra.mxu1 %v11651_v16 }
 0x33f   : > { %v11010_v20 = vld [vmem:[#allocation2 + $0x1b0] sm:$0xf]  ;;  %v12611_v48 = vor.u32 %v16168_v62, %v12610_v25 }
 0x340   : > { %6405 = vmatpush.bf16.msra.mxu2 %v12163_v27  ;;  %v15768_v24 = vld [vmem:[#allocation2 + $0x1ec] sm:$0xf0]  ;;  %6378 = vmatpush.bf16.msra.mxu0 %v11075_v53  ;;  %v6132_v25 = vpop.f32.mrf.mxu2 }
 0x341   : > { %v11522_v28 = vld [vmem:[#allocation2 + $0x5b0] sm:$0xf]  ;;  %v11011_v16 = vor.u32 %v15768_v24, %v11010_v20  ;;  %v6133_v4 = vadd.f32 %v6132_v25, %v18505_v44  ;;  %v11268_v44 = vld [vmem:[#allocation2 + $0x3f0] sm:$0xf0] }
 0x342   : > { %6419 = vmatpush.bf16.msra.mxu3 %v12675_v12  ;;  %v15896_v36 = vld [vmem:[#allocation2 + $0x5ec] sm:$0xf0]  ;;  %6392 = vmatpush.bf16.msra.mxu1 %v11587_v26  ;;  %v6146_v26 = vpop.f32.mrf.mxu3 }
 0x343   : > { %v12034_v29 = vld [vmem:[#allocation2 + $0x9b0] sm:$0xf]  ;;  %v11523_v27 = vor.u32 %v15896_v36, %v11522_v28  ;;  %v18003_v36 = vadd.f32 %v6146_v26, %v6133_v4 }
 0x344   : > { %v16024_v5 = vld [vmem:[#allocation2 + $0x9ec] sm:$0xf0]  ;;  %6406 = vmatpush.bf16.msra.mxu2 %v12099_v56  ;;  %6379 = vmatpush.bf16.msra.mxu0 %v11011_v16 }
 0x345   : > { %v12546_v14 = vld [vmem:[#allocation2 + $0xdb0] sm:$0xf]  ;;  %v12035_v61 = vor.u32 %v16024_v5, %v12034_v29 }
 0x346   : > { %v16152_v15 = vld [vmem:[#allocation2 + $0xdec] sm:$0xf0]  ;;  %6420 = vmatpush.bf16.msra.mxu3 %v12611_v48  ;;  %6393 = vmatpush.bf16.msra.mxu1 %v11523_v27 }
 0x347   : > { %v10946_v54 = vld [vmem:[#allocation2 + $0x130] sm:$0xf]  ;;  %v12547_v12 = vor.u32 %v16152_v15, %v12546_v14 }
 0x348   : > { %v15752_v51 = vld [vmem:[#allocation2 + $0x16c] sm:$0xf0]  ;;  %6407 = vmatpush.bf16.msra.mxu2 %v12035_v61 }
 0x349   : > { %v11458_v40 = vld [vmem:[#allocation2 + $0x530] sm:$0xf]  ;;  %v10947_v53 = vor.u32 %v15752_v51, %v10946_v54 }
 0x34a   : > { %v15880_v8 = vld [vmem:[#allocation2 + $0x56c] sm:$0xf0]  ;;  %6421 = vmatpush.bf16.msra.mxu3 %v12547_v12 }
 0x34b   : > { %v11970_v2 = vld [vmem:[#allocation2 + $0x930] sm:$0xf]  ;;  %v11459_v56 = vor.u32 %v15880_v8, %v11458_v40  ;;  %6380 = vmatpush.bf16.msra.mxu0 %v10947_v53 }
 0x34c   : > { %v16008_v32 = vld [vmem:[#allocation2 + $0x96c] sm:$0xf0] }
 0x34d   : > { %v12482_v62 = vld [vmem:[#allocation2 + $0xd30] sm:$0xf]  ;;  %v11971_v20 = vor.u32 %v16008_v32, %v11970_v2  ;;  %6394 = vmatpush.bf16.msra.mxu1 %v11459_v56  ;;  %v12419_v32 = vor.u32 %v16120_v34, %v12418_v11 }
 0x34e   : > { %v16136_v30 = vld [vmem:[#allocation2 + $0xd6c] sm:$0xf0] }
 0x34f   : > { %v10882_v24 = vld [vmem:[#allocation2 + $0xb0] sm:$0xf]  ;;  %v12483_v29 = vor.u32 %v16136_v30, %v12482_v62  ;;  %6408 = vmatpush.bf16.msra.mxu2 %v11971_v20 }
 0x350   : > { %v15736_v28 = vld [vmem:[#allocation2 + $0xec] sm:$0xf0] }
 0x351   : > { %v11394_v48 = vld [vmem:[#allocation2 + $0x4b0] sm:$0xf]  ;;  %v10883_v16 = vor.u32 %v15736_v28, %v10882_v24  ;;  %6422 = vmatpush.bf16.msra.mxu3 %v12483_v29  ;;  %v15824_v28 = vld [vmem:[#allocation2 + $0x3b4] sm:$0xf] }
 0x352   : > { %v15864_v5 = vld [vmem:[#allocation2 + $0x4ec] sm:$0xf0] }
 0x353   : > { %v11906_v14 = vld [vmem:[#allocation2 + $0x8b0] sm:$0xf]  ;;  %v11395_v27 = vor.u32 %v15864_v5, %v11394_v48  ;;  %6381 = vmatpush.bf16.msra.mxu0 %v10883_v16  ;;  %v15952_v48 = vld [vmem:[#allocation2 + $0x7b4] sm:$0xf] }
 0x354   : > { %v15992_v15 = vld [vmem:[#allocation2 + $0x8ec] sm:$0xf0]  ;;  %v11780_v5 = vld [vmem:[#allocation2 + $0x7f0] sm:$0xf0] }
 0x355   : > { %v10818_v54 = vld [vmem:[#allocation2 + $0x30] sm:$0xf]  ;;  %v11907_v61 = vor.u32 %v15992_v15, %v11906_v14  ;;  %6395 = vmatpush.bf16.msra.mxu1 %v11395_v27  ;;  %6423 = vmatpush.bf16.msra.mxu3 %v12419_v32  ;;  %v11271_v14 = vor.u32 %v15824_v28, %v11268_v44  ;;  %v11783_v16 = vor.u32 %v15952_v48, %v11780_v5  ;;  %v15936_v27 = vld [vmem:[#allocation2 + $0x734] sm:$0xf] }
 0x356   : > { %v15720_v51 = vld [vmem:[#allocation2 + $0x6c] sm:$0xf0] }
 0x357   : > { %v11330_v40 = vld [vmem:[#allocation2 + $0x430] sm:$0xf]  ;;  %v10819_v53 = vor.u32 %v15720_v51, %v10818_v54  ;;  %6409 = vmatpush.bf16.msra.mxu2 %v11907_v61  ;;  %v15808_v51 = vld [vmem:[#allocation2 + $0x334] sm:$0xf] }
 0x358   : > { %v15848_v8 = vld [vmem:[#allocation2 + $0x46c] sm:$0xf0]  ;;  %v11716_v61 = vld [vmem:[#allocation2 + $0x770] sm:$0xf0] }
 0x359   : > { %v11842_v2 = vld [vmem:[#allocation2 + $0x830] sm:$0xf]  ;;  %v11331_v56 = vor.u32 %v15848_v8, %v11330_v40  ;;  %6382 = vmatpush.bf16.msra.mxu0 %v10819_v53  ;;  %v18007_v8 = vpop.f32.mrf.mxu1  ;;  %v15920_v53 = vld [vmem:[#allocation2 + $0x6b4] sm:$0xf] }
 0x35a   : > { %v15976_v12 = vld [vmem:[#allocation2 + $0x86c] sm:$0xf0] }
 0x35b   : > { %v12354_v25 = vld [vmem:[#allocation2 + $0xc30] sm:$0xf]  ;;  %v11843_v20 = vor.u32 %v15976_v12, %v11842_v2  ;;  %6396 = vmatpush.bf16.msra.mxu1 %v11331_v56  ;;  %v11207_v2 = vor.u32 %v15808_v51, %v11204_v52 }
 0x35c   : > { %v16104_v62 = vld [vmem:[#allocation2 + $0xc6c] sm:$0xf0]  ;;  %6383 = vmatmul.bf16.vlgmr.msra.gmra.mxu0 %v17718_v57 }
 0x35d   : > { %v13314_v30 = vld [vmem:[#allocation2 + $0x13b0] sm:$0xf]  ;;  %v12355_v29 = vor.u32 %v16104_v62, %v12354_v25  ;;  %6410 = vmatpush.bf16.msra.mxu2 %v11843_v20  ;;  %v11719_v62 = vor.u32 %v15936_v27, %v11716_v61 }
 0x35e   : > { %v16344_v4 = vld [vmem:[#allocation2 + $0x13ec] sm:$0xf0]  ;;  %6397 = vmatmul.bf16.vlgmr.msra.gmra.mxu1 %v17723_v6 }
 0x35f   : > { %v13826_v26 = vld [vmem:[#allocation2 + $0x17b0] sm:$0xf]  ;;  %v13315_v34 = vor.u32 %v16344_v4, %v13314_v30  ;;  %6424 = vmatpush.bf16.msra.mxu3 %v12355_v29  ;;  %v15792_v4 = vld [vmem:[#allocation2 + $0x2b4] sm:$0xf]  ;;  %v18015_v29 = vpop.f32.mrf.mxu3 }
 0x360   : > { %v16472_v24 = vld [vmem:[#allocation2 + $0x17ec] sm:$0xf0]  ;;  %6411 = vmatmul.bf16.vlgmr.msra.gmra.mxu2 %v17730_v22  ;;  %18564 = vst [vmem:[#allocation68_spill] sm:$0xff] %v18015_v29  ;;  %v16192_v29 = vld [vmem:[#allocation2 + $0xf34] sm:$0xf] }
 0x361   : > { %v13827_v11 = vor.u32 %v16472_v24, %v13826_v26  ;;  %v13250_v15 = vld [vmem:[#allocation2 + $0x1330] sm:$0xf]  ;;  %6431 = vmatpush.bf16.msrb.mxu0 %v13315_v34  ;;  %6459 = vmatpush.bf16.msrb.mxu2 %v11271_v14  ;;  %v11140_v26 = vld [vmem:[#allocation2 + $0x2f0] sm:$0xf0] }
 0x362   : > { %v16456_v54 = vld [vmem:[#allocation2 + $0x176c] sm:$0xf0]  ;;  %v13251_v40 = vor.u32 %v16328_v60, %v13250_v15  ;;  %v11652_v24 = vld [vmem:[#allocation2 + $0x6f0] sm:$0xf0]  ;;  %6425 = vmatmul.bf16.vlgmr.msra.gmra.mxu3 %v17732_v23  ;;  %v11143_v28 = vor.u32 %v15792_v4, %v11140_v26  ;;  %v6160_v15 = vpop.f32.mrf.mxu0 }
 0x363   : > { %6445 = vmatpush.bf16.msrb.mxu1 %v13827_v11  ;;  %v13763_v44 = vor.u32 %v16456_v54, %v13762_v10  ;;  %v13186_v32 = vld [vmem:[#allocation2 + $0x12b0] sm:$0xf]  ;;  %6473 = vmatpush.bf16.msrb.mxu3 %v11783_v16  ;;  %v18012_v10 = vpop.f32.mrf.mxu2  ;;  %v11655_v5 = vor.u32 %v15920_v53, %v11652_v24  ;;  %v15776_v11 = vld [vmem:[#allocation2 + $0x234] sm:$0xf]  ;;  %v6161_v51 = vadd.f32 %v6160_v15, %v18003_v36 }
 0x364   : > { %v16312_v12 = vld [vmem:[#allocation2 + $0x12ec] sm:$0xf0]  ;;  %18563 = vst [vmem:[#allocation67_spill] sm:$0xff] %v18012_v10  ;;  %v11076_v14 = vld [vmem:[#allocation2 + $0x270] sm:$0xf0] }
 0x365   : > { %v13698_v25 = vld [vmem:[#allocation2 + $0x16b0] sm:$0xf]  ;;  %6432 = vmatpush.bf16.msrb.mxu0 %v13251_v40  ;;  %v13187_v60 = vor.u32 %v16312_v12, %v13186_v32  ;;  %6460 = vmatpush.bf16.msrb.mxu2 %v11207_v2  ;;  %v15904_v16 = vld [vmem:[#allocation2 + $0x634] sm:$0xf]  ;;  %v11079_v40 = vor.u32 %v15776_v11, %v11076_v14  ;;  %v11212_v10 = vld [vmem:[#allocation2 + $0x378] sm:$0xf0] }
 0x366   : > { %v16440_v30 = vld [vmem:[#allocation2 + $0x16ec] sm:$0xf0]  ;;  %v11588_v54 = vld [vmem:[#allocation2 + $0x670] sm:$0xf0] }
 0x367   : > { %6446 = vmatpush.bf16.msrb.mxu1 %v13763_v44  ;;  %v13699_v52 = vor.u32 %v16440_v30, %v13698_v25  ;;  %v13122_v56 = vld [vmem:[#allocation2 + $0x1230] sm:$0xf]  ;;  %6474 = vmatpush.bf16.msrb.mxu3 %v11719_v62  ;;  %v6174_v44 = vpop.f32.mrf.mxu1  ;;  %v11591_v25 = vor.u32 %v15904_v16, %v11588_v54  ;;  %v15760_v4 = vld [vmem:[#allocation2 + $0x1b4] sm:$0xf] }
 0x368   : > { %v16296_v20 = vld [vmem:[#allocation2 + $0x126c] sm:$0xf0]  ;;  %v6175_v62 = vadd.f32 %v6174_v44, %v6161_v51  ;;  %v11012_v26 = vld [vmem:[#allocation2 + $0x1f0] sm:$0xf0]  ;;  %v6202_v51 = vpop.f32.mrf.mxu3 }
 0x369   : > { %v13634_v48 = vld [vmem:[#allocation2 + $0x1630] sm:$0xf]  ;;  %6433 = vmatpush.bf16.msrb.mxu0 %v13187_v60  ;;  %v13123_v27 = vor.u32 %v16296_v20, %v13122_v56  ;;  %6461 = vmatpush.bf16.msrb.mxu2 %v11143_v28  ;;  %v15888_v53 = vld [vmem:[#allocation2 + $0x5b4] sm:$0xf] }
 0x36a   : > { %v16424_v34 = vld [vmem:[#allocation2 + $0x166c] sm:$0xf0]  ;;  %v11524_v24 = vld [vmem:[#allocation2 + $0x5f0] sm:$0xf0]  ;;  %v18020_v3 = vpop.f32.mrf.mxu0 }
 0x36b   : > { %6447 = vmatpush.bf16.msrb.mxu1 %v13699_v52  ;;  %v13635_v61 = vor.u32 %v16424_v34, %v13634_v48  ;;  %v13058_v2 = vld [vmem:[#allocation2 + $0x11b0] sm:$0xf]  ;;  %6475 = vmatpush.bf16.msrb.mxu3 %v11655_v5  ;;  %v11015_v52 = vor.u32 %v15760_v4, %v11012_v26  ;;  %v11527_v48 = vor.u32 %v15888_v53, %v11524_v24  ;;  %v6188_v34 = vpop.f32.mrf.mxu2  ;;  %v15744_v11 = vld [vmem:[#allocation2 + $0x134] sm:$0xf] }
 0x36c   : > { %v16280_v32 = vld [vmem:[#allocation2 + $0x11ec] sm:$0xf0]  ;;  %v10948_v14 = vld [vmem:[#allocation2 + $0x170] sm:$0xf0]  ;;  %v6189_v15 = vadd.f32 %v6188_v34, %v6175_v62  ;;  %18566 = vst [vmem:[#allocation70_spill] sm:$0xff] %v18020_v3 }
 0x36d   : > { %v13570_v12 = vld [vmem:[#allocation2 + $0x15b0] sm:$0xf]  ;;  %6434 = vmatpush.bf16.msrb.mxu0 %v13123_v27  ;;  %v13059_v60 = vor.u32 %v16280_v32, %v13058_v2  ;;  %6462 = vmatpush.bf16.msrb.mxu2 %v11079_v40  ;;  %v15872_v16 = vld [vmem:[#allocation2 + $0x534] sm:$0xf]  ;;  %v10951_v44 = vor.u32 %v15744_v11, %v10948_v14  ;;  %v12234_v3 = vld [vmem:[#allocation2 + $0xb38] sm:$0xf] }
 0x36e   : > { %v16408_v30 = vld [vmem:[#allocation2 + $0x15ec] sm:$0xf0]  ;;  %v11460_v54 = vld [vmem:[#allocation2 + $0x570] sm:$0xf0] }
 0x36f   : > { %6448 = vmatpush.bf16.msrb.mxu1 %v13635_v61  ;;  %v13571_v36 = vor.u32 %v16408_v30, %v13570_v12  ;;  %v12994_v28 = vld [vmem:[#allocation2 + $0x1130] sm:$0xf]  ;;  %6476 = vmatpush.bf16.msrb.mxu3 %v11591_v25  ;;  %v18018_v61 = vadd.f32 %v6202_v51, %v6189_v15  ;;  %v11463_v25 = vor.u32 %v15872_v16, %v11460_v54  ;;  %v15728_v4 = vld [vmem:[#allocation2 + $0xb4] sm:$0xf] }
 0x370   : > { %v16264_v56 = vld [vmem:[#allocation2 + $0x116c] sm:$0xf0]  ;;  %v10884_v26 = vld [vmem:[#allocation2 + $0xf0] sm:$0xf0] }
 0x371   : > { %v13506_v20 = vld [vmem:[#allocation2 + $0x1530] sm:$0xf]  ;;  %6435 = vmatpush.bf16.msrb.mxu0 %v13059_v60  ;;  %v12995_v27 = vor.u32 %v16264_v56, %v12994_v28  ;;  %6463 = vmatpush.bf16.msrb.mxu2 %v11015_v52  ;;  %18565 = vst [vmem:[#allocation69_spill] sm:$0xff] %v18018_v61  ;;  %v15856_v62 = vld [vmem:[#allocation2 + $0x4b4] sm:$0xf]  ;;  %v10887_v52 = vor.u32 %v15728_v4, %v10884_v26 }
 0x372   : > { %v16392_v5 = vld [vmem:[#allocation2 + $0x156c] sm:$0xf0]  ;;  %v11396_v53 = vld [vmem:[#allocation2 + $0x4f0] sm:$0xf0] }
 0x373   : > { %6449 = vmatpush.bf16.msrb.mxu1 %v13571_v36  ;;  %v13507_v40 = vor.u32 %v16392_v5, %v13506_v20  ;;  %v12930_v2 = vld [vmem:[#allocation2 + $0x10b0] sm:$0xf]  ;;  %6477 = vmatpush.bf16.msrb.mxu3 %v11527_v48  ;;  %v15712_v34 = vld [vmem:[#allocation2 + $0x34] sm:$0xf]  ;;  %v11399_v5 = vor.u32 %v15856_v62, %v11396_v53 }
 0x374   : > { %v16248_v32 = vld [vmem:[#allocation2 + $0x10ec] sm:$0xf0]  ;;  %v10820_v48 = vld [vmem:[#allocation2 + $0x70] sm:$0xf0] }
 0x375   : > { %v13442_v12 = vld [vmem:[#allocation2 + $0x14b0] sm:$0xf]  ;;  %6436 = vmatpush.bf16.msrb.mxu0 %v12995_v27  ;;  %v12931_v24 = vor.u32 %v16248_v32, %v12930_v2  ;;  %6464 = vmatpush.bf16.msrb.mxu2 %v10951_v44  ;;  %v15840_v11 = vld [vmem:[#allocation2 + $0x434] sm:$0xf]  ;;  %v10823_v44 = vor.u32 %v15712_v34, %v10820_v48 }
 0x376   : > { %v16376_v30 = vld [vmem:[#allocation2 + $0x14ec] sm:$0xf0]  ;;  %v11332_v14 = vld [vmem:[#allocation2 + $0x470] sm:$0xf0] }
 0x377   : > { %v12866_v60 = vld [vmem:[#allocation2 + $0x1030] sm:$0xf]  ;;  %6450 = vmatpush.bf16.msrb.mxu1 %v13507_v40  ;;  %v13443_v36 = vor.u32 %v16376_v30, %v13442_v12  ;;  %6478 = vmatpush.bf16.msrb.mxu3 %v11463_v25  ;;  %v16080_v15 = vld [vmem:[#allocation2 + $0xbb4] sm:$0xf]  ;;  %v11335_v25 = vor.u32 %v15840_v11, %v11332_v14 }
 0x378   : > { %v16232_v28 = vld [vmem:[#allocation2 + $0x106c] sm:$0xf0]  ;;  %v12292_v16 = vld [vmem:[#allocation2 + $0xbf0] sm:$0xf0] }
 0x379   : > { %v13378_v56 = vld [vmem:[#allocation2 + $0x1430] sm:$0xf]  ;;  %v16208_v54 = vld [vmem:[#allocation2 + $0xfb4] sm:$0xf]  ;;  %6437 = vmatpush.bf16.msrb.mxu0 %v12931_v24  ;;  %v12867_v51 = vor.u32 %v16232_v28, %v12866_v60  ;;  %6465 = vmatpush.bf16.msrb.mxu2 %v10887_v52  ;;  %v12295_v4 = vor.u32 %v16080_v15, %v12292_v16 }
 0x37a   : > { %v16360_v20 = vld [vmem:[#allocation2 + $0x146c] sm:$0xf0]  ;;  %v12804_v27 = vld [vmem:[#allocation2 + $0xff0] sm:$0xf0] }
 0x37b   : > { %v16336_v2 = vld [vmem:[#allocation2 + $0x13b4] sm:$0xf]  ;;  %6451 = vmatpush.bf16.msrb.mxu1 %v13443_v36  ;;  %v13379_v40 = vor.u32 %v16360_v20, %v13378_v56  ;;  %6479 = vmatpush.bf16.msrb.mxu3 %v11399_v5  ;;  %v12807_v26 = vor.u32 %v16208_v54, %v12804_v27  ;;  %v18022_v20 = vpop.f32.mrf.mxu1 }
 0x37c   : > { %v13316_v32 = vld [vmem:[#allocation2 + $0x13f0] sm:$0xf0]  ;;  %18567 = vst [vmem:[#allocation71_spill] sm:$0xff] %v18022_v20  ;;  %v15817_v20 = vld [vmem:[#allocation2 + $0x374] sm:$0xf0] }
 0x37d   : > { %v16464_v12 = vld [vmem:[#allocation2 + $0x17b4] sm:$0xf]  ;;  %v13319_v62 = vor.u32 %v16336_v2, %v13316_v32  ;;  %6438 = vmatpush.bf16.msrb.mxu0 %v12867_v51  ;;  %6466 = vmatpush.bf16.msrb.mxu2 %v10823_v44 }
 0x37e   : > { %v13828_v30 = vld [vmem:[#allocation2 + $0x17f0] sm:$0xf0] }
 0x37f   : > { %v16064_v53 = vld [vmem:[#allocation2 + $0xb34] sm:$0xf]  ;;  %v13831_v24 = vor.u32 %v16464_v12, %v13828_v30  ;;  %6452 = vmatpush.bf16.msrb.mxu1 %v13379_v40  ;;  %6480 = vmatpush.bf16.msrb.mxu3 %v11335_v25  ;;  %v18029_v30 = vpop.f32.mrf.mxu2 }
 0x380   : > { %v12228_v61 = vld [vmem:[#allocation2 + $0xb70] sm:$0xf0]  ;;  %6439 = vmatmul.bf16.vlgmr.msrb.gmra.mxu0 %v17740_v35  ;;  %6467 = vmatmul.bf16.vlgmr.msrb.gmra.mxu2 %v17718_v57  ;;  %18568 = vst [vmem:[#allocation72_spill] sm:$0xff] %v18029_v30  ;;  %v11210_v30 = vld [vmem:[#allocation2 + $0x338] sm:$0xf] }
 0x381   : > { %v12740_v60 = vld [vmem:[#allocation2 + $0xf70] sm:$0xf0]  ;;  %6487 = vmatpush.bf16.msra.mxu0 %v12295_v4  ;;  %v12231_v56 = vor.u32 %v16064_v53, %v12228_v61  ;;  %6515 = vmatpush.bf16.msra.mxu2 %v13319_v62 }
 0x382   : > { %v16320_v28 = vld [vmem:[#allocation2 + $0x1334] sm:$0xf]  ;;  %v12743_v34 = vor.u32 %v16192_v29, %v12740_v60  ;;  %6453 = vmatmul.bf16.vlgmr.msrb.gmra.mxu1 %v17742_v39  ;;  %6481 = vmatmul.bf16.vlgmr.msrb.gmra.mxu3 %v17723_v6  ;;  %v6216_v60 = vpop.f32.mrf.mxu0 }
 0x383   : > { %v16448_v36 = vld [vmem:[#allocation2 + $0x1734] sm:$0xf]  ;;  %6501 = vmatpush.bf16.msra.mxu1 %v12807_v26  ;;  %v13255_v5 = vor.u32 %v16320_v28, %v13252_v0  ;;  %6529 = vmatpush.bf16.msra.mxu3 %v13831_v24  ;;  %v18506_v0 = vperm.slane %v17970_v7, 2  ;;  %v18031_v28 = vpop.f32.mrf.mxu3 }
 0x384   : > { %v13764_v52 = vld [vmem:[#allocation2 + $0x1770] sm:$0xf0]  ;;  %18569 = vst [vmem:[#allocation73_spill] sm:$0xff] %v18031_v28 }
 0x385   : > { %v16048_v48 = vld [vmem:[#allocation2 + $0xab4] sm:$0xf]  ;;  %v13767_v15 = vor.u32 %v16448_v36, %v13764_v52  ;;  %6488 = vmatpush.bf16.msra.mxu0 %v12231_v56  ;;  %6516 = vmatpush.bf16.msra.mxu2 %v13255_v5  ;;  %v6217_v52 = vadd.f32 %v6216_v60, %v18506_v0 }
 0x386   : > { %v12164_v11 = vld [vmem:[#allocation2 + $0xaf0] sm:$0xf0] }
 0x387   : > { %v16176_v14 = vld [vmem:[#allocation2 + $0xeb4] sm:$0xf]  ;;  %v12167_v2 = vor.u32 %v16048_v48, %v12164_v11  ;;  %6502 = vmatpush.bf16.msra.mxu1 %v12743_v34  ;;  %6530 = vmatpush.bf16.msra.mxu3 %v13767_v15 }
 0x388   : > { %v12676_v16 = vld [vmem:[#allocation2 + $0xef0] sm:$0xf0] }
 0x389   : > { %v16304_v54 = vld [vmem:[#allocation2 + $0x12b4] sm:$0xf]  ;;  %v12679_v29 = vor.u32 %v16176_v14, %v12676_v16  ;;  %6489 = vmatpush.bf16.msra.mxu0 %v12167_v2  ;;  %v6230_v14 = vpop.f32.mrf.mxu1 }
 0x38a   : > { %v13188_v51 = vld [vmem:[#allocation2 + $0x12f0] sm:$0xf0] }
 0x38b   : > { %v16432_v27 = vld [vmem:[#allocation2 + $0x16b4] sm:$0xf]  ;;  %v13191_v32 = vor.u32 %v16304_v54, %v13188_v51  ;;  %6503 = vmatpush.bf16.msra.mxu1 %v12679_v29 }
 0x38c   : > { %v13700_v61 = vld [vmem:[#allocation2 + $0x16f0] sm:$0xf0] }
 0x38d   : > { %v16032_v40 = vld [vmem:[#allocation2 + $0xa34] sm:$0xf]  ;;  %v13703_v25 = vor.u32 %v16432_v27, %v13700_v61  ;;  %6517 = vmatpush.bf16.msra.mxu2 %v13191_v32  ;;  %v6231_v27 = vadd.f32 %v6230_v14, %v6217_v52 }
 0x38e   : > { %v12100_v44 = vld [vmem:[#allocation2 + $0xa70] sm:$0xf0] }
 0x38f   : > { %v16160_v12 = vld [vmem:[#allocation2 + $0xe34] sm:$0xf]  ;;  %v12103_v36 = vor.u32 %v16032_v40, %v12100_v44  ;;  %6531 = vmatpush.bf16.msra.mxu3 %v13703_v25 }
 0x390   : > { %v12612_v4 = vld [vmem:[#allocation2 + $0xe70] sm:$0xf0] }
 0x391   : > { %v16288_v26 = vld [vmem:[#allocation2 + $0x1234] sm:$0xf]  ;;  %v12615_v56 = vor.u32 %v16160_v12, %v12612_v4  ;;  %6490 = vmatpush.bf16.msra.mxu0 %v12103_v36  ;;  %v6258_v36 = vpop.f32.mrf.mxu3 }
 0x392   : > { %v13124_v62 = vld [vmem:[#allocation2 + $0x1270] sm:$0xf0] }
 0x393   : > { %v16416_v53 = vld [vmem:[#allocation2 + $0x1634] sm:$0xf]  ;;  %v13127_v34 = vor.u32 %v16288_v26, %v13124_v62  ;;  %6504 = vmatpush.bf16.msra.mxu1 %v12615_v56 }
 0x394   : > { %v13636_v24 = vld [vmem:[#allocation2 + $0x1670] sm:$0xf0] }
 0x395   : > { %v16016_v5 = vld [vmem:[#allocation2 + $0x9b4] sm:$0xf]  ;;  %v13639_v15 = vor.u32 %v16416_v53, %v13636_v24  ;;  %6518 = vmatpush.bf16.msra.mxu2 %v13127_v34  ;;  %v6244_v24 = vpop.f32.mrf.mxu2 }
 0x396   : > { %v12036_v48 = vld [vmem:[#allocation2 + $0x9f0] sm:$0xf0]  ;;  %v6245_v52 = vadd.f32 %v6244_v24, %v6231_v27  ;;  %v11274_v24 = vld [vmem:[#allocation2 + $0x3b8] sm:$0xf] }
 0x397   : > { %v16144_v11 = vld [vmem:[#allocation2 + $0xdb4] sm:$0xf]  ;;  %v12039_v40 = vor.u32 %v16016_v5, %v12036_v48  ;;  %6532 = vmatpush.bf16.msra.mxu3 %v13639_v15 }
 0x398   : > { %v12548_v16 = vld [vmem:[#allocation2 + $0xdf0] sm:$0xf0] }
 0x399   : > { %v16272_v54 = vld [vmem:[#allocation2 + $0x11b4] sm:$0xf]  ;;  %v12551_v29 = vor.u32 %v16144_v11, %v12548_v16  ;;  %6491 = vmatpush.bf16.msra.mxu0 %v12039_v40  ;;  %v18035_v16 = vadd.f32 %v6258_v36, %v6245_v52  ;;  %v11786_v52 = vld [vmem:[#allocation2 + $0x7b8] sm:$0xf] }
 0x39a   : > { %v13060_v51 = vld [vmem:[#allocation2 + $0x11f0] sm:$0xf0]  ;;  %v15961_v36 = vld [vmem:[#allocation2 + $0x7f4] sm:$0xf0] }
 0x39b   : > { %v16400_v61 = vld [vmem:[#allocation2 + $0x15b4] sm:$0xf]  ;;  %v13063_v32 = vor.u32 %v16272_v54, %v13060_v51  ;;  %6505 = vmatpush.bf16.msra.mxu1 %v12551_v29 }
 0x39c   : > { %v13572_v2 = vld [vmem:[#allocation2 + $0x15f0] sm:$0xf0] }
 0x39d   : > { %v16000_v44 = vld [vmem:[#allocation2 + $0x934] sm:$0xf]  ;;  %v13575_v26 = vor.u32 %v16400_v61, %v13572_v2  ;;  %6519 = vmatpush.bf16.msra.mxu2 %v13063_v32 }
 0x39e   : > { %v11972_v12 = vld [vmem:[#allocation2 + $0x970] sm:$0xf0] }
 0x39f   : > { %v16128_v4 = vld [vmem:[#allocation2 + $0xd34] sm:$0xf]  ;;  %v11975_v14 = vor.u32 %v16000_v44, %v11972_v12  ;;  %6533 = vmatpush.bf16.msra.mxu3 %v13575_v26 }
 0x3a0   : > { %v12484_v62 = vld [vmem:[#allocation2 + $0xd70] sm:$0xf0] }
 0x3a1   : > { %v16256_v25 = vld [vmem:[#allocation2 + $0x1134] sm:$0xf]  ;;  %v12487_v56 = vor.u32 %v16128_v4, %v12484_v62  ;;  %6492 = vmatpush.bf16.msra.mxu0 %v11975_v14 }
 0x3a2   : > { %v12996_v53 = vld [vmem:[#allocation2 + $0x1170] sm:$0xf0] }
 0x3a3   : > { %v16384_v60 = vld [vmem:[#allocation2 + $0x1534] sm:$0xf]  ;;  %v12999_v34 = vor.u32 %v16256_v25, %v12996_v53  ;;  %6506 = vmatpush.bf16.msra.mxu1 %v12487_v56 }
 0x3a4   : > { %v13508_v0 = vld [vmem:[#allocation2 + $0x1570] sm:$0xf0] }
 0x3a5   : > { %v15984_v5 = vld [vmem:[#allocation2 + $0x8b4] sm:$0xf]  ;;  %v13511_v15 = vor.u32 %v16384_v60, %v13508_v0  ;;  %6520 = vmatpush.bf16.msra.mxu2 %v12999_v34  ;;  %v15833_v60 = vld [vmem:[#allocation2 + $0x3f4] sm:$0xf0] }
 0x3a6   : > { %v11908_v48 = vld [vmem:[#allocation2 + $0x8f0] sm:$0xf0] }
 0x3a7   : > { %v16112_v11 = vld [vmem:[#allocation2 + $0xcb4] sm:$0xf]  ;;  %v11911_v27 = vor.u32 %v15984_v5, %v11908_v48  ;;  %6534 = vmatpush.bf16.msra.mxu3 %v13511_v15  ;;  %v12298_v5 = vld [vmem:[#allocation2 + $0xbb8] sm:$0xf] }
 0x3a8   : > { %v12420_v54 = vld [vmem:[#allocation2 + $0xcf0] sm:$0xf0]  ;;  %v16089_v48 = vld [vmem:[#allocation2 + $0xbf4] sm:$0xf0] }
 0x3a9   : > { %v16240_v51 = vld [vmem:[#allocation2 + $0x10b4] sm:$0xf]  ;;  %v12423_v29 = vor.u32 %v16112_v11, %v12420_v54  ;;  %6493 = vmatpush.bf16.msra.mxu0 %v11911_v27  ;;  %v12810_v11 = vld [vmem:[#allocation2 + $0xfb8] sm:$0xf] }
 0x3aa   : > { %v12932_v61 = vld [vmem:[#allocation2 + $0x10f0] sm:$0xf0]  ;;  %v16217_v54 = vld [vmem:[#allocation2 + $0xff4] sm:$0xf0] }
 0x3ab   : > { %v16368_v2 = vld [vmem:[#allocation2 + $0x14b4] sm:$0xf]  ;;  %v12935_v32 = vor.u32 %v16240_v51, %v12932_v61  ;;  %6507 = vmatpush.bf16.msra.mxu1 %v12423_v29  ;;  %v11787_v51 = vor.u32 %v15961_v36, %v11786_v52  ;;  %v12299_v61 = vor.u32 %v16089_v48, %v12298_v5  ;;  %v11722_v27 = vld [vmem:[#allocation2 + $0x738] sm:$0xf] }
 0x3ac   : > { %v13444_v28 = vld [vmem:[#allocation2 + $0x14f0] sm:$0xf0]  ;;  %v16073_v29 = vld [vmem:[#allocation2 + $0xb74] sm:$0xf0] }
 0x3ad   : > { %v15968_v40 = vld [vmem:[#allocation2 + $0x834] sm:$0xf]  ;;  %v13447_v25 = vor.u32 %v16368_v2, %v13444_v28  ;;  %6521 = vmatpush.bf16.msra.mxu2 %v12935_v32  ;;  %v11275_v28 = vor.u32 %v15833_v60, %v11274_v24  ;;  %v18037_v2 = vpop.f32.mrf.mxu0  ;;  %v12746_v32 = vld [vmem:[#allocation2 + $0xf38] sm:$0xf] }
 0x3ae   : > { %v11844_v44 = vld [vmem:[#allocation2 + $0x870] sm:$0xf0]  ;;  %18570 = vst [vmem:[#allocation74_spill] sm:$0xff] %v18037_v2  ;;  %v11658_v24 = vld [vmem:[#allocation2 + $0x6b8] sm:$0xf] }
 0x3af   : > { %v16096_v12 = vld [vmem:[#allocation2 + $0xc34] sm:$0xf]  ;;  %v11847_v14 = vor.u32 %v15968_v40, %v11844_v44  ;;  %6535 = vmatpush.bf16.msra.mxu3 %v13447_v25  ;;  %v12811_v40 = vor.u32 %v16217_v54, %v12810_v11  ;;  %v15945_v44 = vld [vmem:[#allocation2 + $0x774] sm:$0xf0] }
 0x3b0   : > { %v12356_v4 = vld [vmem:[#allocation2 + $0xc70] sm:$0xf0]  ;;  %v11723_v25 = vor.u32 %v15945_v44, %v11722_v27  ;;  %v15929_v52 = vld [vmem:[#allocation2 + $0x6f4] sm:$0xf0] }
 0x3b1   : > { %v16224_v62 = vld [vmem:[#allocation2 + $0x1034] sm:$0xf]  ;;  %v12359_v56 = vor.u32 %v16096_v12, %v12356_v4  ;;  %6494 = vmatpush.bf16.msra.mxu0 %v11847_v14  ;;  %v16201_v12 = vld [vmem:[#allocation2 + $0xf74] sm:$0xf0]  ;;  %v18039_v4 = vpop.f32.mrf.mxu1 }
 0x3b2   : > { %v12868_v26 = vld [vmem:[#allocation2 + $0x1070] sm:$0xf0]  ;;  %18571 = vst [vmem:[#allocation75_spill] sm:$0xff] %v18039_v4  ;;  %v12747_v60 = vor.u32 %v16201_v12, %v12746_v32  ;;  %v12170_v14 = vld [vmem:[#allocation2 + $0xab8] sm:$0xf]  ;;  %v18048_v12 = vpop.f32.mrf.mxu3 }
 0x3b3   : > { %v16352_v0 = vld [vmem:[#allocation2 + $0x1434] sm:$0xf]  ;;  %v12871_v34 = vor.u32 %v16224_v62, %v12868_v26  ;;  %6508 = vmatpush.bf16.msra.mxu1 %v12359_v56  ;;  %v11211_v62 = vor.u32 %v15817_v20, %v11210_v30  ;;  %v12235_v26 = vor.u32 %v16073_v29, %v12234_v3  ;;  %v16057_v36 = vld [vmem:[#allocation2 + $0xaf4] sm:$0xf0]  ;;  %v11659_v30 = vor.u32 %v15929_v52, %v11658_v24 }
 0x3b4   : > { %v13380_v53 = vld [vmem:[#allocation2 + $0x1470] sm:$0xf0]  ;;  %6495 = vmatmul.bf16.vlgmr.msra.gmra.mxu0 %v17730_v22  ;;  %v12682_v5 = vld [vmem:[#allocation2 + $0xeb8] sm:$0xf]  ;;  %v12171_v48 = vor.u32 %v16057_v36, %v12170_v14  ;;  %18573 = vst [vmem:[#allocation77_spill] sm:$0xff] %v18048_v12 }
 0x3b5   : > { %v13383_v15 = vor.u32 %v16352_v0, %v13380_v53  ;;  %6522 = vmatpush.bf16.msra.mxu2 %v12871_v34  ;;  %6543 = vmatpush.bf16.msrb.mxu0 %v11275_v28  ;;  %v11146_v0 = vld [vmem:[#allocation2 + $0x2b8] sm:$0xf]  ;;  %v6272_v27 = vpop.f32.mrf.mxu0 }
 0x3b6   : > { %v15801_v53 = vld [vmem:[#allocation2 + $0x2f4] sm:$0xf0]  ;;  %6509 = vmatmul.bf16.vlgmr.msra.gmra.mxu1 %v17732_v23  ;;  %v6273_v29 = vadd.f32 %v6272_v27, %v18035_v16 }
 0x3b7   : > { %6536 = vmatpush.bf16.msra.mxu3 %v13383_v15  ;;  %6557 = vmatpush.bf16.msrb.mxu1 %v11787_v51  ;;  %v16185_v20 = vld [vmem:[#allocation2 + $0xef4] sm:$0xf0]  ;;  %v11147_v3 = vor.u32 %v15801_v53, %v11146_v0 }
 0x3b8   : > { %6523 = vmatmul.bf16.vlgmr.msra.gmra.mxu2 %v17740_v35  ;;  %v11082_v56 = vld [vmem:[#allocation2 + $0x238] sm:$0xf]  ;;  %v12683_v54 = vor.u32 %v16185_v20, %v12682_v5 }
 0x3b9   : > { %6571 = vmatpush.bf16.msrb.mxu2 %v12299_v61  ;;  %6544 = vmatpush.bf16.msrb.mxu0 %v11211_v62  ;;  %v15785_v34 = vld [vmem:[#allocation2 + $0x274] sm:$0xf0]  ;;  %v18045_v61 = vpop.f32.mrf.mxu2 }
 0x3ba   : > { %6537 = vmatmul.bf16.vlgmr.msra.gmra.mxu3 %v17742_v39  ;;  %v11594_v11 = vld [vmem:[#allocation2 + $0x638] sm:$0xf]  ;;  %18572 = vst [vmem:[#allocation76_spill] sm:$0xff] %v18045_v61  ;;  %v11083_v32 = vor.u32 %v15785_v34, %v11082_v56 }
 0x3bb   : > { %6585 = vmatpush.bf16.msrb.mxu3 %v12811_v40  ;;  %6558 = vmatpush.bf16.msrb.mxu1 %v11723_v25  ;;  %v15913_v15 = vld [vmem:[#allocation2 + $0x674] sm:$0xf0] }
 0x3bc   : > { %v12106_v28 = vld [vmem:[#allocation2 + $0xa38] sm:$0xf]  ;;  %v11595_v62 = vor.u32 %v15913_v15, %v11594_v11 }
 0x3bd   : > { %6572 = vmatpush.bf16.msrb.mxu2 %v12235_v26  ;;  %v16041_v51 = vld [vmem:[#allocation2 + $0xa74] sm:$0xf0]  ;;  %6545 = vmatpush.bf16.msrb.mxu0 %v11147_v3  ;;  %v6286_v26 = vpop.f32.mrf.mxu1  ;;  %v18052_v3 = vld [vmem:[#allocation4 + $0x8] sm:$0xff]  ;;  %v18059_v55 = vpop.f32.mrf.mxu0 }
 0x3be   : > { %v12618_v40 = vld [vmem:[#allocation2 + $0xe38] sm:$0xf]  ;;  %v12107_v25 = vor.u32 %v16041_v51, %v12106_v28  ;;  %v18050_v52 = vadd.f32 %v6286_v26, %v6273_v29 }
 0x3bf   : > { %6586 = vmatpush.bf16.msrb.mxu3 %v12747_v60  ;;  %v16169_v44 = vld [vmem:[#allocation2 + $0xe74] sm:$0xf0]  ;;  %6559 = vmatpush.bf16.msrb.mxu1 %v11659_v30  ;;  %v18507_v30 = vperm.slane %v18052_v3, 3 }
 0x3c0   : > { %v11018_v0 = vld [vmem:[#allocation2 + $0x1b8] sm:$0xf]  ;;  %v12619_v60 = vor.u32 %v16169_v44, %v12618_v40  ;;  %18574 = vst [vmem:[#allocation78_spill] sm:$0xff] %v18050_v52 }
 0x3c1   : > { %6573 = vmatpush.bf16.msrb.mxu2 %v12171_v48  ;;  %v15769_v53 = vld [vmem:[#allocation2 + $0x1f4] sm:$0xf0]  ;;  %6546 = vmatpush.bf16.msrb.mxu0 %v11083_v32  ;;  %v6300_v44 = vpop.f32.mrf.mxu2 }
 0x3c2   : > { %v11530_v24 = vld [vmem:[#allocation2 + $0x5b8] sm:$0xf]  ;;  %v11019_v48 = vor.u32 %v15769_v53, %v11018_v0  ;;  %v6301_v52 = vadd.f32 %v6300_v44, %v18507_v30  ;;  %v11276_v30 = vld [vmem:[#allocation2 + $0x3f8] sm:$0xf0] }
 0x3c3   : > { %6587 = vmatpush.bf16.msrb.mxu3 %v12683_v54  ;;  %v15897_v14 = vld [vmem:[#allocation2 + $0x5f4] sm:$0xf0]  ;;  %6560 = vmatpush.bf16.msrb.mxu1 %v11595_v62  ;;  %v6314_v62 = vpop.f32.mrf.mxu3 }
 0x3c4   : > { %v12042_v36 = vld [vmem:[#allocation2 + $0x9b8] sm:$0xf]  ;;  %v11531_v56 = vor.u32 %v15897_v14, %v11530_v24  ;;  %v18057_v14 = vadd.f32 %v6314_v62, %v6301_v52 }
 0x3c5   : > { %v16025_v5 = vld [vmem:[#allocation2 + $0x9f4] sm:$0xf0]  ;;  %6574 = vmatpush.bf16.msrb.mxu2 %v12107_v25  ;;  %6547 = vmatpush.bf16.msrb.mxu0 %v11019_v48 }
 0x3c6   : > { %v12554_v20 = vld [vmem:[#allocation2 + $0xdb8] sm:$0xf]  ;;  %v12043_v34 = vor.u32 %v16025_v5, %v12042_v36 }
 0x3c7   : > { %v16153_v16 = vld [vmem:[#allocation2 + $0xdf4] sm:$0xf0]  ;;  %6588 = vmatpush.bf16.msrb.mxu3 %v12619_v60  ;;  %6561 = vmatpush.bf16.msrb.mxu1 %v11531_v56 }
 0x3c8   : > { %v10954_v11 = vld [vmem:[#allocation2 + $0x138] sm:$0xf]  ;;  %v12555_v28 = vor.u32 %v16153_v16, %v12554_v20 }
 0x3c9   : > { %v15753_v54 = vld [vmem:[#allocation2 + $0x174] sm:$0xf0]  ;;  %6575 = vmatpush.bf16.msrb.mxu2 %v12043_v34 }
 0x3ca   : > { %v11466_v15 = vld [vmem:[#allocation2 + $0x538] sm:$0xf]  ;;  %v10955_v32 = vor.u32 %v15753_v54, %v10954_v11 }
 0x3cb   : > { %v15881_v51 = vld [vmem:[#allocation2 + $0x574] sm:$0xf0]  ;;  %6589 = vmatpush.bf16.msrb.mxu3 %v12555_v28 }
 0x3cc   : > { %v11978_v27 = vld [vmem:[#allocation2 + $0x938] sm:$0xf]  ;;  %v11467_v25 = vor.u32 %v15881_v51, %v11466_v15  ;;  %6548 = vmatpush.bf16.msrb.mxu0 %v10955_v32 }
 0x3cd   : > { %v16009_v40 = vld [vmem:[#allocation2 + $0x974] sm:$0xf0] }
 0x3ce   : > { %v12490_v29 = vld [vmem:[#allocation2 + $0xd38] sm:$0xf]  ;;  %v11979_v0 = vor.u32 %v16009_v40, %v11978_v27  ;;  %6562 = vmatpush.bf16.msrb.mxu1 %v11467_v25 }
 0x3cf   : > { %v16137_v26 = vld [vmem:[#allocation2 + $0xd74] sm:$0xf0] }
 0x3d0   : > { %v10890_v53 = vld [vmem:[#allocation2 + $0xb8] sm:$0xf]  ;;  %v12491_v36 = vor.u32 %v16137_v26, %v12490_v29  ;;  %6576 = vmatpush.bf16.msrb.mxu2 %v11979_v0 }
 0x3d1   : > { %v15737_v24 = vld [vmem:[#allocation2 + $0xf4] sm:$0xf0] }
 0x3d2   : > { %v11402_v60 = vld [vmem:[#allocation2 + $0x4b8] sm:$0xf]  ;;  %v10891_v48 = vor.u32 %v15737_v24, %v10890_v53  ;;  %6590 = vmatpush.bf16.msrb.mxu3 %v12491_v36  ;;  %v15825_v24 = vld [vmem:[#allocation2 + $0x3bc] sm:$0xf] }
 0x3d3   : > { %v15865_v5 = vld [vmem:[#allocation2 + $0x4f4] sm:$0xf0] }
 0x3d4   : > { %v11914_v20 = vld [vmem:[#allocation2 + $0x8b8] sm:$0xf]  ;;  %v11403_v56 = vor.u32 %v15865_v5, %v11402_v60  ;;  %6549 = vmatpush.bf16.msrb.mxu0 %v10891_v48  ;;  %v15953_v60 = vld [vmem:[#allocation2 + $0x7bc] sm:$0xf] }
 0x3d5   : > { %v15993_v16 = vld [vmem:[#allocation2 + $0x8f4] sm:$0xf0]  ;;  %v11788_v5 = vld [vmem:[#allocation2 + $0x7f8] sm:$0xf0] }
 0x3d6   : > { %v12426_v12 = vld [vmem:[#allocation2 + $0xcb8] sm:$0xf]  ;;  %v11915_v34 = vor.u32 %v15993_v16, %v11914_v20  ;;  %6563 = vmatpush.bf16.msrb.mxu1 %v11403_v56  ;;  %v11279_v20 = vor.u32 %v15825_v24, %v11276_v30  ;;  %v11791_v48 = vor.u32 %v15953_v60, %v11788_v5  ;;  %v15937_v56 = vld [vmem:[#allocation2 + $0x73c] sm:$0xf] }
 0x3d7   : > { %v16121_v61 = vld [vmem:[#allocation2 + $0xcf4] sm:$0xf0] }
 0x3d8   : > { %v10826_v11 = vld [vmem:[#allocation2 + $0x38] sm:$0xf]  ;;  %v12427_v52 = vor.u32 %v16121_v61, %v12426_v12  ;;  %6577 = vmatpush.bf16.msrb.mxu2 %v11915_v34  ;;  %v11724_v34 = vld [vmem:[#allocation2 + $0x778] sm:$0xf0] }
 0x3d9   : > { %v15721_v54 = vld [vmem:[#allocation2 + $0x74] sm:$0xf0] }
 0x3da   : > { %v11338_v15 = vld [vmem:[#allocation2 + $0x438] sm:$0xf]  ;;  %v10827_v32 = vor.u32 %v15721_v54, %v10826_v11  ;;  %6591 = vmatpush.bf16.msrb.mxu3 %v12427_v52  ;;  %v15809_v54 = vld [vmem:[#allocation2 + $0x33c] sm:$0xf] }
 0x3db   : > { %v15849_v51 = vld [vmem:[#allocation2 + $0x474] sm:$0xf0] }
 0x3dc   : > { %v11850_v27 = vld [vmem:[#allocation2 + $0x838] sm:$0xf]  ;;  %v11339_v25 = vor.u32 %v15849_v51, %v11338_v15  ;;  %6550 = vmatpush.bf16.msrb.mxu0 %v10827_v32  ;;  %v18061_v51 = vpop.f32.mrf.mxu1  ;;  %v15921_v32 = vld [vmem:[#allocation2 + $0x6bc] sm:$0xf] }
 0x3dd   : > { %v15977_v28 = vld [vmem:[#allocation2 + $0x874] sm:$0xf0] }
 0x3de   : > { %v12362_v40 = vld [vmem:[#allocation2 + $0xc38] sm:$0xf]  ;;  %v11851_v0 = vor.u32 %v15977_v28, %v11850_v27  ;;  %6564 = vmatpush.bf16.msrb.mxu1 %v11339_v25  ;;  %v11215_v27 = vor.u32 %v15809_v54, %v11212_v10 }
 0x3df   : > { %v16105_v44 = vld [vmem:[#allocation2 + $0xc74] sm:$0xf0]  ;;  %6551 = vmatmul.bf16.vlgmr.msrb.gmra.mxu0 %v17718_v57 }
 0x3e0   : > { %v13322_v29 = vld [vmem:[#allocation2 + $0x13b8] sm:$0xf]  ;;  %v12363_v36 = vor.u32 %v16105_v44, %v12362_v40  ;;  %6578 = vmatpush.bf16.msrb.mxu2 %v11851_v0  ;;  %v11727_v44 = vor.u32 %v15937_v56, %v11724_v34 }
 0x3e1   : > { %v16345_v26 = vld [vmem:[#allocation2 + $0x13f4] sm:$0xf0]  ;;  %6565 = vmatmul.bf16.vlgmr.msrb.gmra.mxu1 %v17723_v6 }
 0x3e2   : > { %v13834_v62 = vld [vmem:[#allocation2 + $0x17b8] sm:$0xf]  ;;  %v13323_v61 = vor.u32 %v16345_v26, %v13322_v29  ;;  %6592 = vmatpush.bf16.msrb.mxu3 %v12363_v36  ;;  %v15793_v26 = vld [vmem:[#allocation2 + $0x2bc] sm:$0xf]  ;;  %v18069_v36 = vpop.f32.mrf.mxu3 }
 0x3e3   : > { %v16473_v53 = vld [vmem:[#allocation2 + $0x17f4] sm:$0xf0]  ;;  %6579 = vmatmul.bf16.vlgmr.msrb.gmra.mxu2 %v17730_v22  ;;  %18576 = vst [vmem:[#allocation80_spill] sm:$0xff] %v18069_v36  ;;  %v16193_v36 = vld [vmem:[#allocation2 + $0xf3c] sm:$0xf] }
 0x3e4   : > { %v13835_v12 = vor.u32 %v16473_v53, %v13834_v62  ;;  %v13258_v16 = vld [vmem:[#allocation2 + $0x1338] sm:$0xf]  ;;  %6599 = vmatpush.bf16.msra.mxu0 %v13323_v61  ;;  %6627 = vmatpush.bf16.msra.mxu2 %v11279_v20  ;;  %v11148_v62 = vld [vmem:[#allocation2 + $0x2f8] sm:$0xf0] }
 0x3e5   : > { %v16329_v4 = vld [vmem:[#allocation2 + $0x1374] sm:$0xf0]  ;;  %v11660_v53 = vld [vmem:[#allocation2 + $0x6f8] sm:$0xf0]  ;;  %6593 = vmatmul.bf16.vlgmr.msrb.gmra.mxu3 %v17732_v23  ;;  %v11151_v24 = vor.u32 %v15793_v26, %v11148_v62 }
 0x3e6   : > { %v13770_v2 = vld [vmem:[#allocation2 + $0x1738] sm:$0xf]  ;;  %v13259_v15 = vor.u32 %v16329_v4, %v13258_v16  ;;  %6613 = vmatpush.bf16.msra.mxu1 %v13835_v12  ;;  %6641 = vmatpush.bf16.msra.mxu3 %v11791_v48  ;;  %v11663_v5 = vor.u32 %v15921_v32, %v11660_v53  ;;  %v15777_v12 = vld [vmem:[#allocation2 + $0x23c] sm:$0xf]  ;;  %v6328_v16 = vpop.f32.mrf.mxu0 }
 0x3e7   : > { %v16457_v11 = vld [vmem:[#allocation2 + $0x1774] sm:$0xf0]  ;;  %v11084_v20 = vld [vmem:[#allocation2 + $0x278] sm:$0xf0]  ;;  %v6329_v54 = vadd.f32 %v6328_v16, %v18057_v14 }
 0x3e8   : > { %v13771_v30 = vor.u32 %v16457_v11, %v13770_v2  ;;  %v13194_v52 = vld [vmem:[#allocation2 + $0x12b8] sm:$0xf]  ;;  %6600 = vmatpush.bf16.msra.mxu0 %v13259_v15  ;;  %v18066_v2 = vpop.f32.mrf.mxu2  ;;  %6628 = vmatpush.bf16.msra.mxu2 %v11215_v27  ;;  %v15905_v48 = vld [vmem:[#allocation2 + $0x63c] sm:$0xf]  ;;  %v11087_v15 = vor.u32 %v15777_v12, %v11084_v20 }
 0x3e9   : > { %v16313_v28 = vld [vmem:[#allocation2 + $0x12f4] sm:$0xf0]  ;;  %18575 = vst [vmem:[#allocation79_spill] sm:$0xff] %v18066_v2  ;;  %v11596_v11 = vld [vmem:[#allocation2 + $0x678] sm:$0xf0] }
 0x3ea   : > { %v13706_v40 = vld [vmem:[#allocation2 + $0x16b8] sm:$0xf]  ;;  %v13195_v4 = vor.u32 %v16313_v28, %v13194_v52  ;;  %6614 = vmatpush.bf16.msra.mxu1 %v13771_v30  ;;  %6642 = vmatpush.bf16.msra.mxu3 %v11727_v44  ;;  %v6342_v30 = vpop.f32.mrf.mxu1  ;;  %v15761_v26 = vld [vmem:[#allocation2 + $0x1bc] sm:$0xf] }
 0x3eb   : > { %v16441_v29 = vld [vmem:[#allocation2 + $0x16f4] sm:$0xf0]  ;;  %v6343_v44 = vadd.f32 %v6342_v30, %v6329_v54  ;;  %v11020_v62 = vld [vmem:[#allocation2 + $0x1f8] sm:$0xf0]  ;;  %v6370_v54 = vpop.f32.mrf.mxu3 }
 0x3ec   : > { %v13707_v10 = vor.u32 %v16441_v29, %v13706_v40  ;;  %v13130_v25 = vld [vmem:[#allocation2 + $0x1238] sm:$0xf]  ;;  %6601 = vmatpush.bf16.msra.mxu0 %v13195_v4  ;;  %6629 = vmatpush.bf16.msra.mxu2 %v11151_v24  ;;  %v11599_v40 = vor.u32 %v15905_v48, %v11596_v11  ;;  %v15889_v32 = vld [vmem:[#allocation2 + $0x5bc] sm:$0xf] }
 0x3ed   : > { %v16297_v0 = vld [vmem:[#allocation2 + $0x1274] sm:$0xf0]  ;;  %v11532_v53 = vld [vmem:[#allocation2 + $0x5f8] sm:$0xf0] }
 0x3ee   : > { %v13642_v60 = vld [vmem:[#allocation2 + $0x1638] sm:$0xf]  ;;  %v13131_v56 = vor.u32 %v16297_v0, %v13130_v25  ;;  %6615 = vmatpush.bf16.msra.mxu1 %v13707_v10  ;;  %6643 = vmatpush.bf16.msra.mxu3 %v11663_v5  ;;  %v11023_v10 = vor.u32 %v15761_v26, %v11020_v62  ;;  %v15745_v12 = vld [vmem:[#allocation2 + $0x13c] sm:$0xf] }
 0x3ef   : > { %v16425_v61 = vld [vmem:[#allocation2 + $0x1674] sm:$0xf0]  ;;  %v10956_v20 = vld [vmem:[#allocation2 + $0x178] sm:$0xf0] }
 0x3f0   : > { %v13643_v34 = vor.u32 %v16425_v61, %v13642_v60  ;;  %v13066_v27 = vld [vmem:[#allocation2 + $0x11b8] sm:$0xf]  ;;  %6602 = vmatpush.bf16.msra.mxu0 %v13131_v56  ;;  %6630 = vmatpush.bf16.msra.mxu2 %v11087_v15  ;;  %v11535_v60 = vor.u32 %v15889_v32, %v11532_v53  ;;  %v6356_v61 = vpop.f32.mrf.mxu2  ;;  %v15873_v48 = vld [vmem:[#allocation2 + $0x53c] sm:$0xf]  ;;  %v10959_v30 = vor.u32 %v15745_v12, %v10956_v20 }
 0x3f1   : > { %v16281_v52 = vld [vmem:[#allocation2 + $0x11f4] sm:$0xf0]  ;;  %v6357_v16 = vadd.f32 %v6356_v61, %v6343_v44  ;;  %v11468_v11 = vld [vmem:[#allocation2 + $0x578] sm:$0xf0] }
 0x3f2   : > { %v13578_v28 = vld [vmem:[#allocation2 + $0x15b8] sm:$0xf]  ;;  %v13067_v4 = vor.u32 %v16281_v52, %v13066_v27  ;;  %6616 = vmatpush.bf16.msra.mxu1 %v13643_v34  ;;  %6644 = vmatpush.bf16.msra.mxu3 %v11599_v40  ;;  %v11471_v40 = vor.u32 %v15873_v48, %v11468_v11  ;;  %v15729_v26 = vld [vmem:[#allocation2 + $0xbc] sm:$0xf] }
 0x3f3   : > { %v16409_v29 = vld [vmem:[#allocation2 + $0x15f4] sm:$0xf0]  ;;  %v18072_v34 = vadd.f32 %v6370_v54, %v6357_v16  ;;  %v10892_v62 = vld [vmem:[#allocation2 + $0xf8] sm:$0xf0] }
 0x3f4   : > { %v13579_v14 = vor.u32 %v16409_v29, %v13578_v28  ;;  %v13002_v24 = vld [vmem:[#allocation2 + $0x1138] sm:$0xf]  ;;  %6603 = vmatpush.bf16.msra.mxu0 %v13067_v4  ;;  %6631 = vmatpush.bf16.msra.mxu2 %v11023_v10  ;;  %v15857_v44 = vld [vmem:[#allocation2 + $0x4bc] sm:$0xf]  ;;  %v10895_v10 = vor.u32 %v15729_v26, %v10892_v62 }
 0x3f5   : > { %v16265_v25 = vld [vmem:[#allocation2 + $0x1174] sm:$0xf0]  ;;  %18577 = vst [vmem:[#allocation81_spill] sm:$0xff] %v18072_v34  ;;  %v11404_v32 = vld [vmem:[#allocation2 + $0x4f8] sm:$0xf0] }
 0x3f6   : > { %v13514_v0 = vld [vmem:[#allocation2 + $0x1538] sm:$0xf]  ;;  %v13003_v56 = vor.u32 %v16265_v25, %v13002_v24  ;;  %6617 = vmatpush.bf16.msra.mxu1 %v13579_v14  ;;  %6645 = vmatpush.bf16.msra.mxu3 %v11535_v60  ;;  %v15713_v61 = vld [vmem:[#allocation2 + $0x3c] sm:$0xf] }
 0x3f7   : > { %v16393_v5 = vld [vmem:[#allocation2 + $0x1574] sm:$0xf0]  ;;  %v10828_v60 = vld [vmem:[#allocation2 + $0x78] sm:$0xf0] }
 0x3f8   : > { %v13515_v15 = vor.u32 %v16393_v5, %v13514_v0  ;;  %v12938_v27 = vld [vmem:[#allocation2 + $0x10b8] sm:$0xf]  ;;  %6604 = vmatpush.bf16.msra.mxu0 %v13003_v56  ;;  %6632 = vmatpush.bf16.msra.mxu2 %v10959_v30  ;;  %v11407_v5 = vor.u32 %v15857_v44, %v11404_v32  ;;  %v15841_v12 = vld [vmem:[#allocation2 + $0x43c] sm:$0xf]  ;;  %v10831_v30 = vor.u32 %v15713_v61, %v10828_v60 }
 0x3f9   : > { %v16249_v52 = vld [vmem:[#allocation2 + $0x10f4] sm:$0xf0]  ;;  %v11340_v20 = vld [vmem:[#allocation2 + $0x478] sm:$0xf0] }
 0x3fa   : > { %v13450_v28 = vld [vmem:[#allocation2 + $0x14b8] sm:$0xf]  ;;  %v12939_v53 = vor.u32 %v16249_v52, %v12938_v27  ;;  %6618 = vmatpush.bf16.msra.mxu1 %v13515_v15  ;;  %6646 = vmatpush.bf16.msra.mxu3 %v11471_v40  ;;  %v16081_v16 = vld [vmem:[#allocation2 + $0xbbc] sm:$0xf]  ;;  %v11343_v40 = vor.u32 %v15841_v12, %v11340_v20 }
 0x3fb   : > { %v16377_v29 = vld [vmem:[#allocation2 + $0x14f4] sm:$0xf0]  ;;  %v12300_v48 = vld [vmem:[#allocation2 + $0xbf8] sm:$0xf0] }
 0x3fc   : > { %v12874_v4 = vld [vmem:[#allocation2 + $0x1038] sm:$0xf]  ;;  %v13451_v14 = vor.u32 %v16377_v29, %v13450_v28  ;;  %v16209_v11 = vld [vmem:[#allocation2 + $0xfbc] sm:$0xf]  ;;  %6605 = vmatpush.bf16.msra.mxu0 %v12939_v53  ;;  %6633 = vmatpush.bf16.msra.mxu2 %v10895_v10  ;;  %v12303_v26 = vor.u32 %v16081_v16, %v12300_v48 }
 0x3fd   : > { %v16233_v24 = vld [vmem:[#allocation2 + $0x1074] sm:$0xf0]  ;;  %v12812_v56 = vld [vmem:[#allocation2 + $0xff8] sm:$0xf0] }
 0x3fe   : > { %v13386_v25 = vld [vmem:[#allocation2 + $0x1438] sm:$0xf]  ;;  %v12875_v54 = vor.u32 %v16233_v24, %v12874_v4  ;;  %v16337_v27 = vld [vmem:[#allocation2 + $0x13bc] sm:$0xf]  ;;  %6619 = vmatpush.bf16.msra.mxu1 %v13451_v14  ;;  %6647 = vmatpush.bf16.msra.mxu3 %v11407_v5  ;;  %v12815_v62 = vor.u32 %v16209_v11, %v12812_v56 }
 0x3ff   : > { %v16361_v0 = vld [vmem:[#allocation2 + $0x1474] sm:$0xf0]  ;;  %v13324_v52 = vld [vmem:[#allocation2 + $0x13f8] sm:$0xf0] }
 0x400   : > { %v13387_v15 = vor.u32 %v16361_v0, %v13386_v25  ;;  %v16465_v28 = vld [vmem:[#allocation2 + $0x17bc] sm:$0xf]  ;;  %v13327_v44 = vor.u32 %v16337_v27, %v13324_v52  ;;  %6606 = vmatpush.bf16.msra.mxu0 %v12875_v54  ;;  %6634 = vmatpush.bf16.msra.mxu2 %v10831_v30 }
 0x401   : > { %v13836_v29 = vld [vmem:[#allocation2 + $0x17f8] sm:$0xf0] }
 0x402   : > { %v16065_v32 = vld [vmem:[#allocation2 + $0xb3c] sm:$0xf]  ;;  %v13839_v53 = vor.u32 %v16465_v28, %v13836_v29  ;;  %6620 = vmatpush.bf16.msra.mxu1 %v13387_v15  ;;  %6648 = vmatpush.bf16.msra.mxu3 %v11343_v40 }
 0x403   : > { %v12236_v34 = vld [vmem:[#allocation2 + $0xb78] sm:$0xf0]  ;;  %6607 = vmatmul.bf16.vlgmr.msra.gmra.mxu0 %v17740_v35  ;;  %6635 = vmatmul.bf16.vlgmr.msra.gmra.mxu2 %v17718_v57 }
 0x404   : > { %v12748_v4 = vld [vmem:[#allocation2 + $0xf78] sm:$0xf0]  ;;  %6655 = vmatpush.bf16.msrb.mxu0 %v12303_v26  ;;  %v12239_v25 = vor.u32 %v16065_v32, %v12236_v34  ;;  %6683 = vmatpush.bf16.msrb.mxu2 %v13327_v44  ;;  %v18078_v44 = vpop.f32.mrf.mxu0 }
 0x405   : > { %v16321_v24 = vld [vmem:[#allocation2 + $0x133c] sm:$0xf]  ;;  %v12751_v0 = vor.u32 %v16193_v36, %v12748_v4  ;;  %6621 = vmatmul.bf16.vlgmr.msra.gmra.mxu1 %v17742_v39  ;;  %6649 = vmatmul.bf16.vlgmr.msra.gmra.mxu3 %v17723_v6 }
 0x406   : > { %v13260_v2 = vld [vmem:[#allocation2 + $0x1378] sm:$0xf0]  ;;  %6669 = vmatpush.bf16.msrb.mxu1 %v12815_v62  ;;  %6697 = vmatpush.bf16.msrb.mxu3 %v13839_v53 }
 0x407   : > { %v16449_v14 = vld [vmem:[#allocation2 + $0x173c] sm:$0xf]  ;;  %v13263_v61 = vor.u32 %v16321_v24, %v13260_v2 }
 0x408   : > { %v13772_v10 = vld [vmem:[#allocation2 + $0x1778] sm:$0xf0]  ;;  %6656 = vmatpush.bf16.msrb.mxu0 %v12239_v25 }
 0x409   : > { %v16049_v5 = vld [vmem:[#allocation2 + $0xabc] sm:$0xf]  ;;  %v13775_v20 = vor.u32 %v16449_v14, %v13772_v10  ;;  %6684 = vmatpush.bf16.msrb.mxu2 %v13263_v61  ;;  %v18080_v14 = vpop.f32.mrf.mxu1 }
 0x40a   : > { %v12172_v60 = vld [vmem:[#allocation2 + $0xaf8] sm:$0xf0]  ;;  %6670 = vmatpush.bf16.msrb.mxu1 %v12751_v0  ;;  %18578 = vst [vmem:[#allocation82_spill] sm:$0xff] %v18080_v14  ;;  %v16590_v14 = vld [vmem:[#allocation6 + $0x39c] sm:$0xf0] }
 0x40b   : > { %v16177_v12 = vld [vmem:[#allocation2 + $0xebc] sm:$0xf]  ;;  %v12175_v56 = vor.u32 %v16049_v5, %v12172_v60  ;;  %6698 = vmatpush.bf16.msrb.mxu3 %v13775_v20 }
 0x40c   : > { %v12684_v16 = vld [vmem:[#allocation2 + $0xef8] sm:$0xf0] }
 0x40d   : > { %v16305_v48 = vld [vmem:[#allocation2 + $0x12bc] sm:$0xf]  ;;  %v12687_v2 = vor.u32 %v16177_v12, %v12684_v16  ;;  %6657 = vmatpush.bf16.msrb.mxu0 %v12175_v56 }
 0x40e   : > { %v13196_v11 = vld [vmem:[#allocation2 + $0x12f8] sm:$0xf0] }
 0x40f   : > { %v16433_v54 = vld [vmem:[#allocation2 + $0x16bc] sm:$0xf]  ;;  %v13199_v36 = vor.u32 %v16305_v48, %v13196_v11  ;;  %6671 = vmatpush.bf16.msrb.mxu1 %v12687_v2 }
 0x410   : > { %v13708_v34 = vld [vmem:[#allocation2 + $0x16f8] sm:$0xf0] }
 0x411   : > { %v16033_v27 = vld [vmem:[#allocation2 + $0xa3c] sm:$0xf]  ;;  %v13711_v30 = vor.u32 %v16433_v54, %v13708_v34  ;;  %6685 = vmatpush.bf16.msrb.mxu2 %v13199_v36 }
 0x412   : > { %v12108_v52 = vld [vmem:[#allocation2 + $0xa78] sm:$0xf0] }
 0x413   : > { %v16161_v15 = vld [vmem:[#allocation2 + $0xe3c] sm:$0xf]  ;;  %v12111_v62 = vor.u32 %v16033_v27, %v12108_v52  ;;  %6699 = vmatpush.bf16.msrb.mxu3 %v13711_v30  ;;  %v18508_v30 = vperm.slane %v18052_v3, 4 }
 0x414   : > { %v12620_v28 = vld [vmem:[#allocation2 + $0xe78] sm:$0xf0] }
 0x415   : > { %v16289_v29 = vld [vmem:[#allocation2 + $0x123c] sm:$0xf]  ;;  %v12623_v6 = vor.u32 %v16161_v15, %v12620_v28  ;;  %6658 = vmatpush.bf16.msrb.mxu0 %v12111_v62  ;;  %v18083_v28 = vpop.f32.mrf.mxu2 }
 0x416   : > { %v13132_v40 = vld [vmem:[#allocation2 + $0x1278] sm:$0xf0]  ;;  %18579 = vst [vmem:[#allocation83_spill] sm:$0xff] %v18083_v28  ;;  %v14034_v28 = vld [vmem:[#allocation6 + $0x180] sm:$0xf] }
 0x417   : > { %v16417_v26 = vld [vmem:[#allocation2 + $0x163c] sm:$0xf]  ;;  %v13135_v32 = vor.u32 %v16289_v29, %v13132_v40  ;;  %6672 = vmatpush.bf16.msrb.mxu1 %v12623_v6 }
 0x418   : > { %v13644_v57 = vld [vmem:[#allocation2 + $0x1678] sm:$0xf0] }
 0x419   : > { %v16017_v53 = vld [vmem:[#allocation2 + $0x9bc] sm:$0xf]  ;;  %v13647_v10 = vor.u32 %v16417_v26, %v13644_v57  ;;  %6686 = vmatpush.bf16.msrb.mxu2 %v13135_v32  ;;  %v6384_v26 = vpop.f32.mrf.mxu0 }
 0x41a   : > { %v12044_v4 = vld [vmem:[#allocation2 + $0x9f8] sm:$0xf0] }
 0x41b   : > { %v16145_v24 = vld [vmem:[#allocation2 + $0xdbc] sm:$0xf]  ;;  %v12047_v12 = vor.u32 %v16017_v53, %v12044_v4  ;;  %6700 = vmatpush.bf16.msrb.mxu3 %v13647_v10  ;;  %v6398_v10 = vpop.f32.mrf.mxu1 }
 0x41c   : > { %v12556_v25 = vld [vmem:[#allocation2 + $0xdf8] sm:$0xf0] }
 0x41d   : > { %v16273_v0 = vld [vmem:[#allocation2 + $0x11bc] sm:$0xf]  ;;  %v12559_v20 = vor.u32 %v16145_v24, %v12556_v25  ;;  %6659 = vmatpush.bf16.msrb.mxu0 %v12047_v12 }
 0x41e   : > { %v13068_v61 = vld [vmem:[#allocation2 + $0x11f8] sm:$0xf0] }
 0x41f   : > { %v16401_v5 = vld [vmem:[#allocation2 + $0x15bc] sm:$0xf]  ;;  %v13071_v16 = vor.u32 %v16273_v0, %v13068_v61  ;;  %6673 = vmatpush.bf16.msrb.mxu1 %v12559_v20 }
 0x420   : > { %v13580_v60 = vld [vmem:[#allocation2 + $0x15f8] sm:$0xf0] }
 0x421   : > { %v16001_v48 = vld [vmem:[#allocation2 + $0x93c] sm:$0xf]  ;;  %v13583_v34 = vor.u32 %v16401_v5, %v13580_v60  ;;  %6687 = vmatpush.bf16.msrb.mxu2 %v13071_v16  ;;  %v18085_v60 = vpop.f32.mrf.mxu3 }
 0x422   : > { %v11980_v11 = vld [vmem:[#allocation2 + $0x978] sm:$0xf0]  ;;  %18580 = vst [vmem:[#allocation84_spill] sm:$0xff] %v18085_v60  ;;  %v6386_v60 = vpop.f32.mrf.mxu0 }
 0x423   : > { %v16129_v54 = vld [vmem:[#allocation2 + $0xd3c] sm:$0xf]  ;;  %v11983_v15 = vor.u32 %v16001_v48, %v11980_v11  ;;  %6701 = vmatpush.bf16.msrb.mxu3 %v13583_v34 }
 0x424   : > { %v12492_v56 = vld [vmem:[#allocation2 + $0xd78] sm:$0xf0] }
 0x425   : > { %v16257_v2 = vld [vmem:[#allocation2 + $0x113c] sm:$0xf]  ;;  %v12495_v29 = vor.u32 %v16129_v54, %v12492_v56  ;;  %6660 = vmatpush.bf16.msrb.mxu0 %v11983_v15  ;;  %v6385_v54 = vadd.f32 %v6384_v26, %v18508_v30  ;;  %v16534_v15 = vld [vmem:[#allocation6 + $0x1dc] sm:$0xf0]  ;;  %v18583_v26 = vperm.slane %v17970_v7, 0 }
 0x426   : > { %v13004_v36 = vld [vmem:[#allocation2 + $0x1178] sm:$0xf0] }
 0x427   : > { %v16385_v27 = vld [vmem:[#allocation2 + $0x153c] sm:$0xf]  ;;  %v13007_v40 = vor.u32 %v16257_v2, %v13004_v36  ;;  %6674 = vmatpush.bf16.msrb.mxu1 %v12495_v29  ;;  %v6399_v30 = vadd.f32 %v6398_v10, %v6385_v54  ;;  %v18584_v10 = vperm.slane %v18052_v3, 4 }
 0x428   : > { %v13516_v52 = vld [vmem:[#allocation2 + $0x1578] sm:$0xf0] }
 0x429   : > { %v15985_v57 = vld [vmem:[#allocation2 + $0x8bc] sm:$0xf]  ;;  %v13519_v32 = vor.u32 %v16385_v27, %v13516_v52  ;;  %6688 = vmatpush.bf16.msrb.mxu2 %v13007_v40  ;;  %v14066_v52 = vld [vmem:[#allocation6 + $0x1c0] sm:$0xf]  ;;  %v18582_v40 = vperm.slane %v17834_v42, 4 }
 0x42a   : > { %v11916_v62 = vld [vmem:[#allocation2 + $0x8f8] sm:$0xf0] }
 0x42b   : > { %v16113_v6 = vld [vmem:[#allocation2 + $0xcbc] sm:$0xf]  ;;  %v11919_v61 = vor.u32 %v15985_v57, %v11916_v62  ;;  %6702 = vmatpush.bf16.msrb.mxu3 %v13519_v32  ;;  %v18581_v57 = vperm.slane %v17756_v46, 0  ;;  %v5715_v62 = vadd.f32 %v17873_v49, %v18582_v40  ;;  %v14322_v32 = vld [vmem:[#allocation6 + $0x3c0] sm:$0xf] }
 0x42c   : > { %v12428_v53 = vld [vmem:[#allocation2 + $0xcf8] sm:$0xf0]  ;;  %v16526_v49 = vld [vmem:[#allocation6 + $0x19c] sm:$0xf0] }
 0x42d   : > { %v16241_v4 = vld [vmem:[#allocation2 + $0x10bc] sm:$0xf]  ;;  %v12431_v12 = vor.u32 %v16113_v6, %v12428_v53  ;;  %v5379_v29 = vadd.f32 %v17767_v19, %v18581_v57  ;;  %6661 = vmatpush.bf16.msrb.mxu0 %v11919_v61  ;;  %v16598_v53 = vld [vmem:[#allocation6 + $0x3dc] sm:$0xf0]  ;;  %v14067_v57 = vor.u32 %v16534_v15, %v14066_v52 }
 0x42e   : > { %v12940_v24 = vld [vmem:[#allocation2 + $0x10f8] sm:$0xf0]  ;;  %v14323_v61 = vor.u32 %v16598_v53, %v14322_v32  ;;  %v14290_v40 = vld [vmem:[#allocation6 + $0x380] sm:$0xf] }
 0x42f   : > { %v16369_v25 = vld [vmem:[#allocation2 + $0x14bc] sm:$0xf]  ;;  %v12943_v20 = vor.u32 %v16241_v4, %v12940_v24  ;;  %v6051_v4 = vadd.f32 %v17985_v13, %v18583_v26  ;;  %6675 = vmatpush.bf16.msrb.mxu1 %v12431_v12  ;;  %v5393_v13 = vadd.f32 %v17769_v31, %v5379_v29  ;;  %v16574_v15 = vld [vmem:[#allocation6 + $0x31c] sm:$0xf0] }
 0x430   : > { %v13452_v0 = vld [vmem:[#allocation2 + $0x14f8] sm:$0xf0]  ;;  %v13938_v53 = vld [vmem:[#allocation6 + $0xc0] sm:$0xf] }
 0x431   : > { %v15969_v5 = vld [vmem:[#allocation2 + $0x83c] sm:$0xf]  ;;  %v13455_v34 = vor.u32 %v16369_v25, %v13452_v0  ;;  %6689 = vmatpush.bf16.msrb.mxu2 %v12943_v20  ;;  %v6412_v0 = vpop.f32.mrf.mxu2  ;;  %v6065_v12 = vadd.f32 %v17987_v9, %v6051_v4  ;;  %v6426_v20 = vpop.f32.mrf.mxu3  ;;  %v14258_v9 = vld [vmem:[#allocation6 + $0x340] sm:$0xf] }
 0x432   : > { %v11852_v16 = vld [vmem:[#allocation2 + $0x878] sm:$0xf0]  ;;  %v6413_v54 = vadd.f32 %v6412_v0, %v6399_v30  ;;  %v16502_v26 = vld [vmem:[#allocation6 + $0xdc] sm:$0xf0] }
 0x433   : > { %v16097_v48 = vld [vmem:[#allocation2 + $0xc3c] sm:$0xf]  ;;  %v11855_v6 = vor.u32 %v15969_v5, %v11852_v16  ;;  %6703 = vmatpush.bf16.msrb.mxu3 %v13455_v34  ;;  %v5729_v5 = vadd.f32 %v17875_v50, %v5715_v62  ;;  %v6400_v16 = vpop.f32.mrf.mxu1  ;;  %v14002_v50 = vld [vmem:[#allocation6 + $0x140] sm:$0xf]  ;;  %v6079_v30 = vadd.f32 %v17993_v41, %v6065_v12 }
 0x434   : > { %v12364_v11 = vld [vmem:[#allocation2 + $0xc78] sm:$0xf0]  ;;  %v16518_v34 = vld [vmem:[#allocation6 + $0x15c] sm:$0xf0] }
 0x435   : > { %v16225_v56 = vld [vmem:[#allocation2 + $0x103c] sm:$0xf]  ;;  %v12367_v24 = vor.u32 %v16097_v48, %v12364_v11  ;;  %6662 = vmatpush.bf16.msrb.mxu0 %v11855_v6  ;;  %v6387_v48 = vadd.f32 %v6386_v60, %v18584_v10  ;;  %v14035_v11 = vor.u32 %v16526_v49, %v14034_v28  ;;  %v5743_v31 = vadd.f32 %v17881_v43, %v5729_v5  ;;  %v14194_v0 = vld [vmem:[#allocation6 + $0x2c0] sm:$0xf] }
 0x436   : > { %v12876_v2 = vld [vmem:[#allocation2 + $0x1078] sm:$0xf0]  ;;  %v14003_v28 = vor.u32 %v16518_v34, %v14002_v50  ;;  %v6427_v60 = vadd.f32 %v6426_v20, %v6413_v54  ;;  %v14162_v20 = vld [vmem:[#allocation6 + $0x280] sm:$0xf] }
 0x437   : > { %v16353_v36 = vld [vmem:[#allocation2 + $0x143c] sm:$0xf]  ;;  %v12879_v25 = vor.u32 %v16225_v56, %v12876_v2  ;;  %6676 = vmatpush.bf16.msrb.mxu1 %v12367_v24  ;;  %v14291_v56 = vor.u32 %v16590_v14, %v14290_v40  ;;  %v16582_v2 = vld [vmem:[#allocation6 + $0x35c] sm:$0xf0] }
 0x438   : > { %v13388_v27 = vld [vmem:[#allocation2 + $0x1478] sm:$0xf0]  ;;  %6663 = vmatmul.bf16.vlgmr.msrb.gmra.mxu0 %v17730_v22  ;;  %v6401_v22 = vadd.f32 %v6400_v16, %v6387_v48  ;;  %v16510_v14 = vld [vmem:[#allocation6 + $0x11c] sm:$0xf0]  ;;  %v14259_v52 = vor.u32 %v16582_v2, %v14258_v9 }
 0x439   : > { %v13391_v19 = vor.u32 %v16353_v36, %v13388_v27  ;;  %6690 = vmatpush.bf16.msrb.mxu2 %v12879_v25  ;;  %8325 = vmatpush.bf16.msra.mxu0 %v14067_v57  ;;  %v5407_v36 = vadd.f32 %v17775_v59, %v5393_v13  ;;  %v13970_v27 = vld [vmem:[#allocation6 + $0x100] sm:$0xf]  ;;  %v6414_v43 = vpop.f32.mrf.mxu2  ;;  %v6440_v59 = vpop.f32.mrf.mxu0  ;;  %v6719_v57 = vmax.f32 %v17998_v21, 0.0 }
 0x43a   : > { %6677 = vmatmul.bf16.vlgmr.msrb.gmra.mxu1 %v17732_v23  ;;  %v5757_v23 = vadd.f32 %v17884_v58, %v5743_v31  ;;  %v6441_v41 = vadd.f32 %v6440_v59, %v6427_v60  ;;  %v13971_v62 = vor.u32 %v16510_v14, %v13970_v27  ;;  %v6415_v32 = vadd.f32 %v6414_v43, %v6401_v22  ;;  %v6428_v4 = vpop.f32.mrf.mxu3  ;;  %v13906_v16 = vld [vmem:[#allocation6 + $0x80] sm:$0xf] }
 0x43b   : > { %6704 = vmatpush.bf16.msrb.mxu3 %v13391_v19  ;;  %8339 = vmatpush.bf16.msra.mxu1 %v14323_v61  ;;  %v5421_v29 = vadd.f32 %v17778_v1, %v5407_v36  ;;  %v6454_v6 = vpop.f32.mrf.mxu1  ;;  %v16566_v19 = vld [vmem:[#allocation6 + $0x2dc] sm:$0xf0]  ;;  %v13939_v61 = vor.u32 %v16502_v26, %v13938_v53  ;;  %v16522_v26 = vld [vmem:[#allocation6 + $0x184] sm:$0xf] }
 0x43c   : > { %6691 = vmatmul.bf16.vlgmr.msrb.gmra.mxu2 %v17740_v35  ;;  %v14226_v35 = vld [vmem:[#allocation6 + $0x300] sm:$0xf]  ;;  %v5771_v25 = vadd.f32 %v17894_v18, %v5757_v23  ;;  %v6455_v58 = vadd.f32 %v6454_v6, %v6441_v41  ;;  %v6429_v5 = vadd.f32 %v6428_v4, %v6415_v32  ;;  %v14195_v13 = vor.u32 %v16566_v19, %v14194_v0  ;;  %v14036_v4 = vld [vmem:[#allocation6 + $0x1a0] sm:$0xf0] }
 0x43d   : > { %8326 = vmatpush.bf16.msra.mxu0 %v14035_v11  ;;  %v14227_v24 = vor.u32 %v16574_v15, %v14226_v35  ;;  %v5435_v1 = vadd.f32 %v17787_v33, %v5421_v29  ;;  %v16494_v40 = vld [vmem:[#allocation6 + $0x9c] sm:$0xf0]  ;;  %v16594_v15 = vld [vmem:[#allocation6 + $0x3c4] sm:$0xf]  ;;  %v1478_v6 = vperm.slane %v18052_v3, 5 }
 0x43e   : > { %6705 = vmatmul.bf16.vlgmr.msrb.gmra.mxu3 %v17742_v39  ;;  %v6093_v39 = vadd.f32 %v17996_v63, %v6079_v30  ;;  %v6723_v49 = vmax.f32 %v6455_v58, 0.0  ;;  %v5785_v12 = vadd.f32 %v17896_v45, %v5771_v25  ;;  %v16558_v10 = vld [vmem:[#allocation6 + $0x29c] sm:$0xf0]  ;;  %v13907_v54 = vor.u32 %v16494_v40, %v13906_v16  ;;  %v14324_v29 = vld [vmem:[#allocation6 + $0x3e0] sm:$0xf0] }
 0x43f   : > { %8340 = vmatpush.bf16.msra.mxu1 %v14291_v56  ;;  %v5449_v48 = vadd.f32 %v17789_v38, %v5435_v1  ;;  %v13874_v34 = vld [vmem:[#allocation6 + $0x40] sm:$0xf]  ;;  %v14163_v31 = vor.u32 %v16558_v10, %v14162_v20  ;;  %v16586_v25 = vld [vmem:[#allocation6 + $0x384] sm:$0xf]  ;;  %v18585_v20 = vperm.slane %v17834_v42, 5 }
 0x440   : > { %v6107_v63 = vadd.f32 %v18005_v17, %v6093_v39  ;;  %v6751_v18 = vmax.f32 %v6719_v57, %v6723_v49  ;;  %v16486_v56 = vld [vmem:[#allocation6 + $0x5c] sm:$0xf0]  ;;  %v6731_v9 = vmax.f32 %v5785_v12, 0.0  ;;  %v14292_v0 = vld [vmem:[#allocation6 + $0x3a0] sm:$0xf0] }
 0x441   : > { %8327 = vmatpush.bf16.msra.mxu0 %v14003_v28  ;;  %v6442_v33 = vpop.f32.mrf.mxu0  ;;  %v14130_v2 = vld [vmem:[#allocation6 + $0x240] sm:$0xf]  ;;  %v6727_v30 = vmax.f32 %v5449_v48, 0.0  ;;  %v13875_v28 = vor.u32 %v16486_v56, %v13874_v34  ;;  %v6468_v41 = vpop.f32.mrf.mxu2  ;;  %v14295_v16 = vor.u32 %v16586_v25, %v14292_v0  ;;  %v16578_v40 = vld [vmem:[#allocation6 + $0x344] sm:$0xf]  ;;  %v5799_v10 = vadd.f32 %v17901_v47, %v18585_v20 }
 0x442   : > { %v6121_v21 = vadd.f32 %v18007_v8, %v6107_v63  ;;  %v6759_v17 = vmax.f32 %v17888_v37, %v6751_v18  ;;  %v6443_v11 = vadd.f32 %v6442_v33, %v6429_v5  ;;  %v16550_v36 = vld [vmem:[#allocation6 + $0x25c] sm:$0xf0]  ;;  %v16530_v37 = vld [vmem:[#allocation6 + $0x1c4] sm:$0xf]  ;;  %v6482_v32 = vpop.f32.mrf.mxu3  ;;  %v14039_v63 = vor.u32 %v16522_v26, %v14036_v4 }
 0x443   : > { %8341 = vmatpush.bf16.msra.mxu1 %v14259_v52  ;;  %v6456_v50 = vpop.f32.mrf.mxu1  ;;  %v13842_v8 = vld [vmem:[#allocation6] sm:$0xf]  ;;  %v14131_v27 = vor.u32 %v16550_v36, %v14130_v2  ;;  %v6747_v14 = vmax.f32 %v6727_v30, %v6731_v9  ;;  %v14068_v52 = vld [vmem:[#allocation6 + $0x1e0] sm:$0xf0]  ;;  %v6469_v49 = vadd.f32 %v6468_v41, %v1478_v6  ;;  %v18588_v2 = vperm.slane %v17970_v7, 1  ;;  %v18589_v36 = vld [vmem:[#allocation67_spill] sm:$0xff] }
 0x444   : > { %v6457_v45 = vadd.f32 %v6456_v50, %v6443_v11  ;;  %v6735_v22 = vmax.f32 %v6121_v21, 0.0  ;;  %v16478_v60 = vld [vmem:[#allocation6 + $0x1c] sm:$0xf0]  ;;  %v14004_v5 = vld [vmem:[#allocation6 + $0x160] sm:$0xf0]  ;;  %v18587_v11 = vld [vmem:[#allocation28_spill] sm:$0xff] }
 0x445   : > { %8328 = vmatpush.bf16.msra.mxu0 %v13971_v62  ;;  %v14098_v23 = vld [vmem:[#allocation6 + $0x200] sm:$0xf]  ;;  %v13843_v39 = vor.u32 %v16478_v60, %v13842_v8  ;;  %v14071_v62 = vor.u32 %v16530_v37, %v14068_v52  ;;  %v16506_v21 = vld [vmem:[#allocation6 + $0x104] sm:$0xf]  ;;  %v6483_v50 = vadd.f32 %v6482_v32, %v6469_v49  ;;  %v6135_v47 = vadd.f32 %v18589_v36, %v18588_v2  ;;  %v18592_v41 = vld [vmem:[#allocation68_spill] sm:$0xff] }
 0x446   : > { %v6739_v38 = vmax.f32 %v6457_v45, 0.0  ;;  %v16542_v35 = vld [vmem:[#allocation6 + $0x21c] sm:$0xf0]  ;;  %v13972_v56 = vld [vmem:[#allocation6 + $0x120] sm:$0xf0] }
 0x447   : > { %8342 = vmatpush.bf16.msra.mxu1 %v14227_v24  ;;  %v14099_v53 = vor.u32 %v16542_v35, %v14098_v23  ;;  %v14327_v24 = vor.u32 %v16594_v15, %v14324_v29  ;;  %v14578_v19 = vld [vmem:[#allocation6 + $0x5c0] sm:$0xf]  ;;  %v18590_v8 = vld [vmem:[#allocation46_spill] sm:$0xff] }
 0x448   : > { %v6755_v43 = vmax.f32 %v6735_v22, %v6739_v38  ;;  %v16662_v1 = vld [vmem:[#allocation6 + $0x5dc] sm:$0xf0]  ;;  %v16570_v22 = vld [vmem:[#allocation6 + $0x304] sm:$0xf]  ;;  %v5813_v60 = vadd.f32 %v18590_v8, %v5799_v10 }
 0x449   : > { %8329 = vmatpush.bf16.msra.mxu0 %v13939_v61  ;;  %v14579_v57 = vor.u32 %v16662_v1, %v14578_v19  ;;  %v16514_v61 = vld [vmem:[#allocation6 + $0x144] sm:$0xf]  ;;  %v14546_v12 = vld [vmem:[#allocation6 + $0x580] sm:$0xf]  ;;  %v6470_v34 = vpop.f32.mrf.mxu2  ;;  %v6496_v37 = vpop.f32.mrf.mxu0 }
 0x44a   : > { %v6763_v59 = vmax.f32 %v6747_v14, %v6755_v43  ;;  %v16654_v18 = vld [vmem:[#allocation6 + $0x59c] sm:$0xf0]  ;;  %v14007_v33 = vor.u32 %v16514_v61, %v14004_v5  ;;  %v6484_v30 = vpop.f32.mrf.mxu3  ;;  %v14228_v38 = vld [vmem:[#allocation6 + $0x320] sm:$0xf0]  ;;  %v6497_v23 = vadd.f32 %v6496_v37, %v6483_v50  ;;  %v6471_v32 = vadd.f32 %v6470_v34, %v1478_v6  ;;  %v18597_v34 = vld [vmem:[#allocation31_spill] sm:$0xff] }
 0x44b   : > { %8343 = vmatpush.bf16.msra.mxu1 %v14195_v13  ;;  %8353 = vmatpush.bf16.msra.mxu2 %v14579_v57  ;;  %v14260_v13 = vld [vmem:[#allocation6 + $0x360] sm:$0xf0]  ;;  %v14547_v48 = vor.u32 %v16654_v18, %v14546_v12  ;;  %v14514_v9 = vld [vmem:[#allocation6 + $0x540] sm:$0xf]  ;;  %v6510_v35 = vpop.f32.mrf.mxu1  ;;  %v14231_v29 = vor.u32 %v16570_v22, %v14228_v38 }
 0x44c   : > { %v18122_v58 = vpack.c.bf16 %v6763_v59, %v6759_v17  ;;  %v18586_v17 = vperm.slane %v17756_v46, 1  ;;  %v16646_v45 = vld [vmem:[#allocation6 + $0x55c] sm:$0xf0]  ;;  %v16498_v14 = vld [vmem:[#allocation6 + $0xc4] sm:$0xf]  ;;  %v6511_v0 = vadd.f32 %v6510_v35, %v6497_v23  ;;  %v6485_v6 = vadd.f32 %v6484_v30, %v6471_v32  ;;  %v18599_v30 = vld [vmem:[#allocation71_spill] sm:$0xff] }
 0x44d   : > { %8330 = vmatpush.bf16.msra.mxu0 %v13907_v54  ;;  %v18591_v43 = vld [vmem:[#allocation29_spill] sm:$0xff]  ;;  %v18594_v57 = vld [vmem:[#allocation30_spill] sm:$0xff]  ;;  %v18602_v35 = vld [vmem:[#allocation72_spill] sm:$0xff] }
 0x44e   : > { %v5463_v54 = vadd.f32 %v18587_v11, %v18586_v17  ;;  %v13940_v15 = vld [vmem:[#allocation6 + $0xe0] sm:$0xf0]  ;;  %v14482_v59 = vld [vmem:[#allocation6 + $0x500] sm:$0xf] }
 0x44f   : > { %8344 = vmatpush.bf16.msra.mxu1 %v14163_v31  ;;  %v14263_v31 = vor.u32 %v16578_v40, %v14260_v13  ;;  %8354 = vmatpush.bf16.msra.mxu2 %v14547_v48  ;;  %v14196_v26 = vld [vmem:[#allocation6 + $0x2e0] sm:$0xf0]  ;;  %v13943_v19 = vor.u32 %v16498_v14, %v13940_v15  ;;  %v14450_v5 = vld [vmem:[#allocation6 + $0x4c0] sm:$0xf] }
 0x450   : > { %v5477_v52 = vadd.f32 %v18591_v43, %v5463_v54  ;;  %v16490_v1 = vld [vmem:[#allocation6 + $0x84] sm:$0xf]  ;;  %v14418_v36 = vld [vmem:[#allocation6 + $0x480] sm:$0xf] }
 0x451   : > { %8331 = vmatpush.bf16.msra.mxu0 %v13875_v28  ;;  %v14515_v28 = vor.u32 %v16646_v45, %v14514_v9  ;;  %v13908_v49 = vld [vmem:[#allocation6 + $0xa0] sm:$0xf0]  ;;  %v6498_v17 = vpop.f32.mrf.mxu0 }
 0x452   : > { %v18595_v40 = vld [vmem:[#allocation70_spill] sm:$0xff]  ;;  %v18596_v10 = vld [vmem:[#allocation49_spill] sm:$0xff]  ;;  %v6538_v11 = vpop.f32.mrf.mxu3  ;;  %v13911_v54 = vor.u32 %v16490_v1, %v13908_v49  ;;  %v6499_v38 = vadd.f32 %v6498_v17, %v6485_v6 }
 0x453   : > { %8345 = vmatpush.bf16.msra.mxu1 %v14131_v27  ;;  %v13975_v27 = vor.u32 %v16506_v21, %v13972_v56  ;;  %8355 = vmatpush.bf16.msra.mxu2 %v14515_v28  ;;  %v16554_v12 = vld [vmem:[#allocation6 + $0x284] sm:$0xf]  ;;  %v6512_v43 = vpop.f32.mrf.mxu1 }
 0x454   : > { %v14164_v18 = vld [vmem:[#allocation6 + $0x2a0] sm:$0xf0] }
 0x455   : > { %8332 = vmatpush.bf16.msra.mxu0 %v13843_v39  ;;  %v16638_v39 = vld [vmem:[#allocation6 + $0x51c] sm:$0xf0]  ;;  %v16482_v50 = vld [vmem:[#allocation6 + $0x44] sm:$0xf]  ;;  %v14167_v2 = vor.u32 %v16554_v12, %v14164_v18 }
 0x456   : > { %v14483_v4 = vor.u32 %v16638_v39, %v14482_v59  ;;  %v13876_v45 = vld [vmem:[#allocation6 + $0x60] sm:$0xf0] }
 0x457   : > { %8346 = vmatpush.bf16.msra.mxu1 %v14099_v53  ;;  %v16562_v53 = vld [vmem:[#allocation6 + $0x2c4] sm:$0xf]  ;;  %v13879_v59 = vor.u32 %v16482_v50, %v13876_v45  ;;  %v16606_v50 = vld [vmem:[#allocation6 + $0x41c] sm:$0xf0] }
 0x458   : > { %8333 = vmatmul.bf16.vlgmr.msra.gmra.mxu0 %v18122_v58  ;;  %v14199_v61 = vor.u32 %v16562_v53, %v14196_v26  ;;  %8356 = vmatpush.bf16.msra.mxu2 %v14483_v4  ;;  %v16546_v8 = vld [vmem:[#allocation6 + $0x244] sm:$0xf]  ;;  %v14074_v53 = vld [vmem:[#allocation6 + $0x1c8] sm:$0xf]  ;;  %v14386_v4 = vld [vmem:[#allocation6 + $0x440] sm:$0xf] }
 0x459   : > { %8381 = vmatpush.bf16.msrb.mxu0 %v14071_v62  ;;  %v6149_v62 = vadd.f32 %v18592_v41, %v6135_v47  ;;  %v16622_v47 = vld [vmem:[#allocation6 + $0x49c] sm:$0xf0]  ;;  %v16474_v39 = vld [vmem:[#allocation6 + $0x4] sm:$0xf] }
 0x45a   : > { %v14419_v37 = vor.u32 %v16622_v47, %v14418_v36  ;;  %v13844_v41 = vld [vmem:[#allocation6 + $0x20] sm:$0xf0]  ;;  %v6540_v18 = vpop.f32.mrf.mxu3 }
 0x45b   : > { %8395 = vmatpush.bf16.msrb.mxu1 %v14327_v24  ;;  %v18593_v24 = vld [vmem:[#allocation48_spill] sm:$0xff]  ;;  %v6163_v13 = vadd.f32 %v18595_v40, %v6149_v62  ;;  %v16538_v1 = vld [vmem:[#allocation6 + $0x204] sm:$0xf] }
 0x45c   : > { %v5827_v25 = vadd.f32 %v18593_v24, %v5813_v60  ;;  %v14132_v60 = vld [vmem:[#allocation6 + $0x260] sm:$0xf0]  ;;  %v18603_v62 = vld [vmem:[#allocation52_spill] sm:$0xff]  ;;  %v16614_v24 = vld [vmem:[#allocation6 + $0x45c] sm:$0xf0] }
 0x45d   : > { %8382 = vmatpush.bf16.msrb.mxu0 %v14039_v63  ;;  %v5491_v63 = vadd.f32 %v18594_v57, %v5477_v52  ;;  %v6177_v22 = vadd.f32 %v18599_v30, %v6163_v13  ;;  %v18601_v52 = vld [vmem:[#allocation69_spill] sm:$0xff]  ;;  %v14135_v26 = vor.u32 %v16546_v8, %v14132_v60  ;;  %v18606_v13 = vld [vmem:[#allocation47_spill] sm:$0xff]  ;;  %v14010_v30 = vld [vmem:[#allocation6 + $0x148] sm:$0xf] }
 0x45e   : > { %v5841_v48 = vadd.f32 %v18596_v10, %v5827_v25  ;;  %v6720_v23 = vmax.f32 %v18601_v52, 0.0  ;;  %v14100_v57 = vld [vmem:[#allocation6 + $0x220] sm:$0xf0]  ;;  %v16599_v60 = vld [vmem:[#allocation6 + $0x3e4] sm:$0xf0] }
 0x45f   : > { %8396 = vmatpush.bf16.msrb.mxu1 %v14295_v16  ;;  %v16630_v16 = vld [vmem:[#allocation6 + $0x4dc] sm:$0xf0]  ;;  %v5505_v56 = vadd.f32 %v18597_v34, %v5491_v63  ;;  %v6191_v15 = vadd.f32 %v18602_v35, %v6177_v22  ;;  %v14387_v63 = vor.u32 %v16614_v24, %v14386_v4  ;;  %v16519_v22 = vld [vmem:[#allocation6 + $0x164] sm:$0xf0] }
 0x460   : > { %v14451_v20 = vor.u32 %v16630_v16, %v14450_v5  ;;  %v18604_v49 = vld [vmem:[#allocation33_spill] sm:$0xff]  ;;  %v14011_v52 = vor.u32 %v16519_v22, %v14010_v30  ;;  %v13978_v35 = vld [vmem:[#allocation6 + $0x108] sm:$0xf] }
 0x461   : > { %8383 = vmatpush.bf16.msrb.mxu0 %v14007_v33  ;;  %v6524_v33 = vpop.f32.mrf.mxu2  ;;  %v18605_v16 = vld [vmem:[#allocation73_spill] sm:$0xff] }
 0x462   : > { %v6525_v21 = vadd.f32 %v6524_v33, %v6511_v0  ;;  %8357 = vmatpush.bf16.msra.mxu2 %v14451_v20  ;;  %v6513_v0 = vadd.f32 %v6512_v43, %v6499_v38  ;;  %v6205_v40 = vadd.f32 %v18605_v16, %v6191_v15  ;;  %v13847_v20 = vor.u32 %v16474_v39, %v13844_v41  ;;  %v14042_v33 = vld [vmem:[#allocation6 + $0x188] sm:$0xf]  ;;  %v14834_v15 = vld [vmem:[#allocation6 + $0x7c0] sm:$0xf]  ;;  %v14484_v16 = vld [vmem:[#allocation6 + $0x520] sm:$0xf0] }
 0x463   : > { %8397 = vmatpush.bf16.msrb.mxu1 %v14263_v31  ;;  %v18598_v31 = vld [vmem:[#allocation51_spill] sm:$0xff]  ;;  %v14330_v38 = vld [vmem:[#allocation6 + $0x3c8] sm:$0xf]  ;;  %v16618_v30 = vld [vmem:[#allocation6 + $0x484] sm:$0xf] }
 0x464   : > { %v5855_v9 = vadd.f32 %v18598_v31, %v5841_v48  ;;  %v6539_v28 = vadd.f32 %v6538_v11, %v6525_v21  ;;  %v14103_v21 = vor.u32 %v16538_v1, %v14100_v57  ;;  %v16527_v11 = vld [vmem:[#allocation6 + $0x1a4] sm:$0xf0]  ;;  %v14580_v31 = vld [vmem:[#allocation6 + $0x5e0] sm:$0xf0]  ;;  %v6736_v45 = vmax.f32 %v6205_v40, 0.0 }
 0x465   : > { %8384 = vmatpush.bf16.msrb.mxu0 %v13975_v27  ;;  %v18600_v27 = vld [vmem:[#allocation32_spill] sm:$0xff]  ;;  %v14043_v47 = vor.u32 %v16527_v11, %v14042_v33  ;;  %v16511_v39 = vld [vmem:[#allocation6 + $0x124] sm:$0xf0]  ;;  %v16718_v1 = vld [vmem:[#allocation6 + $0x79c] sm:$0xf0] }
 0x466   : > { %v5519_v14 = vadd.f32 %v18600_v27, %v5505_v56  ;;  %v5869_v32 = vadd.f32 %v18603_v62, %v5855_v9  ;;  %8358 = vmatpush.bf16.msra.mxu2 %v14419_v37  ;;  %v16658_v56 = vld [vmem:[#allocation6 + $0x5c4] sm:$0xf]  ;;  %v14298_v41 = vld [vmem:[#allocation6 + $0x388] sm:$0xf]  ;;  %v13979_v24 = vor.u32 %v16511_v39, %v13978_v35  ;;  %v16694_v35 = vld [vmem:[#allocation6 + $0x6dc] sm:$0xf0] }
 0x467   : > { %8398 = vmatpush.bf16.msrb.mxu1 %v14231_v29  ;;  %v6724_v29 = vmax.f32 %v6539_v28, 0.0  ;;  %v14583_v36 = vor.u32 %v16658_v56, %v14580_v31  ;;  %v16650_v37 = vld [vmem:[#allocation6 + $0x584] sm:$0xf]  ;;  %v16591_v62 = vld [vmem:[#allocation6 + $0x3a4] sm:$0xf0] }
 0x468   : > { %v6732_v10 = vmax.f32 %v5869_v32, 0.0  ;;  %v14548_v27 = vld [vmem:[#allocation6 + $0x5a0] sm:$0xf0]  ;;  %v16503_v57 = vld [vmem:[#allocation6 + $0xe4] sm:$0xf0] }
 0x469   : > { %8385 = vmatpush.bf16.msrb.mxu0 %v13943_v19  ;;  %v6752_v25 = vmax.f32 %v6720_v23, %v6724_v29  ;;  %v16535_v19 = vld [vmem:[#allocation6 + $0x1e4] sm:$0xf0]  ;;  %v6526_v5 = vpop.f32.mrf.mxu2  ;;  %v14331_v23 = vor.u32 %v16599_v60, %v14330_v38  ;;  %v16726_v29 = vld [vmem:[#allocation6 + $0x7dc] sm:$0xf0]  ;;  %v14452_v11 = vld [vmem:[#allocation6 + $0x4e0] sm:$0xf0] }
 0x46a   : > { %v6527_v12 = vadd.f32 %v6526_v5, %v6513_v0  ;;  %v14075_v48 = vor.u32 %v16535_v19, %v14074_v53  ;;  %8359 = vmatpush.bf16.msra.mxu2 %v14387_v63  ;;  %v14835_v32 = vor.u32 %v16726_v29, %v14834_v15  ;;  %v16642_v53 = vld [vmem:[#allocation6 + $0x544] sm:$0xf]  ;;  %v13946_v0 = vld [vmem:[#allocation6 + $0xc8] sm:$0xf]  ;;  %v14802_v19 = vld [vmem:[#allocation6 + $0x780] sm:$0xf] }
 0x46b   : > { %8399 = vmatpush.bf16.msrb.mxu1 %v14199_v61  ;;  %v5533_v61 = vadd.f32 %v18604_v49, %v5519_v14  ;;  %v6760_v6 = vmax.f32 %v18606_v13, %v6752_v25  ;;  %v14551_v14 = vor.u32 %v16650_v37, %v14548_v27  ;;  %v14299_v25 = vor.u32 %v16591_v62, %v14298_v41  ;;  %v14266_v63 = vld [vmem:[#allocation6 + $0x348] sm:$0xf]  ;;  %v16634_v5 = vld [vmem:[#allocation6 + $0x504] sm:$0xf]  ;;  %v14738_v31 = vld [vmem:[#allocation6 + $0x700] sm:$0xf] }
 0x46c   : > { %v6541_v17 = vadd.f32 %v6540_v18, %v6527_v12  ;;  %8367 = vmatpush.bf16.msra.mxu3 %v14835_v32  ;;  %v16583_v49 = vld [vmem:[#allocation6 + $0x364] sm:$0xf0]  ;;  %v14487_v40 = vor.u32 %v16634_v5, %v14484_v16  ;;  %v13947_v13 = vor.u32 %v16503_v57, %v13946_v0  ;;  %v14770_v18 = vld [vmem:[#allocation6 + $0x740] sm:$0xf]  ;;  %v14420_v22 = vld [vmem:[#allocation6 + $0x4a0] sm:$0xf0] }
 0x46d   : > { %8386 = vmatpush.bf16.msrb.mxu0 %v13911_v54  ;;  %v14354_v54 = vld [vmem:[#allocation6 + $0x400] sm:$0xf]  ;;  %v6728_v9 = vmax.f32 %v5533_v61, 0.0  ;;  %v14803_v61 = vor.u32 %v16718_v1, %v14802_v19  ;;  %v13914_v12 = vld [vmem:[#allocation6 + $0x88] sm:$0xf]  ;;  %v18155_v38 = vld [vmem:[#allocation4 + $0x8] sm:$0xff]  ;;  %v14423_v37 = vor.u32 %v16618_v30, %v14420_v22 }
 0x46e   : > { %v14355_v34 = vor.u32 %v16606_v50, %v14354_v54  ;;  %v16575_v33 = vld [vmem:[#allocation6 + $0x324] sm:$0xf0]  ;;  %v16531_v39 = vld [vmem:[#allocation6 + $0x1cc] sm:$0xf]  ;;  %v16610_v32 = vld [vmem:[#allocation6 + $0x444] sm:$0xf] }
 0x46f   : > { %8400 = vmatpush.bf16.msrb.mxu1 %v14167_v2  ;;  %v6740_v2 = vmax.f32 %v6541_v17, 0.0  ;;  %v6748_v28 = vmax.f32 %v6728_v9, %v6732_v10  ;;  %v16495_v10 = vld [vmem:[#allocation6 + $0xa4] sm:$0xf0]  ;;  %v16626_v17 = vld [vmem:[#allocation6 + $0x4c4] sm:$0xf] }
 0x470   : > { %8360 = vmatpush.bf16.msra.mxu2 %v14355_v34  ;;  %8368 = vmatpush.bf16.msra.mxu3 %v14803_v61  ;;  %v14455_v54 = vor.u32 %v16626_v17, %v14452_v11  ;;  %v13915_v50 = vor.u32 %v16495_v10, %v13914_v12  ;;  %v13882_v56 = vld [vmem:[#allocation6 + $0x48] sm:$0xf]  ;;  %v16702_v9 = vld [vmem:[#allocation6 + $0x71c] sm:$0xf0]  ;;  %v14076_v62 = vld [vmem:[#allocation6 + $0x1e8] sm:$0xf0] }
 0x471   : > { %8387 = vmatpush.bf16.msrb.mxu0 %v13879_v59  ;;  %v6756_v8 = vmax.f32 %v6736_v45, %v6740_v2  ;;  %v16487_v45 = vld [vmem:[#allocation6 + $0x64] sm:$0xf0]  ;;  %v14079_v61 = vor.u32 %v16531_v39, %v14076_v62  ;;  %v16602_v12 = vld [vmem:[#allocation6 + $0x404] sm:$0xf]  ;;  %v6580_v17 = vpop.f32.mrf.mxu2  ;;  %v16515_v30 = vld [vmem:[#allocation6 + $0x14c] sm:$0xf] }
 0x472   : > { %v14202_v2 = vld [vmem:[#allocation6 + $0x2c8] sm:$0xf]  ;;  %v13883_v27 = vor.u32 %v16487_v45, %v13882_v56  ;;  %v16678_v45 = vld [vmem:[#allocation6 + $0x65c] sm:$0xf0] }
 0x473   : > { %8401 = vmatpush.bf16.msrb.mxu1 %v14135_v26  ;;  %v6764_v43 = vmax.f32 %v6748_v28, %v6756_v8  ;;  %v14516_v26 = vld [vmem:[#allocation6 + $0x560] sm:$0xf0]  ;;  %v1479_v28 = vperm.slane %v18155_v38, 6  ;;  %v6552_v8 = vpop.f32.mrf.mxu0  ;;  %v13850_v60 = vld [vmem:[#allocation6 + $0x8] sm:$0xf] }
 0x474   : > { %8409 = vmatpush.bf16.msrb.mxu2 %v14583_v36  ;;  %v14519_v4 = vor.u32 %v16642_v53, %v14516_v26  ;;  %v16567_v36 = vld [vmem:[#allocation6 + $0x2e4] sm:$0xf0]  ;;  %v14388_v53 = vld [vmem:[#allocation6 + $0x460] sm:$0xf0]  ;;  %v14610_v62 = vld [vmem:[#allocation6 + $0x600] sm:$0xf] }
 0x475   : > { %8388 = vmatpush.bf16.msrb.mxu0 %v13847_v20  ;;  %v18152_v59 = vpack.c.bf16 %v6764_v43, %v6760_v6  ;;  %v14267_v6 = vor.u32 %v16583_v49, %v14266_v63  ;;  %v16710_v20 = vld [vmem:[#allocation6 + $0x75c] sm:$0xf0]  ;;  %v6566_v43 = vpop.f32.mrf.mxu1  ;;  %v14170_v15 = vld [vmem:[#allocation6 + $0x288] sm:$0xf]  ;;  %v14391_v0 = vor.u32 %v16610_v32, %v14388_v53  ;;  %v6553_v19 = vadd.f32 %v6552_v8, %v1479_v28 }
 0x476   : > { %v16559_v29 = vld [vmem:[#allocation6 + $0x2a4] sm:$0xf0]  ;;  %v14674_v63 = vld [vmem:[#allocation6 + $0x680] sm:$0xf] }
 0x477   : > { %8402 = vmatpush.bf16.msrb.mxu1 %v14103_v21  ;;  %v14771_v21 = vor.u32 %v16710_v20, %v14770_v18  ;;  %v18607_v26 = vld [vmem:[#allocation50_spill] sm:$0xff]  ;;  %v14171_v57 = vor.u32 %v16559_v29, %v14170_v15  ;;  %v16686_v49 = vld [vmem:[#allocation6 + $0x69c] sm:$0xf0]  ;;  %v18610_v20 = vperm.slane %v17756_v46, 2  ;;  %v6567_v56 = vadd.f32 %v6566_v43, %v6553_v19  ;;  %v18616_v43 = vld [vmem:[#allocation55_spill] sm:$0xff] }
 0x478   : > { %8389 = vmatmul.bf16.vlgmr.msrb.gmra.mxu0 %v18122_v58  ;;  %8410 = vmatpush.bf16.msrb.mxu2 %v14551_v14  ;;  %v14203_v14 = vor.u32 %v16567_v36, %v14202_v2  ;;  %v14138_v5 = vld [vmem:[#allocation6 + $0x248] sm:$0xf]  ;;  %v14356_v18 = vld [vmem:[#allocation6 + $0x420] sm:$0xf0]  ;;  %v16670_v32 = vld [vmem:[#allocation6 + $0x61c] sm:$0xf0] }
 0x479   : > { %8437 = vmatpush.bf16.msra.mxu0 %v14075_v48  ;;  %8347 = vmatmul.bf16.vlgmr.msra.gmra.mxu1 %v18152_v59  ;;  %v14234_v48 = vld [vmem:[#allocation6 + $0x308] sm:$0xf]  ;;  %v14359_v11 = vor.u32 %v16602_v12, %v14356_v18  ;;  %v6581_v39 = vadd.f32 %v6580_v17, %v6567_v56  ;;  %v14611_v19 = vor.u32 %v16670_v32, %v14610_v62  ;;  %v13948_v17 = vld [vmem:[#allocation6 + $0xe8] sm:$0xf0] }
 0x47a   : > { %8369 = vmatpush.bf16.msra.mxu3 %v14771_v21  ;;  %v14235_v34 = vor.u32 %v16575_v33, %v14234_v48  ;;  %v16551_v16 = vld [vmem:[#allocation6 + $0x264] sm:$0xf0] }
 0x47b   : > { %8451 = vmatpush.bf16.msra.mxu1 %v14331_v23  ;;  %v14706_v23 = vld [vmem:[#allocation6 + $0x6c0] sm:$0xf]  ;;  %v18611_v10 = vld [vmem:[#allocation34_spill] sm:$0xff]  ;;  %v6554_v2 = vpop.f32.mrf.mxu0 }
 0x47c   : > { %8411 = vmatpush.bf16.msrb.mxu2 %v14519_v4  ;;  %v14707_v41 = vor.u32 %v16694_v35, %v14706_v23  ;;  %v18608_v4 = vperm.slane %v18607_v26, 6  ;;  %v5547_v48 = vadd.f32 %v18611_v10, %v18610_v20  ;;  %v18612_v33 = vld [vmem:[#allocation54_spill] sm:$0xff]  ;;  %v6594_v23 = vpop.f32.mrf.mxu3  ;;  %v18617_v35 = vld [vmem:[#allocation75_spill] sm:$0xff]  ;;  %v6555_v29 = vadd.f32 %v6554_v2, %v1479_v28  ;;  %v6582_v10 = vpop.f32.mrf.mxu2  ;;  %v18623_v2 = vld [vmem:[#allocation77_spill] sm:$0xff] }
 0x47d   : > { %8438 = vmatpush.bf16.msra.mxu0 %v14043_v47  ;;  %v14739_v47 = vor.u32 %v16702_v9, %v14738_v31  ;;  %v14139_v31 = vor.u32 %v16551_v16, %v14138_v5  ;;  %v14642_v9 = vld [vmem:[#allocation6 + $0x640] sm:$0xf]  ;;  %v14106_v36 = vld [vmem:[#allocation6 + $0x208] sm:$0xf]  ;;  %v6568_v8 = vpop.f32.mrf.mxu1  ;;  %v18619_v5 = vld [vmem:[#allocation56_spill] sm:$0xff]  ;;  %v6595_v12 = vadd.f32 %v6594_v23, %v6581_v39 }
 0x47e   : > { %v14643_v22 = vor.u32 %v16678_v45, %v14642_v9  ;;  %v14236_v23 = vld [vmem:[#allocation6 + $0x328] sm:$0xf0] }
 0x47f   : > { %8452 = vmatpush.bf16.msra.mxu1 %v14299_v25  ;;  %8370 = vmatpush.bf16.msra.mxu3 %v14739_v47  ;;  %v16543_v47 = vld [vmem:[#allocation6 + $0x224] sm:$0xf0]  ;;  %v18625_v39 = vld [vmem:[#allocation59_spill] sm:$0xff] }
 0x480   : > { %8412 = vmatpush.bf16.msrb.mxu2 %v14487_v40  ;;  %v16523_v40 = vld [vmem:[#allocation6 + $0x18c] sm:$0xf] }
 0x481   : > { %8439 = vmatpush.bf16.msra.mxu0 %v14011_v52  ;;  %v16479_v52 = vld [vmem:[#allocation6 + $0x24] sm:$0xf0] }
 0x482   : > { %v13851_v1 = vor.u32 %v16479_v52, %v13850_v60  ;;  %v14012_v60 = vld [vmem:[#allocation6 + $0x168] sm:$0xf0] }
 0x483   : > { %8453 = vmatpush.bf16.msra.mxu1 %v14267_v6  ;;  %8371 = vmatpush.bf16.msra.mxu3 %v14707_v41  ;;  %v14044_v6 = vld [vmem:[#allocation6 + $0x1a8] sm:$0xf0]  ;;  %v14107_v41 = vor.u32 %v16543_v47, %v14106_v36  ;;  %v14015_v53 = vor.u32 %v16515_v30, %v14012_v60  ;;  %v6608_v45 = vpop.f32.mrf.mxu0 }
 0x484   : > { %8413 = vmatpush.bf16.msrb.mxu2 %v14455_v54  ;;  %v18613_v54 = vperm.slane %v17970_v7, 2  ;;  %v14047_v46 = vor.u32 %v16523_v40, %v14044_v6  ;;  %v18615_v7 = vld [vmem:[#allocation35_spill] sm:$0xff]  ;;  %v18620_v40 = vld [vmem:[#allocation76_spill] sm:$0xff]  ;;  %v6569_v6 = vadd.f32 %v6568_v8, %v6555_v29  ;;  %v6609_v36 = vadd.f32 %v6608_v45, %v6595_v12  ;;  %v18626_v62 = vld [vmem:[#allocation78_spill] sm:$0xff] }
 0x485   : > { %8440 = vmatpush.bf16.msra.mxu0 %v13979_v24  ;;  %v18609_v24 = vld [vmem:[#allocation53_spill] sm:$0xff]  ;;  %v6622_v47 = vpop.f32.mrf.mxu1  ;;  %v6721_v32 = vmax.f32 %v18626_v62, 0.0  ;;  %v16536_v45 = vld [vmem:[#allocation6 + $0x1ec] sm:$0xf0] }
 0x486   : > { %v5883_v25 = vadd.f32 %v18609_v24, %v18608_v4  ;;  %v16507_v24 = vld [vmem:[#allocation6 + $0x10c] sm:$0xf]  ;;  %v6583_v30 = vadd.f32 %v6582_v10, %v6569_v6  ;;  %v18628_v12 = vld [vmem:[#allocation57_spill] sm:$0xff] }
 0x487   : > { %8454 = vmatpush.bf16.msra.mxu1 %v14235_v34 }
 0x488   : > { %8414 = vmatpush.bf16.msrb.mxu2 %v14423_v37  ;;  %v5897_v21 = vadd.f32 %v18612_v33, %v5883_v25  ;;  %v16595_v37 = vld [vmem:[#allocation6 + $0x3cc] sm:$0xf]  ;;  %v16714_v33 = vld [vmem:[#allocation6 + $0x784] sm:$0xf] }
 0x489   : > { %8441 = vmatpush.bf16.msra.mxu0 %v13947_v13  ;;  %8403 = vmatmul.bf16.vlgmr.msrb.gmra.mxu1 %v18152_v59  ;;  %v14675_v13 = vor.u32 %v16686_v49, %v14674_v63  ;;  %v13980_v25 = vld [vmem:[#allocation6 + $0x128] sm:$0xf0]  ;;  %v14836_v63 = vld [vmem:[#allocation6 + $0x7e0] sm:$0xf0]  ;;  %v18618_v49 = vld [vmem:[#allocation36_spill] sm:$0xff] }
 0x48a   : > { %v5911_v52 = vadd.f32 %v18616_v43, %v5897_v21  ;;  %v13983_v18 = vor.u32 %v16507_v24, %v13980_v25  ;;  %v14804_v21 = vld [vmem:[#allocation6 + $0x7a0] sm:$0xf0]  ;;  %v13916_v43 = vld [vmem:[#allocation6 + $0xa8] sm:$0xf0] }
 0x48b   : > { %8455 = vmatpush.bf16.msra.mxu1 %v14203_v14  ;;  %8372 = vmatpush.bf16.msra.mxu3 %v14675_v13  ;;  %v5561_v14 = vadd.f32 %v18615_v7, %v5547_v48  ;;  %v16499_v48 = vld [vmem:[#allocation6 + $0xcc] sm:$0xf]  ;;  %v14772_v7 = vld [vmem:[#allocation6 + $0x760] sm:$0xf0] }
 0x48c   : > { %8415 = vmatpush.bf16.msrb.mxu2 %v14391_v0  ;;  %v16587_v0 = vld [vmem:[#allocation6 + $0x38c] sm:$0xf]  ;;  %v5925_v16 = vadd.f32 %v18619_v5, %v5911_v52  ;;  %v13951_v8 = vor.u32 %v16499_v48, %v13948_v17  ;;  %v16690_v17 = vld [vmem:[#allocation6 + $0x6c4] sm:$0xf] }
 0x48d   : > { %8442 = vmatpush.bf16.msra.mxu0 %v13915_v50  ;;  %v18614_v50 = vld [vmem:[#allocation74_spill] sm:$0xff]  ;;  %v6624_v10 = vpop.f32.mrf.mxu1 }
 0x48e   : > { %v6219_v34 = vadd.f32 %v18614_v50, %v18613_v54  ;;  %v14268_v54 = vld [vmem:[#allocation6 + $0x368] sm:$0xf0]  ;;  %v14807_v50 = vor.u32 %v16714_v33, %v14804_v21 }
 0x48f   : > { %8456 = vmatpush.bf16.msra.mxu1 %v14171_v57  ;;  %8373 = vmatpush.bf16.msra.mxu3 %v14643_v22  ;;  %v16722_v57 = vld [vmem:[#allocation6 + $0x7c4] sm:$0xf]  ;;  %v6596_v22 = vpop.f32.mrf.mxu3  ;;  %v16571_v52 = vld [vmem:[#allocation6 + $0x30c] sm:$0xf] }
 0x490   : > { %8416 = vmatpush.bf16.msrb.mxu2 %v14359_v11  ;;  %v6233_v15 = vadd.f32 %v18617_v35, %v6219_v34  ;;  %v14839_v28 = vor.u32 %v16722_v57, %v14836_v63  ;;  %v16579_v11 = vld [vmem:[#allocation6 + $0x34c] sm:$0xf]  ;;  %v18621_v34 = vld [vmem:[#allocation37_spill] sm:$0xff]  ;;  %v6597_v24 = vadd.f32 %v6596_v22, %v6583_v30  ;;  %v14586_v30 = vld [vmem:[#allocation6 + $0x5c8] sm:$0xf] }
 0x491   : > { %8443 = vmatpush.bf16.msra.mxu0 %v13883_v27  ;;  %v14332_v27 = vld [vmem:[#allocation6 + $0x3e8] sm:$0xf0]  ;;  %v14271_v60 = vor.u32 %v16579_v11, %v14268_v54  ;;  %v14740_v57 = vld [vmem:[#allocation6 + $0x720] sm:$0xf0] }
 0x492   : > { %v14335_v4 = vor.u32 %v16595_v37, %v14332_v27  ;;  %v6247_v13 = vadd.f32 %v18620_v40, %v6233_v15  ;;  %v16491_v37 = vld [vmem:[#allocation6 + $0x8c] sm:$0xf]  ;;  %v16706_v27 = vld [vmem:[#allocation6 + $0x744] sm:$0xf] }
 0x493   : > { %8457 = vmatpush.bf16.msra.mxu1 %v14139_v31  ;;  %8374 = vmatpush.bf16.msra.mxu3 %v14611_v19  ;;  %v18622_v31 = vld [vmem:[#allocation58_spill] sm:$0xff]  ;;  %v14775_v35 = vor.u32 %v16706_v27, %v14772_v7  ;;  %v13919_v25 = vor.u32 %v16491_v37, %v13916_v43 }
 0x494   : > { %v5939_v9 = vadd.f32 %v18622_v31, %v5925_v16  ;;  %v18624_v15 = vld [vmem:[#allocation38_spill] sm:$0xff] }
 0x495   : > { %8444 = vmatpush.bf16.msra.mxu0 %v13851_v1  ;;  %v14300_v1 = vld [vmem:[#allocation6 + $0x3a8] sm:$0xf0]  ;;  %v14708_v11 = vld [vmem:[#allocation6 + $0x6e0] sm:$0xf0]  ;;  %v16663_v7 = vld [vmem:[#allocation6 + $0x5e4] sm:$0xf0] }
 0x496   : > { %v14303_v20 = vor.u32 %v16587_v0, %v14300_v1  ;;  %v14239_v0 = vor.u32 %v16571_v52, %v14236_v23  ;;  %v16483_v19 = vld [vmem:[#allocation6 + $0x4c] sm:$0xf]  ;;  %v16698_v1 = vld [vmem:[#allocation6 + $0x704] sm:$0xf]  ;;  %v14711_v31 = vor.u32 %v16690_v17, %v14708_v11  ;;  %v14050_v23 = vld [vmem:[#allocation6 + $0x190] sm:$0xf] }
 0x497   : > { %8458 = vmatpush.bf16.msra.mxu1 %v14107_v41  ;;  %8423 = vmatpush.bf16.msrb.mxu3 %v14839_v28  ;;  %v5953_v41 = vadd.f32 %v18625_v39, %v5939_v9  ;;  %v14204_v5 = vld [vmem:[#allocation6 + $0x2e8] sm:$0xf0]  ;;  %v14743_v16 = vor.u32 %v16698_v1, %v14740_v57  ;;  %v14082_v9 = vld [vmem:[#allocation6 + $0x1d0] sm:$0xf]  ;;  %v16682_v22 = vld [vmem:[#allocation6 + $0x684] sm:$0xf]  ;;  %v6636_v39 = vpop.f32.mrf.mxu2 }
 0x498   : > { %8445 = vmatmul.bf16.vlgmr.msra.gmra.mxu0 %v18122_v58  ;;  %v18627_v28 = vld [vmem:[#allocation39_spill] sm:$0xff]  ;;  %v14083_v27 = vor.u32 %v16536_v45, %v14082_v9  ;;  %v18632_v17 = vld [vmem:[#allocation60_spill] sm:$0xff]  ;;  %v18634_v45 = vperm.slane %v18052_v3, 3 }
 0x499   : > { %8493 = vmatpush.bf16.msrb.mxu0 %v14079_v61  ;;  %v5575_v61 = vadd.f32 %v18618_v49, %v5561_v14  ;;  %v6623_v14 = vadd.f32 %v6622_v47, %v6609_v36  ;;  %v13884_v49 = vld [vmem:[#allocation6 + $0x68] sm:$0xf0]  ;;  %v6733_v6 = vmax.f32 %v5953_v41, 0.0  ;;  %v14587_v41 = vor.u32 %v16663_v7, %v14586_v30  ;;  %v14018_v57 = vld [vmem:[#allocation6 + $0x150] sm:$0xf] }
 0x49a   : > { %8459 = vmatmul.bf16.vlgmr.msra.gmra.mxu1 %v18152_v59  ;;  %v13887_v48 = vor.u32 %v16483_v19, %v13884_v49  ;;  %v16475_v21 = vld [vmem:[#allocation6 + $0xc] sm:$0xf]  ;;  %v16520_v49 = vld [vmem:[#allocation6 + $0x16c] sm:$0xf0]  ;;  %v16639_v30 = vld [vmem:[#allocation6 + $0x524] sm:$0xf0] }
 0x49b   : > { %8507 = vmatpush.bf16.msrb.mxu1 %v14335_v4  ;;  %v5589_v56 = vadd.f32 %v18621_v34, %v5575_v61  ;;  %8424 = vmatpush.bf16.msrb.mxu3 %v14807_v50  ;;  %v6725_v4 = vmax.f32 %v6623_v14, 0.0  ;;  %v16563_v61 = vld [vmem:[#allocation6 + $0x2cc] sm:$0xf]  ;;  %v14274_v7 = vld [vmem:[#allocation6 + $0x350] sm:$0xf] }
 0x49c   : > { %v14207_v33 = vor.u32 %v16563_v61, %v14204_v5  ;;  %v13852_v50 = vld [vmem:[#allocation6 + $0x28] sm:$0xf0]  ;;  %v14338_v61 = vld [vmem:[#allocation6 + $0x3d0] sm:$0xf] }
 0x49d   : > { %8494 = vmatpush.bf16.msrb.mxu0 %v14047_v46  ;;  %v6261_v46 = vadd.f32 %v18623_v2, %v6247_v13  ;;  %v5603_v29 = vadd.f32 %v18624_v15, %v5589_v56  ;;  %v6753_v63 = vmax.f32 %v6721_v32, %v6725_v4  ;;  %v6610_v13 = vpop.f32.mrf.mxu0  ;;  %v16555_v34 = vld [vmem:[#allocation6 + $0x28c] sm:$0xf]  ;;  %v13855_v36 = vor.u32 %v16475_v21, %v13852_v50  ;;  %v16655_v32 = vld [vmem:[#allocation6 + $0x5a4] sm:$0xf0]  ;;  %v14644_v4 = vld [vmem:[#allocation6 + $0x660] sm:$0xf0] }
 0x49e   : > { %v14172_v56 = vld [vmem:[#allocation6 + $0x2a8] sm:$0xf0]  ;;  %v16600_v5 = vld [vmem:[#allocation6 + $0x3ec] sm:$0xf0]  ;;  %v18631_v21 = vperm.slane %v18607_v26, 7 }
 0x49f   : > { %8508 = vmatpush.bf16.msrb.mxu1 %v14303_v20  ;;  %8425 = vmatpush.bf16.msrb.mxu3 %v14775_v35  ;;  %v5617_v40 = vadd.f32 %v18627_v28, %v5603_v29  ;;  %v6611_v20 = vadd.f32 %v6610_v13, %v6597_v24  ;;  %v14175_v47 = vor.u32 %v16555_v34, %v14172_v56  ;;  %v16547_v14 = vld [vmem:[#allocation6 + $0x24c] sm:$0xf]  ;;  %v16528_v35 = vld [vmem:[#allocation6 + $0x1ac] sm:$0xf0]  ;;  %v14554_v29 = vld [vmem:[#allocation6 + $0x588] sm:$0xf] }
 0x4a0   : > { %v14140_v43 = vld [vmem:[#allocation6 + $0x268] sm:$0xf0]  ;;  %v18629_v28 = vperm.slane %v17834_v42, 3  ;;  %v5967_v11 = vadd.f32 %v18632_v17, %v18631_v21  ;;  %v16512_v42 = vld [vmem:[#allocation6 + $0x12c] sm:$0xf0] }
 0x4a1   : > { %8495 = vmatpush.bf16.msrb.mxu0 %v14015_v53  ;;  %v6275_v53 = vadd.f32 %v18059_v55, %v6261_v46  ;;  %v6625_v54 = vadd.f32 %v6624_v10, %v6611_v20  ;;  %v14143_v62 = vor.u32 %v16547_v14, %v14140_v43  ;;  %v16539_v19 = vld [vmem:[#allocation6 + $0x20c] sm:$0xf]  ;;  %v14019_v20 = vor.u32 %v16520_v49, %v14018_v57  ;;  %v16592_v50 = vld [vmem:[#allocation6 + $0x3ac] sm:$0xf0] }
 0x4a2   : > { %v14108_v1 = vld [vmem:[#allocation6 + $0x228] sm:$0xf0]  ;;  %v14339_v10 = vor.u32 %v16600_v5, %v14338_v61  ;;  %v16584_v14 = vld [vmem:[#allocation6 + $0x36c] sm:$0xf0] }
 0x4a3   : > { %8509 = vmatpush.bf16.msrb.mxu1 %v14271_v60  ;;  %v6289_v55 = vadd.f32 %v18061_v51, %v6275_v53  ;;  %8426 = vmatpush.bf16.msrb.mxu3 %v14743_v16  ;;  %v6729_v51 = vmax.f32 %v5617_v40, 0.0  ;;  %v6741_v46 = vmax.f32 %v6625_v54, 0.0  ;;  %v16674_v53 = vld [vmem:[#allocation6 + $0x644] sm:$0xf]  ;;  %v1480_v16 = vperm.slane %v18155_v38, 7  ;;  %v18630_v40 = vld [vmem:[#allocation40_spill] sm:$0xff] }
 0x4a4   : > { %v5631_v13 = vadd.f32 %v18630_v40, %v18629_v28  ;;  %v13986_v38 = vld [vmem:[#allocation6 + $0x110] sm:$0xf] }
 0x4a5   : > { %8496 = vmatpush.bf16.msrb.mxu0 %v13983_v18  ;;  %v6761_v18 = vmax.f32 %v18628_v12, %v6753_v63  ;;  %v6737_v2 = vmax.f32 %v6289_v55, 0.0  ;;  %v6749_v60 = vmax.f32 %v6729_v51, %v6733_v6  ;;  %v14647_v63 = vor.u32 %v16674_v53, %v14644_v4  ;;  %v16666_v12 = vld [vmem:[#allocation6 + $0x604] sm:$0xf]  ;;  %v14306_v54 = vld [vmem:[#allocation6 + $0x390] sm:$0xf] }
 0x4a6   : > { %v14555_v6 = vor.u32 %v16655_v32, %v14554_v29  ;;  %v14111_v55 = vor.u32 %v16539_v19, %v14108_v1  ;;  %v6637_v56 = vadd.f32 %v6636_v39, %v1480_v16  ;;  %v18635_v51 = vld [vmem:[#allocation79_spill] sm:$0xff]  ;;  %v14307_v26 = vor.u32 %v16592_v50, %v14306_v54  ;;  %v14458_v53 = vld [vmem:[#allocation6 + $0x4c8] sm:$0xf] }
 0x4a7   : > { %8510 = vmatpush.bf16.msrb.mxu1 %v14239_v0  ;;  %v6757_v37 = vmax.f32 %v6737_v2, %v6741_v46  ;;  %8427 = vmatpush.bf16.msrb.mxu3 %v14711_v31  ;;  %v14051_v0 = vor.u32 %v16528_v35, %v14050_v23  ;;  %v18633_v31 = vld [vmem:[#allocation41_spill] sm:$0xff]  ;;  %v6303_v2 = vadd.f32 %v18635_v51, %v18634_v45  ;;  %v18637_v23 = vld [vmem:[#allocation42_spill] sm:$0xff]  ;;  %v18639_v19 = vld [vmem:[#allocation63_spill] sm:$0xff] }
 0x4a8   : > { %v5645_v9 = vadd.f32 %v18633_v31, %v5631_v13  ;;  %v14275_v32 = vor.u32 %v16584_v14, %v14274_v7  ;;  %v16631_v4 = vld [vmem:[#allocation6 + $0x4e4] sm:$0xf0]  ;;  %v16496_v57 = vld [vmem:[#allocation6 + $0xac] sm:$0xf0] }
 0x4a9   : > { %8497 = vmatpush.bf16.msrb.mxu0 %v13951_v8  ;;  %v14676_v8 = vld [vmem:[#allocation6 + $0x6a0] sm:$0xf0]  ;;  %v6765_v15 = vmax.f32 %v6749_v60, %v6757_v37  ;;  %v6638_v37 = vpop.f32.mrf.mxu2  ;;  %v16576_v49 = vld [vmem:[#allocation6 + $0x32c] sm:$0xf0]  ;;  %v14459_v13 = vor.u32 %v16631_v4, %v14458_v53 }
 0x4aa   : > { %v14679_v52 = vor.u32 %v16682_v22, %v14676_v8  ;;  %v13954_v22 = vld [vmem:[#allocation6 + $0xd0] sm:$0xf]  ;;  %v18636_v8 = vld [vmem:[#allocation61_spill] sm:$0xff]  ;;  %v5659_v35 = vadd.f32 %v18637_v23, %v5645_v9  ;;  %v6639_v61 = vadd.f32 %v6638_v37, %v1480_v16  ;;  %v18644_v9 = vld [vmem:[#allocation82_spill] sm:$0xff] }
 0x4ab   : > { %8511 = vmatpush.bf16.msrb.mxu1 %v14207_v33  ;;  %v18191_v24 = vpack.c.bf16 %v6765_v15, %v6761_v18  ;;  %v14612_v18 = vld [vmem:[#allocation6 + $0x620] sm:$0xf0]  ;;  %v16647_v33 = vld [vmem:[#allocation6 + $0x564] sm:$0xf0]  ;;  %v5981_v60 = vadd.f32 %v18636_v8, %v5967_v11  ;;  %v18638_v15 = vld [vmem:[#allocation80_spill] sm:$0xff] }
 0x4ac   : > { %8428 = vmatpush.bf16.msrb.mxu3 %v14679_v52  ;;  %v14615_v34 = vor.u32 %v16666_v12, %v14612_v18  ;;  %v6317_v29 = vadd.f32 %v18638_v15, %v6303_v2  ;;  %v18640_v5 = vld [vmem:[#allocation43_spill] sm:$0xff]  ;;  %v18642_v11 = vld [vmem:[#allocation44_spill] sm:$0xff] }
 0x4ad   : > { %8498 = vmatpush.bf16.msrb.mxu0 %v13919_v25  ;;  %v6650_v25 = vpop.f32.mrf.mxu3  ;;  %8361 = vmatmul.bf16.vlgmr.msra.gmra.mxu2 %v18191_v24  ;;  %v5673_v28 = vadd.f32 %v18640_v5, %v5659_v35  ;;  %v14210_v17 = vld [vmem:[#allocation6 + $0x2d0] sm:$0xf]  ;;  %v14084_v23 = vld [vmem:[#allocation6 + $0x1f0] sm:$0xf0]  ;;  %v18647_v35 = vld [vmem:[#allocation45_spill] sm:$0xff] }
 0x4ae   : > { %8465 = vmatpush.bf16.msra.mxu2 %v14587_v41  ;;  %v6651_v3 = vadd.f32 %v6650_v25, %v6637_v56  ;;  %v5995_v25 = vadd.f32 %v18639_v19, %v5981_v60  ;;  %v6331_v40 = vadd.f32 %v18078_v44, %v6317_v29  ;;  %v16568_v16 = vld [vmem:[#allocation6 + $0x2ec] sm:$0xf0]  ;;  %v18643_v56 = vld [vmem:[#allocation65_spill] sm:$0xff]  ;;  %v18648_v29 = vld [vmem:[#allocation66_spill] sm:$0xff] }
 0x4af   : > { %8512 = vmatpush.bf16.msrb.mxu1 %v14175_v47  ;;  %v14490_v47 = vld [vmem:[#allocation6 + $0x508] sm:$0xf]  ;;  %v16480_v8 = vld [vmem:[#allocation6 + $0x2c] sm:$0xf0] }
 0x4b0   : > { %8429 = vmatpush.bf16.msrb.mxu3 %v14647_v63  ;;  %v14491_v39 = vor.u32 %v16639_v30, %v14490_v47  ;;  %v14242_v63 = vld [vmem:[#allocation6 + $0x310] sm:$0xf]  ;;  %v6345_v45 = vadd.f32 %v18644_v9, %v6331_v40  ;;  %v14211_v47 = vor.u32 %v16568_v16, %v14210_v17  ;;  %v16615_v30 = vld [vmem:[#allocation6 + $0x464] sm:$0xf0]  ;;  %v16651_v16 = vld [vmem:[#allocation6 + $0x58c] sm:$0xf] }
 0x4b1   : > { %8499 = vmatpush.bf16.msrb.mxu0 %v13887_v48  ;;  %v14522_v48 = vld [vmem:[#allocation6 + $0x548] sm:$0xf]  ;;  %v14243_v18 = vor.u32 %v16576_v49, %v14242_v63  ;;  %v14178_v60 = vld [vmem:[#allocation6 + $0x290] sm:$0xf]  ;;  %v14588_v49 = vld [vmem:[#allocation6 + $0x5e8] sm:$0xf0] }
 0x4b2   : > { %8466 = vmatpush.bf16.msra.mxu2 %v14555_v6  ;;  %v14523_v46 = vor.u32 %v16647_v33, %v14522_v48  ;;  %v14426_v6 = vld [vmem:[#allocation6 + $0x488] sm:$0xf]  ;;  %v16488_v48 = vld [vmem:[#allocation6 + $0x6c] sm:$0xf0]  ;;  %v18641_v33 = vld [vmem:[#allocation64_spill] sm:$0xff] }
 0x4b3   : > { %8513 = vmatpush.bf16.msrb.mxu1 %v14143_v62  ;;  %v16560_v37 = vld [vmem:[#allocation6 + $0x2ac] sm:$0xf0]  ;;  %v14362_v19 = vld [vmem:[#allocation6 + $0x408] sm:$0xf]  ;;  %v16596_v9 = vld [vmem:[#allocation6 + $0x3d4] sm:$0xf] }
 0x4b4   : > { %8430 = vmatpush.bf16.msrb.mxu3 %v14615_v34  ;;  %v18646_v14 = vld [vmem:[#allocation83_spill] sm:$0xff] }
 0x4b5   : > { %8500 = vmatpush.bf16.msrb.mxu0 %v13855_v36  ;;  %v13987_v36 = vor.u32 %v16512_v42, %v13986_v38  ;;  %v6652_v43 = vpop.f32.mrf.mxu3  ;;  %v6664_v52 = vpop.f32.mrf.mxu0  ;;  %v6009_v38 = vadd.f32 %v18641_v33, %v5995_v25  ;;  %v5687_v42 = vadd.f32 %v18642_v11, %v5673_v28  ;;  %v16607_v25 = vld [vmem:[#allocation6 + $0x424] sm:$0xf0]  ;;  %v16552_v5 = vld [vmem:[#allocation6 + $0x26c] sm:$0xf0]  ;;  %v18649_v28 = vld [vmem:[#allocation84_spill] sm:$0xff] }
 0x4b6   : > { %8467 = vmatpush.bf16.msra.mxu2 %v14523_v46  ;;  %v6665_v41 = vadd.f32 %v6664_v52, %v6651_v3  ;;  %v6653_v54 = vadd.f32 %v6652_v43, %v6639_v61  ;;  %v14394_v46 = vld [vmem:[#allocation6 + $0x448] sm:$0xf]  ;;  %v6359_v3 = vadd.f32 %v18646_v14, %v6345_v45  ;;  %v16532_v52 = vld [vmem:[#allocation6 + $0x1d4] sm:$0xf]  ;;  %v14146_v61 = vld [vmem:[#allocation6 + $0x250] sm:$0xf]  ;;  %v14363_v33 = vor.u32 %v16607_v25, %v14362_v19 }
 0x4b7   : > { %8514 = vmatpush.bf16.msrb.mxu1 %v14111_v55  ;;  %v6678_v1 = vpop.f32.mrf.mxu1  ;;  %v6023_v31 = vadd.f32 %v18643_v56, %v6009_v38  ;;  %v5701_v15 = vadd.f32 %v18647_v35, %v5687_v42  ;;  %v14087_v63 = vor.u32 %v16532_v52, %v14084_v23  ;;  %v14147_v17 = vor.u32 %v16552_v5, %v14146_v61  ;;  %v14556_v11 = vld [vmem:[#allocation6 + $0x5a8] sm:$0xf0]  ;;  %v14114_v42 = vld [vmem:[#allocation6 + $0x210] sm:$0xf]  ;;  %v14340_v45 = vld [vmem:[#allocation6 + $0x3f0] sm:$0xf0] }
 0x4b8   : > { %8501 = vmatmul.bf16.vlgmr.msrb.gmra.mxu0 %v18122_v58  ;;  %v6679_v55 = vadd.f32 %v6678_v1, %v6665_v41  ;;  %v16659_v1 = vld [vmem:[#allocation6 + $0x5cc] sm:$0xf]  ;;  %v6373_v40 = vadd.f32 %v18649_v28, %v6359_v3  ;;  %v16588_v14 = vld [vmem:[#allocation6 + $0x394] sm:$0xf]  ;;  %v14810_v35 = vld [vmem:[#allocation6 + $0x788] sm:$0xf] }
 0x4b9   : > { %8549 = vmatpush.bf16.msra.mxu0 %v14083_v27  ;;  %v16504_v27 = vld [vmem:[#allocation6 + $0xec] sm:$0xf0]  ;;  %v14308_v3 = vld [vmem:[#allocation6 + $0x3b0] sm:$0xf0]  ;;  %v16627_v61 = vld [vmem:[#allocation6 + $0x4cc] sm:$0xf] }
 0x4ba   : > { %8515 = vmatmul.bf16.vlgmr.msrb.gmra.mxu1 %v18152_v59  ;;  %v13955_v62 = vor.u32 %v16504_v27, %v13954_v22  ;;  %8468 = vmatpush.bf16.msra.mxu2 %v14491_v39  ;;  %v13858_v22 = vld [vmem:[#allocation6 + $0x10] sm:$0xf]  ;;  %v18645_v27 = vld [vmem:[#allocation81_spill] sm:$0xff]  ;;  %v6037_v39 = vadd.f32 %v18648_v29, %v6023_v31  ;;  %v6738_v56 = vmax.f32 %v6373_v40, 0.0  ;;  %v14460_v5 = vld [vmem:[#allocation6 + $0x4e8] sm:$0xf0] }
 0x4bb   : > { %8563 = vmatpush.bf16.msra.mxu1 %v14339_v10  ;;  %v13890_v10 = vld [vmem:[#allocation6 + $0x50] sm:$0xf]  ;;  %v6722_v7 = vmax.f32 %v18645_v27, 0.0  ;;  %v16492_v28 = vld [vmem:[#allocation6 + $0x94] sm:$0xf] }
 0x4bc   : > { %v13891_v2 = vor.u32 %v16488_v48, %v13890_v10  ;;  %v6734_v10 = vmax.f32 %v6037_v39, 0.0  ;;  %v14311_v39 = vor.u32 %v16588_v14, %v14308_v3  ;;  %v13924_v40 = vld [vmem:[#allocation6 + $0xb0] sm:$0xf0]  ;;  %v14594_v14 = vld [vmem:[#allocation6 + $0x5d0] sm:$0xf] }
 0x4bd   : > { %8550 = vmatpush.bf16.msra.mxu0 %v14051_v0  ;;  %v13922_v0 = vld [vmem:[#allocation6 + $0x90] sm:$0xf]  ;;  %v6666_v34 = vpop.f32.mrf.mxu0  ;;  %8417 = vmatmul.bf16.vlgmr.msrb.gmra.mxu2 %v18191_v24 }
 0x4be   : > { %v13923_v12 = vor.u32 %v16496_v57, %v13922_v0  ;;  %8469 = vmatpush.bf16.msra.mxu2 %v14459_v13  ;;  %v14179_v0 = vor.u32 %v16560_v37, %v14178_v60  ;;  %v18650_v13 = vld [vmem:[#allocation62_spill] sm:$0xff]  ;;  %v16508_v37 = vld [vmem:[#allocation6 + $0x114] sm:$0xf] }
 0x4bf   : > { %8564 = vmatpush.bf16.msra.mxu1 %v14307_v26  ;;  %v6692_v21 = vpop.f32.mrf.mxu2  ;;  %v6667_v26 = vadd.f32 %v6666_v34, %v6653_v54  ;;  %v6680_v41 = vpop.f32.mrf.mxu1  ;;  %v14020_v34 = vld [vmem:[#allocation6 + $0x170] sm:$0xf0]  ;;  %v14524_v60 = vld [vmem:[#allocation6 + $0x568] sm:$0xf0] }
 0x4c0   : > { %v6693_v44 = vadd.f32 %v6692_v21, %v6679_v55  ;;  %v14591_v21 = vor.u32 %v16659_v1, %v14588_v49  ;;  %v14778_v1 = vld [vmem:[#allocation6 + $0x748] sm:$0xf] }
 0x4c1   : > { %8551 = vmatpush.bf16.msra.mxu0 %v14019_v20  ;;  %v16623_v20 = vld [vmem:[#allocation6 + $0x4a4] sm:$0xf0]  ;;  %v6706_v50 = vpop.f32.mrf.mxu3  ;;  %v6681_v4 = vadd.f32 %v6680_v41, %v6667_v26  ;;  %v16635_v41 = vld [vmem:[#allocation6 + $0x50c] sm:$0xf] }
 0x4c2   : > { %v14427_v51 = vor.u32 %v16623_v20, %v14426_v6  ;;  %v6730_v20 = vmax.f32 %v5701_v15, 0.0  ;;  %v14842_v26 = vld [vmem:[#allocation6 + $0x7c8] sm:$0xf] }
 0x4c3   : > { %8565 = vmatpush.bf16.msra.mxu1 %v14275_v32  ;;  %v13859_v32 = vor.u32 %v16480_v8, %v13858_v22  ;;  %v14343_v22 = vor.u32 %v16596_v9, %v14340_v45  ;;  %v16643_v8 = vld [vmem:[#allocation6 + $0x54c] sm:$0xf]  ;;  %v16719_v15 = vld [vmem:[#allocation6 + $0x7a4] sm:$0xf0]  ;;  %v16476_v45 = vld [vmem:[#allocation6 + $0x14] sm:$0xf] }
 0x4c4   : > { %8470 = vmatpush.bf16.msra.mxu2 %v14427_v51  ;;  %v6750_v51 = vmax.f32 %v6730_v20, %v6734_v10  ;;  %v14527_v23 = vor.u32 %v16643_v8, %v14524_v60  ;;  %v14811_v19 = vor.u32 %v16719_v15, %v14810_v35  ;;  %v16703_v20 = vld [vmem:[#allocation6 + $0x724] sm:$0xf0]  ;;  %v13927_v10 = vor.u32 %v16492_v28, %v13924_v40  ;;  %v14396_v9 = vld [vmem:[#allocation6 + $0x468] sm:$0xf0]  ;;  %v14148_v35 = vld [vmem:[#allocation6 + $0x270] sm:$0xf0] }
 0x4c5   : > { %8552 = vmatpush.bf16.msra.mxu0 %v13987_v36  ;;  %v6707_v36 = vadd.f32 %v6706_v50, %v6693_v44  ;;  %v16544_v44 = vld [vmem:[#allocation6 + $0x22c] sm:$0xf0]  ;;  %v16516_v50 = vld [vmem:[#allocation6 + $0x154] sm:$0xf]  ;;  %v16687_v8 = vld [vmem:[#allocation6 + $0x6a4] sm:$0xf0] }
 0x4c6   : > { %v16601_v28 = vld [vmem:[#allocation6 + $0x3f4] sm:$0xf0]  ;;  %v14618_v40 = vld [vmem:[#allocation6 + $0x608] sm:$0xf] }
 0x4c7   : > { %8566 = vmatpush.bf16.msra.mxu1 %v14243_v18  ;;  %v6726_v43 = vmax.f32 %v6707_v36, 0.0  ;;  %v6694_v57 = vpop.f32.mrf.mxu2  ;;  %v14052_v18 = vld [vmem:[#allocation6 + $0x1b0] sm:$0xf0]  ;;  %v14115_v36 = vor.u32 %v16544_v44, %v14114_v42  ;;  %v14714_v44 = vld [vmem:[#allocation6 + $0x6c8] sm:$0xf] }
 0x4c8   : > { %v6695_v55 = vadd.f32 %v6694_v57, %v6681_v4  ;;  %v16580_v4 = vld [vmem:[#allocation6 + $0x354] sm:$0xf]  ;;  %v16711_v57 = vld [vmem:[#allocation6 + $0x764] sm:$0xf0] }
 0x4c9   : > { %8553 = vmatpush.bf16.msra.mxu0 %v13955_v62  ;;  %v14395_v62 = vor.u32 %v16615_v30, %v14394_v46  ;;  %v18222_v53 = vmax.f32 %v6722_v7, %v6726_v43  ;;  %v6708_v48 = vpop.f32.mrf.mxu3  ;;  %v14559_v46 = vor.u32 %v16651_v16, %v14556_v11  ;;  %v14023_v30 = vor.u32 %v16516_v50, %v14020_v34  ;;  %v13988_v7 = vld [vmem:[#allocation6 + $0x130] sm:$0xf0]  ;;  %v16695_v50 = vld [vmem:[#allocation6 + $0x6e4] sm:$0xf0] }
 0x4ca   : > { %v6709_v38 = vadd.f32 %v6708_v48, %v6695_v55  ;;  %v13991_v29 = vor.u32 %v16508_v37, %v13988_v7  ;;  %v14779_v55 = vor.u32 %v16711_v57, %v14778_v1  ;;  %v16564_v16 = vld [vmem:[#allocation6 + $0x2d4] sm:$0xf]  ;;  %v14364_v7 = vld [vmem:[#allocation6 + $0x428] sm:$0xf0] }
 0x4cb   : > { %8567 = vmatpush.bf16.msra.mxu1 %v14211_v47  ;;  %v6762_v6 = vmax.f32 %v18650_v13, %v18222_v53  ;;  %8471 = vmatpush.bf16.msra.mxu2 %v14395_v62  ;;  %v16727_v47 = vld [vmem:[#allocation6 + $0x7e4] sm:$0xf0]  ;;  %v14492_v62 = vld [vmem:[#allocation6 + $0x528] sm:$0xf0]  ;;  %v13956_v53 = vld [vmem:[#allocation6 + $0xf0] sm:$0xf0] }
 0x4cc   : > { %v6742_v31 = vmax.f32 %v6709_v38, 0.0  ;;  %v14843_v43 = vor.u32 %v16727_v47, %v14842_v26  ;;  %v14495_v25 = vor.u32 %v16635_v41, %v14492_v62  ;;  %v16572_v13 = vld [vmem:[#allocation6 + $0x314] sm:$0xf]  ;;  %v14428_v38 = vld [vmem:[#allocation6 + $0x4a8] sm:$0xf0] }
 0x4cd   : > { %8554 = vmatpush.bf16.msra.mxu0 %v13923_v12  ;;  %v16524_v12 = vld [vmem:[#allocation6 + $0x194] sm:$0xf]  ;;  %v14090_v26 = vld [vmem:[#allocation6 + $0x1d8] sm:$0xf]  ;;  %v14650_v62 = vld [vmem:[#allocation6 + $0x648] sm:$0xf] }
 0x4ce   : > { %v14055_v54 = vor.u32 %v16524_v12, %v14052_v18  ;;  %v14463_v12 = vor.u32 %v16627_v61, %v14460_v5  ;;  %v14746_v18 = vld [vmem:[#allocation6 + $0x708] sm:$0xf]  ;;  %v14212_v11 = vld [vmem:[#allocation6 + $0x2f0] sm:$0xf0]  ;;  %v16537_v47 = vld [vmem:[#allocation6 + $0x1f4] sm:$0xf0] }
 0x4cf   : > { %8568 = vmatpush.bf16.msra.mxu1 %v14179_v0  ;;  %8472 = vmatpush.bf16.msra.mxu2 %v14363_v33  ;;  %v14276_v0 = vld [vmem:[#allocation6 + $0x370] sm:$0xf0]  ;;  %v16619_v33 = vld [vmem:[#allocation6 + $0x48c] sm:$0xf]  ;;  %v14747_v42 = vor.u32 %v16703_v20, %v14746_v18  ;;  %v14091_v3 = vor.u32 %v16537_v47, %v14090_v26  ;;  %v16521_v61 = vld [vmem:[#allocation6 + $0x174] sm:$0xf0] }
 0x4d0   : > { %v14279_v49 = vor.u32 %v16580_v4, %v14276_v0  ;;  %v14562_v0 = vld [vmem:[#allocation6 + $0x590] sm:$0xf]  ;;  %v16540_v1 = vld [vmem:[#allocation6 + $0x214] sm:$0xf]  ;;  %v14346_v5 = vld [vmem:[#allocation6 + $0x3d8] sm:$0xf] }
 0x4d1   : > { %8555 = vmatpush.bf16.msra.mxu0 %v13891_v2  ;;  %v6758_v2 = vmax.f32 %v6738_v56, %v6742_v31  ;;  %v14215_v56 = vor.u32 %v16564_v16, %v14212_v11  ;;  %v16611_v31 = vld [vmem:[#allocation6 + $0x44c] sm:$0xf]  ;;  %v14116_v57 = vld [vmem:[#allocation6 + $0x230] sm:$0xf0]  ;;  %v14314_v11 = vld [vmem:[#allocation6 + $0x398] sm:$0xf] }
 0x4d2   : > { %8473 = vmatmul.bf16.vlgmr.msra.gmra.mxu2 %v18191_v24  ;;  %v14844_v18 = vld [vmem:[#allocation6 + $0x7e8] sm:$0xf0]  ;;  %v14282_v26 = vld [vmem:[#allocation6 + $0x358] sm:$0xf] }
 0x4d3   : > { %8521 = vmatpush.bf16.msrb.mxu2 %v14591_v21  ;;  %8569 = vmatpush.bf16.msra.mxu1 %v14147_v17  ;;  %v6766_v27 = vmax.f32 %v6750_v51, %v6758_v2  ;;  %v16484_v21 = vld [vmem:[#allocation6 + $0x54] sm:$0xf]  ;;  %v16585_v47 = vld [vmem:[#allocation6 + $0x374] sm:$0xf0] }
 0x4d4   : > { %v13892_v17 = vld [vmem:[#allocation6 + $0x70] sm:$0xf0] }
 0x4d5   : > { %8556 = vmatpush.bf16.msra.mxu0 %v13859_v32  ;;  %v18229_v52 = vpack.c.bf16 %v6766_v27, %v6762_v6  ;;  %v16500_v32 = vld [vmem:[#allocation6 + $0xd4] sm:$0xf]  ;;  %v13895_v34 = vor.u32 %v16484_v21, %v13892_v17  ;;  %v16603_v27 = vld [vmem:[#allocation6 + $0x40c] sm:$0xf]  ;;  %v13994_v21 = vld [vmem:[#allocation6 + $0x118] sm:$0xf] }
 0x4d6   : > { %v14244_v6 = vld [vmem:[#allocation6 + $0x330] sm:$0xf0]  ;;  %v14367_v41 = vor.u32 %v16603_v27, %v14364_v7  ;;  %v16513_v17 = vld [vmem:[#allocation6 + $0x134] sm:$0xf0]  ;;  %v14466_v27 = vld [vmem:[#allocation6 + $0x4d0] sm:$0xf] }
 0x4d7   : > { %8522 = vmatpush.bf16.msrb.mxu2 %v14559_v46  ;;  %8570 = vmatpush.bf16.msra.mxu1 %v14115_v36  ;;  %v14247_v48 = vor.u32 %v16572_v13, %v14244_v6  ;;  %v13860_v51 = vld [vmem:[#allocation6 + $0x30] sm:$0xf0]  ;;  %v14715_v36 = vor.u32 %v16695_v50, %v14714_v44  ;;  %v16671_v13 = vld [vmem:[#allocation6 + $0x624] sm:$0xf0]  ;;  %v16715_v44 = vld [vmem:[#allocation6 + $0x78c] sm:$0xf] }
 0x4d8   : > { %8557 = vmatmul.bf16.vlgmr.msra.gmra.mxu0 %v18122_v58  ;;  %8375 = vmatmul.bf16.vlgmr.msra.gmra.mxu3 %v18229_v52  ;;  %v16556_v2 = vld [vmem:[#allocation6 + $0x294] sm:$0xf]  ;;  %v13863_v60 = vor.u32 %v16476_v45, %v13860_v51  ;;  %v14812_v50 = vld [vmem:[#allocation6 + $0x7a8] sm:$0xf0]  ;;  %v16640_v45 = vld [vmem:[#allocation6 + $0x52c] sm:$0xf0] }
 0x4d9   : > { %8605 = vmatpush.bf16.msrb.mxu0 %v14087_v63  ;;  %8479 = vmatpush.bf16.msra.mxu3 %v14843_v43  ;;  %v13959_v63 = vor.u32 %v16500_v32, %v13956_v53  ;;  %v14180_v46 = vld [vmem:[#allocation6 + $0x2b0] sm:$0xf0]  ;;  %v16664_v43 = vld [vmem:[#allocation6 + $0x5ec] sm:$0xf0]  ;;  %v16679_v32 = vld [vmem:[#allocation6 + $0x664] sm:$0xf0] }
 0x4da   : > { %8571 = vmatmul.bf16.vlgmr.msra.gmra.mxu1 %v18152_v59  ;;  %v14183_v37 = vor.u32 %v16556_v2, %v14180_v46  ;;  %v14595_v53 = vor.u32 %v16664_v43, %v14594_v14  ;;  %v13962_v2 = vld [vmem:[#allocation6 + $0xd8] sm:$0xf]  ;;  %v16632_v7 = vld [vmem:[#allocation6 + $0x4ec] sm:$0xf0]  ;;  %v14283_v14 = vor.u32 %v16585_v47, %v14282_v26  ;;  %v16525_v47 = vld [vmem:[#allocation6 + $0x19c] sm:$0xf] }
 0x4db   : > { %8619 = vmatpush.bf16.msrb.mxu1 %v14343_v22  ;;  %8523 = vmatpush.bf16.msrb.mxu2 %v14527_v23  ;;  %v14682_v22 = vld [vmem:[#allocation6 + $0x688] sm:$0xf]  ;;  %v16548_v23 = vld [vmem:[#allocation6 + $0x254] sm:$0xf]  ;;  %v16505_v46 = vld [vmem:[#allocation6 + $0xf4] sm:$0xf0] }
 0x4dc   : > { %v14683_v15 = vor.u32 %v16687_v8, %v14682_v22  ;;  %v14151_v4 = vor.u32 %v16548_v23, %v14148_v35  ;;  %v16707_v8 = vld [vmem:[#allocation6 + $0x74c] sm:$0xf]  ;;  %v16497_v43 = vld [vmem:[#allocation6 + $0xb4] sm:$0xf0] }
 0x4dd   : > { %8606 = vmatpush.bf16.msrb.mxu0 %v14055_v54  ;;  %8480 = vmatpush.bf16.msra.mxu3 %v14811_v19  ;;  %v14431_v54 = vor.u32 %v16619_v33, %v14428_v38  ;;  %v16656_v19 = vld [vmem:[#allocation6 + $0x5ac] sm:$0xf0]  ;;  %v14619_v38 = vor.u32 %v16671_v13, %v14618_v40  ;;  %v14250_v35 = vld [vmem:[#allocation6 + $0x318] sm:$0xf]  ;;  %v16691_v40 = vld [vmem:[#allocation6 + $0x6cc] sm:$0xf] }
 0x4de   : > { %v14563_v6 = vor.u32 %v16656_v19, %v14562_v0  ;;  %v16648_v33 = vld [vmem:[#allocation6 + $0x56c] sm:$0xf0]  ;;  %v14716_v13 = vld [vmem:[#allocation6 + $0x6e8] sm:$0xf0]  ;;  %v16553_v26 = vld [vmem:[#allocation6 + $0x274] sm:$0xf0] }
 0x4df   : > { %8620 = vmatpush.bf16.msrb.mxu1 %v14311_v39  ;;  %8524 = vmatpush.bf16.msrb.mxu2 %v14495_v25  ;;  %v16529_v39 = vld [vmem:[#allocation6 + $0x1b4] sm:$0xf0]  ;;  %v16624_v0 = vld [vmem:[#allocation6 + $0x4ac] sm:$0xf0] }
 0x4e1   : > { %8607 = vmatpush.bf16.msrb.mxu0 %v14023_v30  ;;  %8481 = vmatpush.bf16.msra.mxu3 %v14779_v55  ;;  %v14399_v30 = vor.u32 %v16611_v31, %v14396_v9  ;;  %v14119_v55 = vor.u32 %v16540_v1, %v14116_v57  ;;  %v13995_v31 = vor.u32 %v16513_v17, %v13994_v21  ;;  %v14498_v9 = vld [vmem:[#allocation6 + $0x510] sm:$0xf]  ;;  %v13898_v1 = vld [vmem:[#allocation6 + $0x58] sm:$0xf]  ;;  %v16533_v21 = vld [vmem:[#allocation6 + $0x1dc] sm:$0xf] }
 0x4e2   : > { %v14499_v22 = vor.u32 %v16640_v45, %v14498_v9  ;;  %v16489_v57 = vld [vmem:[#allocation6 + $0x74] sm:$0xf0]  ;;  %v14092_v17 = vld [vmem:[#allocation6 + $0x1f8] sm:$0xf0]  ;;  %v16660_v45 = vld [vmem:[#allocation6 + $0x5d4] sm:$0xf] }
 0x4e3   : > { %8621 = vmatpush.bf16.msrb.mxu1 %v14279_v49  ;;  %8525 = vmatpush.bf16.msrb.mxu2 %v14463_v12  ;;  %v14651_v49 = vor.u32 %v16679_v32, %v14650_v62  ;;  %v16723_v12 = vld [vmem:[#allocation6 + $0x7cc] sm:$0xf]  ;;  %v14095_v9 = vor.u32 %v16533_v21, %v14092_v17  ;;  %v14818_v21 = vld [vmem:[#allocation6 + $0x790] sm:$0xf] }
 0x4e4   : > { %v14847_v16 = vor.u32 %v16723_v12, %v14844_v18  ;;  %v14748_v62 = vld [vmem:[#allocation6 + $0x728] sm:$0xf0]  ;;  %v16616_v12 = vld [vmem:[#allocation6 + $0x46c] sm:$0xf0] }
 0x4e5   : > { %8608 = vmatpush.bf16.msrb.mxu0 %v13991_v29  ;;  %8482 = vmatpush.bf16.msra.mxu3 %v14747_v42  ;;  %v14058_v29 = vld [vmem:[#allocation6 + $0x198] sm:$0xf]  ;;  %v16720_v17 = vld [vmem:[#allocation6 + $0x7ac] sm:$0xf0] }
 0x4e6   : > { %v14059_v25 = vor.u32 %v16529_v39, %v14058_v29  ;;  %v16593_v42 = vld [vmem:[#allocation6 + $0x3b4] sm:$0xf0]  ;;  %v14467_v39 = vor.u32 %v16632_v7, %v14466_v27  ;;  %v14652_v27 = vld [vmem:[#allocation6 + $0x668] sm:$0xf0] }
 0x4e7   : > { %8622 = vmatpush.bf16.msrb.mxu1 %v14247_v48  ;;  %8526 = vmatpush.bf16.msrb.mxu2 %v14431_v54  ;;  %v14530_v48 = vld [vmem:[#allocation6 + $0x550] sm:$0xf]  ;;  %v14315_v51 = vor.u32 %v16593_v42, %v14314_v11  ;;  %v16683_v11 = vld [vmem:[#allocation6 + $0x68c] sm:$0xf] }
 0x4e8   : > { %8431 = vmatmul.bf16.vlgmr.msrb.gmra.mxu3 %v18229_v52  ;;  %v14531_v54 = vor.u32 %v16648_v33, %v14530_v48  ;;  %v14186_v48 = vld [vmem:[#allocation6 + $0x298] sm:$0xf]  ;;  %v14719_v33 = vor.u32 %v16691_v40, %v14716_v13  ;;  %v14684_v42 = vld [vmem:[#allocation6 + $0x6a8] sm:$0xf0]  ;;  %v16644_v40 = vld [vmem:[#allocation6 + $0x554] sm:$0xf] }
 0x4e9   : > { %8609 = vmatpush.bf16.msrb.mxu0 %v13959_v63  ;;  %8483 = vmatpush.bf16.msra.mxu3 %v14715_v36  ;;  %v14026_v63 = vld [vmem:[#allocation6 + $0x158] sm:$0xf]  ;;  %v14815_v36 = vor.u32 %v16715_v44, %v14812_v50  ;;  %v14370_v50 = vld [vmem:[#allocation6 + $0x410] sm:$0xf]  ;;  %v14532_v13 = vld [vmem:[#allocation6 + $0x570] sm:$0xf0] }
 0x4ea   : > { %v14027_v20 = vor.u32 %v16521_v61, %v14026_v63  ;;  %v14218_v61 = vld [vmem:[#allocation6 + $0x2d8] sm:$0xf] }
 0x4eb   : > { %8623 = vmatpush.bf16.msrb.mxu1 %v14215_v56  ;;  %8527 = vmatpush.bf16.msrb.mxu2 %v14399_v30  ;;  %v8334_v56 = vpop.f32.mrf.mxu0 }
 0x4ed   : > { %8610 = vmatpush.bf16.msrb.mxu0 %v13927_v10  ;;  %8484 = vmatpush.bf16.msra.mxu3 %v14683_v15  ;;  %v14347_v10 = vor.u32 %v16601_v28, %v14346_v5  ;;  %v16577_v15 = vld [vmem:[#allocation6 + $0x334] sm:$0xf0] }
 0x4ee   : > { %v16569_v5 = vld [vmem:[#allocation6 + $0x2f4] sm:$0xf0] }
 0x4ef   : > { %8624 = vmatpush.bf16.msrb.mxu1 %v14183_v37  ;;  %8528 = vmatpush.bf16.msrb.mxu2 %v14367_v41  ;;  %v13963_v37 = vor.u32 %v16505_v46, %v13962_v2  ;;  %v16699_v41 = vld [vmem:[#allocation6 + $0x70c] sm:$0xf]  ;;  %v14219_v18 = vor.u32 %v16569_v5, %v14218_v61  ;;  %v14154_v2 = vld [vmem:[#allocation6 + $0x258] sm:$0xf] }
 0x4f1   : > { %8611 = vmatpush.bf16.msrb.mxu0 %v13895_v34  ;;  %8485 = vmatpush.bf16.msra.mxu3 %v14651_v49  ;;  %v18236_v34 = vld [vmem:[#allocation7] sm:$0xff]  ;;  %v14751_v49 = vor.u32 %v16699_v41, %v14748_v62  ;;  %v16517_v41 = vld [vmem:[#allocation6 + $0x15c] sm:$0xf] }
 0x4f2   : > { %8529 = vmatmul.bf16.vlgmr.msrb.gmra.mxu2 %v18191_v24  ;;  %v7029_v30 = vperm.slane %v18236_v34, 0  ;;  %v14028_v62 = vld [vmem:[#allocation6 + $0x178] sm:$0xf0] }
 0x4f3   : > { %8577 = vmatpush.bf16.msra.mxu2 %v14595_v53  ;;  %8625 = vmatpush.bf16.msrb.mxu1 %v14151_v4  ;;  %v14434_v4 = vld [vmem:[#allocation6 + $0x490] sm:$0xf]  ;;  %v18245_v63 = vpop.f32.mrf.mxu0 }
 0x4f4   : > { %v8335_v29 = vadd.f32 %v8334_v56, %v7029_v30  ;;  %v14435_v28 = vor.u32 %v16624_v0, %v14434_v4  ;;  %v16608_v56 = vld [vmem:[#allocation6 + $0x42c] sm:$0xf0]  ;;  %v16597_v4 = vld [vmem:[#allocation6 + $0x3dc] sm:$0xf] }
 0x4f5   : > { %8612 = vmatpush.bf16.msrb.mxu0 %v13863_v60  ;;  %8486 = vmatpush.bf16.msra.mxu3 %v14619_v38  ;;  %v14780_v60 = vld [vmem:[#allocation6 + $0x768] sm:$0xf0]  ;;  %v16561_v38 = vld [vmem:[#allocation6 + $0x2b4] sm:$0xf0]  ;;  %v14348_v0 = vld [vmem:[#allocation6 + $0x3f8] sm:$0xf0] }
 0x4f6   : > { %v14783_v23 = vor.u32 %v16707_v8, %v14780_v60  ;;  %v8348_v32 = vpop.f32.mrf.mxu1  ;;  %v7030_v8 = vperm.slane %v18236_v34, 1  ;;  %v14371_v60 = vor.u32 %v16608_v56, %v14370_v50  ;;  %v16501_v50 = vld [vmem:[#allocation6 + $0xdc] sm:$0xf] }
 0x4f7   : > { %8578 = vmatpush.bf16.msra.mxu2 %v14563_v6  ;;  %8626 = vmatpush.bf16.msrb.mxu1 %v14119_v55  ;;  %v18243_v19 = vadd.f32 %v8348_v32, %v8335_v29  ;;  %v13899_v6 = vor.u32 %v16489_v57, %v13898_v1  ;;  %v14402_v55 = vld [vmem:[#allocation6 + $0x450] sm:$0xf]  ;;  %v13964_v56 = vld [vmem:[#allocation6 + $0xf8] sm:$0xf0] }
 0x4f8   : > { %8613 = vmatmul.bf16.vlgmr.msrb.gmra.mxu0 %v18122_v58  ;;  %8487 = vmatmul.bf16.vlgmr.msra.gmra.mxu3 %v18229_v52  ;;  %v14850_v57 = vld [vmem:[#allocation6 + $0x7d0] sm:$0xf] }
 0x4f9   : > { %8661 = vmatpush.bf16.msra.mxu0 %v14091_v3  ;;  %8535 = vmatpush.bf16.msrb.mxu3 %v14847_v16  ;;  %v13930_v3 = vld [vmem:[#allocation6 + $0x98] sm:$0xf]  ;;  %v14403_v16 = vor.u32 %v16616_v12, %v14402_v55  ;;  %v14351_v55 = vor.u32 %v16597_v4, %v14348_v0  ;;  %v16509_v12 = vld [vmem:[#allocation6 + $0x11c] sm:$0xf] }
 0x4fa   : > { %8627 = vmatmul.bf16.vlgmr.msrb.gmra.mxu1 %v18152_v59  ;;  %v13931_v53 = vor.u32 %v16497_v43, %v13930_v3  ;;  %v14155_v3 = vor.u32 %v16553_v26, %v14154_v2  ;;  %v13967_v26 = vor.u32 %v16501_v50, %v13964_v56  ;;  %v13900_v4 = vld [vmem:[#allocation6 + $0x78] sm:$0xf0]  ;;  %v14372_v50 = vld [vmem:[#allocation6 + $0x430] sm:$0xf0] }
 0x4fb   : > { %8675 = vmatpush.bf16.msra.mxu1 %v14347_v10  ;;  %8579 = vmatpush.bf16.msra.mxu2 %v14531_v54  ;;  %v16481_v10 = vld [vmem:[#allocation6 + $0x34] sm:$0xf0]  ;;  %v8390_v46 = vpop.f32.mrf.mxu0 }
 0x4fc   : > { %v8391_v32 = vadd.f32 %v8390_v46, %v7030_v8  ;;  %v14786_v46 = vld [vmem:[#allocation6 + $0x750] sm:$0xf] }
 0x4fd   : > { %8662 = vmatpush.bf16.msra.mxu0 %v14059_v25  ;;  %8536 = vmatpush.bf16.msrb.mxu3 %v14815_v36  ;;  %v14251_v25 = vor.u32 %v16577_v15, %v14250_v35  ;;  %v14687_v36 = vor.u32 %v16683_v11, %v14684_v42  ;;  %v16667_v35 = vld [vmem:[#allocation6 + $0x60c] sm:$0xf]  ;;  %v14122_v15 = vld [vmem:[#allocation6 + $0x218] sm:$0xf]  ;;  %v16636_v11 = vld [vmem:[#allocation6 + $0x514] sm:$0xf] }
 0x4fe   : > { %v18247_v54 = vpop.f32.mrf.mxu1  ;;  %v14500_v42 = vld [vmem:[#allocation6 + $0x530] sm:$0xf0] }
 0x4ff   : > { %8676 = vmatpush.bf16.msra.mxu1 %v14315_v51  ;;  %8580 = vmatpush.bf16.msra.mxu2 %v14499_v22  ;;  %v14596_v51 = vld [vmem:[#allocation6 + $0x5f0] sm:$0xf0]  ;;  %v14060_v22 = vld [vmem:[#allocation6 + $0x1b8] sm:$0xf0]  ;;  %v14503_v2 = vor.u32 %v16636_v11, %v14500_v42  ;;  %v16688_v11 = vld [vmem:[#allocation6 + $0x6ac] sm:$0xf0] }
 0x500   : > { %v14599_v7 = vor.u32 %v16660_v45, %v14596_v51  ;;  %v14063_v43 = vor.u32 %v16525_v47, %v14060_v22  ;;  %v14284_v45 = vld [vmem:[#allocation6 + $0x378] sm:$0xf0]  ;;  %v16628_v47 = vld [vmem:[#allocation6 + $0x4d4] sm:$0xf] }
 0x501   : > { %8663 = vmatpush.bf16.msra.mxu0 %v14027_v20  ;;  %8537 = vmatpush.bf16.msrb.mxu3 %v14783_v23  ;;  %v13866_v20 = vld [vmem:[#allocation6 + $0x18] sm:$0xf]  ;;  %v14564_v23 = vld [vmem:[#allocation6 + $0x5b0] sm:$0xf0] }
 0x502   : > { %v13867_v44 = vor.u32 %v16481_v10, %v13866_v20  ;;  %v16589_v10 = vld [vmem:[#allocation6 + $0x39c] sm:$0xf]  ;;  %v14468_v22 = vld [vmem:[#allocation6 + $0x4f0] sm:$0xf0] }
 0x503   : > { %8677 = vmatpush.bf16.msra.mxu1 %v14283_v14  ;;  %8581 = vmatpush.bf16.msra.mxu2 %v14467_v39  ;;  %v16652_v14 = vld [vmem:[#allocation6 + $0x594] sm:$0xf]  ;;  %v16545_v39 = vld [vmem:[#allocation6 + $0x234] sm:$0xf0] }
 0x504   : > { %v14567_v1 = vor.u32 %v16652_v14, %v14564_v23  ;;  %v14123_v5 = vor.u32 %v16545_v39, %v14122_v15  ;;  %v14754_v15 = vld [vmem:[#allocation6 + $0x710] sm:$0xf] }
 0x505   : > { %8664 = vmatpush.bf16.msra.mxu0 %v13995_v31  ;;  %8538 = vmatpush.bf16.msrb.mxu3 %v14751_v49  ;;  %v14187_v31 = vor.u32 %v16561_v38, %v14186_v48  ;;  %v16728_v49 = vld [vmem:[#allocation6 + $0x7ec] sm:$0xf0]  ;;  %v14316_v48 = vld [vmem:[#allocation6 + $0x3b8] sm:$0xf0]  ;;  %v14535_v38 = vor.u32 %v16644_v40, %v14532_v13 }
 0x506   : > { %v14851_v20 = vor.u32 %v16728_v49, %v14850_v57  ;;  %v14220_v57 = vld [vmem:[#allocation6 + $0x2f8] sm:$0xf0]  ;;  %v16696_v40 = vld [vmem:[#allocation6 + $0x6ec] sm:$0xf0] }
 0x507   : > { %8678 = vmatpush.bf16.msra.mxu1 %v14251_v25  ;;  %8582 = vmatpush.bf16.msra.mxu2 %v14435_v28  ;;  %v8404_v25 = vpop.f32.mrf.mxu1  ;;  %v14031_v28 = vor.u32 %v16517_v41, %v14028_v62  ;;  %v16620_v41 = vld [vmem:[#allocation6 + $0x494] sm:$0xf] }
 0x508   : > { %v18253_v61 = vadd.f32 %v8404_v25, %v8391_v32  ;;  %v14436_v62 = vld [vmem:[#allocation6 + $0x4b0] sm:$0xf0] }
 0x509   : > { %8665 = vmatpush.bf16.msra.mxu0 %v13963_v37  ;;  %8539 = vmatpush.bf16.msrb.mxu3 %v14719_v33  ;;  %v16675_v37 = vld [vmem:[#allocation6 + $0x64c] sm:$0xf]  ;;  %v18256_v33 = vpop.f32.mrf.mxu0 }
 0x50a   : > { %v14655_v29 = vor.u32 %v16675_v37, %v14652_v27  ;;  %v16493_v37 = vld [vmem:[#allocation6 + $0x9c] sm:$0xf] }
 0x50b   : > { %8679 = vmatpush.bf16.msra.mxu1 %v14219_v18  ;;  %8583 = vmatpush.bf16.msra.mxu2 %v14403_v16  ;;  %v13996_v18 = vld [vmem:[#allocation6 + $0x138] sm:$0xf0] }
 0x50c   : > { %v13999_v16 = vor.u32 %v16509_v12, %v13996_v18  ;;  %v13932_v27 = vld [vmem:[#allocation6 + $0xb8] sm:$0xf0]  ;;  %v14404_v12 = vld [vmem:[#allocation6 + $0x470] sm:$0xf0] }
 0x50d   : > { %8666 = vmatpush.bf16.msra.mxu0 %v13931_v53  ;;  %8540 = vmatpush.bf16.msrb.mxu3 %v14687_v36  ;;  %v14620_v53 = vld [vmem:[#allocation6 + $0x628] sm:$0xf0]  ;;  %v16712_v36 = vld [vmem:[#allocation6 + $0x76c] sm:$0xf0]  ;;  %v13935_v39 = vor.u32 %v16493_v37, %v13932_v27  ;;  %v14570_v37 = vld [vmem:[#allocation6 + $0x598] sm:$0xf] }
 0x50e   : > { %v14787_v14 = vor.u32 %v16712_v36, %v14786_v46  ;;  %v14156_v46 = vld [vmem:[#allocation6 + $0x278] sm:$0xf0]  ;;  %v16657_v27 = vld [vmem:[#allocation6 + $0x5b4] sm:$0xf0] }
 0x50f   : > { %8680 = vmatpush.bf16.msra.mxu1 %v14187_v31  ;;  %8584 = vmatpush.bf16.msra.mxu2 %v14371_v60  ;;  %v14819_v31 = vor.u32 %v16720_v17, %v14818_v21  ;;  %v18259_v51 = vpop.f32.mrf.mxu1  ;;  %v14188_v21 = vld [vmem:[#allocation6 + $0x2b8] sm:$0xf0] }
 0x511   : > { %8667 = vmatpush.bf16.msra.mxu0 %v13899_v6  ;;  %8541 = vmatpush.bf16.msrb.mxu3 %v14655_v29  ;;  %v14623_v6 = vor.u32 %v16667_v35, %v14620_v53  ;;  %v14471_v35 = vor.u32 %v16628_v47, %v14468_v22  ;;  %v16704_v29 = vld [vmem:[#allocation6 + $0x72c] sm:$0xf0]  ;;  %v16485_v53 = vld [vmem:[#allocation6 + $0x5c] sm:$0xf] }
 0x512   : > { %8585 = vmatmul.bf16.vlgmr.msra.gmra.mxu2 %v18191_v24  ;;  %v14755_v25 = vor.u32 %v16704_v29, %v14754_v15  ;;  %v16680_v47 = vld [vmem:[#allocation6 + $0x66c] sm:$0xf0]  ;;  %v14571_v15 = vor.u32 %v16657_v27, %v14570_v37  ;;  %v16724_v29 = vld [vmem:[#allocation6 + $0x7d4] sm:$0xf]  ;;  %v14378_v27 = vld [vmem:[#allocation6 + $0x418] sm:$0xf] }
 0x513   : > { %8633 = vmatpush.bf16.msrb.mxu2 %v14599_v7  ;;  %8681 = vmatpush.bf16.msra.mxu1 %v14155_v3  ;;  %v7031_v7 = vperm.slane %v18236_v34, 2  ;;  %v16573_v3 = vld [vmem:[#allocation6 + $0x31c] sm:$0xf]  ;;  %v14692_v37 = vld [vmem:[#allocation6 + $0x6b0] sm:$0xf0] }
 0x515   : > { %8668 = vmatpush.bf16.msra.mxu0 %v13867_v44  ;;  %8542 = vmatpush.bf16.msrb.mxu3 %v14623_v6  ;;  %v14319_v44 = vor.u32 %v16589_v10, %v14316_v48  ;;  %v8446_v23 = vpop.f32.mrf.mxu0  ;;  %v13903_v6 = vor.u32 %v16485_v53, %v13900_v4  ;;  %v13868_v10 = vld [vmem:[#allocation6 + $0x38] sm:$0xf0] }
 0x516   : > { %v8447_v0 = vadd.f32 %v8446_v23, %v7031_v7  ;;  %v14626_v23 = vld [vmem:[#allocation6 + $0x610] sm:$0xf] }
 0x517   : > { %8634 = vmatpush.bf16.msrb.mxu2 %v14567_v1  ;;  %8682 = vmatpush.bf16.msra.mxu1 %v14123_v5  ;;  %v16565_v1 = vld [vmem:[#allocation6 + $0x2dc] sm:$0xf]  ;;  %v8460_v49 = vpop.f32.mrf.mxu1  ;;  %v14439_v5 = vor.u32 %v16620_v41, %v14436_v62  ;;  %v14538_v62 = vld [vmem:[#allocation6 + $0x558] sm:$0xf] }
 0x518   : > { %8669 = vmatmul.bf16.vlgmr.msra.gmra.mxu0 %v18122_v58  ;;  %8543 = vmatmul.bf16.vlgmr.msrb.gmra.mxu3 %v18229_v52  ;;  %v18265_v13 = vadd.f32 %v8460_v49, %v8447_v0  ;;  %v14223_v18 = vor.u32 %v16565_v1, %v14220_v57  ;;  %v14820_v1 = vld [vmem:[#allocation6 + $0x7b0] sm:$0xf0]  ;;  %v14506_v57 = vld [vmem:[#allocation6 + $0x518] sm:$0xf] }
 0x519   : > { %8717 = vmatpush.bf16.msrb.mxu0 %v14095_v9  ;;  %8591 = vmatpush.bf16.msra.mxu3 %v14851_v20  ;;  %v16581_v9 = vld [vmem:[#allocation6 + $0x35c] sm:$0xf]  ;;  %v16641_v49 = vld [vmem:[#allocation6 + $0x534] sm:$0xf0] }
 0x51a   : > { %8683 = vmatmul.bf16.vlgmr.msra.gmra.mxu1 %v18152_v59  ;;  %v14287_v60 = vor.u32 %v16581_v9, %v14284_v45  ;;  %v16477_v20 = vld [vmem:[#allocation6 + $0x1c] sm:$0xf]  ;;  %v16665_v9 = vld [vmem:[#allocation6 + $0x5f4] sm:$0xf0] }
 0x51b   : > { %8731 = vmatpush.bf16.msrb.mxu1 %v14351_v55  ;;  %8635 = vmatpush.bf16.msrb.mxu2 %v14535_v38  ;;  %v16612_v55 = vld [vmem:[#allocation6 + $0x454] sm:$0xf]  ;;  %v16557_v38 = vld [vmem:[#allocation6 + $0x29c] sm:$0xf]  ;;  %v13871_v42 = vor.u32 %v16477_v20, %v13868_v10  ;;  %v7032_v10 = vperm.slane %v18236_v34, 3 }
 0x51c   : > { %v14407_v17 = vor.u32 %v16612_v55, %v14404_v12  ;;  %v14191_v56 = vor.u32 %v16557_v38, %v14188_v21  ;;  %v14788_v55 = vld [vmem:[#allocation6 + $0x770] sm:$0xf0]  ;;  %v14474_v12 = vld [vmem:[#allocation6 + $0x4d8] sm:$0xf]  ;;  %v15234_v34 = vld [vmem:[#allocation12 + $0xe0] sm:$0xf] }
 0x51d   : > { %8718 = vmatpush.bf16.msrb.mxu0 %v14063_v43  ;;  %8592 = vmatpush.bf16.msra.mxu3 %v14819_v31  ;;  %v14252_v43 = vld [vmem:[#allocation6 + $0x338] sm:$0xf0]  ;;  %v14602_v31 = vld [vmem:[#allocation6 + $0x5d8] sm:$0xf]  ;;  %v18268_v53 = vpop.f32.mrf.mxu0  ;;  %v16700_v21 = vld [vmem:[#allocation6 + $0x714] sm:$0xf] }
 0x51e   : > { %v14255_v32 = vor.u32 %v16573_v3, %v14252_v43  ;;  %v14603_v22 = vor.u32 %v16665_v9, %v14602_v31  ;;  %v16541_v3 = vld [vmem:[#allocation6 + $0x21c] sm:$0xf]  ;;  %v16692_v9 = vld [vmem:[#allocation6 + $0x6d4] sm:$0xf] }
 0x51f   : > { %8732 = vmatpush.bf16.msrb.mxu1 %v14319_v44  ;;  %8636 = vmatpush.bf16.msrb.mxu2 %v14503_v2  ;;  %v16604_v44 = vld [vmem:[#allocation6 + $0x414] sm:$0xf]  ;;  %v16549_v2 = vld [vmem:[#allocation6 + $0x25c] sm:$0xf] }
 0x520   : > { %v14375_v36 = vor.u32 %v16604_v44, %v14372_v50  ;;  %v14124_v43 = vld [vmem:[#allocation6 + $0x238] sm:$0xf0] }
 0x521   : > { %8719 = vmatpush.bf16.msrb.mxu0 %v14031_v28  ;;  %8593 = vmatpush.bf16.msra.mxu3 %v14787_v14  ;;  %v14722_v28 = vld [vmem:[#allocation6 + $0x6d0] sm:$0xf]  ;;  %v14127_v41 = vor.u32 %v16541_v3, %v14124_v43  ;;  %v16661_v3 = vld [vmem:[#allocation6 + $0x5dc] sm:$0xf] }
 0x522   : > { %v14723_v48 = vor.u32 %v16696_v40, %v14722_v28  ;;  %v18271_v28 = vpop.f32.mrf.mxu1  ;;  %v14507_v40 = vor.u32 %v16641_v49, %v14506_v57  ;;  %v14604_v43 = vld [vmem:[#allocation6 + $0x5f8] sm:$0xf0]  ;;  %v14858_v49 = vld [vmem:[#allocation6 + $0x7d8] sm:$0xf] }
 0x523   : > { %8733 = vmatpush.bf16.msrb.mxu1 %v14287_v60  ;;  %8637 = vmatpush.bf16.msrb.mxu2 %v14471_v35  ;;  %v14159_v60 = vor.u32 %v16549_v2, %v14156_v46  ;;  %v16672_v35 = vld [vmem:[#allocation6 + $0x62c] sm:$0xf0]  ;;  %v14410_v46 = vld [vmem:[#allocation6 + $0x458] sm:$0xf] }
 0x524   : > { %v14627_v4 = vor.u32 %v16672_v35, %v14626_v23 }
 0x525   : > { %8720 = vmatpush.bf16.msrb.mxu0 %v13999_v16  ;;  %8594 = vmatpush.bf16.msra.mxu3 %v14755_v25  ;;  %v14690_v16 = vld [vmem:[#allocation6 + $0x690] sm:$0xf] }
 0x526   : > { %v14691_v45 = vor.u32 %v16688_v11, %v14690_v16  ;;  %v14442_v16 = vld [vmem:[#allocation6 + $0x498] sm:$0xf] }
 0x527   : > { %8734 = vmatpush.bf16.msrb.mxu1 %v14255_v32  ;;  %8638 = vmatpush.bf16.msrb.mxu2 %v14439_v5  ;;  %v16649_v32 = vld [vmem:[#allocation6 + $0x574] sm:$0xf0] }
 0x528   : > { %v14539_v25 = vor.u32 %v16649_v32, %v14538_v62  ;;  %v16625_v11 = vld [vmem:[#allocation6 + $0x4b4] sm:$0xf0]  ;;  %v14607_v32 = vor.u32 %v16661_v3, %v14604_v43  ;;  %v14412_v3 = vld [vmem:[#allocation6 + $0x478] sm:$0xf0] }
 0x529   : > { %8721 = vmatpush.bf16.msrb.mxu0 %v13967_v26  ;;  %8595 = vmatpush.bf16.msra.mxu3 %v14723_v48  ;;  %v14658_v26 = vld [vmem:[#allocation6 + $0x650] sm:$0xf]  ;;  %v14443_v31 = vor.u32 %v16625_v11, %v14442_v16 }
 0x52a   : > { %v14659_v14 = vor.u32 %v16680_v47, %v14658_v26 }
 0x52b   : > { %8735 = vmatpush.bf16.msrb.mxu1 %v14223_v18  ;;  %8639 = vmatpush.bf16.msrb.mxu2 %v14407_v17  ;;  %v16633_v18 = vld [vmem:[#allocation6 + $0x4f4] sm:$0xf0]  ;;  %v14756_v17 = vld [vmem:[#allocation6 + $0x730] sm:$0xf0] }
 0x52c   : > { %v14475_v38 = vor.u32 %v16633_v18, %v14474_v12  ;;  %v14759_v50 = vor.u32 %v16700_v21, %v14756_v17  ;;  %v16637_v21 = vld [vmem:[#allocation6 + $0x51c] sm:$0xf] }
 0x52d   : > { %8722 = vmatpush.bf16.msrb.mxu0 %v13935_v39  ;;  %8596 = vmatpush.bf16.msra.mxu3 %v14691_v45  ;;  %v14852_v39 = vld [vmem:[#allocation6 + $0x7f0] sm:$0xf0]  ;;  %v14508_v17 = vld [vmem:[#allocation6 + $0x538] sm:$0xf0] }
 0x52e   : > { %v14855_v0 = vor.u32 %v16724_v29, %v14852_v39  ;;  %v14724_v45 = vld [vmem:[#allocation6 + $0x6f0] sm:$0xf0]  ;;  %v14511_v11 = vor.u32 %v16637_v21, %v14508_v17  ;;  %v14796_v21 = vld [vmem:[#allocation6 + $0x778] sm:$0xf0] }
 0x52f   : > { %8736 = vmatpush.bf16.msrb.mxu1 %v14191_v56  ;;  %8640 = vmatpush.bf16.msrb.mxu2 %v14375_v36  ;;  %v16617_v36 = vld [vmem:[#allocation6 + $0x474] sm:$0xf0]  ;;  %v14727_v26 = vor.u32 %v16692_v9, %v14724_v45  ;;  %v16676_v39 = vld [vmem:[#allocation6 + $0x654] sm:$0xf] }
 0x530   : > { %v14762_v45 = vld [vmem:[#allocation6 + $0x718] sm:$0xf] }
 0x531   : > { %8723 = vmatpush.bf16.msrb.mxu0 %v13903_v6  ;;  %8597 = vmatpush.bf16.msra.mxu3 %v14659_v14  ;;  %v16708_v6 = vld [vmem:[#allocation6 + $0x754] sm:$0xf] }
 0x532   : > { %8641 = vmatmul.bf16.vlgmr.msrb.gmra.mxu2 %v18191_v24  ;;  %v14791_v48 = vor.u32 %v16708_v6, %v14788_v55  ;;  %v16645_v6 = vld [vmem:[#allocation6 + $0x55c] sm:$0xf] }
 0x533   : > { %8689 = vmatpush.bf16.msra.mxu2 %v14603_v22  ;;  %8737 = vmatpush.bf16.msrb.mxu1 %v14159_v60  ;;  %v14411_v22 = vor.u32 %v16617_v36, %v14410_v46  ;;  %v16684_v60 = vld [vmem:[#allocation6 + $0x694] sm:$0xf]  ;;  %v14540_v55 = vld [vmem:[#allocation6 + $0x578] sm:$0xf0]  ;;  %v16705_v46 = vld [vmem:[#allocation6 + $0x734] sm:$0xf0] }
 0x534   : > { %v14695_v35 = vor.u32 %v16684_v60, %v14692_v37  ;;  %v16621_v36 = vld [vmem:[#allocation6 + $0x49c] sm:$0xf]  ;;  %v14730_v60 = vld [vmem:[#allocation6 + $0x6d8] sm:$0xf] }
 0x535   : > { %8724 = vmatpush.bf16.msrb.mxu0 %v13871_v42  ;;  %8598 = vmatpush.bf16.msra.mxu3 %v14627_v4  ;;  %v8502_v20 = vpop.f32.mrf.mxu0  ;;  %v8362_v42 = vpop.f32.mrf.mxu2  ;;  %v16653_v4 = vld [vmem:[#allocation6 + $0x59c] sm:$0xf]  ;;  %v16697_v37 = vld [vmem:[#allocation6 + $0x6f4] sm:$0xf0] }
 0x536   : > { %v18277_v44 = vadd.f32 %v8362_v42, %v18243_v19  ;;  %v16609_v19 = vld [vmem:[#allocation6 + $0x434] sm:$0xf0] }
 0x537   : > { %8690 = vmatpush.bf16.msra.mxu2 %v14571_v15  ;;  %8738 = vmatpush.bf16.msrb.mxu1 %v14127_v41  ;;  %v8516_v56 = vpop.f32.mrf.mxu1  ;;  %v14379_v29 = vor.u32 %v16609_v19, %v14378_v27  ;;  %v14660_v41 = vld [vmem:[#allocation6 + $0x670] sm:$0xf0]  ;;  %v14794_v42 = vld [vmem:[#allocation6 + $0x758] sm:$0xf]  ;;  %v16613_v19 = vld [vmem:[#allocation6 + $0x45c] sm:$0xf] }
 0x538   : > { %8725 = vmatmul.bf16.vlgmr.msrb.gmra.mxu0 %v18122_v58  ;;  %v16716_v58 = vld [vmem:[#allocation6 + $0x794] sm:$0xf]  ;;  %8599 = vmatmul.bf16.vlgmr.msra.gmra.mxu3 %v18229_v52 }
 0x539   : > { %8647 = vmatpush.bf16.msrb.mxu3 %v14855_v0  ;;  %v14823_v5 = vor.u32 %v16716_v58, %v14820_v1  ;;  %v14572_v0 = vld [vmem:[#allocation6 + $0x5b8] sm:$0xf0]  ;;  %v16668_v58 = vld [vmem:[#allocation6 + $0x614] sm:$0xf] }
 0x53a   : > { %8739 = vmatmul.bf16.vlgmr.msrb.gmra.mxu1 %v18152_v59  ;;  %v8503_v59 = vadd.f32 %v8502_v20, %v7032_v10  ;;  %v14628_v1 = vld [vmem:[#allocation6 + $0x630] sm:$0xf0]  ;;  %v14575_v57 = vor.u32 %v16653_v4, %v14572_v0 }
 0x53b   : > { %8691 = vmatpush.bf16.msra.mxu2 %v14539_v25  ;;  %v14663_v25 = vor.u32 %v16676_v39, %v14660_v41  ;;  %v14631_v18 = vor.u32 %v16668_v58, %v14628_v1  ;;  %v16605_v41 = vld [vmem:[#allocation6 + $0x41c] sm:$0xf]  ;;  %v14666_v58 = vld [vmem:[#allocation6 + $0x658] sm:$0xf] }
 0x53c   : > { %v18279_v2 = vadd.f32 %v8516_v56, %v8503_v59  ;;  %v16713_v59 = vld [vmem:[#allocation6 + $0x774] sm:$0xf0]  ;;  %v14476_v56 = vld [vmem:[#allocation6 + $0x4f8] sm:$0xf0] }
 0x53d   : > { %8648 = vmatpush.bf16.msrb.mxu3 %v14823_v5  ;;  %v8504_v47 = vpop.f32.mrf.mxu0  ;;  %v18281_v14 = vpop.f32.mrf.mxu2  ;;  %v16729_v5 = vld [vmem:[#allocation6 + $0x7f4] sm:$0xf0] }
 0x53e   : > { %v8505_v23 = vadd.f32 %v8504_v47, %v7032_v10  ;;  %v14859_v20 = vor.u32 %v16729_v5, %v14858_v49  ;;  %v14543_v10 = vor.u32 %v16645_v6, %v14540_v55  ;;  %v14763_v47 = vor.u32 %v16705_v46, %v14762_v45  ;;  %v16681_v1 = vld [vmem:[#allocation6 + $0x674] sm:$0xf0]  ;;  %v14860_v6 = vld [vmem:[#allocation6 + $0x7f8] sm:$0xf0] }
 0x53f   : > { %8692 = vmatpush.bf16.msra.mxu2 %v14507_v40  ;;  %v8518_v15 = vpop.f32.mrf.mxu1  ;;  %v16673_v49 = vld [vmem:[#allocation6 + $0x634] sm:$0xf0] }
 0x540   : > { %v18283_v62 = vadd.f32 %v8518_v15, %v8505_v23  ;;  %v14731_v23 = vor.u32 %v16697_v37, %v14730_v60  ;;  %v14698_v15 = vld [vmem:[#allocation6 + $0x698] sm:$0xf]  ;;  %v14668_v60 = vld [vmem:[#allocation6 + $0x678] sm:$0xf0] }
 0x541   : > { %8649 = vmatpush.bf16.msrb.mxu3 %v14791_v48  ;;  %v14826_v48 = vld [vmem:[#allocation6 + $0x798] sm:$0xf] }
 0x543   : > { %8693 = vmatpush.bf16.msra.mxu2 %v14475_v38  ;;  %v16721_v38 = vld [vmem:[#allocation6 + $0x7b4] sm:$0xf0] }
 0x544   : > { %v14827_v16 = vor.u32 %v16721_v38, %v14826_v48  ;;  %v16709_v38 = vld [vmem:[#allocation6 + $0x75c] sm:$0xf] }
 0x545   : > { %8650 = vmatpush.bf16.msrb.mxu3 %v14759_v50  ;;  %v8418_v40 = vpop.f32.mrf.mxu2  ;;  %v16629_v50 = vld [vmem:[#allocation6 + $0x4dc] sm:$0xf] }
 0x546   : > { %v18286_v12 = vadd.f32 %v8418_v40, %v18253_v61  ;;  %v14479_v9 = vor.u32 %v16629_v50, %v14476_v56  ;;  %v16725_v40 = vld [vmem:[#allocation6 + $0x7dc] sm:$0xf] }
 0x547   : > { %8694 = vmatpush.bf16.msra.mxu2 %v14443_v31  ;;  %v14795_v31 = vor.u32 %v16713_v59, %v14794_v42  ;;  %v16701_v42 = vld [vmem:[#allocation6 + $0x71c] sm:$0xf] }
 0x548   : > { %v16693_v56 = vld [vmem:[#allocation6 + $0x6dc] sm:$0xf] }
 0x549   : > { %8651 = vmatpush.bf16.msrb.mxu3 %v14727_v26  ;;  %v14444_v26 = vld [vmem:[#allocation6 + $0x4b8] sm:$0xf0] }
 0x54b   : > { %8695 = vmatpush.bf16.msra.mxu2 %v14411_v22  ;;  %v14447_v22 = vor.u32 %v16621_v36, %v14444_v26  ;;  %v16685_v36 = vld [vmem:[#allocation6 + $0x69c] sm:$0xf] }
 0x54c   : > { %v14700_v26 = vld [vmem:[#allocation6 + $0x6b8] sm:$0xf0] }
 0x54d   : > { %8652 = vmatpush.bf16.msrb.mxu3 %v14695_v35  ;;  %v18290_v61 = vpop.f32.mrf.mxu2  ;;  %v14415_v35 = vor.u32 %v16613_v19, %v14412_v3 }
 0x54f   : > { %8696 = vmatpush.bf16.msra.mxu2 %v14379_v29  ;;  %v16689_v29 = vld [vmem:[#allocation6 + $0x6b4] sm:$0xf0] }
 0x550   : > { %v14699_v0 = vor.u32 %v16689_v29, %v14698_v15  ;;  %v16669_v15 = vld [vmem:[#allocation6 + $0x61c] sm:$0xf] }
 0x551   : > { %8653 = vmatpush.bf16.msrb.mxu3 %v14663_v25  ;;  %v14636_v29 = vld [vmem:[#allocation6 + $0x638] sm:$0xf0] }
 0x552   : > { %8697 = vmatmul.bf16.vlgmr.msra.gmra.mxu2 %v18191_v24 }
 0x553   : > { %8745 = vmatpush.bf16.msrb.mxu2 %v14607_v32  ;;  %v14380_v32 = vld [vmem:[#allocation6 + $0x438] sm:$0xf0] }
 0x554   : > { %v14383_v25 = vor.u32 %v16605_v41, %v14380_v32 }
 0x555   : > { %8654 = vmatpush.bf16.msrb.mxu3 %v14631_v18  ;;  %v8474_v27 = vpop.f32.mrf.mxu2  ;;  %v16717_v18 = vld [vmem:[#allocation6 + $0x79c] sm:$0xf] }
 0x556   : > { %v8475_v43 = vadd.f32 %v8474_v27, %v18265_v13  ;;  %v14634_v13 = vld [vmem:[#allocation6 + $0x618] sm:$0xf] }
 0x557   : > { %8746 = vmatpush.bf16.msrb.mxu2 %v14575_v57  ;;  %v14667_v57 = vor.u32 %v16681_v1, %v14666_v58  ;;  %v14635_v55 = vor.u32 %v16673_v49, %v14634_v13  ;;  %v14978_v1 = vld [vmem:[#allocation9 + $0xe0] sm:$0xf]  ;;  %v16758_v13 = vld [vmem:[#allocation9 + $0xe4] sm:$0xf] }
 0x558   : > { %8655 = vmatmul.bf16.vlgmr.msrb.gmra.mxu3 %v18229_v52 }
 0x559   : > { %8703 = vmatpush.bf16.msra.mxu3 %v14859_v20  ;;  %v14828_v20 = vld [vmem:[#allocation6 + $0x7b8] sm:$0xf0] }
 0x55b   : > { %8747 = vmatpush.bf16.msrb.mxu2 %v14543_v10  ;;  %v8376_v39 = vpop.f32.mrf.mxu3  ;;  %v14831_v10 = vor.u32 %v16717_v18, %v14828_v20  ;;  %v14964_v20 = vld [vmem:[#allocation9 + $0xd0] sm:$0xf0] }
 0x55c   : > { %v8377_v4 = vadd.f32 %v8376_v39, %v18277_v44  ;;  %v14863_v44 = vor.u32 %v16725_v40, %v14860_v6  ;;  %v14639_v39 = vor.u32 %v16669_v15, %v14636_v29  ;;  %v14980_v40 = vld [vmem:[#allocation9 + $0xf0] sm:$0xf0] }
 0x55d   : > { %8704 = vmatpush.bf16.msra.mxu3 %v14827_v16  ;;  %v18297_v17 = vpop.f32.mrf.mxu2  ;;  %v14983_v6 = vor.u32 %v16758_v13, %v14980_v40  ;;  %v14900_v15 = vld [vmem:[#allocation9 + $0x50] sm:$0xf0]  ;;  %v14866_v40 = vld [vmem:[#allocation9] sm:$0xf] }
 0x55e   : > { %v8773_v3 = vmax.f32 %v8377_v4, 0.0 }
 0x55f   : > { %8748 = vmatpush.bf16.msrb.mxu2 %v14511_v11  ;;  %v14799_v11 = vor.u32 %v16709_v38, %v14796_v21  ;;  %v16752_v38 = vld [vmem:[#allocation9 + $0xac] sm:$0xf0]  ;;  %v16750_v21 = vld [vmem:[#allocation9 + $0xa4] sm:$0xf] }
 0x561   : > { %8705 = vmatpush.bf16.msra.mxu3 %v14795_v31  ;;  %v14732_v31 = vld [vmem:[#allocation6 + $0x6f8] sm:$0xf0] }
 0x562   : > { %v14735_v46 = vor.u32 %v16693_v56, %v14732_v31  ;;  %v16746_v56 = vld [vmem:[#allocation9 + $0x84] sm:$0xf] }
 0x563   : > { %8749 = vmatpush.bf16.msrb.mxu2 %v14479_v9  ;;  %v18294_v5 = vpop.f32.mrf.mxu3 }
 0x565   : > { %8706 = vmatpush.bf16.msra.mxu3 %v14763_v47 }
 0x567   : > { %8750 = vmatpush.bf16.msrb.mxu2 %v14447_v22  ;;  %v16677_v22 = vld [vmem:[#allocation6 + $0x65c] sm:$0xf] }
 0x569   : > { %8707 = vmatpush.bf16.msra.mxu3 %v14731_v23 }
 0x56b   : > { %8751 = vmatpush.bf16.msrb.mxu2 %v14415_v35  ;;  %v8432_v48 = vpop.f32.mrf.mxu3  ;;  %v14671_v35 = vor.u32 %v16677_v22, %v14668_v60  ;;  %v18316_v60 = vpop.f32.mrf.mxu1 }
 0x56c   : > { %v8433_v16 = vadd.f32 %v8432_v48, %v18286_v12  ;;  %v14703_v12 = vor.u32 %v16685_v36, %v14700_v26  ;;  %v14946_v48 = vld [vmem:[#allocation9 + $0xa0] sm:$0xf]  ;;  %v16744_v36 = vld [vmem:[#allocation9 + $0x6c] sm:$0xf0]  ;;  %v18314_v26 = vpop.f32.mrf.mxu0 }
 0x56d   : > { %8708 = vmatpush.bf16.msra.mxu3 %v14699_v0 }
 0x56e   : > { %v8774_v0 = vmax.f32 %v8433_v16, 0.0  ;;  %v14947_v16 = vor.u32 %v16752_v38, %v14946_v48  ;;  %v16790_v38 = vld [vmem:[#allocation9 + $0x1e4] sm:$0xf] }
 0x56f   : > { %8752 = vmatpush.bf16.msrb.mxu2 %v14383_v25 }
 0x571   : > { %8709 = vmatpush.bf16.msra.mxu3 %v14667_v57  ;;  %v16760_v57 = vld [vmem:[#allocation9 + $0xec] sm:$0xf0] }
 0x572   : > { %8753 = vmatmul.bf16.vlgmr.msrb.gmra.mxu2 %v18191_v24  ;;  %v14764_v24 = vld [vmem:[#allocation6 + $0x738] sm:$0xf0]  ;;  %v14979_v49 = vor.u32 %v16760_v57, %v14978_v1 }
 0x573   : > { %v14767_v59 = vor.u32 %v16701_v42, %v14764_v24  ;;  %v18301_v50 = vpop.f32.mrf.mxu3  ;;  %9225 = vmatpush.bf16.msra.mxu2 %v14983_v6  ;;  %v14930_v24 = vld [vmem:[#allocation9 + $0x80] sm:$0xf]  ;;  %v18324_v13 = vpop.f32.mrf.mxu1  ;;  %v16732_v6 = vld [vmem:[#allocation9 + $0xc] sm:$0xf0] }
 0x574   : > { %9197 = vmatpush.bf16.msra.mxu0 %v14979_v49 }
 0x575   : > { %8710 = vmatpush.bf16.msra.mxu3 %v14635_v55  ;;  %v8530_v9 = vpop.f32.mrf.mxu2  ;;  %v16756_v55 = vld [vmem:[#allocation9 + $0xcc] sm:$0xf0] }
 0x576   : > { %v8531_v45 = vadd.f32 %v8530_v9, %v18279_v2  ;;  %v14932_v9 = vld [vmem:[#allocation9 + $0x90] sm:$0xf0] }
 0x578   : > { %8711 = vmatmul.bf16.vlgmr.msra.gmra.mxu3 %v18229_v52 }
 0x579   : > { %8759 = vmatpush.bf16.msrb.mxu3 %v14863_v44  ;;  %v16754_v44 = vld [vmem:[#allocation9 + $0xc4] sm:$0xf] }
 0x57b   : > { %v8488_v47 = vpop.f32.mrf.mxu3 }
 0x57c   : > { %v8489_v37 = vadd.f32 %v8488_v47, %v8475_v43  ;;  %v14916_v47 = vld [vmem:[#allocation9 + $0x70] sm:$0xf0] }
 0x57d   : > { %8760 = vmatpush.bf16.msrb.mxu3 %v14831_v10  ;;  %v8532_v27 = vpop.f32.mrf.mxu2  ;;  %v14967_v10 = vor.u32 %v16754_v44, %v14964_v20  ;;  %v14868_v44 = vld [vmem:[#allocation9 + $0x10] sm:$0xf0]  ;;  %v16792_v20 = vld [vmem:[#allocation9 + $0x1ec] sm:$0xf0] }
 0x57e   : > { %v8533_v19 = vadd.f32 %v8532_v27, %v18283_v62  ;;  %v8775_v23 = vmax.f32 %v8489_v37, 0.0 }
 0x57f   : > { %9226 = vmatpush.bf16.msra.mxu2 %v14967_v10 }
 0x580   : > { %v18305_v2 = vmax.f32 %v8773_v3, %v8775_v23  ;;  %v16740_v3 = vld [vmem:[#allocation9 + $0x4c] sm:$0xf0]  ;;  %v16738_v23 = vld [vmem:[#allocation9 + $0x44] sm:$0xf] }
 0x581   : > { %8761 = vmatpush.bf16.msrb.mxu3 %v14799_v11  ;;  %v14948_v11 = vld [vmem:[#allocation9 + $0xb0] sm:$0xf0]  ;;  %v14903_v29 = vor.u32 %v16738_v23, %v14900_v15  ;;  %v16757_v23 = vld [vmem:[#allocation9 + $0xd4] sm:$0xf0]  ;;  %v14972_v15 = vld [vmem:[#allocation9 + $0xd8] sm:$0xf0] }
 0x582   : > { %v14951_v42 = vor.u32 %v16750_v21, %v14948_v11  ;;  %v15108_v21 = vld [vmem:[#allocation9 + $0x1f0] sm:$0xf0] }
 0x583   : > { %v18308_v41 = vpop.f32.mrf.mxu3 }
 0x584   : > { %9227 = vmatpush.bf16.msra.mxu2 %v14951_v42  ;;  %v15111_v42 = vor.u32 %v16790_v38, %v15108_v21  ;;  %v15058_v38 = vld [vmem:[#allocation9 + $0x180] sm:$0xf]  ;;  %v16780_v21 = vld [vmem:[#allocation9 + $0x18c] sm:$0xf0] }
 0x585   : > { %8762 = vmatpush.bf16.msrb.mxu3 %v14767_v59  ;;  %v16748_v59 = vld [vmem:[#allocation9 + $0x8c] sm:$0xf0] }
 0x586   : > { %v14931_v31 = vor.u32 %v16748_v59, %v14930_v24  ;;  %v16761_v24 = vld [vmem:[#allocation9 + $0xf4] sm:$0xf0]  ;;  %v16759_v59 = vld [vmem:[#allocation9 + $0xec] sm:$0xf] }
 0x589   : > { %8763 = vmatpush.bf16.msrb.mxu3 %v14735_v46  ;;  %v14914_v46 = vld [vmem:[#allocation9 + $0x60] sm:$0xf] }
 0x58a   : > { %v14915_v22 = vor.u32 %v16744_v36, %v14914_v46  ;;  %v16788_v46 = vld [vmem:[#allocation9 + $0x1cc] sm:$0xf0]  ;;  %v16786_v36 = vld [vmem:[#allocation9 + $0x1c4] sm:$0xf] }
 0x58d   : > { %8764 = vmatpush.bf16.msrb.mxu3 %v14703_v12  ;;  %v16742_v12 = vld [vmem:[#allocation9 + $0x64] sm:$0xf] }
 0x58e   : > { %v14919_v37 = vor.u32 %v16742_v12, %v14916_v47  ;;  %v18330_v12 = vpop.f32.mrf.mxu1 }
 0x591   : > { %8765 = vmatpush.bf16.msrb.mxu3 %v14671_v35 }
 0x595   : > { %8766 = vmatpush.bf16.msrb.mxu3 %v14639_v39  ;;  %v18318_v27 = vpop.f32.mrf.mxu2  ;;  %v14882_v39 = vld [vmem:[#allocation9 + $0x20] sm:$0xf] }
 0x598   : > { %8767 = vmatmul.bf16.vlgmr.msrb.gmra.mxu3 %v18229_v52  ;;  %v14962_v52 = vld [vmem:[#allocation9 + $0xc0] sm:$0xf] }
 0x599   : > { %v14963_v18 = vor.u32 %v16756_v55, %v14962_v52  ;;  %v16730_v52 = vld [vmem:[#allocation9 + $0x4] sm:$0xf]  ;;  %v14867_v55 = vor.u32 %v16732_v6, %v14866_v40  ;;  %9239 = vmatpush.bf16.msra.mxu3 %v15111_v42  ;;  %v15076_v40 = vld [vmem:[#allocation9 + $0x1b0] sm:$0xf0]  ;;  %v14954_v6 = vld [vmem:[#allocation9 + $0xa8] sm:$0xf] }
 0x59a   : > { %v14871_v10 = vor.u32 %v16730_v52, %v14868_v44  ;;  %v16753_v52 = vld [vmem:[#allocation9 + $0xb4] sm:$0xf0] }
 0x59b   : > { %v8544_v32 = vpop.f32.mrf.mxu3  ;;  %9198 = vmatpush.bf16.msra.mxu0 %v14963_v18  ;;  %v15106_v18 = vld [vmem:[#allocation9 + $0x1e0] sm:$0xf]  ;;  %v14955_v44 = vor.u32 %v16753_v52, %v14954_v6 }
 0x59c   : > { %v8545_v43 = vadd.f32 %v8544_v32, %v8531_v45  ;;  %v14935_v45 = vor.u32 %v16746_v56, %v14932_v9  ;;  %v16736_v32 = vld [vmem:[#allocation9 + $0x2c] sm:$0xf0]  ;;  %v15107_v48 = vor.u32 %v16792_v20, %v15106_v18  ;;  %v14988_v56 = vld [vmem:[#allocation9 + $0xf8] sm:$0xf0]  ;;  %v16751_v18 = vld [vmem:[#allocation9 + $0xac] sm:$0xf] }
 0x59d   : > { %v18326_v49 = vpop.f32.mrf.mxu2  ;;  %v14991_v9 = vor.u32 %v16759_v59, %v14988_v56  ;;  %v14956_v20 = vld [vmem:[#allocation9 + $0xb8] sm:$0xf0]  ;;  %v15060_v59 = vld [vmem:[#allocation9 + $0x190] sm:$0xf0]  ;;  %v14938_v56 = vld [vmem:[#allocation9 + $0x88] sm:$0xf] }
 0x59e   : > { %v8776_v25 = vmax.f32 %v8545_v43, 0.0  ;;  %9228 = vmatpush.bf16.msra.mxu2 %v14935_v45  ;;  %v16734_v43 = vld [vmem:[#allocation9 + $0x24] sm:$0xf]  ;;  %9211 = vmatpush.bf16.msra.mxu1 %v15107_v48  ;;  %v15090_v45 = vld [vmem:[#allocation9 + $0x1c0] sm:$0xf] }
 0x59f   : > { %9199 = vmatpush.bf16.msra.mxu0 %v14947_v16  ;;  %v14986_v16 = vld [vmem:[#allocation9 + $0xe8] sm:$0xf]  ;;  %v15026_v6 = vld [vmem:[#allocation9 + $0x140] sm:$0xf] }
 0x5a0   : > { %v18310_v62 = vmax.f32 %v8774_v0, %v8776_v25  ;;  %v18320_v0 = vpop.f32.mrf.mxu0  ;;  %v14883_v25 = vor.u32 %v16736_v32, %v14882_v39 }
 0x5a2   : > { %9229 = vmatpush.bf16.msra.mxu2 %v14919_v37  ;;  %v15092_v37 = vld [vmem:[#allocation9 + $0x1d0] sm:$0xf0] }
 0x5a3   : > { %v8546_v4 = vpop.f32.mrf.mxu3  ;;  %9200 = vmatpush.bf16.msra.mxu0 %v14931_v31  ;;  %v14987_v31 = vor.u32 %v16761_v24, %v14986_v16  ;;  %v16778_v16 = vld [vmem:[#allocation9 + $0x184] sm:$0xf]  ;;  %v15059_v24 = vor.u32 %v16780_v21, %v15058_v38  ;;  %v14906_v21 = vld [vmem:[#allocation9 + $0x48] sm:$0xf] }
 0x5a4   : > { %v18312_v58 = vadd.f32 %v8546_v4, %v8533_v19  ;;  %v14898_v19 = vld [vmem:[#allocation9 + $0x40] sm:$0xf]  ;;  %v14884_v4 = vld [vmem:[#allocation9 + $0x30] sm:$0xf0] }
 0x5a5   : > { %v14899_v35 = vor.u32 %v16740_v3, %v14898_v19  ;;  %v14887_v57 = vor.u32 %v16734_v43, %v14884_v4  ;;  %v14970_v19 = vld [vmem:[#allocation9 + $0xc8] sm:$0xf]  ;;  %v15095_v3 = vor.u32 %v16786_v36, %v15092_v37  ;;  %v15074_v43 = vld [vmem:[#allocation9 + $0x1a0] sm:$0xf]  ;;  %v16782_v4 = vld [vmem:[#allocation9 + $0x1a4] sm:$0xf]  ;;  %v18340_v36 = vpop.f32.mrf.mxu1 }
 0x5a6   : > { %9230 = vmatpush.bf16.msra.mxu2 %v14903_v29  ;;  %v14971_v39 = vor.u32 %v16757_v23, %v14970_v19  ;;  %v15042_v19 = vld [vmem:[#allocation9 + $0x160] sm:$0xf]  ;;  %v16774_v23 = vld [vmem:[#allocation9 + $0x164] sm:$0xf] }
 0x5a7   : > { %9201 = vmatpush.bf16.msra.mxu0 %v14915_v22  ;;  %v15091_v22 = vor.u32 %v16788_v46, %v15090_v45  ;;  %9240 = vmatpush.bf16.msra.mxu3 %v15095_v3  ;;  %v16747_v45 = vld [vmem:[#allocation9 + $0x8c] sm:$0xf]  ;;  %v14940_v46 = vld [vmem:[#allocation9 + $0x98] sm:$0xf0]  ;;  %v16776_v3 = vld [vmem:[#allocation9 + $0x16c] sm:$0xf0] }
 0x5a8   : > { %v18328_v11 = vpop.f32.mrf.mxu0  ;;  %v14943_v37 = vor.u32 %v16747_v45, %v14940_v46  ;;  %v16766_v46 = vld [vmem:[#allocation9 + $0x124] sm:$0xf] }
 0x5a9   : > { %9212 = vmatpush.bf16.msra.mxu1 %v15091_v22 }
 0x5aa   : > { %9231 = vmatpush.bf16.msra.mxu2 %v14887_v57 }
 0x5ab   : > { %9202 = vmatpush.bf16.msra.mxu0 %v14899_v35  ;;  %v16755_v35 = vld [vmem:[#allocation9 + $0xcc] sm:$0xf] }
 0x5ac   : > { %v14975_v32 = vor.u32 %v16755_v35, %v14972_v15  ;;  %v15043_v15 = vor.u32 %v16776_v3, %v15042_v19 }
 0x5ad   : > { %v8684_v19 = vpop.f32.mrf.mxu1 }
 0x5ae   : > { %9232 = vmatpush.bf16.msra.mxu2 %v14871_v10  ;;  %v14959_v10 = vor.u32 %v16751_v18, %v14956_v20  ;;  %v15028_v18 = vld [vmem:[#allocation9 + $0x150] sm:$0xf0] }
 0x5af   : > { %9203 = vmatpush.bf16.msra.mxu0 %v14883_v25  ;;  %v16784_v25 = vld [vmem:[#allocation9 + $0x1ac] sm:$0xf0] }
 0x5b0   : > { %v15075_v57 = vor.u32 %v16784_v25, %v15074_v43  ;;  %v18336_v48 = vpop.f32.mrf.mxu0  ;;  %v16745_v43 = vld [vmem:[#allocation9 + $0x74] sm:$0xf0] }
 0x5b2   : > { %9281 = vmatpush.bf16.msrb.mxu2 %v14991_v9  ;;  %9213 = vmatpush.bf16.msra.mxu1 %v15075_v57  ;;  %v16749_v9 = vld [vmem:[#allocation9 + $0x94] sm:$0xf0]  ;;  %v16743_v57 = vld [vmem:[#allocation9 + $0x6c] sm:$0xf] }
 0x5b3   : > { %9204 = vmatpush.bf16.msra.mxu0 %v14867_v55  ;;  %v15079_v55 = vor.u32 %v16782_v4, %v15076_v40  ;;  %v14939_v22 = vor.u32 %v16749_v9, %v14938_v56  ;;  %v14924_v40 = vld [vmem:[#allocation9 + $0x78] sm:$0xf0]  ;;  %v16768_v9 = vld [vmem:[#allocation9 + $0x12c] sm:$0xf0] }
 0x5b4   : > { %v14927_v52 = vor.u32 %v16743_v57, %v14924_v40  ;;  %v14908_v56 = vld [vmem:[#allocation9 + $0x58] sm:$0xf0] }
 0x5b5   : > { %v18334_v29 = vpop.f32.mrf.mxu2  ;;  %9241 = vmatpush.bf16.msra.mxu3 %v15079_v55  ;;  %v16772_v55 = vld [vmem:[#allocation9 + $0x14c] sm:$0xf0] }
 0x5b6   : > { %9282 = vmatpush.bf16.msrb.mxu2 %v14975_v32  ;;  %9214 = vmatpush.bf16.msra.mxu1 %v15059_v24  ;;  %v14922_v32 = vld [vmem:[#allocation9 + $0x68] sm:$0xf]  ;;  %v16739_v24 = vld [vmem:[#allocation9 + $0x4c] sm:$0xf] }
 0x5b7   : > { %9253 = vmatpush.bf16.msrb.mxu0 %v14987_v31  ;;  %v15063_v31 = vor.u32 %v16778_v16, %v15060_v59  ;;  %v14923_v4 = vor.u32 %v16745_v43, %v14922_v32  ;;  %v16741_v16 = vld [vmem:[#allocation9 + $0x54] sm:$0xf0]  ;;  %v14911_v45 = vor.u32 %v16739_v24, %v14908_v56  ;;  %v14892_v32 = vld [vmem:[#allocation9 + $0x38] sm:$0xf0]  ;;  %v14874_v56 = vld [vmem:[#allocation9 + $0x8] sm:$0xf] }
 0x5b8   : > { %v8670_v20 = vpop.f32.mrf.mxu0  ;;  %v14907_v59 = vor.u32 %v16741_v16, %v14906_v21  ;;  %v18346_v43 = vld [vmem:[#allocation7] sm:$0xff]  ;;  %v16762_v21 = vld [vmem:[#allocation9 + $0x104] sm:$0xf]  ;;  %v8449_v16 = vadd.f32 %v18268_v53, %v7031_v7 }
 0x5b9   : > { %9242 = vmatpush.bf16.msra.mxu3 %v15063_v31  ;;  %v15010_v31 = vld [vmem:[#allocation9 + $0x120] sm:$0xf] }
 0x5ba   : > { %9283 = vmatpush.bf16.msrb.mxu2 %v14959_v10  ;;  %9215 = vmatpush.bf16.msra.mxu1 %v15043_v15  ;;  %v15027_v10 = vor.u32 %v16772_v55, %v15026_v6  ;;  %v16737_v15 = vld [vmem:[#allocation9 + $0x34] sm:$0xf0]  ;;  %v8337_v55 = vadd.f32 %v18245_v63, %v7029_v30 }
 0x5bb   : > { %v18322_v1 = vpop.f32.mrf.mxu3  ;;  %9254 = vmatpush.bf16.msrb.mxu0 %v14971_v39  ;;  %v15044_v39 = vld [vmem:[#allocation9 + $0x170] sm:$0xf0] }
 0x5bc   : > { %v15047_v25 = vor.u32 %v16774_v23, %v15044_v39  ;;  %v15011_v23 = vor.u32 %v16768_v9, %v15010_v31  ;;  %v16735_v39 = vld [vmem:[#allocation9 + $0x2c] sm:$0xf]  ;;  %v16733_v31 = vld [vmem:[#allocation9 + $0x14] sm:$0xf0] }
 0x5bd   : > { %v18342_v35 = vpop.f32.mrf.mxu2  ;;  %v14895_v6 = vor.u32 %v16735_v39, %v14892_v32  ;;  %v16793_v39 = vld [vmem:[#allocation9 + $0x1f4] sm:$0xf0]  ;;  %v16791_v32 = vld [vmem:[#allocation9 + $0x1ec] sm:$0xf] }
 0x5be   : > { %9284 = vmatpush.bf16.msrb.mxu2 %v14943_v37  ;;  %9243 = vmatpush.bf16.msra.mxu3 %v15047_v25  ;;  %v14890_v37 = vld [vmem:[#allocation9 + $0x28] sm:$0xf]  ;;  %v7035_v25 = vperm.slane %v18346_v43, 6 }
 0x5bf   : > { %9255 = vmatpush.bf16.msrb.mxu0 %v14955_v44  ;;  %v16770_v44 = vld [vmem:[#allocation9 + $0x144] sm:$0xf]  ;;  %9216 = vmatpush.bf16.msra.mxu1 %v15027_v10  ;;  %v14891_v40 = vor.u32 %v16737_v15, %v14890_v37  ;;  %v16764_v10 = vld [vmem:[#allocation9 + $0x10c] sm:$0xf0]  ;;  %v15114_v37 = vld [vmem:[#allocation9 + $0x1e8] sm:$0xf] }
 0x5c0   : > { %v15031_v38 = vor.u32 %v16770_v44, %v15028_v18  ;;  %v8671_v44 = vadd.f32 %v8670_v20, %v7035_v25  ;;  %v14994_v18 = vld [vmem:[#allocation9 + $0x100] sm:$0xf]  ;;  %v8672_v63 = vpop.f32.mrf.mxu0 }
 0x5c1   : > { %v14995_v24 = vor.u32 %v16764_v10, %v14994_v18  ;;  %v16787_v18 = vld [vmem:[#allocation9 + $0x1cc] sm:$0xf] }
 0x5c2   : > { %9285 = vmatpush.bf16.msrb.mxu2 %v14927_v52  ;;  %9244 = vmatpush.bf16.msra.mxu3 %v15031_v38  ;;  %v7033_v52 = vperm.slane %v18346_v43, 4  ;;  %v8351_v38 = vadd.f32 %v18247_v54, %v8337_v55  ;;  %v8685_v20 = vadd.f32 %v8684_v19, %v8671_v44  ;;  %v8463_v54 = vadd.f32 %v18271_v28, %v8449_v16 }
 0x5c3   : > { %v18332_v47 = vpop.f32.mrf.mxu3  ;;  %9256 = vmatpush.bf16.msrb.mxu0 %v14939_v22  ;;  %v15012_v22 = vld [vmem:[#allocation9 + $0x130] sm:$0xf0]  ;;  %9217 = vmatpush.bf16.msra.mxu1 %v15011_v23  ;;  %v8673_v44 = vadd.f32 %v8672_v63, %v7035_v25 }
 0x5c4   : > { %v8559_v30 = vadd.f32 %v18314_v26, %v7033_v52  ;;  %v8365_v23 = vadd.f32 %v18281_v14, %v8351_v38  ;;  %v8561_v7 = vadd.f32 %v18320_v0, %v7033_v52  ;;  %v8477_v28 = vadd.f32 %v18297_v17, %v8463_v54  ;;  %v8686_v14 = vpop.f32.mrf.mxu1  ;;  %v15098_v0 = vld [vmem:[#allocation9 + $0x1c8] sm:$0xf]  ;;  %v16789_v52 = vld [vmem:[#allocation9 + $0x1d4] sm:$0xf0] }
 0x5c5   : > { %v15066_v54 = vld [vmem:[#allocation9 + $0x188] sm:$0xf] }
 0x5c6   : > { %9286 = vmatpush.bf16.msrb.mxu2 %v14911_v45  ;;  %v14875_v45 = vor.u32 %v16733_v31, %v14874_v56  ;;  %v8573_v26 = vadd.f32 %v18316_v60, %v8559_v30  ;;  %v8575_v55 = vadd.f32 %v18324_v13, %v8561_v7  ;;  %v15099_v60 = vor.u32 %v16789_v52, %v15098_v0  ;;  %v15082_v56 = vld [vmem:[#allocation9 + $0x1a8] sm:$0xf]  ;;  %v16785_v31 = vld [vmem:[#allocation9 + $0x1b4] sm:$0xf0]  ;;  %v16783_v30 = vld [vmem:[#allocation9 + $0x1ac] sm:$0xf] }
 0x5c7   : > { %9257 = vmatpush.bf16.msrb.mxu0 %v14923_v4  ;;  %v15015_v4 = vor.u32 %v16766_v46, %v15012_v22  ;;  %v16731_v46 = vld [vmem:[#allocation9 + $0xc] sm:$0xf]  ;;  %v14876_v22 = vld [vmem:[#allocation9 + $0x18] sm:$0xf0]  ;;  %9218 = vmatpush.bf16.msra.mxu1 %v14995_v24  ;;  %v8379_v38 = vadd.f32 %v18294_v5, %v8365_v23  ;;  %v8491_v17 = vadd.f32 %v18308_v41, %v8477_v28  ;;  %v16781_v23 = vld [vmem:[#allocation9 + $0x194] sm:$0xf0] }
 0x5c8   : > { %v14879_v15 = vor.u32 %v16731_v46, %v14876_v22  ;;  %v8587_v10 = vadd.f32 %v18318_v27, %v8573_v26  ;;  %v8589_v25 = vadd.f32 %v18326_v49, %v8575_v55  ;;  %v8687_v24 = vadd.f32 %v8686_v14, %v8673_v44  ;;  %v15084_v5 = vld [vmem:[#allocation9 + $0x1b8] sm:$0xf0]  ;;  %v15034_v52 = vld [vmem:[#allocation9 + $0x148] sm:$0xf] }
 0x5c9   : > { %9245 = vmatpush.bf16.msra.mxu3 %v15015_v4  ;;  %v15116_v4 = vld [vmem:[#allocation9 + $0x1f8] sm:$0xf0]  ;;  %v15087_v46 = vor.u32 %v16783_v30, %v15084_v5  ;;  %v8781_v22 = vmax.f32 %v8379_v38, 0.0  ;;  %v8783_v41 = vmax.f32 %v8491_v17, 0.0  ;;  %v16769_v17 = vld [vmem:[#allocation9 + $0x134] sm:$0xf0] }
 0x5ca   : > { %9287 = vmatpush.bf16.msrb.mxu2 %v14895_v6  ;;  %v15119_v6 = vor.u32 %v16791_v32, %v15116_v4  ;;  %v8603_v27 = vadd.f32 %v18332_v47, %v8589_v25  ;;  %v15067_v47 = vor.u32 %v16781_v23, %v15066_v54  ;;  %v15052_v44 = vld [vmem:[#allocation9 + $0x178] sm:$0xf0]  ;;  %v16767_v25 = vld [vmem:[#allocation9 + $0x12c] sm:$0xf] }
 0x5cb   : > { %9258 = vmatpush.bf16.msrb.mxu0 %v14907_v59  ;;  %v14996_v59 = vld [vmem:[#allocation9 + $0x110] sm:$0xf0]  ;;  %v8791_v4 = vmax.f32 %v8781_v22, %v8783_v41  ;;  %v15004_v5 = vld [vmem:[#allocation9 + $0x118] sm:$0xf0] }
 0x5cc   : > { %v14999_v9 = vor.u32 %v16762_v21, %v14996_v59  ;;  %v8601_v59 = vadd.f32 %v18322_v1, %v8587_v10  ;;  %v16779_v1 = vld [vmem:[#allocation9 + $0x18c] sm:$0xf]  ;;  %v8785_v7 = vmax.f32 %v8603_v27, 0.0  ;;  %v16773_v10 = vld [vmem:[#allocation9 + $0x154] sm:$0xf0] }
 0x5cd   : > { %v15035_v38 = vor.u32 %v16773_v10, %v15034_v52 }
 0x5ce   : > { %9246 = vmatpush.bf16.msra.mxu3 %v14999_v9  ;;  %9288 = vmatpush.bf16.msrb.mxu2 %v14879_v15  ;;  %v15083_v9 = vor.u32 %v16785_v31, %v15082_v56  ;;  %v7034_v56 = vperm.slane %v18346_v43, 5 }
 0x5cf   : > { %9259 = vmatpush.bf16.msrb.mxu0 %v14891_v40  ;;  %v15115_v40 = vor.u32 %v16793_v39, %v15114_v37  ;;  %v8777_v37 = vmax.f32 %v8601_v59, 0.0  ;;  %v15068_v39 = vld [vmem:[#allocation9 + $0x198] sm:$0xf0]  ;;  %v7036_v59 = vperm.slane %v18346_v43, 7  ;;  %v8393_v43 = vadd.f32 %v18256_v33, %v7030_v8  ;;  %v16824_v8 = vld [vmem:[#allocation12 + $0xec] sm:$0xf0] }
 0x5d0   : > { %v15071_v32 = vor.u32 %v16779_v1, %v15068_v39 }
 0x5d1   : > { %9267 = vmatpush.bf16.msrb.mxu1 %v15115_v40  ;;  %v16777_v40 = vld [vmem:[#allocation9 + $0x174] sm:$0xf0] }
 0x5d2   : > { %9295 = vmatpush.bf16.msrb.mxu3 %v15119_v6  ;;  %v16775_v6 = vld [vmem:[#allocation9 + $0x16c] sm:$0xf] }
 0x5d3   : > { %9260 = vmatpush.bf16.msrb.mxu0 %v14875_v45  ;;  %v15055_v0 = vor.u32 %v16775_v6, %v15052_v44  ;;  %v15202_v44 = vld [vmem:[#allocation12 + $0xa0] sm:$0xf] }
 0x5d5   : > { %v8698_v57 = vpop.f32.mrf.mxu2  ;;  %9268 = vmatpush.bf16.msrb.mxu1 %v15099_v60  ;;  %v15036_v60 = vld [vmem:[#allocation9 + $0x158] sm:$0xf0] }
 0x5d6   : > { %v8699_v19 = vadd.f32 %v8698_v57, %v8685_v20  ;;  %v15100_v57 = vld [vmem:[#allocation9 + $0x1d8] sm:$0xf0] }
 0x5d7   : > { %v15103_v13 = vor.u32 %v16787_v18, %v15100_v57  ;;  %v8726_v57 = vpop.f32.mrf.mxu0 }
 0x5d9   : > { %9296 = vmatpush.bf16.msrb.mxu3 %v15103_v13  ;;  %9269 = vmatpush.bf16.msrb.mxu1 %v15083_v9  ;;  %v15018_v13 = vld [vmem:[#allocation9 + $0x128] sm:$0xf]  ;;  %v16763_v9 = vld [vmem:[#allocation9 + $0x10c] sm:$0xf] }
 0x5da   : > { %v15019_v30 = vor.u32 %v16769_v17, %v15018_v13  ;;  %v16812_v13 = vld [vmem:[#allocation12 + $0x8c] sm:$0xf0] }
 0x5db   : > { %v18338_v42 = vpop.f32.mrf.mxu3 }
 0x5dd   : > { %v8700_v16 = vpop.f32.mrf.mxu2  ;;  %9297 = vmatpush.bf16.msrb.mxu3 %v15087_v46  ;;  %9270 = vmatpush.bf16.msrb.mxu1 %v15067_v47  ;;  %v8615_v46 = vadd.f32 %v18328_v11, %v7034_v56 }
 0x5de   : > { %v8701_v63 = vadd.f32 %v8700_v16, %v8687_v24  ;;  %v15020_v24 = vld [vmem:[#allocation9 + $0x138] sm:$0xf0] }
 0x5df   : > { %v15023_v27 = vor.u32 %v16767_v25, %v15020_v24  ;;  %v8728_v54 = vpop.f32.mrf.mxu0  ;;  %v8629_v1 = vadd.f32 %v18330_v12, %v8615_v46  ;;  %v16820_v12 = vld [vmem:[#allocation12 + $0xcc] sm:$0xf0] }
 0x5e0   : > { %v8729_v47 = vadd.f32 %v8728_v54, %v7036_v59  ;;  %v15474_v54 = vld [vmem:[#allocation12 + $0x2c0] sm:$0xf] }
 0x5e1   : > { %9298 = vmatpush.bf16.msrb.mxu3 %v15071_v32  ;;  %v8643_v39 = vadd.f32 %v18334_v29, %v8629_v1  ;;  %v16884_v1 = vld [vmem:[#allocation12 + $0x2cc] sm:$0xf0] }
 0x5e3   : > { %v18344_v3 = vpop.f32.mrf.mxu3 }
 0x5e5   : > { %9299 = vmatpush.bf16.msrb.mxu3 %v15055_v0  ;;  %v8784_v0 = vmax.f32 %v18312_v58, 0.0 }
 0x5f5   : > { %v8754_v31 = vpop.f32.mrf.mxu2 }
 0x5fb   : > { %v8712_v53 = vpop.f32.mrf.mxu3 }
 0x5fc   : > { %v8713_v21 = vadd.f32 %v8712_v53, %v8699_v19  ;;  %v15050_v19 = vld [vmem:[#allocation9 + $0x168] sm:$0xf] }
 0x5fd   : > { %v15051_v14 = vor.u32 %v16777_v40, %v15050_v19 }
 0x5fe   : > { %v8779_v20 = vmax.f32 %v8713_v21, 0.0  ;;  %v16771_v21 = vld [vmem:[#allocation9 + $0x14c] sm:$0xf] }
 0x5ff   : > { %9271 = vmatpush.bf16.msrb.mxu1 %v15051_v14  ;;  %v15039_v16 = vor.u32 %v16771_v21, %v15036_v60  ;;  %v16816_v14 = vld [vmem:[#allocation12 + $0xac] sm:$0xf0] }
 0x600   : > { %v8793_v53 = vmax.f32 %v8777_v37, %v8779_v20  ;;  %v16765_v20 = vld [vmem:[#allocation9 + $0x114] sm:$0xf0]  ;;  %v15007_v37 = vor.u32 %v16763_v9, %v15004_v5  ;;  %v15490_v9 = vld [vmem:[#allocation12 + $0x2e0] sm:$0xf] }
 0x601   : > { %9300 = vmatpush.bf16.msrb.mxu3 %v15039_v16  ;;  %v15186_v16 = vld [vmem:[#allocation12 + $0x80] sm:$0xf] }
 0x602   : > { %v8797_v55 = vmax.f32 %v18305_v2, %v8793_v53  ;;  %v8740_v2 = vpop.f32.mrf.mxu1  ;;  %v8407_v53 = vadd.f32 %v18259_v51, %v8393_v43  ;;  %v15187_v58 = vor.u32 %v16812_v13, %v15186_v16  ;;  %v15154_v43 = vld [vmem:[#allocation12 + $0x40] sm:$0xf]  ;;  %v16818_v16 = vld [vmem:[#allocation12 + $0xc4] sm:$0xf]  ;;  %v15220_v13 = vld [vmem:[#allocation12 + $0xd0] sm:$0xf0] }
 0x603   : > { %v8714_v45 = vpop.f32.mrf.mxu3  ;;  %9272 = vmatpush.bf16.msrb.mxu1 %v15035_v38  ;;  %v16856_v38 = vld [vmem:[#allocation12 + $0x1ec] sm:$0xf0] }
 0x604   : > { %v8715_v49 = vadd.f32 %v8714_v45, %v8701_v63  ;;  %v15002_v63 = vld [vmem:[#allocation9 + $0x108] sm:$0xf]  ;;  %v8727_v45 = vadd.f32 %v8726_v57, %v7036_v59  ;;  %v8421_v33 = vadd.f32 %v18290_v61, %v8407_v53  ;;  %v15346_v59 = vld [vmem:[#allocation12 + $0x1c0] sm:$0xf] }
 0x605   : > { %9301 = vmatpush.bf16.msrb.mxu3 %v15023_v27  ;;  %v15003_v41 = vor.u32 %v16765_v20, %v15002_v63  ;;  %v16848_v27 = vld [vmem:[#allocation12 + $0x1ac] sm:$0xf0]  ;;  %v15170_v20 = vld [vmem:[#allocation12 + $0x60] sm:$0xf] }
 0x606   : > { %v8787_v15 = vmax.f32 %v8715_v49, 0.0  ;;  %v8741_v22 = vadd.f32 %v8740_v2, %v8727_v45  ;;  %v8617_v49 = vadd.f32 %v18336_v48, %v7034_v56  ;;  %v8756_v48 = vpop.f32.mrf.mxu2  ;;  %v8435_v40 = vadd.f32 %v18301_v50, %v8421_v33  ;;  %v16852_v56 = vld [vmem:[#allocation12 + $0x1cc] sm:$0xf0]  ;;  %v15298_v53 = vld [vmem:[#allocation12 + $0x160] sm:$0xf] }
 0x607   : > { %9273 = vmatpush.bf16.msrb.mxu1 %v15019_v30  ;;  %v15203_v50 = vor.u32 %v16816_v14, %v15202_v44  ;;  %v15330_v30 = vld [vmem:[#allocation12 + $0x1a0] sm:$0xf]  ;;  %v16888_v45 = vld [vmem:[#allocation12 + $0x2ec] sm:$0xf0]  ;;  %v16822_v14 = vld [vmem:[#allocation12 + $0xe4] sm:$0xf] }
 0x608   : > { %v8795_v26 = vmax.f32 %v8785_v7, %v8787_v15  ;;  %v8755_v7 = vadd.f32 %v8754_v31, %v8741_v22  ;;  %v8631_v11 = vadd.f32 %v18340_v36, %v8617_v49  ;;  %v8657_v36 = vadd.f32 %v18338_v42, %v8643_v39  ;;  %v15314_v22 = vld [vmem:[#allocation12 + $0x180] sm:$0xf]  ;;  %v16804_v49 = vld [vmem:[#allocation12 + $0x4c] sm:$0xf0] }
 0x609   : > { %9302 = vmatpush.bf16.msrb.mxu3 %v15007_v37  ;;  %v8782_v10 = vmax.f32 %v8435_v40, 0.0  ;;  %v15347_v31 = vor.u32 %v16852_v56, %v15346_v59  ;;  %v15331_v63 = vor.u32 %v16848_v27, %v15330_v30  ;;  %v15491_v46 = vor.u32 %v16888_v45, %v15490_v9  ;;  %v16920_v39 = vld [vmem:[#allocation12 + $0x3ec] sm:$0xf0]  ;;  %v15458_v33 = vld [vmem:[#allocation12 + $0x2a0] sm:$0xf] }
 0x60a   : > { %v8799_v28 = vmax.f32 %v8791_v4, %v8795_v26  ;;  %v8742_v15 = vpop.f32.mrf.mxu1  ;;  %v15235_v4 = vor.u32 %v16824_v8, %v15234_v34  ;;  %v15218_v26 = vld [vmem:[#allocation12 + $0xc0] sm:$0xf]  ;;  %v8645_v19 = vadd.f32 %v18342_v35, %v8631_v11  ;;  %v8778_v52 = vmax.f32 %v8657_v36, 0.0  ;;  %v16840_v11 = vld [vmem:[#allocation12 + $0x16c] sm:$0xf0] }
 0x60b   : > { %9274 = vmatpush.bf16.msrb.mxu1 %v15003_v41  ;;  %v8743_v51 = vadd.f32 %v8742_v15, %v8729_v47  ;;  %v8792_v57 = vmax.f32 %v8782_v10, %v8784_v0  ;;  %v16844_v41 = vld [vmem:[#allocation12 + $0x18c] sm:$0xf0]  ;;  %v15618_v15 = vld [vmem:[#allocation12 + $0x3e0] sm:$0xf]  ;;  %v15299_v47 = vor.u32 %v16840_v11, %v15298_v53  ;;  %v15236_v0 = vld [vmem:[#allocation12 + $0xf0] sm:$0xf0] }
 0x60c   : > { %v8801_v18 = vpack.c.bf16 %v8799_v28, %v8797_v55  ;;  %v8659_v29 = vadd.f32 %v18344_v3, %v8645_v19  ;;  %v15219_v28 = vor.u32 %v16820_v12, %v15218_v26  ;;  %v15315_v37 = vor.u32 %v16844_v41, %v15314_v22  ;;  %v15138_v34 = vld [vmem:[#allocation12 + $0x20] sm:$0xf]  ;;  %v16800_v8 = vld [vmem:[#allocation12 + $0x2c] sm:$0xf0]  ;;  %v16854_v56 = vld [vmem:[#allocation12 + $0x1e4] sm:$0xf] }
 0x60d   : > { %v8757_v6 = vadd.f32 %v8756_v48, %v8743_v51  ;;  %v15139_v48 = vor.u32 %v16800_v8, %v15138_v34  ;;  %v15282_v12 = vld [vmem:[#allocation12 + $0x140] sm:$0xf]  ;;  %v16836_v19 = vld [vmem:[#allocation12 + $0x14c] sm:$0xf0]  ;;  %v16814_v9 = vld [vmem:[#allocation12 + $0xa4] sm:$0xf] }
 0x60e   : > { %9205 = vmatmul.bf16.vlgmr.msra.gmra.mxu0 %v8801_v18  ;;  %9233 = vmatmul.bf16.vlgmr.msra.gmra.mxu2 %v8801_v18  ;;  %v8786_v21 = vmax.f32 %v8659_v29, 0.0  ;;  %v15602_v51 = vld [vmem:[#allocation12 + $0x3c0] sm:$0xf]  ;;  %v15283_v36 = vor.u32 %v16836_v19, %v15282_v12  ;;  %v16916_v40 = vld [vmem:[#allocation12 + $0x3cc] sm:$0xf0] }
 0x60f   : > { %10099 = vmatpush.bf16.msra.mxu0 %v15235_v4  ;;  %10127 = vmatpush.bf16.msra.mxu2 %v15491_v46  ;;  %v16880_v4 = vld [vmem:[#allocation12 + $0x2ac] sm:$0xf0]  ;;  %v15603_v29 = vor.u32 %v16916_v40, %v15602_v51  ;;  %v15266_v10 = vld [vmem:[#allocation12 + $0x120] sm:$0xf]  ;;  %v15188_v53 = vld [vmem:[#allocation12 + $0x90] sm:$0xf0] }
 0x610   : > { %v15459_v26 = vor.u32 %v16880_v4, %v15458_v33  ;;  %v16876_v44 = vld [vmem:[#allocation12 + $0x28c] sm:$0xf0]  ;;  %v15554_v46 = vld [vmem:[#allocation12 + $0x360] sm:$0xf]  ;;  %v15332_v34 = vld [vmem:[#allocation12 + $0x1b0] sm:$0xf0] }
 0x611   : > { %v16908_v59 = vld [vmem:[#allocation12 + $0x38c] sm:$0xf0]  ;;  %v15378_v33 = vld [vmem:[#allocation12 + $0x200] sm:$0xf]  ;;  %v15172_v12 = vld [vmem:[#allocation12 + $0x70] sm:$0xf0] }
 0x612   : > { %v16904_v22 = vld [vmem:[#allocation12 + $0x36c] sm:$0xf0]  ;;  %v16886_v19 = vld [vmem:[#allocation12 + $0x2e4] sm:$0xf]  ;;  %v15522_v40 = vld [vmem:[#allocation12 + $0x320] sm:$0xf] }
 0x613   : > { %10100 = vmatpush.bf16.msra.mxu0 %v15219_v28  ;;  %v15442_v28 = vld [vmem:[#allocation12 + $0x280] sm:$0xf]  ;;  %v15555_v41 = vor.u32 %v16904_v22, %v15554_v46  ;;  %v15444_v46 = vld [vmem:[#allocation12 + $0x290] sm:$0xf0] }
 0x617   : > { %10101 = vmatpush.bf16.msra.mxu0 %v15203_v50  ;;  %v16912_v50 = vld [vmem:[#allocation12 + $0x3ac] sm:$0xf0] }
 0x61b   : > { %v8768_v23 = vpop.f32.mrf.mxu3  ;;  %10102 = vmatpush.bf16.msra.mxu0 %v15187_v58  ;;  %v15570_v58 = vld [vmem:[#allocation12 + $0x380] sm:$0xf] }
 0x61c   : > { %v8769_v32 = vadd.f32 %v8768_v23, %v8755_v7  ;;  %v15155_v23 = vor.u32 %v16804_v49, %v15154_v43  ;;  %v15475_v7 = vor.u32 %v16884_v1, %v15474_v54  ;;  %v15571_v30 = vor.u32 %v16908_v59, %v15570_v58  ;;  %v15348_v43 = vld [vmem:[#allocation12 + $0x1d0] sm:$0xf0]  ;;  %v15394_v54 = vld [vmem:[#allocation12 + $0x220] sm:$0xf] }
 0x61e   : > { %9261 = vmatmul.bf16.vlgmr.msrb.gmra.mxu0 %v8801_v18  ;;  %9289 = vmatmul.bf16.vlgmr.msrb.gmra.mxu2 %v8801_v18  ;;  %v8780_v55 = vmax.f32 %v8769_v32, 0.0  ;;  %v15362_v18 = vld [vmem:[#allocation12 + $0x1e0] sm:$0xf]  ;;  %v15619_v32 = vor.u32 %v16920_v39, %v15618_v15 }
 0x61f   : > { %v15363_v25 = vor.u32 %v16856_v38, %v15362_v18  ;;  %10128 = vmatpush.bf16.msra.mxu2 %v15475_v7  ;;  %v16810_v7 = vld [vmem:[#allocation12 + $0x84] sm:$0xf]  ;;  %v15538_v15 = vld [vmem:[#allocation12 + $0x340] sm:$0xf] }
 0x620   : > { %v8794_v42 = vmax.f32 %v8778_v52, %v8780_v55  ;;  %v16796_v55 = vld [vmem:[#allocation12 + $0xc] sm:$0xf0]  ;;  %v15443_v52 = vor.u32 %v16876_v44, %v15442_v28  ;;  %v15191_v11 = vor.u32 %v16810_v7, %v15188_v53  ;;  %v16842_v28 = vld [vmem:[#allocation12 + $0x184] sm:$0xf]  ;;  %v15428_v7 = vld [vmem:[#allocation12 + $0x270] sm:$0xf0] }
 0x622   : > { %v8798_v2 = vmax.f32 %v18310_v62, %v8794_v42  ;;  %v16808_v62 = vld [vmem:[#allocation12 + $0x6c] sm:$0xf0]  ;;  %v15586_v42 = vld [vmem:[#allocation12 + $0x3a0] sm:$0xf] }
 0x623   : > { %v8770_v61 = vpop.f32.mrf.mxu3  ;;  %v15171_v5 = vor.u32 %v16808_v62, %v15170_v20  ;;  %10129 = vmatpush.bf16.msra.mxu2 %v15459_v26  ;;  %v15587_v18 = vor.u32 %v16912_v50, %v15586_v42  ;;  %v16868_v20 = vld [vmem:[#allocation12 + $0x24c] sm:$0xf0]  ;;  %v16806_v26 = vld [vmem:[#allocation12 + $0x64] sm:$0xf] }
 0x624   : > { %v8771_v35 = vadd.f32 %v8770_v61, %v8757_v6  ;;  %v15122_v6 = vld [vmem:[#allocation12] sm:$0xf]  ;;  %v15175_v51 = vor.u32 %v16806_v26, %v15172_v12  ;;  %v16892_v42 = vld [vmem:[#allocation12 + $0x30c] sm:$0xf0]  ;;  %v16902_v26 = vld [vmem:[#allocation12 + $0x364] sm:$0xf] }
 0x625   : > { %10103 = vmatpush.bf16.msra.mxu0 %v15171_v5  ;;  %v15123_v61 = vor.u32 %v16796_v55, %v15122_v6  ;;  %v15204_v5 = vld [vmem:[#allocation12 + $0xb0] sm:$0xf0] }
 0x626   : > { %v8788_v60 = vmax.f32 %v8771_v35, 0.0  ;;  %v15239_v35 = vor.u32 %v16822_v14, %v15236_v0  ;;  %v15207_v45 = vor.u32 %v16814_v9, %v15204_v5  ;;  %v16802_v14 = vld [vmem:[#allocation12 + $0x44] sm:$0xf]  ;;  %v15156_v0 = vld [vmem:[#allocation12 + $0x50] sm:$0xf0] }
 0x627   : > { %10130 = vmatpush.bf16.msra.mxu2 %v15443_v52  ;;  %v16882_v52 = vld [vmem:[#allocation12 + $0x2c4] sm:$0xf]  ;;  %v15124_v9 = vld [vmem:[#allocation12 + $0x10] sm:$0xf0] }
 0x628   : > { %v8796_v3 = vmax.f32 %v8786_v21, %v8788_v60  ;;  %v16832_v21 = vld [vmem:[#allocation12 + $0x12c] sm:$0xf0]  ;;  %v16874_v5 = vld [vmem:[#allocation12 + $0x284] sm:$0xf]  ;;  %v15556_v12 = vld [vmem:[#allocation12 + $0x370] sm:$0xf0] }
 0x629   : > { %10104 = vmatpush.bf16.msra.mxu0 %v15155_v23  ;;  %v15267_v60 = vor.u32 %v16832_v21, %v15266_v10  ;;  %v16864_v23 = vld [vmem:[#allocation12 + $0x22c] sm:$0xf0]  ;;  %v15476_v10 = vld [vmem:[#allocation12 + $0x2d0] sm:$0xf0]  ;;  %v15506_v21 = vld [vmem:[#allocation12 + $0x300] sm:$0xf]  ;;  %v15447_v22 = vor.u32 %v16874_v5, %v15444_v46 }
 0x62a   : > { %v8800_v17 = vmax.f32 %v8792_v57, %v8796_v3  ;;  %v15426_v57 = vld [vmem:[#allocation12 + $0x260] sm:$0xf]  ;;  %v16872_v3 = vld [vmem:[#allocation12 + $0x26c] sm:$0xf0]  ;;  %v15395_v1 = vor.u32 %v16864_v23, %v15394_v54  ;;  %v15507_v50 = vor.u32 %v16892_v42, %v15506_v21  ;;  %v15588_v54 = vld [vmem:[#allocation12 + $0x3b0] sm:$0xf0] }
 0x62b   : > { %v15427_v38 = vor.u32 %v16872_v3, %v15426_v57  ;;  %v15300_v57 = vld [vmem:[#allocation12 + $0x170] sm:$0xf0]  ;;  %v16918_v3 = vld [vmem:[#allocation12 + $0x3e4] sm:$0xf]  ;;  %v15226_v5 = vld [vmem:[#allocation12 + $0xc8] sm:$0xf] }
 0x62c   : > { %v8802_v24 = vpack.c.bf16 %v8800_v17, %v8798_v2  ;;  %v15223_v2 = vor.u32 %v16818_v16, %v15220_v13  ;;  %v15250_v17 = vld [vmem:[#allocation12 + $0x100] sm:$0xf]  ;;  %v15620_v16 = vld [vmem:[#allocation12 + $0x3f0] sm:$0xf0] }
 0x62d   : > { %10105 = vmatpush.bf16.msra.mxu0 %v15139_v48  ;;  %10131 = vmatpush.bf16.msra.mxu2 %v15427_v38  ;;  %v16860_v48 = vld [vmem:[#allocation12 + $0x20c] sm:$0xf0]  ;;  %v15623_v13 = vor.u32 %v16918_v3, %v15620_v16 }
 0x62e   : > { %9219 = vmatmul.bf16.vlgmr.msra.gmra.mxu1 %v8802_v24  ;;  %9247 = vmatmul.bf16.vlgmr.msra.gmra.mxu3 %v8802_v24  ;;  %v15379_v4 = vor.u32 %v16860_v48, %v15378_v33  ;;  %v15412_v33 = vld [vmem:[#allocation12 + $0x250] sm:$0xf0] }
 0x62f   : > { %10113 = vmatpush.bf16.msra.mxu1 %v15363_v25  ;;  %10141 = vmatpush.bf16.msra.mxu3 %v15619_v32  ;;  %v16828_v25 = vld [vmem:[#allocation12 + $0x10c] sm:$0xf0]  ;;  %v16846_v32 = vld [vmem:[#allocation12 + $0x1a4] sm:$0xf] }
 0x630   : > { %v15335_v8 = vor.u32 %v16846_v32, %v15332_v34  ;;  %v15572_v32 = vld [vmem:[#allocation12 + $0x390] sm:$0xf0] }
 0x631   : > { %10106 = vmatpush.bf16.msra.mxu0 %v15123_v61  ;;  %v15316_v61 = vld [vmem:[#allocation12 + $0x190] sm:$0xf0] }
 0x632   : > { %v15319_v44 = vor.u32 %v16842_v28, %v15316_v61  ;;  %v16858_v61 = vld [vmem:[#allocation12 + $0x204] sm:$0xf] }
 0x633   : > { %10114 = vmatpush.bf16.msra.mxu1 %v15347_v31  ;;  %10142 = vmatpush.bf16.msra.mxu3 %v15603_v29  ;;  %v15364_v31 = vld [vmem:[#allocation12 + $0x1f0] sm:$0xf0]  ;;  %v16896_v29 = vld [vmem:[#allocation12 + $0x32c] sm:$0xf0] }
 0x634   : > { %v15367_v27 = vor.u32 %v16854_v56, %v15364_v31  ;;  %v15523_v55 = vor.u32 %v16896_v29, %v15522_v40  ;;  %v16834_v56 = vld [vmem:[#allocation12 + $0x144] sm:$0xf]  ;;  %v15284_v31 = vld [vmem:[#allocation12 + $0x150] sm:$0xf0] }
 0x635   : > { %10155 = vmatpush.bf16.msrb.mxu0 %v15239_v35  ;;  %v15159_v35 = vor.u32 %v16802_v14, %v15156_v0  ;;  %v16898_v29 = vld [vmem:[#allocation12 + $0x344] sm:$0xf]  ;;  %v18389_v0 = vld [vmem:[#allocation10] sm:$0xf] }
 0x637   : > { %10115 = vmatpush.bf16.msra.mxu1 %v15331_v63  ;;  %10143 = vmatpush.bf16.msra.mxu3 %v15587_v18  ;;  %v15410_v63 = vld [vmem:[#allocation12 + $0x240] sm:$0xf]  ;;  %v16838_v18 = vld [vmem:[#allocation12 + $0x164] sm:$0xf] }
 0x638   : > { %v15411_v62 = vor.u32 %v16868_v20, %v15410_v63  ;;  %v15303_v38 = vor.u32 %v16838_v18, %v15300_v57  ;;  %v15604_v63 = vld [vmem:[#allocation12 + $0x3d0] sm:$0xf0] }
 0x639   : > { %10156 = vmatpush.bf16.msrb.mxu0 %v15223_v2  ;;  %v16798_v2 = vld [vmem:[#allocation12 + $0x24] sm:$0xf]  ;;  %v15508_v18 = vld [vmem:[#allocation12 + $0x310] sm:$0xf0] }
 0x63a   : > { %10132 = vmatpush.bf16.msra.mxu2 %v15411_v62  ;;  %v16794_v62 = vld [vmem:[#allocation12 + $0x4] sm:$0xf] }
 0x63b   : > { %10116 = vmatpush.bf16.msra.mxu1 %v15315_v37  ;;  %10144 = vmatpush.bf16.msra.mxu3 %v15571_v30  ;;  %v16850_v37 = vld [vmem:[#allocation12 + $0x1c4] sm:$0xf] }
 0x63c   : > { %v15351_v49 = vor.u32 %v16850_v37, %v15348_v43  ;;  %v16914_v30 = vld [vmem:[#allocation12 + $0x3c4] sm:$0xf]  ;;  %v15268_v37 = vld [vmem:[#allocation12 + $0x130] sm:$0xf0] }
 0x63d   : > { %10157 = vmatpush.bf16.msrb.mxu0 %v15207_v45  ;;  %v15607_v20 = vor.u32 %v16914_v30, %v15604_v63  ;;  %v15127_v45 = vor.u32 %v16794_v62, %v15124_v9  ;;  %v16910_v43 = vld [vmem:[#allocation12 + $0x3a4] sm:$0xf] }
 0x63e   : > { %9275 = vmatmul.bf16.vlgmr.msrb.gmra.mxu1 %v8802_v24  ;;  %9303 = vmatmul.bf16.vlgmr.msrb.gmra.mxu3 %v8802_v24  ;;  %v15251_v24 = vor.u32 %v16828_v25, %v15250_v17  ;;  %v15140_v17 = vld [vmem:[#allocation12 + $0x30] sm:$0xf0]  ;;  %v16878_v25 = vld [vmem:[#allocation12 + $0x2a4] sm:$0xf]  ;;  %v15591_v23 = vor.u32 %v16910_v43, %v15588_v54  ;;  %v8871_v43 = vperm.slane %v18389_v0, 2 }
 0x63f   : > { %10117 = vmatpush.bf16.msra.mxu1 %v15299_v47  ;;  %10145 = vmatpush.bf16.msra.mxu3 %v15555_v41  ;;  %v16900_v47 = vld [vmem:[#allocation12 + $0x34c] sm:$0xf0]  ;;  %v15143_v58 = vor.u32 %v16798_v2, %v15140_v17  ;;  %v16830_v41 = vld [vmem:[#allocation12 + $0x124] sm:$0xf] }
 0x640   : > { %v15539_v39 = vor.u32 %v16900_v47, %v15538_v15  ;;  %10133 = vmatpush.bf16.msra.mxu2 %v15395_v1  ;;  %v16870_v1 = vld [vmem:[#allocation12 + $0x264] sm:$0xf]  ;;  %v15252_v15 = vld [vmem:[#allocation12 + $0x110] sm:$0xf0] }
 0x641   : > { %10158 = vmatpush.bf16.msrb.mxu0 %v15191_v11  ;;  %v15431_v53 = vor.u32 %v16870_v1, %v15428_v7  ;;  %v16826_v11 = vld [vmem:[#allocation12 + $0x104] sm:$0xf] }
 0x642   : > { %v16906_v47 = vld [vmem:[#allocation12 + $0x384] sm:$0xf] }
 0x643   : > { %10118 = vmatpush.bf16.msra.mxu1 %v15283_v36  ;;  %10146 = vmatpush.bf16.msra.mxu3 %v15539_v39  ;;  %v15492_v36 = vld [vmem:[#allocation12 + $0x2f0] sm:$0xf0]  ;;  %v15255_v39 = vor.u32 %v16826_v11, %v15252_v15  ;;  %v15575_v34 = vor.u32 %v16906_v47, %v15572_v32  ;;  %v16817_v11 = vld [vmem:[#allocation12 + $0xb4] sm:$0xf0] }
 0x644   : > { %v15495_v6 = vor.u32 %v16886_v19, %v15492_v36  ;;  %10134 = vmatpush.bf16.msra.mxu2 %v15379_v4  ;;  %v15559_v19 = vor.u32 %v16902_v26, %v15556_v12  ;;  %v15396_v36 = vld [vmem:[#allocation12 + $0x230] sm:$0xf0]  ;;  %v16853_v32 = vld [vmem:[#allocation12 + $0x1d4] sm:$0xf0] }
 0x645   : > { %10159 = vmatpush.bf16.msrb.mxu0 %v15175_v51  ;;  %v16862_v51 = vld [vmem:[#allocation12 + $0x224] sm:$0xf] }
 0x646   : > { %v15399_v40 = vor.u32 %v16862_v51, %v15396_v36 }
 0x647   : > { %10119 = vmatpush.bf16.msra.mxu1 %v15267_v60  ;;  %10147 = vmatpush.bf16.msra.mxu3 %v15523_v55  ;;  %v15479_v60 = vor.u32 %v16882_v52, %v15476_v10  ;;  %v16894_v52 = vld [vmem:[#allocation12 + $0x324] sm:$0xf] }
 0x648   : > { %10183 = vmatpush.bf16.msrb.mxu2 %v15495_v6  ;;  %v15540_v6 = vld [vmem:[#allocation12 + $0x350] sm:$0xf0] }
 0x649   : > { %10160 = vmatpush.bf16.msrb.mxu0 %v15159_v35  ;;  %v15543_v55 = vor.u32 %v16898_v29, %v15540_v6  ;;  %v15524_v35 = vld [vmem:[#allocation12 + $0x330] sm:$0xf0]  ;;  %v16849_v29 = vld [vmem:[#allocation12 + $0x1b4] sm:$0xf0] }
 0x64a   : > { %v15527_v10 = vor.u32 %v16894_v52, %v15524_v35  ;;  %v16889_v52 = vld [vmem:[#allocation12 + $0x2f4] sm:$0xf0] }
 0x64b   : > { %10120 = vmatpush.bf16.msra.mxu1 %v15251_v24  ;;  %10148 = vmatpush.bf16.msra.mxu3 %v15507_v50  ;;  %v15460_v24 = vld [vmem:[#allocation12 + $0x2b0] sm:$0xf0]  ;;  %v16890_v50 = vld [vmem:[#allocation12 + $0x304] sm:$0xf] }
 0x64c   : > { %10184 = vmatpush.bf16.msrb.mxu2 %v15479_v60  ;;  %v15463_v59 = vor.u32 %v16878_v25, %v15460_v24  ;;  %v8869_v60 = vperm.slane %v18389_v0, 0  ;;  %v15511_v57 = vor.u32 %v16890_v50, %v15508_v18  ;;  %v15242_v24 = vld [vmem:[#allocation12 + $0xe8] sm:$0xf] }
 0x64d   : > { %10161 = vmatpush.bf16.msrb.mxu0 %v15143_v58  ;;  %v15322_v50 = vld [vmem:[#allocation12 + $0x188] sm:$0xf] }
 0x64f   : > { %10169 = vmatpush.bf16.msrb.mxu1 %v15367_v27  ;;  %10197 = vmatpush.bf16.msrb.mxu3 %v15623_v13  ;;  %v15287_v27 = vor.u32 %v16834_v56, %v15284_v31  ;;  %v8870_v13 = vperm.slane %v18389_v0, 1 }
 0x650   : > { %10185 = vmatpush.bf16.msrb.mxu2 %v15463_v59  ;;  %v16825_v59 = vld [vmem:[#allocation12 + $0xf4] sm:$0xf0] }
 0x651   : > { %10162 = vmatpush.bf16.msrb.mxu0 %v15127_v45  ;;  %v15243_v63 = vor.u32 %v16825_v59, %v15242_v24  ;;  %v16821_v45 = vld [vmem:[#allocation12 + $0xd4] sm:$0xf0]  ;;  %v15306_v59 = vld [vmem:[#allocation12 + $0x168] sm:$0xf] }
 0x653   : > { %10170 = vmatpush.bf16.msrb.mxu1 %v15351_v49  ;;  %10198 = vmatpush.bf16.msrb.mxu3 %v15607_v20  ;;  %v15271_v49 = vor.u32 %v16830_v41, %v15268_v37  ;;  %v15370_v41 = vld [vmem:[#allocation12 + $0x1e8] sm:$0xf]  ;;  %v16857_v37 = vld [vmem:[#allocation12 + $0x1f4] sm:$0xf0] }
 0x654   : > { %10186 = vmatpush.bf16.msrb.mxu2 %v15447_v22  ;;  %v15371_v15 = vor.u32 %v16857_v37, %v15370_v41  ;;  %v16881_v41 = vld [vmem:[#allocation12 + $0x2b4] sm:$0xf0] }
 0x657   : > { %10171 = vmatpush.bf16.msrb.mxu1 %v15335_v8  ;;  %10199 = vmatpush.bf16.msrb.mxu3 %v15591_v23  ;;  %v16866_v8 = vld [vmem:[#allocation12 + $0x244] sm:$0xf]  ;;  %v15227_v23 = vor.u32 %v16821_v45, %v15226_v5  ;;  %v16801_v5 = vld [vmem:[#allocation12 + $0x34] sm:$0xf0] }
 0x658   : > { %10187 = vmatpush.bf16.msrb.mxu2 %v15431_v53  ;;  %v15415_v48 = vor.u32 %v16866_v8, %v15412_v33  ;;  %v15210_v53 = vld [vmem:[#allocation12 + $0xa8] sm:$0xf] }
 0x659   : > { %v15211_v8 = vor.u32 %v16817_v11, %v15210_v53 }
 0x65b   : > { %10172 = vmatpush.bf16.msrb.mxu1 %v15319_v44  ;;  %10200 = vmatpush.bf16.msrb.mxu3 %v15575_v34  ;;  %v15380_v44 = vld [vmem:[#allocation12 + $0x210] sm:$0xf0] }
 0x65c   : > { %10188 = vmatpush.bf16.msrb.mxu2 %v15415_v48  ;;  %v15383_v14 = vor.u32 %v16858_v61, %v15380_v44  ;;  %v15194_v48 = vld [vmem:[#allocation12 + $0x88] sm:$0xf]  ;;  %v16809_v44 = vld [vmem:[#allocation12 + $0x74] sm:$0xf0] }
 0x65f   : > { %10173 = vmatpush.bf16.msrb.mxu1 %v15303_v38  ;;  %10201 = vmatpush.bf16.msrb.mxu3 %v15559_v19  ;;  %v8872_v19 = vperm.slane %v18389_v0, 3  ;;  %v16845_v0 = vld [vmem:[#allocation12 + $0x194] sm:$0xf0] }
 0x660   : > { %10189 = vmatpush.bf16.msrb.mxu2 %v15399_v40  ;;  %v15338_v40 = vld [vmem:[#allocation12 + $0x1a8] sm:$0xf]  ;;  %v15323_v24 = vor.u32 %v16845_v0, %v15322_v50  ;;  %v15372_v50 = vld [vmem:[#allocation12 + $0x1f8] sm:$0xf0] }
 0x663   : > { %10174 = vmatpush.bf16.msrb.mxu1 %v15287_v27  ;;  %10202 = vmatpush.bf16.msrb.mxu3 %v15543_v55 }
 0x664   : > { %10190 = vmatpush.bf16.msrb.mxu2 %v15383_v14  ;;  %v15498_v14 = vld [vmem:[#allocation12 + $0x2e8] sm:$0xf] }
 0x667   : > { %10175 = vmatpush.bf16.msrb.mxu1 %v15271_v49  ;;  %10203 = vmatpush.bf16.msrb.mxu3 %v15527_v10  ;;  %v15339_v10 = vor.u32 %v16849_v29, %v15338_v40 }
 0x66b   : > { %10176 = vmatpush.bf16.msrb.mxu1 %v15255_v39  ;;  %10204 = vmatpush.bf16.msrb.mxu3 %v15511_v57  ;;  %v15354_v39 = vld [vmem:[#allocation12 + $0x1c8] sm:$0xf]  ;;  %v15499_v57 = vor.u32 %v16889_v52, %v15498_v14  ;;  %v15228_v14 = vld [vmem:[#allocation12 + $0xd8] sm:$0xf0] }
 0x66c   : > { %v15355_v12 = vor.u32 %v16853_v32, %v15354_v39  ;;  %v16797_v39 = vld [vmem:[#allocation12 + $0x14] sm:$0xf0]  ;;  %v15450_v32 = vld [vmem:[#allocation12 + $0x288] sm:$0xf] }
 0x66d   : > { %v15258_v52 = vld [vmem:[#allocation12 + $0x108] sm:$0xf] }
 0x68b   : > { %v9206_v4 = vpop.f32.mrf.mxu0 }
 0x68c   : > { %v9207_v3 = vadd.f32 %v9206_v4, %v8869_v60  ;;  %v16813_v4 = vld [vmem:[#allocation12 + $0x94] sm:$0xf0] }
 0x68d   : > { %v15195_v55 = vor.u32 %v16813_v4, %v15194_v48  ;;  %v16823_v48 = vld [vmem:[#allocation12 + $0xec] sm:$0xf]  ;;  %v15244_v4 = vld [vmem:[#allocation12 + $0xf8] sm:$0xf0] }
 0x68e   : > { %v15247_v29 = vor.u32 %v16823_v48, %v15244_v4  ;;  %v15324_v48 = vld [vmem:[#allocation12 + $0x198] sm:$0xf0] }
 0x691   : > { %v9234_v28 = vpop.f32.mrf.mxu2 }
 0x692   : > { %v9235_v31 = vadd.f32 %v9234_v28, %v8870_v13  ;;  %v15178_v28 = vld [vmem:[#allocation12 + $0x68] sm:$0xf] }
 0x693   : > { %v9208_v21 = vpop.f32.mrf.mxu0  ;;  %v15179_v18 = vor.u32 %v16809_v44, %v15178_v28  ;;  %v16819_v44 = vld [vmem:[#allocation12 + $0xcc] sm:$0xf] }
 0x694   : > { %v9209_v2 = vadd.f32 %v9208_v21, %v8869_v60  ;;  %v15231_v0 = vor.u32 %v16819_v44, %v15228_v14  ;;  %v16919_v44 = vld [vmem:[#allocation12 + $0x3ec] sm:$0xf]  ;;  %v15628_v14 = vld [vmem:[#allocation12 + $0x3f8] sm:$0xf0] }
 0x699   : > { %v9236_v38 = vpop.f32.mrf.mxu2 }
 0x69a   : > { %v9237_v20 = vadd.f32 %v9236_v38, %v8870_v13 }
 0x69b   : > { %v9262_v56 = vpop.f32.mrf.mxu0 }
 0x69c   : > { %v9263_v33 = vadd.f32 %v9262_v56, %v8871_v43 }
 0x6a1   : > { %v9290_v49 = vpop.f32.mrf.mxu2 }
 0x6a2   : > { %v9291_v21 = vadd.f32 %v9290_v49, %v8872_v19  ;;  %v15290_v49 = vld [vmem:[#allocation12 + $0x148] sm:$0xf] }
 0x6a3   : > { %v9264_v34 = vpop.f32.mrf.mxu0 }
 0x6a4   : > { %v9265_v51 = vadd.f32 %v9264_v34, %v8871_v43  ;;  %v16877_v34 = vld [vmem:[#allocation12 + $0x294] sm:$0xf0] }
 0x6a5   : > { %v15451_v40 = vor.u32 %v16877_v34, %v15450_v32  ;;  %v15530_v32 = vld [vmem:[#allocation12 + $0x328] sm:$0xf]  ;;  %v16897_v34 = vld [vmem:[#allocation12 + $0x334] sm:$0xf0] }
 0x6a9   : > { %v9292_v35 = vpop.f32.mrf.mxu2 }
 0x6aa   : > { %v9293_v38 = vadd.f32 %v9292_v35, %v8872_v19  ;;  %v15594_v19 = vld [vmem:[#allocation12 + $0x3a8] sm:$0xf]  ;;  %v16829_v35 = vld [vmem:[#allocation12 + $0x114] sm:$0xf0] }
 0x6ab   : > { %v9220_v42 = vpop.f32.mrf.mxu1 }
 0x6ac   : > { %v9221_v17 = vadd.f32 %v9220_v42, %v9207_v3  ;;  %v15162_v3 = vld [vmem:[#allocation12 + $0x48] sm:$0xf] }
 0x6ae   : > { %v9309_v30 = vmax.f32 %v9221_v17, 0.0  ;;  %v15482_v17 = vld [vmem:[#allocation12 + $0x2c8] sm:$0xf] }
 0x6b1   : > { %v9248_v16 = vpop.f32.mrf.mxu3 }
 0x6b2   : > { %v9249_v62 = vadd.f32 %v9248_v16, %v9235_v31  ;;  %v16841_v31 = vld [vmem:[#allocation12 + $0x174] sm:$0xf0] }
 0x6b3   : > { %v9222_v25 = vpop.f32.mrf.mxu1  ;;  %v15307_v37 = vor.u32 %v16841_v31, %v15306_v59  ;;  %v16851_v59 = vld [vmem:[#allocation12 + $0x1cc] sm:$0xf] }
 0x6b4   : > { %v9223_v58 = vadd.f32 %v9222_v25, %v9209_v2  ;;  %v9310_v1 = vmax.f32 %v9249_v62, 0.0  ;;  %v16805_v2 = vld [vmem:[#allocation12 + $0x54] sm:$0xf0]  ;;  %v15146_v62 = vld [vmem:[#allocation12 + $0x28] sm:$0xf] }
 0x6b5   : > { %v16885_v25 = vld [vmem:[#allocation12 + $0x2d4] sm:$0xf0]  ;;  %v15147_v53 = vor.u32 %v16801_v5, %v15146_v62  ;;  %v15196_v62 = vld [vmem:[#allocation12 + $0x98] sm:$0xf0] }
 0x6b6   : > { %v9313_v27 = vmax.f32 %v9223_v58, 0.0 }
 0x6b8   : > { %v18393_v9 = vpack.c.bf16 %v9313_v27, %v9309_v30  ;;  %v15626_v30 = vld [vmem:[#allocation12 + $0x3e8] sm:$0xf]  ;;  %v16921_v27 = vld [vmem:[#allocation12 + $0x3f4] sm:$0xf0] }
 0x6b9   : > { %v9250_v46 = vpop.f32.mrf.mxu3  ;;  %v15627_v43 = vor.u32 %v16921_v27, %v15626_v30  ;;  %v15402_v30 = vld [vmem:[#allocation12 + $0x228] sm:$0xf]  ;;  %v16865_v27 = vld [vmem:[#allocation12 + $0x234] sm:$0xf0] }
 0x6ba   : > { %v9251_v22 = vadd.f32 %v9250_v46, %v9237_v20  ;;  %10107 = vmatmul.bf16.vlgmr.msra.gmra.mxu0 %v18393_v9  ;;  %v15483_v20 = vor.u32 %v16885_v25, %v15482_v17  ;;  %v15562_v25 = vld [vmem:[#allocation12 + $0x368] sm:$0xf] }
 0x6bb   : > { %10211 = vmatpush.bf16.msra.mxu0 %v15243_v63  ;;  %v9276_v54 = vpop.f32.mrf.mxu1  ;;  %v15163_v63 = vor.u32 %v16805_v2, %v15162_v3  ;;  %v15259_v3 = vor.u32 %v16829_v35, %v15258_v52  ;;  %v15212_v2 = vld [vmem:[#allocation12 + $0xb8] sm:$0xf0] }
 0x6bc   : > { %v9314_v7 = vmax.f32 %v9251_v22, 0.0  ;;  %v9277_v36 = vadd.f32 %v9276_v54, %v9263_v33  ;;  %v15466_v22 = vld [vmem:[#allocation12 + $0x2a8] sm:$0xf] }
 0x6bd   : > { %v15467_v11 = vor.u32 %v16881_v41, %v15466_v22  ;;  %v15403_v22 = vor.u32 %v16865_v27, %v15402_v30  ;;  %v16847_v41 = vld [vmem:[#allocation12 + $0x1ac] sm:$0xf]  ;;  %v15276_v27 = vld [vmem:[#allocation12 + $0x138] sm:$0xf0] }
 0x6be   : > { %v18397_v47 = vpack.c.bf16 %v9314_v7, %v9310_v1  ;;  %v9311_v42 = vmax.f32 %v9277_v36, 0.0  ;;  %v15610_v1 = vld [vmem:[#allocation12 + $0x3c8] sm:$0xf]  ;;  %v16917_v7 = vld [vmem:[#allocation12 + $0x3d4] sm:$0xf0] }
 0x6bf   : > { %10212 = vmatpush.bf16.msra.mxu0 %v15227_v23  ;;  %v16837_v23 = vld [vmem:[#allocation12 + $0x154] sm:$0xf0]  ;;  %v15611_v33 = vor.u32 %v16917_v7, %v15610_v1  ;;  %v16807_v1 = vld [vmem:[#allocation12 + $0x6c] sm:$0xf] }
 0x6c0   : > { %10121 = vmatmul.bf16.vlgmr.msra.gmra.mxu1 %v18397_v47  ;;  %v16831_v30 = vld [vmem:[#allocation12 + $0x12c] sm:$0xf] }
 0x6c1   : > { %10225 = vmatpush.bf16.msra.mxu1 %v15371_v15  ;;  %v9304_v26 = vpop.f32.mrf.mxu3  ;;  %v15130_v15 = vld [vmem:[#allocation12 + $0x8] sm:$0xf] }
 0x6c2   : > { %v9305_v16 = vadd.f32 %v9304_v26, %v9291_v21  ;;  %v15274_v26 = vld [vmem:[#allocation12 + $0x128] sm:$0xf]  ;;  %v15131_v36 = vor.u32 %v16797_v39, %v15130_v15  ;;  %v16909_v21 = vld [vmem:[#allocation12 + $0x394] sm:$0xf0]  ;;  %v15500_v15 = vld [vmem:[#allocation12 + $0x2f8] sm:$0xf0] }
 0x6c3   : > { %10213 = vmatpush.bf16.msra.mxu0 %v15211_v8  ;;  %v9278_v6 = vpop.f32.mrf.mxu1  ;;  %v15291_v8 = vor.u32 %v16837_v23, %v15290_v49  ;;  %v15386_v49 = vld [vmem:[#allocation12 + $0x208] sm:$0xf]  ;;  %v16861_v23 = vld [vmem:[#allocation12 + $0x214] sm:$0xf0] }
 0x6c4   : > { %v9279_v61 = vadd.f32 %v9278_v6, %v9265_v51  ;;  %v9312_v45 = vmax.f32 %v9305_v16, 0.0  ;;  %v16913_v51 = vld [vmem:[#allocation12 + $0x3b4] sm:$0xf0]  ;;  %v15434_v6 = vld [vmem:[#allocation12 + $0x268] sm:$0xf] }
 0x6c5   : > { %10226 = vmatpush.bf16.msra.mxu1 %v15355_v12  ;;  %v16833_v12 = vld [vmem:[#allocation12 + $0x134] sm:$0xf0]  ;;  %v16815_v16 = vld [vmem:[#allocation12 + $0xac] sm:$0xf] }
 0x6c6   : > { %v9315_v60 = vmax.f32 %v9279_v61, 0.0  ;;  %v15275_v28 = vor.u32 %v16833_v12, %v15274_v26  ;;  %v15595_v61 = vor.u32 %v16913_v51, %v15594_v19  ;;  %v15215_v31 = vor.u32 %v16815_v16, %v15212_v2  ;;  %v16803_v12 = vld [vmem:[#allocation12 + $0x4c] sm:$0xf]  ;;  %v15164_v51 = vld [vmem:[#allocation12 + $0x58] sm:$0xf0] }
 0x6c7   : > { %10214 = vmatpush.bf16.msra.mxu0 %v15195_v55  ;;  %v16873_v55 = vld [vmem:[#allocation12 + $0x274] sm:$0xf0]  ;;  %v15531_v19 = vor.u32 %v16897_v34, %v15530_v32  ;;  %v15167_v52 = vor.u32 %v16803_v12, %v15164_v51  ;;  %v15612_v16 = vld [vmem:[#allocation12 + $0x3d8] sm:$0xf0] }
 0x6c8   : > { %v18401_v13 = vpack.c.bf16 %v9315_v60, %v9311_v42  ;;  %v15435_v42 = vor.u32 %v16873_v55, %v15434_v6  ;;  %v16855_v60 = vld [vmem:[#allocation12 + $0x1ec] sm:$0xf]  ;;  %v15514_v6 = vld [vmem:[#allocation12 + $0x308] sm:$0xf]  ;;  %v16893_v55 = vld [vmem:[#allocation12 + $0x314] sm:$0xf0] }
 0x6c9   : > { %10227 = vmatpush.bf16.msra.mxu1 %v15339_v10  ;;  %v9306_v58 = vpop.f32.mrf.mxu3  ;;  %v15578_v10 = vld [vmem:[#allocation12 + $0x388] sm:$0xf]  ;;  %v15375_v17 = vor.u32 %v16855_v60, %v15372_v50  ;;  %v16879_v60 = vld [vmem:[#allocation12 + $0x2ac] sm:$0xf]  ;;  %v15468_v50 = vld [vmem:[#allocation12 + $0x2b8] sm:$0xf0] }
 0x6ca   : > { %v9307_v56 = vadd.f32 %v9306_v58, %v9293_v38  ;;  %10135 = vmatmul.bf16.vlgmr.msra.gmra.mxu2 %v18401_v13  ;;  %10163 = vmatmul.bf16.vlgmr.msrb.gmra.mxu0 %v18393_v9  ;;  %v15579_v38 = vor.u32 %v16909_v21, %v15578_v10  ;;  %v16905_v58 = vld [vmem:[#allocation12 + $0x374] sm:$0xf0]  ;;  %v16799_v10 = vld [vmem:[#allocation12 + $0x2c] sm:$0xf]  ;;  %v15515_v21 = vor.u32 %v16893_v55, %v15514_v6  ;;  %v15564_v32 = vld [vmem:[#allocation12 + $0x378] sm:$0xf0] }
 0x6cb   : > { %10215 = vmatpush.bf16.msra.mxu0 %v15179_v18  ;;  %10239 = vmatpush.bf16.msra.mxu2 %v15499_v57  ;;  %v15418_v18 = vld [vmem:[#allocation12 + $0x248] sm:$0xf]  ;;  %v16869_v57 = vld [vmem:[#allocation12 + $0x254] sm:$0xf0]  ;;  %v15388_v51 = vld [vmem:[#allocation12 + $0x218] sm:$0xf0] }
 0x6cc   : > { %v9316_v46 = vmax.f32 %v9307_v56, 0.0  ;;  %v15356_v56 = vld [vmem:[#allocation12 + $0x1d8] sm:$0xf0]  ;;  %v16891_v55 = vld [vmem:[#allocation12 + $0x30c] sm:$0xf] }
 0x6cd   : > { %10228 = vmatpush.bf16.msra.mxu1 %v15323_v24  ;;  %v15419_v24 = vor.u32 %v16869_v57, %v15418_v18  ;;  %v15359_v5 = vor.u32 %v16851_v59, %v15356_v56  ;;  %v15631_v18 = vor.u32 %v16919_v44, %v15628_v14  ;;  %v16835_v57 = vld [vmem:[#allocation12 + $0x14c] sm:$0xf]  ;;  %v15452_v59 = vld [vmem:[#allocation12 + $0x298] sm:$0xf0] }
 0x6ce   : > { %v18405_v54 = vpack.c.bf16 %v9316_v46, %v9312_v45  ;;  %v15546_v45 = vld [vmem:[#allocation12 + $0x348] sm:$0xf]  ;;  %v16901_v46 = vld [vmem:[#allocation12 + $0x354] sm:$0xf0] }
 0x6cf   : > { %10216 = vmatpush.bf16.msra.mxu0 %v15163_v63  ;;  %10240 = vmatpush.bf16.msra.mxu2 %v15483_v20  ;;  %v15563_v63 = vor.u32 %v16905_v58, %v15562_v25  ;;  %v16811_v20 = vld [vmem:[#allocation12 + $0x8c] sm:$0xf]  ;;  %v15547_v7 = vor.u32 %v16901_v46, %v15546_v45  ;;  %v15132_v58 = vld [vmem:[#allocation12 + $0x18] sm:$0xf0] }
 0x6d0   : > { %10149 = vmatmul.bf16.vlgmr.msra.gmra.mxu3 %v18405_v54  ;;  %10177 = vmatmul.bf16.vlgmr.msrb.gmra.mxu1 %v18397_v47  ;;  %v16795_v25 = vld [vmem:[#allocation12 + $0xc] sm:$0xf]  ;;  %v15436_v46 = vld [vmem:[#allocation12 + $0x278] sm:$0xf0] }
 0x6d1   : > { %10229 = vmatpush.bf16.msra.mxu1 %v15307_v37  ;;  %10253 = vmatpush.bf16.msra.mxu3 %v15627_v43  ;;  %v15340_v37 = vld [vmem:[#allocation12 + $0x1b8] sm:$0xf0]  ;;  %v15199_v43 = vor.u32 %v16811_v20, %v15196_v62  ;;  %v15135_v62 = vor.u32 %v16795_v25, %v15132_v58  ;;  %v16871_v45 = vld [vmem:[#allocation12 + $0x26c] sm:$0xf] }
 0x6d2   : > { %v15343_v39 = vor.u32 %v16847_v41, %v15340_v37  ;;  %v15596_v20 = vld [vmem:[#allocation12 + $0x3b8] sm:$0xf0]  ;;  %v16827_v37 = vld [vmem:[#allocation12 + $0x10c] sm:$0xf] }
 0x6d3   : > { %10217 = vmatpush.bf16.msra.mxu0 %v15147_v53  ;;  %10241 = vmatpush.bf16.msra.mxu2 %v15467_v11  ;;  %v15180_v53 = vld [vmem:[#allocation12 + $0x78] sm:$0xf0]  ;;  %v16887_v11 = vld [vmem:[#allocation12 + $0x2ec] sm:$0xf] }
 0x6d4   : > { %v15183_v4 = vor.u32 %v16807_v1, %v15180_v53  ;;  %v15503_v26 = vor.u32 %v16887_v11, %v15500_v15  ;;  %v15439_v1 = vor.u32 %v16871_v45, %v15436_v46  ;;  %v15420_v53 = vld [vmem:[#allocation12 + $0x258] sm:$0xf0]  ;;  %v9449_v46 = vld [vmem:[#allocation13] sm:$0xf] }
 0x6d5   : > { %10230 = vmatpush.bf16.msra.mxu1 %v15291_v8  ;;  %10254 = vmatpush.bf16.msra.mxu3 %v15611_v33  ;;  %v15387_v8 = vor.u32 %v16861_v23, %v15386_v49  ;;  %v16843_v33 = vld [vmem:[#allocation12 + $0x18c] sm:$0xf]  ;;  %v15580_v23 = vld [vmem:[#allocation12 + $0x398] sm:$0xf0] }
 0x6d6   : > { %v16907_v49 = vld [vmem:[#allocation12 + $0x38c] sm:$0xf] }
 0x6d7   : > { %10218 = vmatpush.bf16.msra.mxu0 %v15131_v36  ;;  %10242 = vmatpush.bf16.msra.mxu2 %v15451_v40  ;;  %v16883_v36 = vld [vmem:[#allocation12 + $0x2cc] sm:$0xf]  ;;  %v15484_v40 = vld [vmem:[#allocation12 + $0x2d8] sm:$0xf0]  ;;  %v15583_v15 = vor.u32 %v16907_v49, %v15580_v23  ;;  %v9453_v23 = vperm.slane %v9449_v46, 2 }
 0x6d8   : > { %v15487_v35 = vor.u32 %v16883_v36, %v15484_v40  ;;  %v15532_v40 = vld [vmem:[#allocation12 + $0x338] sm:$0xf0] }
 0x6d9   : > { %10231 = vmatpush.bf16.msra.mxu1 %v15275_v28  ;;  %10255 = vmatpush.bf16.msra.mxu3 %v15595_v61  ;;  %v16839_v28 = vld [vmem:[#allocation12 + $0x16c] sm:$0xf]  ;;  %v15308_v61 = vld [vmem:[#allocation12 + $0x178] sm:$0xf0] }
 0x6da   : > { %10191 = vmatmul.bf16.vlgmr.msrb.gmra.mxu2 %v18401_v13  ;;  %10219 = vmatmul.bf16.vlgmr.msra.gmra.mxu0 %v18393_v9 }
 0x6db   : > { %10267 = vmatpush.bf16.msrb.mxu0 %v15247_v29  ;;  %10243 = vmatpush.bf16.msra.mxu2 %v15435_v42  ;;  %v15327_v29 = vor.u32 %v16843_v33, %v15324_v48  ;;  %v15148_v42 = vld [vmem:[#allocation12 + $0x38] sm:$0xf0] }
 0x6dc   : > { %v15151_v2 = vor.u32 %v16799_v10, %v15148_v42  ;;  %v15404_v33 = vld [vmem:[#allocation12 + $0x238] sm:$0xf0] }
 0x6dd   : > { %10232 = vmatpush.bf16.msra.mxu1 %v15259_v3  ;;  %10256 = vmatpush.bf16.msra.mxu3 %v15579_v38  ;;  %v15292_v3 = vld [vmem:[#allocation12 + $0x158] sm:$0xf0]  ;;  %v16915_v38 = vld [vmem:[#allocation12 + $0x3cc] sm:$0xf] }
 0x6de   : > { %v15295_v56 = vor.u32 %v16835_v57, %v15292_v3  ;;  %v16927_v3 = vld [vmem:[%s18488_s9 + $0x28] sm:$0xff] }
 0x6df   : > { %10268 = vmatpush.bf16.msrb.mxu0 %v15231_v0  ;;  %10244 = vmatpush.bf16.msra.mxu2 %v15419_v24  ;;  %v15311_v0 = vor.u32 %v16839_v28, %v15308_v61  ;;  %v16875_v24 = vld [vmem:[#allocation12 + $0x28c] sm:$0xf]  ;;  %v15516_v28 = vld [vmem:[#allocation12 + $0x318] sm:$0xf0] }
 0x6e0   : > { %10205 = vmatmul.bf16.vlgmr.msrb.gmra.mxu3 %v18405_v54  ;;  %10233 = vmatmul.bf16.vlgmr.msra.gmra.mxu1 %v18397_v47  ;;  %v15519_v61 = vor.u32 %v16891_v55, %v15516_v28 }
 0x6e1   : > { %10281 = vmatpush.bf16.msrb.mxu1 %v15375_v17  ;;  %10257 = vmatpush.bf16.msra.mxu3 %v15563_v63  ;;  %v15471_v17 = vor.u32 %v16879_v60, %v15468_v50  ;;  %v16911_v63 = vld [vmem:[#allocation12 + $0x3ac] sm:$0xf] }
 0x6e2   : > { %v15599_v41 = vor.u32 %v16911_v63, %v15596_v20  ;;  %v16922_v63 = vld [vmem:[%s18488_s9] sm:$0xff] }
 0x6e3   : > { %10269 = vmatpush.bf16.msrb.mxu0 %v15215_v31  ;;  %10245 = vmatpush.bf16.msra.mxu2 %v15403_v22  ;;  %v15615_v31 = vor.u32 %v16915_v38, %v15612_v16  ;;  %v15279_v22 = vor.u32 %v16831_v30, %v15276_v27 }
 0x6e5   : > { %10282 = vmatpush.bf16.msrb.mxu1 %v15359_v5  ;;  %10258 = vmatpush.bf16.msra.mxu3 %v15547_v7  ;;  %v15455_v5 = vor.u32 %v16875_v24, %v15452_v59  ;;  %v16867_v7 = vld [vmem:[#allocation12 + $0x24c] sm:$0xf]  ;;  %v16924_v59 = vld [vmem:[%s18488_s9 + $0x10] sm:$0xff] }
 0x6e6   : > { %v15423_v34 = vor.u32 %v16867_v7, %v15420_v53 }
 0x6e7   : > { %10270 = vmatpush.bf16.msrb.mxu0 %v15199_v43  ;;  %10246 = vmatpush.bf16.msra.mxu2 %v15387_v8  ;;  %v15260_v43 = vld [vmem:[#allocation12 + $0x118] sm:$0xf0]  ;;  %v16863_v8 = vld [vmem:[#allocation12 + $0x22c] sm:$0xf] }
 0x6e8   : > { %v15263_v11 = vor.u32 %v16827_v37, %v15260_v43  ;;  %v15407_v12 = vor.u32 %v16863_v8, %v15404_v33  ;;  %v9454_v37 = vperm.slane %v9449_v46, 3  ;;  %v9452_v43 = vperm.slane %v9449_v46, 1 }
 0x6e9   : > { %10283 = vmatpush.bf16.msrb.mxu1 %v15343_v39  ;;  %10259 = vmatpush.bf16.msra.mxu3 %v15531_v19  ;;  %v16903_v39 = vld [vmem:[#allocation12 + $0x36c] sm:$0xf] }
 0x6ea   : > { %10247 = vmatmul.bf16.vlgmr.msra.gmra.mxu2 %v18401_v13  ;;  %v15567_v48 = vor.u32 %v16903_v39, %v15564_v32  ;;  %v16859_v19 = vld [vmem:[#allocation12 + $0x20c] sm:$0xf] }
 0x6eb   : > { %10271 = vmatpush.bf16.msrb.mxu0 %v15183_v4  ;;  %10295 = vmatpush.bf16.msrb.mxu2 %v15503_v26  ;;  %v16899_v4 = vld [vmem:[#allocation12 + $0x34c] sm:$0xf]  ;;  %v15548_v26 = vld [vmem:[#allocation12 + $0x358] sm:$0xf0] }
 0x6ec   : > { %v15551_v36 = vor.u32 %v16899_v4, %v15548_v26 }
 0x6ed   : > { %10284 = vmatpush.bf16.msrb.mxu1 %v15327_v29  ;;  %10260 = vmatpush.bf16.msra.mxu3 %v15515_v21  ;;  %v15391_v29 = vor.u32 %v16859_v19, %v15388_v51 }
 0x6ef   : > { %10272 = vmatpush.bf16.msrb.mxu0 %v15167_v52  ;;  %10296 = vmatpush.bf16.msrb.mxu2 %v15487_v35 }
 0x6f0   : > { %10261 = vmatmul.bf16.vlgmr.msra.gmra.mxu3 %v18405_v54 }
 0x6f1   : > { %10285 = vmatpush.bf16.msrb.mxu1 %v15311_v0  ;;  %10309 = vmatpush.bf16.msrb.mxu3 %v15631_v18  ;;  %v16928_v0 = vld [vmem:[%s18488_s9 + $0x30] sm:$0xff] }
 0x6f3   : > { %10273 = vmatpush.bf16.msrb.mxu0 %v15151_v2  ;;  %10297 = vmatpush.bf16.msrb.mxu2 %v15471_v17  ;;  %v16926_v2 = vld [vmem:[%s18488_s9 + $0x20] sm:$0xff]  ;;  %v16925_v17 = vld [vmem:[%s18488_s9 + $0x18] sm:$0xff] }
 0x6f5   : > { %10286 = vmatpush.bf16.msrb.mxu1 %v15295_v56  ;;  %10310 = vmatpush.bf16.msrb.mxu3 %v15615_v31  ;;  %v16923_v31 = vld [vmem:[%s18488_s9 + $0x8] sm:$0xff] }
 0x6f7   : > { %10274 = vmatpush.bf16.msrb.mxu0 %v15135_v62  ;;  %10298 = vmatpush.bf16.msrb.mxu2 %v15455_v5  ;;  %v16933_v5 = vld [vmem:[#allocation16 + $0x18] sm:$0xff] }
 0x6f9   : > { %10287 = vmatpush.bf16.msrb.mxu1 %v15279_v22  ;;  %10311 = vmatpush.bf16.msrb.mxu3 %v15599_v41 }
 0x6fa   : > { %10275 = vmatmul.bf16.vlgmr.msrb.gmra.mxu0 %v18393_v9  ;;  %v16895_v9 = vld [vmem:[#allocation12 + $0x32c] sm:$0xf] }
 0x6fb   : > { %10299 = vmatpush.bf16.msrb.mxu2 %v15439_v1  ;;  %v15535_v6 = vor.u32 %v16895_v9, %v15532_v40  ;;  %v9451_v1 = vperm.slane %v9449_v46, 0 }
 0x6fd   : > { %10288 = vmatpush.bf16.msrb.mxu1 %v15263_v11  ;;  %10312 = vmatpush.bf16.msrb.mxu3 %v15583_v15 }
 0x6ff   : > { %10300 = vmatpush.bf16.msrb.mxu2 %v15423_v34 }
 0x700   : > { %10289 = vmatmul.bf16.vlgmr.msrb.gmra.mxu1 %v18397_v47 }
 0x701   : > { %10313 = vmatpush.bf16.msrb.mxu3 %v15567_v48  ;;  %10467 = vmatpush.bf16.msra.mxu1 %v16933_v5  ;;  %v16930_v5 = vld [vmem:[#allocation16] sm:$0xff] }
 0x703   : > { %10301 = vmatpush.bf16.msrb.mxu2 %v15407_v12 }
 0x705   : > { %10314 = vmatpush.bf16.msrb.mxu3 %v15551_v36 }
 0x707   : > { %10302 = vmatpush.bf16.msrb.mxu2 %v15391_v29 }
 0x709   : > { %10315 = vmatpush.bf16.msrb.mxu3 %v15535_v6 }
 0x70a   : > { %10303 = vmatmul.bf16.vlgmr.msrb.gmra.mxu2 %v18401_v13  ;;  %v16929_v13 = vld [vmem:[%s18488_s9 + $0x38] sm:$0xff] }
 0x70b   : > { %10406 = vmatpush.bf16.msra.mxu0 %v16929_v13 }
 0x70d   : > { %10316 = vmatpush.bf16.msrb.mxu3 %v15519_v61 }
 0x70f   : > { %10407 = vmatpush.bf16.msra.mxu0 %v16928_v0 }
 0x710   : > { %10317 = vmatmul.bf16.vlgmr.msrb.gmra.mxu3 %v18405_v54 }
 0x713   : > { %10408 = vmatpush.bf16.msra.mxu0 %v16927_v3 }
 0x717   : > { %10409 = vmatpush.bf16.msra.mxu0 %v16926_v2 }
 0x71b   : > { %10410 = vmatpush.bf16.msra.mxu0 %v16925_v17 }
 0x71f   : > { %10411 = vmatpush.bf16.msra.mxu0 %v16924_v59 }
 0x723   : > { %10412 = vmatpush.bf16.msra.mxu0 %v16923_v31 }
 0x727   : > { %10413 = vmatpush.bf16.msra.mxu0 %v16922_v63 }
 0x737   : > { %v10108_v47 = vpop.f32.mrf.mxu0 }
 0x738   : > { %v10109_v32 = vadd.f32 %v10108_v47, %v9451_v1 }
 0x73d   : > { %v18419_v44 = vpop.f32.mrf.mxu1 }
 0x73e   : > { %v10123_v51 = vadd.f32 %v18419_v44, %v10109_v32 }
 0x73f   : > { %v10110_v52 = vpop.f32.mrf.mxu0 }
 0x740   : > { %v10111_v34 = vadd.f32 %v10110_v52, %v9451_v1 }
 0x745   : > { %v10124_v10 = vpop.f32.mrf.mxu1 }
 0x746   : > { %v10125_v36 = vadd.f32 %v10124_v10, %v10111_v34 }
 0x747   : > { %v10164_v42 = vpop.f32.mrf.mxu0 }
 0x748   : > { %v10165_v53 = vadd.f32 %v10164_v42, %v9452_v43 }
 0x74d   : > { %v18421_v14 = vpop.f32.mrf.mxu2  ;;  %v10178_v50 = vpop.f32.mrf.mxu1 }
 0x74e   : > { %v10179_v8 = vadd.f32 %v10178_v50, %v10165_v53  ;;  %v10137_v47 = vadd.f32 %v18421_v14, %v10123_v51  ;;  %v16935_v53 = vld [vmem:[%s18492_s13 + $0x8] sm:$0xff] }
 0x74f   : > { %v10166_v18 = vpop.f32.mrf.mxu0 }
 0x750   : > { %v10167_v11 = vadd.f32 %v10166_v18, %v9452_v43 }
 0x753   : > { %v18423_v35 = vpop.f32.mrf.mxu3 }
 0x754   : > { %v10151_v44 = vadd.f32 %v18423_v35, %v10137_v47 }
 0x755   : > { %v18425_v21 = vpop.f32.mrf.mxu2  ;;  %v10180_v38 = vpop.f32.mrf.mxu1 }
 0x756   : > { %v10181_v33 = vadd.f32 %v10180_v38, %v10167_v11  ;;  %v10139_v52 = vadd.f32 %v18425_v21, %v10125_v36  ;;  %v10323_v59 = vmax.f32 %v10151_v44, 0.0  ;;  %v16934_v11 = vld [vmem:[%s18492_s13] sm:$0xff] }
 0x757   : > { %v10220_v25 = vpop.f32.mrf.mxu0 }
 0x758   : > { %v10221_v15 = vadd.f32 %v10220_v25, %v9453_v23 }
 0x75b   : > { %v18427_v60 = vpop.f32.mrf.mxu3 }
 0x75c   : > { %v10153_v10 = vadd.f32 %v18427_v60, %v10139_v52  ;;  %v16932_v60 = vld [vmem:[#allocation16 + $0x10] sm:$0xff] }
 0x75d   : > { %v10192_v54 = vpop.f32.mrf.mxu2  ;;  %v10234_v24 = vpop.f32.mrf.mxu1  ;;  %10468 = vmatpush.bf16.msra.mxu1 %v16932_v60 }
 0x75e   : > { %v10235_v26 = vadd.f32 %v10234_v24, %v10221_v15  ;;  %v10193_v9 = vadd.f32 %v10192_v54, %v10179_v8  ;;  %v10327_v21 = vmax.f32 %v10153_v10, 0.0 }
 0x75f   : > { %v10222_v30 = vpop.f32.mrf.mxu0 }
 0x760   : > { %v10223_v12 = vadd.f32 %v10222_v30, %v9453_v23 }
 0x763   : > { %v10206_v57 = vpop.f32.mrf.mxu3 }
 0x764   : > { %v10207_v42 = vadd.f32 %v10206_v57, %v10193_v9 }
 0x765   : > { %v10194_v16 = vpop.f32.mrf.mxu2  ;;  %v10236_v20 = vpop.f32.mrf.mxu1 }
 0x766   : > { %v10195_v40 = vadd.f32 %v10194_v16, %v10181_v33  ;;  %v10237_v6 = vadd.f32 %v10236_v20, %v10223_v12  ;;  %v10324_v17 = vmax.f32 %v10207_v42, 0.0 }
 0x768   : > { %v10331_v31 = vmax.f32 %v10323_v59, %v10324_v17 }
 0x76b   : > { %v10208_v58 = vpop.f32.mrf.mxu3 }
 0x76c   : > { %v10209_v13 = vadd.f32 %v10208_v58, %v10195_v40 }
 0x76d   : > { %v10248_v56 = vpop.f32.mrf.mxu2 }
 0x76e   : > { %v10249_v55 = vadd.f32 %v10248_v56, %v10235_v26  ;;  %v10328_v25 = vmax.f32 %v10209_v13, 0.0  ;;  %v17077_v26 = vld [vmem:[#allocation19] ss:$0 sm:$0xff] }
 0x770   : > { %v10332_v30 = vmax.f32 %v10327_v21, %v10328_v25 }
 0x773   : > { %v10262_v27 = vpop.f32.mrf.mxu3 }
 0x774   : > { %v10263_v0 = vadd.f32 %v10262_v27, %v10249_v55 }
 0x775   : > { %v10250_v62 = vpop.f32.mrf.mxu2 }
 0x776   : > { %v10251_v18 = vadd.f32 %v10250_v62, %v10237_v6  ;;  %v10325_v24 = vmax.f32 %v10263_v0, 0.0  ;;  %v16931_v62 = vld [vmem:[#allocation16 + $0x8] sm:$0xff] }
 0x777   : > { %v10276_v45 = vpop.f32.mrf.mxu0  ;;  %10469 = vmatpush.bf16.msra.mxu1 %v16931_v62 }
 0x778   : > { %v10277_v7 = vadd.f32 %v10276_v45, %v9454_v37  ;;  %v16937_v45 = vld [vmem:[%s18492_s13 + $0x18] sm:$0xff] }
 0x779   : > { %10523 = vmatpush.bf16.msra.mxu2 %v16937_v45 }
 0x77b   : > { %v10264_v41 = vpop.f32.mrf.mxu3  ;;  %10470 = vmatpush.bf16.msra.mxu1 %v16930_v5 }
 0x77c   : > { %v10265_v54 = vadd.f32 %v10264_v41, %v10251_v18 }
 0x77d   : > { %v10290_v22 = vpop.f32.mrf.mxu1 }
 0x77e   : > { %v10291_v39 = vadd.f32 %v10290_v22, %v10277_v7  ;;  %v10329_v57 = vmax.f32 %v10265_v54, 0.0  ;;  %v17075_v22 = vld [vmem:[#allocation15] ss:$0 sm:$0xff]  ;;  %v16936_v7 = vld [vmem:[%s18492_s13 + $0x10] sm:$0xff] }
 0x77f   : > { %v10278_v48 = vpop.f32.mrf.mxu0  ;;  %10524 = vmatpush.bf16.msra.mxu2 %v16936_v7 }
 0x780   : > { %v10279_v28 = vadd.f32 %v10278_v48, %v9454_v37 }
 0x783   : > { %10525 = vmatpush.bf16.msra.mxu2 %v16935_v53 }
 0x785   : > { %v10292_v29 = vpop.f32.mrf.mxu1 }
 0x786   : > { %v10293_v3 = vadd.f32 %v10292_v29, %v10279_v28 }
 0x787   : > { %10526 = vmatpush.bf16.msra.mxu2 %v16934_v11 }
 0x78d   : > { %v10304_v49 = vpop.f32.mrf.mxu2 }
 0x78e   : > { %v10305_v19 = vadd.f32 %v10304_v49, %v10291_v39  ;;  %v17076_v39 = vld [vmem:[#allocation18] ss:$0 sm:$0xff] }
 0x793   : > { %v10318_v4 = vpop.f32.mrf.mxu3 }
 0x794   : > { %v10319_v61 = vadd.f32 %v10318_v4, %v10305_v19 }
 0x795   : > { %v10306_v50 = vpop.f32.mrf.mxu2 }
 0x796   : > { %v10326_v38 = vmax.f32 %v10319_v61, 0.0  ;;  %v10307_v16 = vadd.f32 %v10306_v50, %v10293_v3 }
 0x798   : > { %v10333_v56 = vmax.f32 %v10325_v24, %v10326_v38 }
 0x79a   : > { %v10335_v63 = vmax.f32 %v10331_v31, %v10333_v56 }
 0x79b   : > { %v10320_v2 = vpop.f32.mrf.mxu3 }
 0x79c   : > { %v10321_v14 = vadd.f32 %v10320_v2, %v10307_v16 }
 0x79e   : > { %v10330_v58 = vmax.f32 %v10321_v14, 0.0 }
 0x7a0   : > { %v10334_v27 = vmax.f32 %v10329_v57, %v10330_v58 }
 0x7a2   : > { %v10336_v35 = vmax.f32 %v10332_v30, %v10334_v27 }
 0x7a4   : > { %v10337_v20 = vpack.c.bf16 %v10336_v35, %v10335_v63 }
 0x7a6   : > { %10414 = vmatmul.bf16.vlgmr.msra.gmra.mxu0 %v10337_v20 }
 0x823   : > { %v10415_v46 = vpop.f32.mrf.mxu0 }
 0x824   : > { %v10416_v41 = vadd.f32 %v17075_v22, %v10415_v46 }
 0x826   : > { %v10420_v49 = vmax.f32 %v10416_v41, 0.0 }
 0x82b   : > { %v10417_v37 = vpop.f32.mrf.mxu0 }
 0x82c   : > { %v10418_v43 = vadd.f32 %v17075_v22, %v10417_v37 }
 0x82e   : > { %v10421_v23 = vmax.f32 %v10418_v43, 0.0 }
 0x830   : > { %v10422_v1 = vpack.c.bf16 %v10421_v23, %v10420_v49 }
 0x832   : > { %15680 = vmatmul.msk.bf16.vlgmr.msra.gmra.mxu1 %vm10459_vm0, %v10422_v1 }
 0x8af   : > { %v10472_v15 = vpop.f32.mrf.mxu1 }
 0x8b0   : > { %v10473_v32 = vadd.f32 %v17076_v39, %v10472_v15 }
 0x8b2   : > { %v10477_v33 = vmax.f32 %v10473_v32, 0.0 }
 0x8b7   : > { %v10474_v34 = vpop.f32.mrf.mxu1 }
 0x8b8   : > { %v10475_v8 = vadd.f32 %v17076_v39, %v10474_v34 }
 0x8ba   : > { %v10478_v48 = vmax.f32 %v10475_v8, 0.0 }
 0x8bc   : > { %v10479_v4 = vpack.c.bf16 %v10478_v48, %v10477_v33 }
 0x8be   : > { %15697 = vmatmul.msk.bf16.vlgmr.msra.gmra.mxu2 %vm10459_vm0, %v10479_v4 }
 0x941   : > { %v10528_v12 = vpop.f32.mrf.mxu2 }
 0x942   : > { %v10529_v19 = vadd.f32 %v17077_v26, %v10528_v12 }
 0x944   : > { %17078 = vtanh.f32 %v10529_v19 }
 0x949   : > { %v10530_v51 = vpop.f32.mrf.mxu2 }
 0x94a   : > { %v17079_v36 = vpop.eup %17078  ;;  %v10531_v9 = vadd.f32 %v17077_v26, %v10530_v51 }
 0x94b   : > { %10536 = vst.msk [vmem:[%s684_s29] sm:$0xff] %vm10535_vm1, %v17079_v36 }
 0x94c   : > { %17080 = vtanh.f32 %v10531_v9 }
 0x952   : > { %v17081_v40 = vpop.eup %17080 }
 0x953   : > { %10537 = vst.msk [vmem:[%s684_s29 + $0x8] sm:$0xff] %vm10535_vm1, %v17081_v40 }
 0x954 PF: > { %s32_s18 = sadd.s32 1, %s17481_s18  }
 0x955   : > { %p29_p7 = scmp.ge.s32.totalorder %s32_s18, 4  }
 0x957   :  { %31 = sbr.rel (!%p29_p7) target bundleno = 13 (0xd), region = 159 }
 0x95c   :  { %10560 = vsyncpa [#allocation3], 1 }
 0x95d   :  { %10562 = vsyncpa [#allocation3 + $0x1], 1 }
 0x95e   :  { %10563 = vsyncpa [#allocation5], 1 }
 0x95f   :  { %10564 = vsyncpa [#allocation8], 1 }
 0x960   :  { %10565 = vsyncpa [#allocation11], 1 }
 0x961   :  { %10566 = vsyncpa [#allocation14], 1 }
 0x962   :  { %10567 = vsyncpa [#allocation17], 1 }
 0x963   :  { %10568 = vsyncpa [#allocation20], 1 }

</bundles_post_ra>
